<compile_context>
chip_gen: v7x
topology: tpu7x:2x2x1
jax: 0.10.0
libtpu: 0.0.40
codegen_flags: <defaults>
</compile_context>

<pallas_src>
import functools
import math

import jax
import jax.numpy as jnp
from jax.experimental import pallas as pl
from jax.experimental.pallas import tpu as pltpu

# ----------------------------- hyperparameters (small config) -----------------
EMBED_DIM = 32            # d_model
NUM_HEADS = 4
FF_DIM = 64
NUM_LAYERS = 2
MAX_LEN = 25
LN_EPS = 1e-5
HEAD_DIM = EMBED_DIM // NUM_HEADS

LANES = 128               # slab lane width and logits padding
SUBLANES = 8              # every packed param starts on a sublane-aligned row
MXU_DTYPE = jnp.bfloat16  # matmul operand dtype; accumulation stays f32
GRID_STEPS = 1            # 1 for v5e/v6e (single TC); set 2 on v7x (one step per TC)


def _round_up(x, m):
    return ((x + m - 1) // m) * m


# ----------------------------- packed weight-slab layout ----------------------
def build_layout(src_vocab, tgt_vocab):
    """Static map: name -> (row_offset, rows, cols) inside the (ROWS, 128) f32 slab."""
    E, F, L = EMBED_DIM, FF_DIM, NUM_LAYERS
    vpad = _round_up(tgt_vocab, LANES)
    entries = [("enc_embed", src_vocab, E), ("dec_embed", tgt_vocab, E),
               ("pos_embed", MAX_LEN, E)]
    for l in range(L):
        entries += [
            (f"enc{l}_qkv_w", E, 3 * E), (f"enc{l}_qkv_b", 1, 3 * E),
            (f"enc{l}_out_w", E, E), (f"enc{l}_out_b", 1, E),
            (f"enc{l}_ff1_w", E, F), (f"enc{l}_ff1_b", 1, F),
            (f"enc{l}_ff2_w", F, E), (f"enc{l}_ff2_b", 1, E),
            (f"enc{l}_ln1_g", 1, E), (f"enc{l}_ln1_b", 1, E),
            (f"enc{l}_ln2_g", 1, E), (f"enc{l}_ln2_b", 1, E),
        ]
    entries += [("enc_norm_g", 1, E), ("enc_norm_b", 1, E)]
    for l in range(L):
        entries += [
            (f"dec{l}_sa_qkv_w", E, 3 * E), (f"dec{l}_sa_qkv_b", 1, 3 * E),
            (f"dec{l}_sa_out_w", E, E), (f"dec{l}_sa_out_b", 1, E),
            (f"dec{l}_ca_q_w", E, E), (f"dec{l}_ca_q_b", 1, E),
            (f"dec{l}_ca_kv_w", E, 2 * E), (f"dec{l}_ca_kv_b", 1, 2 * E),
            (f"dec{l}_ca_out_w", E, E), (f"dec{l}_ca_out_b", 1, E),
            (f"dec{l}_ff1_w", E, F), (f"dec{l}_ff1_b", 1, F),
            (f"dec{l}_ff2_w", F, E), (f"dec{l}_ff2_b", 1, E),
            (f"dec{l}_ln1_g", 1, E), (f"dec{l}_ln1_b", 1, E),
            (f"dec{l}_ln2_g", 1, E), (f"dec{l}_ln2_b", 1, E),
            (f"dec{l}_ln3_g", 1, E), (f"dec{l}_ln3_b", 1, E),
        ]
    entries += [("dec_norm_g", 1, E), ("dec_norm_b", 1, E),
                ("fc_w", E, vpad), ("fc_b", 1, vpad)]
    layout, off = {}, 0
    for name, r, c in entries:
        layout[name] = (off, r, c)
        off += _round_up(r, SUBLANES)       # keep every param sublane-aligned
    return layout, off, vpad


def init_slab(key, src_vocab, tgt_vocab):
    """Deterministic init of the single packed f32 weight slab."""
    layout, total_rows, vpad = build_layout(src_vocab, tgt_vocab)
    slab = jnp.zeros((total_rows, LANES), jnp.float32)
    for i, (name, (off, r, c)) in enumerate(layout.items()):
        if name == "fc_w":
            # only the real vocab columns are non-zero -> padded logits are exactly 0
            w = 0.02 * jax.random.normal(jax.random.fold_in(key, i),
                                         (r, tgt_vocab), jnp.float32)
            val = jnp.pad(w, ((0, 0), (0, vpad - tgt_vocab)))
        elif name.endswith("_g"):                                     # LN gains
            val = jnp.ones((r, c), jnp.float32)
        elif name.endswith("_b"):                                     # biases / LN shifts
            continue                                                  # already zero
        else:                                                         # weights + embeds
            val = 0.02 * jax.random.normal(jax.random.fold_in(key, i),
                                           (r, c), jnp.float32)
        slab = slab.at[off:off + r, :c].set(val)
    return slab, layout, vpad


# ----------------------------- fused Pallas kernel ----------------------------
def _make_kernel(layout, Bp, Ss, St):
    """Whole encoder-decoder forward for Bp batch elements (one grid step)."""
    E, H, DH, F32 = EMBED_DIM, NUM_HEADS, HEAD_DIM, jnp.float32
    scale = 1.0 / math.sqrt(DH)

    def kernel(src_ids, tgt_ids, w_ref, out_ref, x_scr, y_scr):
        # ---- static-offset views into the packed weight slab ----
        def get(name):
            off, r, c = layout[name]
            return w_ref[off:off + r, :c]

        def layer_norm(v, gname, bname):
            # torch LayerNorm semantics (biased variance), all f32.
            mu = jnp.mean(v, axis=-1, keepdims=True)
            vc = v - mu
            var = jnp.mean(vc * vc, axis=-1, keepdims=True)
            return vc * jax.lax.rsqrt(var + LN_EPS) * get(gname) + get(bname)

        def lin(v, wname, bname):
            w = get(wname).astype(MXU_DTYPE)
            return jnp.dot(v.astype(MXU_DTYPE), w,
                           preferred_element_type=F32) + get(bname)

        def softmax(scores):
            m = jnp.max(scores, axis=-1, keepdims=True)
            e = jnp.exp(scores - m)
            # EUP reciprocal (approx) — fine for inference, not for bit-parity tests.
            return e * pl.reciprocal(jnp.sum(e, axis=-1, keepdims=True), approx=True)

        def mha(q, k, v, out_wname, out_bname, Sq, Sk, bias):
            # q:(Bp*Sq,E), k/v:(Bp*Sk,E), batch-major.  The head concat is folded into
            # the output projection: acc += (p @ v_h) @ W_out[h*DH:(h+1)*DH, :]
            # (sublane-aligned 8-row slices of W_out, no lane concatenation).
            w_out = get(out_wname).astype(MXU_DTYPE)
            outs = []
            for b in range(Bp):
                qb = q[b * Sq:(b + 1) * Sq].astype(MXU_DTYPE)
                kb = k[b * Sk:(b + 1) * Sk].astype(MXU_DTYPE)
                vb = v[b * Sk:(b + 1) * Sk].astype(MXU_DTYPE)
                acc = None
                for h in range(H):
                    sl = slice(h * DH, (h + 1) * DH)
                    # contract last axes of both operands: no materialized k transpose
                    scores = jax.lax.dot_general(
                        qb[:, sl], kb[:, sl], (((1,), (1,)), ((), ())),
                        preferred_element_type=F32) * scale
                    if bias is not None:
                        scores = scores + bias
                    p = softmax(scores)
                    ctx = jnp.dot(p.astype(MXU_DTYPE), vb[:, sl],
                                  preferred_element_type=F32)
                    contrib = jnp.dot(ctx.astype(MXU_DTYPE), w_out[sl, :],
                                      preferred_element_type=F32)
                    acc = contrib if acc is None else acc + contrib
                outs.append(acc)
            o = outs[0] if Bp == 1 else jnp.concatenate(outs, axis=0)
            return o + get(out_bname)

        # ---- in-kernel embedding gather + positional add (no XLA gathers) ----
        b0 = pl.program_id(0) * Bp                      # first batch element this step
        enc_off = layout["enc_embed"][0]
        dec_off = layout["dec_embed"][0]
        pos_off = layout["pos_embed"][0]
        for b in range(Bp):
            for si in range(Ss):
                tok = src_ids[b0 + b, si]
                row = (w_ref[pl.ds(enc_off + tok, 1), :][:, :E]
                       + w_ref[pos_off + si:pos_off + si + 1, :E])
                x_scr[b * Ss + si:b * Ss + si + 1, :] = row
            for si in range(St):
                tok = tgt_ids[b0 + b, si]
                row = (w_ref[pl.ds(dec_off + tok, 1), :][:, :E]
                       + w_ref[pos_off + si:pos_off + si + 1, :E])
                y_scr[b * St + si:b * St + si + 1, :] = row
        x = x_scr[...]            # (Bp*Ss, E) encoder stream, batch folded into M
        y = y_scr[...]            # (Bp*St, E) decoder stream

        # ---- encoder (post-norm layers) ----
        for l in range(NUM_LAYERS):
            qkv = lin(x, f"enc{l}_qkv_w", f"enc{l}_qkv_b")           # fused QKV
            sa = mha(qkv[:, :E], qkv[:, E:2 * E], qkv[:, 2 * E:],
                     f"enc{l}_out_w", f"enc{l}_out_b", Ss, Ss, None)
            x = layer_norm(x + sa, f"enc{l}_ln1_g", f"enc{l}_ln1_b")
            h1 = jnp.maximum(lin(x, f"enc{l}_ff1_w", f"enc{l}_ff1_b"), 0.0)
            ff = lin(h1, f"enc{l}_ff2_w", f"enc{l}_ff2_b")
            x = layer_norm(x + ff, f"enc{l}_ln2_g", f"enc{l}_ln2_b")
        memory = layer_norm(x, "enc_norm_g", "enc_norm_b")

        # causal bias built ONCE (hoisted out of the unrolled decoder layers)
        rows = jax.lax.broadcasted_iota(jnp.int32, (St, St), 0)
        cols = jax.lax.broadcasted_iota(jnp.int32, (St, St), 1)
        causal = jnp.where(rows >= cols, 0.0, -1e30).astype(F32)

        # ---- decoder (post-norm layers) ----
        for l in range(NUM_LAYERS):
            qkv = lin(y, f"dec{l}_sa_qkv_w", f"dec{l}_sa_qkv_b")     # fused QKV
            sa = mha(qkv[:, :E], qkv[:, E:2 * E], qkv[:, 2 * E:],
                     f"dec{l}_sa_out_w", f"dec{l}_sa_out_b", St, St, causal)
            y = layer_norm(y + sa, f"dec{l}_ln1_g", f"dec{l}_ln1_b")

            qc = lin(y, f"dec{l}_ca_q_w", f"dec{l}_ca_q_b")
            kv = lin(memory, f"dec{l}_ca_kv_w", f"dec{l}_ca_kv_b")   # fused KV
            ca = mha(qc, kv[:, :E], kv[:, E:],
                     f"dec{l}_ca_out_w", f"dec{l}_ca_out_b", St, Ss, None)
            y = layer_norm(y + ca, f"dec{l}_ln2_g", f"dec{l}_ln2_b")

            h1 = jnp.maximum(lin(y, f"dec{l}_ff1_w", f"dec{l}_ff1_b"), 0.0)
            ff = lin(h1, f"dec{l}_ff2_w", f"dec{l}_ff2_b")
            y = layer_norm(y + ff, f"dec{l}_ln3_g", f"dec{l}_ln3_b")
        y = layer_norm(y, "dec_norm_g", "dec_norm_b")

        # ---- output head: lane-dense, vocab already padded to 128 in the slab ----
        out_ref[...] = lin(y, "fc_w", "fc_b").astype(out_ref.dtype)

    return kernel


# ----------------------------- cost estimate (advisory) -----------------------
def _cost(B, Ss, St, vpad, slab):
    E, F, H, DH, L = EMBED_DIM, FF_DIM, NUM_HEADS, HEAD_DIM, NUM_LAYERS
    Me, Md = B * Ss, B * St
    mm = lambda m, k, n: 2 * m * k * n
    attn = lambda sq, sk: B * H * (mm(sq, DH, sk) + mm(sq, sk, DH) + mm(sq, DH, E))
    flops = L * (mm(Me, E, 3 * E) + attn(Ss, Ss) + mm(Me, E, F) + mm(Me, F, E))
    flops += L * (mm(Md, E, 3 * E) + attn(St, St)
                  + mm(Md, E, E) + mm(Me, E, 2 * E) + attn(St, Ss)
                  + mm(Md, E, F) + mm(Md, F, E))
    flops += mm(Md, E, vpad)
    transc = L * B * H * (Ss * Ss + St * St + St * Ss)
    bytes_acc = slab.size * 4 + (B * Ss + B * St) * 4 + B * St * vpad * 4
    return int(flops), int(transc), int(bytes_acc)


# ----------------------------- wrapper -----------------------------------------
def forward(slab, src_ids, tgt_ids, *, layout, vpad):
    B, Ss = src_ids.shape
    _, St = tgt_ids.shape
    assert Ss <= MAX_LEN and St <= MAX_LEN, "sequence length exceeds MAX_LEN pos table"
    assert B % GRID_STEPS == 0, "batch must divide GRID_STEPS"
    Bp = B // GRID_STEPS

    kernel = _make_kernel(layout, Bp, Ss, St)
    flops, transc, bytes_acc = _cost(B, Ss, St, vpad, slab)

    out = pl.pallas_call(
        kernel,
        out_shape=jax.ShapeDtypeStruct((B * St, vpad), jnp.float32),
        grid_spec=pltpu.PrefetchScalarGridSpec(
            num_scalar_prefetch=2,                 # src/tgt token ids land in SMEM
            grid=(GRID_STEPS,),
            in_specs=[
                # single packed weight slab; same block every step -> fetched once
                pl.BlockSpec(slab.shape, lambda g, s_ids, t_ids: (0, 0)),
            ],
            out_specs=pl.BlockSpec((Bp * St, vpad), lambda g, s_ids, t_ids: (g, 0)),
            scratch_shapes=[
                pltpu.VMEM((Bp * Ss, EMBED_DIM), jnp.float32),   # embedded src stream
                pltpu.VMEM((Bp * St, EMBED_DIM), jnp.float32),   # embedded tgt stream
            ]),
        compiler_params=pltpu.CompilerParams(
            dimension_semantics=("parallel",)),    # splits batch across TCs if GRID_STEPS=2
        cost_estimate=pl.CostEstimate(flops=flops, transcendentals=transc,
                                      bytes_accessed=bytes_acc),
    )(src_ids.astype(jnp.int32), tgt_ids.astype(jnp.int32), slab)

    # Return 128-padded lane-dense logits (pad columns are exactly zero); the vocab
    # slice is kept out of the fused hot path per perf feedback.
    return out.reshape(B, St, vpad)


# ----------------------------- main ---------------------------------------------
if __name__ == "__main__":
    key = jax.random.PRNGKey(0)
    k_param, k_src, k_tgt = jax.random.split(key, 3)

    src_vocab_size, tgt_vocab_size = 50, 60
    B, S_src, S_tgt = 2, 8, 8                      # seq lens <= MAX_LEN

    slab, layout, vpad = init_slab(k_param, src_vocab_size, tgt_vocab_size)
    src = jax.random.randint(k_src, (B, S_src), 0, src_vocab_size, dtype=jnp.int32)
    tgt = jax.random.randint(k_tgt, (B, S_tgt), 0, tgt_vocab_size, dtype=jnp.int32)

    fwd = jax.jit(functools.partial(forward, layout=layout, vpad=vpad))
    logits_padded = fwd(slab, src, tgt)
    jax.block_until_ready(logits_padded)

    assert logits_padded.shape == (B, S_tgt, vpad), logits_padded.shape
    assert bool(jnp.all(jnp.isfinite(logits_padded)))
    # Module-equivalent logits (pad columns are exactly zero); sliced only here,
    # outside the fused hot path.
    logits = logits_padded[:, :, :tgt_vocab_size]
    assert logits.shape == (B, S_tgt, tgt_vocab_size), logits.shape
    print("KERNEL_OK")
</pallas_src>

<mosaic_0001>
module attributes {stable_mosaic.version = 11 : i64} {
  func.func @kernel(%arg0: i32, %arg1: memref<2x8xi32, #tpu.memory_space<smem>>, %arg2: memref<2x8xi32, #tpu.memory_space<smem>>, %arg3: memref<1392x128xf32, #tpu.memory_space<vmem>>, %arg4: memref<16x128xf32, #tpu.memory_space<vmem>>, %arg5: memref<16x32xf32, #tpu.memory_space<vmem>>, %arg6: memref<16x32xf32, #tpu.memory_space<vmem>>) attributes {dimension_semantics = [#tpu.dimension_semantics<parallel>], iteration_bounds = array<i64: 1>, scalar_prefetch = 2 : i64, scratch_operands = 2 : i64, tpu.core_type = #tpu.core_type<tc>, window_params = [{pipeline_mode = #tpu.pipeline_mode<synchronous>, transform_indices = @transform_0, window_bounds = array<i64: 1392, 128>}, {transform_indices = @transform_1, window_bounds = array<i64: 16, 128>}]} {
    %c2_i32 = arith.constant 2 : i32
    %0 = arith.muli %arg0, %c2_i32 : i32
    %c0_i32 = arith.constant 0 : i32
    %1 = arith.addi %0, %c0_i32 : i32
    %2 = arith.index_cast %1 : i32 to index
    %c0 = arith.constant 0 : index
    %3 = memref.load %arg1[%2, %c0] : memref<2x8xi32, #tpu.memory_space<smem>>
    %c0_i32_0 = arith.constant 0 : i32
    %4 = arith.addi %c0_i32_0, %3 : i32
    %5 = arith.index_cast %4 : i32 to index
    %c0_1 = arith.constant 0 : index
    %6 = vector.load %arg3[%5, %c0_1] : memref<1392x128xf32, #tpu.memory_space<vmem>>, vector<1x128xf32>
    %7 = vector.extract_strided_slice %6 {offsets = [0, 0], sizes = [1, 32], strides = [1, 1]} : vector<1x128xf32> to vector<1x32xf32>
    %c120 = arith.constant 120 : index
    %c0_2 = arith.constant 0 : index
    %8 = vector.load %arg3[%c120, %c0_2] : memref<1392x128xf32, #tpu.memory_space<vmem>>, vector<1x32xf32>
    %9 = arith.addf %7, %8 : vector<1x32xf32>
    %c0_3 = arith.constant 0 : index
    %c0_4 = arith.constant 0 : index
    %10 = vector.load %arg5[%c0_3, %c0_4] : memref<16x32xf32, #tpu.memory_space<vmem>>, vector<1x32xf32>
    tpu.vector_store %arg5[%c0_3, %c0_4], %9 {strides = array<i32>} : memref<16x32xf32, #tpu.memory_space<vmem>>, vector<1x32xf32>,
    %c0_i32_5 = arith.constant 0 : i32
    %11 = arith.addi %0, %c0_i32_5 : i32
    %12 = arith.index_cast %11 : i32 to index
    %c1 = arith.constant 1 : index
    %13 = memref.load %arg1[%12, %c1] : memref<2x8xi32, #tpu.memory_space<smem>>
    %c0_i32_6 = arith.constant 0 : i32
    %14 = arith.addi %c0_i32_6, %13 : i32
    %15 = arith.index_cast %14 : i32 to index
    %c0_7 = arith.constant 0 : index
    %16 = vector.load %arg3[%15, %c0_7] : memref<1392x128xf32, #tpu.memory_space<vmem>>, vector<1x128xf32>
    %17 = vector.extract_strided_slice %16 {offsets = [0, 0], sizes = [1, 32], strides = [1, 1]} : vector<1x128xf32> to vector<1x32xf32>
    %c121 = arith.constant 121 : index
    %c0_8 = arith.constant 0 : index
    %18 = vector.load %arg3[%c121, %c0_8] : memref<1392x128xf32, #tpu.memory_space<vmem>>, vector<1x32xf32>
    %19 = arith.addf %17, %18 : vector<1x32xf32>
    %c1_9 = arith.constant 1 : index
    %c0_10 = arith.constant 0 : index
    %20 = vector.load %arg5[%c1_9, %c0_10] : memref<16x32xf32, #tpu.memory_space<vmem>>, vector<1x32xf32>
    tpu.vector_store %arg5[%c1_9, %c0_10], %19 {strides = array<i32>} : memref<16x32xf32, #tpu.memory_space<vmem>>, vector<1x32xf32>,
    %c0_i32_11 = arith.constant 0 : i32
    %21 = arith.addi %0, %c0_i32_11 : i32
    %22 = arith.index_cast %21 : i32 to index
    %c2 = arith.constant 2 : index
    %23 = memref.load %arg1[%22, %c2] : memref<2x8xi32, #tpu.memory_space<smem>>
    %c0_i32_12 = arith.constant 0 : i32
    %24 = arith.addi %c0_i32_12, %23 : i32
    %25 = arith.index_cast %24 : i32 to index
    %c0_13 = arith.constant 0 : index
    %26 = vector.load %arg3[%25, %c0_13] : memref<1392x128xf32, #tpu.memory_space<vmem>>, vector<1x128xf32>
    %27 = vector.extract_strided_slice %26 {offsets = [0, 0], sizes = [1, 32], strides = [1, 1]} : vector<1x128xf32> to vector<1x32xf32>
    %c122 = arith.constant 122 : index
    %c0_14 = arith.constant 0 : index
    %28 = vector.load %arg3[%c122, %c0_14] : memref<1392x128xf32, #tpu.memory_space<vmem>>, vector<1x32xf32>
    %29 = arith.addf %27, %28 : vector<1x32xf32>
    %c2_15 = arith.constant 2 : index
    %c0_16 = arith.constant 0 : index
    %30 = vector.load %arg5[%c2_15, %c0_16] : memref<16x32xf32, #tpu.memory_space<vmem>>, vector<1x32xf32>
    tpu.vector_store %arg5[%c2_15, %c0_16], %29 {strides = array<i32>} : memref<16x32xf32, #tpu.memory_space<vmem>>, vector<1x32xf32>,
    %c0_i32_17 = arith.constant 0 : i32
    %31 = arith.addi %0, %c0_i32_17 : i32
    %32 = arith.index_cast %31 : i32 to index
    %c3 = arith.constant 3 : index
    %33 = memref.load %arg1[%32, %c3] : memref<2x8xi32, #tpu.memory_space<smem>>
    %c0_i32_18 = arith.constant 0 : i32
    %34 = arith.addi %c0_i32_18, %33 : i32
    %35 = arith.index_cast %34 : i32 to index
    %c0_19 = arith.constant 0 : index
    %36 = vector.load %arg3[%35, %c0_19] : memref<1392x128xf32, #tpu.memory_space<vmem>>, vector<1x128xf32>
    %37 = vector.extract_strided_slice %36 {offsets = [0, 0], sizes = [1, 32], strides = [1, 1]} : vector<1x128xf32> to vector<1x32xf32>
    %c123 = arith.constant 123 : index
    %c0_20 = arith.constant 0 : index
    %38 = vector.load %arg3[%c123, %c0_20] : memref<1392x128xf32, #tpu.memory_space<vmem>>, vector<1x32xf32>
    %39 = arith.addf %37, %38 : vector<1x32xf32>
    %c3_21 = arith.constant 3 : index
    %c0_22 = arith.constant 0 : index
    %40 = vector.load %arg5[%c3_21, %c0_22] : memref<16x32xf32, #tpu.memory_space<vmem>>, vector<1x32xf32>
    tpu.vector_store %arg5[%c3_21, %c0_22], %39 {strides = array<i32>} : memref<16x32xf32, #tpu.memory_space<vmem>>, vector<1x32xf32>,
    %c0_i32_23 = arith.constant 0 : i32
    %41 = arith.addi %0, %c0_i32_23 : i32
    %42 = arith.index_cast %41 : i32 to index
    %c4 = arith.constant 4 : index
    %43 = memref.load %arg1[%42, %c4] : memref<2x8xi32, #tpu.memory_space<smem>>
    %c0_i32_24 = arith.constant 0 : i32
    %44 = arith.addi %c0_i32_24, %43 : i32
    %45 = arith.index_cast %44 : i32 to index
    %c0_25 = arith.constant 0 : index
    %46 = vector.load %arg3[%45, %c0_25] : memref<1392x128xf32, #tpu.memory_space<vmem>>, vector<1x128xf32>
    %47 = vector.extract_strided_slice %46 {offsets = [0, 0], sizes = [1, 32], strides = [1, 1]} : vector<1x128xf32> to vector<1x32xf32>
    %c124 = arith.constant 124 : index
    %c0_26 = arith.constant 0 : index
    %48 = vector.load %arg3[%c124, %c0_26] : memref<1392x128xf32, #tpu.memory_space<vmem>>, vector<1x32xf32>
    %49 = arith.addf %47, %48 : vector<1x32xf32>
    %c4_27 = arith.constant 4 : index
    %c0_28 = arith.constant 0 : index
    %50 = vector.load %arg5[%c4_27, %c0_28] : memref<16x32xf32, #tpu.memory_space<vmem>>, vector<1x32xf32>
    tpu.vector_store %arg5[%c4_27, %c0_28], %49 {strides = array<i32>} : memref<16x32xf32, #tpu.memory_space<vmem>>, vector<1x32xf32>,
    %c0_i32_29 = arith.constant 0 : i32
    %51 = arith.addi %0, %c0_i32_29 : i32
    %52 = arith.index_cast %51 : i32 to index
    %c5 = arith.constant 5 : index
    %53 = memref.load %arg1[%52, %c5] : memref<2x8xi32, #tpu.memory_space<smem>>
    %c0_i32_30 = arith.constant 0 : i32
    %54 = arith.addi %c0_i32_30, %53 : i32
    %55 = arith.index_cast %54 : i32 to index
    %c0_31 = arith.constant 0 : index
    %56 = vector.load %arg3[%55, %c0_31] : memref<1392x128xf32, #tpu.memory_space<vmem>>, vector<1x128xf32>
    %57 = vector.extract_strided_slice %56 {offsets = [0, 0], sizes = [1, 32], strides = [1, 1]} : vector<1x128xf32> to vector<1x32xf32>
    %c125 = arith.constant 125 : index
    %c0_32 = arith.constant 0 : index
    %58 = vector.load %arg3[%c125, %c0_32] : memref<1392x128xf32, #tpu.memory_space<vmem>>, vector<1x32xf32>
    %59 = arith.addf %57, %58 : vector<1x32xf32>
    %c5_33 = arith.constant 5 : index
    %c0_34 = arith.constant 0 : index
    %60 = vector.load %arg5[%c5_33, %c0_34] : memref<16x32xf32, #tpu.memory_space<vmem>>, vector<1x32xf32>
    tpu.vector_store %arg5[%c5_33, %c0_34], %59 {strides = array<i32>} : memref<16x32xf32, #tpu.memory_space<vmem>>, vector<1x32xf32>,
    %c0_i32_35 = arith.constant 0 : i32
    %61 = arith.addi %0, %c0_i32_35 : i32
    %62 = arith.index_cast %61 : i32 to index
    %c6 = arith.constant 6 : index
    %63 = memref.load %arg1[%62, %c6] : memref<2x8xi32, #tpu.memory_space<smem>>
    %c0_i32_36 = arith.constant 0 : i32
    %64 = arith.addi %c0_i32_36, %63 : i32
    %65 = arith.index_cast %64 : i32 to index
    %c0_37 = arith.constant 0 : index
    %66 = vector.load %arg3[%65, %c0_37] : memref<1392x128xf32, #tpu.memory_space<vmem>>, vector<1x128xf32>
    %67 = vector.extract_strided_slice %66 {offsets = [0, 0], sizes = [1, 32], strides = [1, 1]} : vector<1x128xf32> to vector<1x32xf32>
    %c126 = arith.constant 126 : index
    %c0_38 = arith.constant 0 : index
    %68 = vector.load %arg3[%c126, %c0_38] : memref<1392x128xf32, #tpu.memory_space<vmem>>, vector<1x32xf32>
    %69 = arith.addf %67, %68 : vector<1x32xf32>
    %c6_39 = arith.constant 6 : index
    %c0_40 = arith.constant 0 : index
    %70 = vector.load %arg5[%c6_39, %c0_40] : memref<16x32xf32, #tpu.memory_space<vmem>>, vector<1x32xf32>
    tpu.vector_store %arg5[%c6_39, %c0_40], %69 {strides = array<i32>} : memref<16x32xf32, #tpu.memory_space<vmem>>, vector<1x32xf32>,
    %c0_i32_41 = arith.constant 0 : i32
    %71 = arith.addi %0, %c0_i32_41 : i32
    %72 = arith.index_cast %71 : i32 to index
    %c7 = arith.constant 7 : index
    %73 = memref.load %arg1[%72, %c7] : memref<2x8xi32, #tpu.memory_space<smem>>
    %c0_i32_42 = arith.constant 0 : i32
    %74 = arith.addi %c0_i32_42, %73 : i32
    %75 = arith.index_cast %74 : i32 to index
    %c0_43 = arith.constant 0 : index
    %76 = vector.load %arg3[%75, %c0_43] : memref<1392x128xf32, #tpu.memory_space<vmem>>, vector<1x128xf32>
    %77 = vector.extract_strided_slice %76 {offsets = [0, 0], sizes = [1, 32], strides = [1, 1]} : vector<1x128xf32> to vector<1x32xf32>
    %c127 = arith.constant 127 : index
    %c0_44 = arith.constant 0 : index
    %78 = vector.load %arg3[%c127, %c0_44] : memref<1392x128xf32, #tpu.memory_space<vmem>>, vector<1x32xf32>
    %79 = arith.addf %77, %78 : vector<1x32xf32>
    %c7_45 = arith.constant 7 : index
    %c0_46 = arith.constant 0 : index
    %80 = vector.load %arg5[%c7_45, %c0_46] : memref<16x32xf32, #tpu.memory_space<vmem>>, vector<1x32xf32>
    tpu.vector_store %arg5[%c7_45, %c0_46], %79 {strides = array<i32>} : memref<16x32xf32, #tpu.memory_space<vmem>>, vector<1x32xf32>,
    %c0_i32_47 = arith.constant 0 : i32
    %81 = arith.addi %0, %c0_i32_47 : i32
    %82 = arith.index_cast %81 : i32 to index
    %c0_48 = arith.constant 0 : index
    %83 = memref.load %arg2[%82, %c0_48] : memref<2x8xi32, #tpu.memory_space<smem>>
    %c56_i32 = arith.constant 56 : i32
    %84 = arith.addi %c56_i32, %83 : i32
    %85 = arith.index_cast %84 : i32 to index
    %c0_49 = arith.constant 0 : index
    %86 = vector.load %arg3[%85, %c0_49] : memref<1392x128xf32, #tpu.memory_space<vmem>>, vector<1x128xf32>
    %87 = vector.extract_strided_slice %86 {offsets = [0, 0], sizes = [1, 32], strides = [1, 1]} : vector<1x128xf32> to vector<1x32xf32>
    %c120_50 = arith.constant 120 : index
    %c0_51 = arith.constant 0 : index
    %88 = vector.load %arg3[%c120_50, %c0_51] : memref<1392x128xf32, #tpu.memory_space<vmem>>, vector<1x32xf32>
    %89 = arith.addf %87, %88 : vector<1x32xf32>
    %c0_52 = arith.constant 0 : index
    %c0_53 = arith.constant 0 : index
    %90 = vector.load %arg6[%c0_52, %c0_53] : memref<16x32xf32, #tpu.memory_space<vmem>>, vector<1x32xf32>
    tpu.vector_store %arg6[%c0_52, %c0_53], %89 {strides = array<i32>} : memref<16x32xf32, #tpu.memory_space<vmem>>, vector<1x32xf32>,
    %c0_i32_54 = arith.constant 0 : i32
    %91 = arith.addi %0, %c0_i32_54 : i32
    %92 = arith.index_cast %91 : i32 to index
    %c1_55 = arith.constant 1 : index
    %93 = memref.load %arg2[%92, %c1_55] : memref<2x8xi32, #tpu.memory_space<smem>>
    %c56_i32_56 = arith.constant 56 : i32
    %94 = arith.addi %c56_i32_56, %93 : i32
    %95 = arith.index_cast %94 : i32 to index
    %c0_57 = arith.constant 0 : index
    %96 = vector.load %arg3[%95, %c0_57] : memref<1392x128xf32, #tpu.memory_space<vmem>>, vector<1x128xf32>
    %97 = vector.extract_strided_slice %96 {offsets = [0, 0], sizes = [1, 32], strides = [1, 1]} : vector<1x128xf32> to vector<1x32xf32>
    %c121_58 = arith.constant 121 : index
    %c0_59 = arith.constant 0 : index
    %98 = vector.load %arg3[%c121_58, %c0_59] : memref<1392x128xf32, #tpu.memory_space<vmem>>, vector<1x32xf32>
    %99 = arith.addf %97, %98 : vector<1x32xf32>
    %c1_60 = arith.constant 1 : index
    %c0_61 = arith.constant 0 : index
    %100 = vector.load %arg6[%c1_60, %c0_61] : memref<16x32xf32, #tpu.memory_space<vmem>>, vector<1x32xf32>
    tpu.vector_store %arg6[%c1_60, %c0_61], %99 {strides = array<i32>} : memref<16x32xf32, #tpu.memory_space<vmem>>, vector<1x32xf32>,
    %c0_i32_62 = arith.constant 0 : i32
    %101 = arith.addi %0, %c0_i32_62 : i32
    %102 = arith.index_cast %101 : i32 to index
    %c2_63 = arith.constant 2 : index
    %103 = memref.load %arg2[%102, %c2_63] : memref<2x8xi32, #tpu.memory_space<smem>>
    %c56_i32_64 = arith.constant 56 : i32
    %104 = arith.addi %c56_i32_64, %103 : i32
    %105 = arith.index_cast %104 : i32 to index
    %c0_65 = arith.constant 0 : index
    %106 = vector.load %arg3[%105, %c0_65] : memref<1392x128xf32, #tpu.memory_space<vmem>>, vector<1x128xf32>
    %107 = vector.extract_strided_slice %106 {offsets = [0, 0], sizes = [1, 32], strides = [1, 1]} : vector<1x128xf32> to vector<1x32xf32>
    %c122_66 = arith.constant 122 : index
    %c0_67 = arith.constant 0 : index
    %108 = vector.load %arg3[%c122_66, %c0_67] : memref<1392x128xf32, #tpu.memory_space<vmem>>, vector<1x32xf32>
    %109 = arith.addf %107, %108 : vector<1x32xf32>
    %c2_68 = arith.constant 2 : index
    %c0_69 = arith.constant 0 : index
    %110 = vector.load %arg6[%c2_68, %c0_69] : memref<16x32xf32, #tpu.memory_space<vmem>>, vector<1x32xf32>
    tpu.vector_store %arg6[%c2_68, %c0_69], %109 {strides = array<i32>} : memref<16x32xf32, #tpu.memory_space<vmem>>, vector<1x32xf32>,
    %c0_i32_70 = arith.constant 0 : i32
    %111 = arith.addi %0, %c0_i32_70 : i32
    %112 = arith.index_cast %111 : i32 to index
    %c3_71 = arith.constant 3 : index
    %113 = memref.load %arg2[%112, %c3_71] : memref<2x8xi32, #tpu.memory_space<smem>>
    %c56_i32_72 = arith.constant 56 : i32
    %114 = arith.addi %c56_i32_72, %113 : i32
    %115 = arith.index_cast %114 : i32 to index
    %c0_73 = arith.constant 0 : index
    %116 = vector.load %arg3[%115, %c0_73] : memref<1392x128xf32, #tpu.memory_space<vmem>>, vector<1x128xf32>
    %117 = vector.extract_strided_slice %116 {offsets = [0, 0], sizes = [1, 32], strides = [1, 1]} : vector<1x128xf32> to vector<1x32xf32>
    %c123_74 = arith.constant 123 : index
    %c0_75 = arith.constant 0 : index
    %118 = vector.load %arg3[%c123_74, %c0_75] : memref<1392x128xf32, #tpu.memory_space<vmem>>, vector<1x32xf32>
    %119 = arith.addf %117, %118 : vector<1x32xf32>
    %c3_76 = arith.constant 3 : index
    %c0_77 = arith.constant 0 : index
    %120 = vector.load %arg6[%c3_76, %c0_77] : memref<16x32xf32, #tpu.memory_space<vmem>>, vector<1x32xf32>
    tpu.vector_store %arg6[%c3_76, %c0_77], %119 {strides = array<i32>} : memref<16x32xf32, #tpu.memory_space<vmem>>, vector<1x32xf32>,
    %c0_i32_78 = arith.constant 0 : i32
    %121 = arith.addi %0, %c0_i32_78 : i32
    %122 = arith.index_cast %121 : i32 to index
    %c4_79 = arith.constant 4 : index
    %123 = memref.load %arg2[%122, %c4_79] : memref<2x8xi32, #tpu.memory_space<smem>>
    %c56_i32_80 = arith.constant 56 : i32
    %124 = arith.addi %c56_i32_80, %123 : i32
    %125 = arith.index_cast %124 : i32 to index
    %c0_81 = arith.constant 0 : index
    %126 = vector.load %arg3[%125, %c0_81] : memref<1392x128xf32, #tpu.memory_space<vmem>>, vector<1x128xf32>
    %127 = vector.extract_strided_slice %126 {offsets = [0, 0], sizes = [1, 32], strides = [1, 1]} : vector<1x128xf32> to vector<1x32xf32>
    %c124_82 = arith.constant 124 : index
    %c0_83 = arith.constant 0 : index
    %128 = vector.load %arg3[%c124_82, %c0_83] : memref<1392x128xf32, #tpu.memory_space<vmem>>, vector<1x32xf32>
    %129 = arith.addf %127, %128 : vector<1x32xf32>
    %c4_84 = arith.constant 4 : index
    %c0_85 = arith.constant 0 : index
    %130 = vector.load %arg6[%c4_84, %c0_85] : memref<16x32xf32, #tpu.memory_space<vmem>>, vector<1x32xf32>
    tpu.vector_store %arg6[%c4_84, %c0_85], %129 {strides = array<i32>} : memref<16x32xf32, #tpu.memory_space<vmem>>, vector<1x32xf32>,
    %c0_i32_86 = arith.constant 0 : i32
    %131 = arith.addi %0, %c0_i32_86 : i32
    %132 = arith.index_cast %131 : i32 to index
    %c5_87 = arith.constant 5 : index
    %133 = memref.load %arg2[%132, %c5_87] : memref<2x8xi32, #tpu.memory_space<smem>>
    %c56_i32_88 = arith.constant 56 : i32
    %134 = arith.addi %c56_i32_88, %133 : i32
    %135 = arith.index_cast %134 : i32 to index
    %c0_89 = arith.constant 0 : index
    %136 = vector.load %arg3[%135, %c0_89] : memref<1392x128xf32, #tpu.memory_space<vmem>>, vector<1x128xf32>
    %137 = vector.extract_strided_slice %136 {offsets = [0, 0], sizes = [1, 32], strides = [1, 1]} : vector<1x128xf32> to vector<1x32xf32>
    %c125_90 = arith.constant 125 : index
    %c0_91 = arith.constant 0 : index
    %138 = vector.load %arg3[%c125_90, %c0_91] : memref<1392x128xf32, #tpu.memory_space<vmem>>, vector<1x32xf32>
    %139 = arith.addf %137, %138 : vector<1x32xf32>
    %c5_92 = arith.constant 5 : index
    %c0_93 = arith.constant 0 : index
    %140 = vector.load %arg6[%c5_92, %c0_93] : memref<16x32xf32, #tpu.memory_space<vmem>>, vector<1x32xf32>
    tpu.vector_store %arg6[%c5_92, %c0_93], %139 {strides = array<i32>} : memref<16x32xf32, #tpu.memory_space<vmem>>, vector<1x32xf32>,
    %c0_i32_94 = arith.constant 0 : i32
    %141 = arith.addi %0, %c0_i32_94 : i32
    %142 = arith.index_cast %141 : i32 to index
    %c6_95 = arith.constant 6 : index
    %143 = memref.load %arg2[%142, %c6_95] : memref<2x8xi32, #tpu.memory_space<smem>>
    %c56_i32_96 = arith.constant 56 : i32
    %144 = arith.addi %c56_i32_96, %143 : i32
    %145 = arith.index_cast %144 : i32 to index
    %c0_97 = arith.constant 0 : index
    %146 = vector.load %arg3[%145, %c0_97] : memref<1392x128xf32, #tpu.memory_space<vmem>>, vector<1x128xf32>
    %147 = vector.extract_strided_slice %146 {offsets = [0, 0], sizes = [1, 32], strides = [1, 1]} : vector<1x128xf32> to vector<1x32xf32>
    %c126_98 = arith.constant 126 : index
    %c0_99 = arith.constant 0 : index
    %148 = vector.load %arg3[%c126_98, %c0_99] : memref<1392x128xf32, #tpu.memory_space<vmem>>, vector<1x32xf32>
    %149 = arith.addf %147, %148 : vector<1x32xf32>
    %c6_100 = arith.constant 6 : index
    %c0_101 = arith.constant 0 : index
    %150 = vector.load %arg6[%c6_100, %c0_101] : memref<16x32xf32, #tpu.memory_space<vmem>>, vector<1x32xf32>
    tpu.vector_store %arg6[%c6_100, %c0_101], %149 {strides = array<i32>} : memref<16x32xf32, #tpu.memory_space<vmem>>, vector<1x32xf32>,
    %c0_i32_102 = arith.constant 0 : i32
    %151 = arith.addi %0, %c0_i32_102 : i32
    %152 = arith.index_cast %151 : i32 to index
    %c7_103 = arith.constant 7 : index
    %153 = memref.load %arg2[%152, %c7_103] : memref<2x8xi32, #tpu.memory_space<smem>>
    %c56_i32_104 = arith.constant 56 : i32
    %154 = arith.addi %c56_i32_104, %153 : i32
    %155 = arith.index_cast %154 : i32 to index
    %c0_105 = arith.constant 0 : index
    %156 = vector.load %arg3[%155, %c0_105] : memref<1392x128xf32, #tpu.memory_space<vmem>>, vector<1x128xf32>
    %157 = vector.extract_strided_slice %156 {offsets = [0, 0], sizes = [1, 32], strides = [1, 1]} : vector<1x128xf32> to vector<1x32xf32>
    %c127_106 = arith.constant 127 : index
    %c0_107 = arith.constant 0 : index
    %158 = vector.load %arg3[%c127_106, %c0_107] : memref<1392x128xf32, #tpu.memory_space<vmem>>, vector<1x32xf32>
    %159 = arith.addf %157, %158 : vector<1x32xf32>
    %c7_108 = arith.constant 7 : index
    %c0_109 = arith.constant 0 : index
    %160 = vector.load %arg6[%c7_108, %c0_109] : memref<16x32xf32, #tpu.memory_space<vmem>>, vector<1x32xf32>
    tpu.vector_store %arg6[%c7_108, %c0_109], %159 {strides = array<i32>} : memref<16x32xf32, #tpu.memory_space<vmem>>, vector<1x32xf32>,
    %c1_i32 = arith.constant 1 : i32
    %161 = arith.addi %0, %c1_i32 : i32
    %162 = arith.index_cast %161 : i32 to index
    %c0_110 = arith.constant 0 : index
    %163 = memref.load %arg1[%162, %c0_110] : memref<2x8xi32, #tpu.memory_space<smem>>
    %c0_i32_111 = arith.constant 0 : i32
    %164 = arith.addi %c0_i32_111, %163 : i32
    %165 = arith.index_cast %164 : i32 to index
    %c0_112 = arith.constant 0 : index
    %166 = vector.load %arg3[%165, %c0_112] : memref<1392x128xf32, #tpu.memory_space<vmem>>, vector<1x128xf32>
    %167 = vector.extract_strided_slice %166 {offsets = [0, 0], sizes = [1, 32], strides = [1, 1]} : vector<1x128xf32> to vector<1x32xf32>
    %c120_113 = arith.constant 120 : index
    %c0_114 = arith.constant 0 : index
    %168 = vector.load %arg3[%c120_113, %c0_114] : memref<1392x128xf32, #tpu.memory_space<vmem>>, vector<1x32xf32>
    %169 = arith.addf %167, %168 : vector<1x32xf32>
    %c8 = arith.constant 8 : index
    %c0_115 = arith.constant 0 : index
    %170 = vector.load %arg5[%c8, %c0_115] : memref<16x32xf32, #tpu.memory_space<vmem>>, vector<1x32xf32>
    tpu.vector_store %arg5[%c8, %c0_115], %169 {strides = array<i32>} : memref<16x32xf32, #tpu.memory_space<vmem>>, vector<1x32xf32>,
    %c1_i32_116 = arith.constant 1 : i32
    %171 = arith.addi %0, %c1_i32_116 : i32
    %172 = arith.index_cast %171 : i32 to index
    %c1_117 = arith.constant 1 : index
    %173 = memref.load %arg1[%172, %c1_117] : memref<2x8xi32, #tpu.memory_space<smem>>
    %c0_i32_118 = arith.constant 0 : i32
    %174 = arith.addi %c0_i32_118, %173 : i32
    %175 = arith.index_cast %174 : i32 to index
    %c0_119 = arith.constant 0 : index
    %176 = vector.load %arg3[%175, %c0_119] : memref<1392x128xf32, #tpu.memory_space<vmem>>, vector<1x128xf32>
    %177 = vector.extract_strided_slice %176 {offsets = [0, 0], sizes = [1, 32], strides = [1, 1]} : vector<1x128xf32> to vector<1x32xf32>
    %c121_120 = arith.constant 121 : index
    %c0_121 = arith.constant 0 : index
    %178 = vector.load %arg3[%c121_120, %c0_121] : memref<1392x128xf32, #tpu.memory_space<vmem>>, vector<1x32xf32>
    %179 = arith.addf %177, %178 : vector<1x32xf32>
    %c9 = arith.constant 9 : index
    %c0_122 = arith.constant 0 : index
    %180 = vector.load %arg5[%c9, %c0_122] : memref<16x32xf32, #tpu.memory_space<vmem>>, vector<1x32xf32>
    tpu.vector_store %arg5[%c9, %c0_122], %179 {strides = array<i32>} : memref<16x32xf32, #tpu.memory_space<vmem>>, vector<1x32xf32>,
    %c1_i32_123 = arith.constant 1 : i32
    %181 = arith.addi %0, %c1_i32_123 : i32
    %182 = arith.index_cast %181 : i32 to index
    %c2_124 = arith.constant 2 : index
    %183 = memref.load %arg1[%182, %c2_124] : memref<2x8xi32, #tpu.memory_space<smem>>
    %c0_i32_125 = arith.constant 0 : i32
    %184 = arith.addi %c0_i32_125, %183 : i32
    %185 = arith.index_cast %184 : i32 to index
    %c0_126 = arith.constant 0 : index
    %186 = vector.load %arg3[%185, %c0_126] : memref<1392x128xf32, #tpu.memory_space<vmem>>, vector<1x128xf32>
    %187 = vector.extract_strided_slice %186 {offsets = [0, 0], sizes = [1, 32], strides = [1, 1]} : vector<1x128xf32> to vector<1x32xf32>
    %c122_127 = arith.constant 122 : index
    %c0_128 = arith.constant 0 : index
    %188 = vector.load %arg3[%c122_127, %c0_128] : memref<1392x128xf32, #tpu.memory_space<vmem>>, vector<1x32xf32>
    %189 = arith.addf %187, %188 : vector<1x32xf32>
    %c10 = arith.constant 10 : index
    %c0_129 = arith.constant 0 : index
    %190 = vector.load %arg5[%c10, %c0_129] : memref<16x32xf32, #tpu.memory_space<vmem>>, vector<1x32xf32>
    tpu.vector_store %arg5[%c10, %c0_129], %189 {strides = array<i32>} : memref<16x32xf32, #tpu.memory_space<vmem>>, vector<1x32xf32>,
    %c1_i32_130 = arith.constant 1 : i32
    %191 = arith.addi %0, %c1_i32_130 : i32
    %192 = arith.index_cast %191 : i32 to index
    %c3_131 = arith.constant 3 : index
    %193 = memref.load %arg1[%192, %c3_131] : memref<2x8xi32, #tpu.memory_space<smem>>
    %c0_i32_132 = arith.constant 0 : i32
    %194 = arith.addi %c0_i32_132, %193 : i32
    %195 = arith.index_cast %194 : i32 to index
    %c0_133 = arith.constant 0 : index
    %196 = vector.load %arg3[%195, %c0_133] : memref<1392x128xf32, #tpu.memory_space<vmem>>, vector<1x128xf32>
    %197 = vector.extract_strided_slice %196 {offsets = [0, 0], sizes = [1, 32], strides = [1, 1]} : vector<1x128xf32> to vector<1x32xf32>
    %c123_134 = arith.constant 123 : index
    %c0_135 = arith.constant 0 : index
    %198 = vector.load %arg3[%c123_134, %c0_135] : memref<1392x128xf32, #tpu.memory_space<vmem>>, vector<1x32xf32>
    %199 = arith.addf %197, %198 : vector<1x32xf32>
    %c11 = arith.constant 11 : index
    %c0_136 = arith.constant 0 : index
    %200 = vector.load %arg5[%c11, %c0_136] : memref<16x32xf32, #tpu.memory_space<vmem>>, vector<1x32xf32>
    tpu.vector_store %arg5[%c11, %c0_136], %199 {strides = array<i32>} : memref<16x32xf32, #tpu.memory_space<vmem>>, vector<1x32xf32>,
    %c1_i32_137 = arith.constant 1 : i32
    %201 = arith.addi %0, %c1_i32_137 : i32
    %202 = arith.index_cast %201 : i32 to index
    %c4_138 = arith.constant 4 : index
    %203 = memref.load %arg1[%202, %c4_138] : memref<2x8xi32, #tpu.memory_space<smem>>
    %c0_i32_139 = arith.constant 0 : i32
    %204 = arith.addi %c0_i32_139, %203 : i32
    %205 = arith.index_cast %204 : i32 to index
    %c0_140 = arith.constant 0 : index
    %206 = vector.load %arg3[%205, %c0_140] : memref<1392x128xf32, #tpu.memory_space<vmem>>, vector<1x128xf32>
    %207 = vector.extract_strided_slice %206 {offsets = [0, 0], sizes = [1, 32], strides = [1, 1]} : vector<1x128xf32> to vector<1x32xf32>
    %c124_141 = arith.constant 124 : index
    %c0_142 = arith.constant 0 : index
    %208 = vector.load %arg3[%c124_141, %c0_142] : memref<1392x128xf32, #tpu.memory_space<vmem>>, vector<1x32xf32>
    %209 = arith.addf %207, %208 : vector<1x32xf32>
    %c12 = arith.constant 12 : index
    %c0_143 = arith.constant 0 : index
    %210 = vector.load %arg5[%c12, %c0_143] : memref<16x32xf32, #tpu.memory_space<vmem>>, vector<1x32xf32>
    tpu.vector_store %arg5[%c12, %c0_143], %209 {strides = array<i32>} : memref<16x32xf32, #tpu.memory_space<vmem>>, vector<1x32xf32>,
    %c1_i32_144 = arith.constant 1 : i32
    %211 = arith.addi %0, %c1_i32_144 : i32
    %212 = arith.index_cast %211 : i32 to index
    %c5_145 = arith.constant 5 : index
    %213 = memref.load %arg1[%212, %c5_145] : memref<2x8xi32, #tpu.memory_space<smem>>
    %c0_i32_146 = arith.constant 0 : i32
    %214 = arith.addi %c0_i32_146, %213 : i32
    %215 = arith.index_cast %214 : i32 to index
    %c0_147 = arith.constant 0 : index
    %216 = vector.load %arg3[%215, %c0_147] : memref<1392x128xf32, #tpu.memory_space<vmem>>, vector<1x128xf32>
    %217 = vector.extract_strided_slice %216 {offsets = [0, 0], sizes = [1, 32], strides = [1, 1]} : vector<1x128xf32> to vector<1x32xf32>
    %c125_148 = arith.constant 125 : index
    %c0_149 = arith.constant 0 : index
    %218 = vector.load %arg3[%c125_148, %c0_149] : memref<1392x128xf32, #tpu.memory_space<vmem>>, vector<1x32xf32>
    %219 = arith.addf %217, %218 : vector<1x32xf32>
    %c13 = arith.constant 13 : index
    %c0_150 = arith.constant 0 : index
    %220 = vector.load %arg5[%c13, %c0_150] : memref<16x32xf32, #tpu.memory_space<vmem>>, vector<1x32xf32>
    tpu.vector_store %arg5[%c13, %c0_150], %219 {strides = array<i32>} : memref<16x32xf32, #tpu.memory_space<vmem>>, vector<1x32xf32>,
    %c1_i32_151 = arith.constant 1 : i32
    %221 = arith.addi %0, %c1_i32_151 : i32
    %222 = arith.index_cast %221 : i32 to index
    %c6_152 = arith.constant 6 : index
    %223 = memref.load %arg1[%222, %c6_152] : memref<2x8xi32, #tpu.memory_space<smem>>
    %c0_i32_153 = arith.constant 0 : i32
    %224 = arith.addi %c0_i32_153, %223 : i32
    %225 = arith.index_cast %224 : i32 to index
    %c0_154 = arith.constant 0 : index
    %226 = vector.load %arg3[%225, %c0_154] : memref<1392x128xf32, #tpu.memory_space<vmem>>, vector<1x128xf32>
    %227 = vector.extract_strided_slice %226 {offsets = [0, 0], sizes = [1, 32], strides = [1, 1]} : vector<1x128xf32> to vector<1x32xf32>
    %c126_155 = arith.constant 126 : index
    %c0_156 = arith.constant 0 : index
    %228 = vector.load %arg3[%c126_155, %c0_156] : memref<1392x128xf32, #tpu.memory_space<vmem>>, vector<1x32xf32>
    %229 = arith.addf %227, %228 : vector<1x32xf32>
    %c14 = arith.constant 14 : index
    %c0_157 = arith.constant 0 : index
    %230 = vector.load %arg5[%c14, %c0_157] : memref<16x32xf32, #tpu.memory_space<vmem>>, vector<1x32xf32>
    tpu.vector_store %arg5[%c14, %c0_157], %229 {strides = array<i32>} : memref<16x32xf32, #tpu.memory_space<vmem>>, vector<1x32xf32>,
    %c1_i32_158 = arith.constant 1 : i32
    %231 = arith.addi %0, %c1_i32_158 : i32
    %232 = arith.index_cast %231 : i32 to index
    %c7_159 = arith.constant 7 : index
    %233 = memref.load %arg1[%232, %c7_159] : memref<2x8xi32, #tpu.memory_space<smem>>
    %c0_i32_160 = arith.constant 0 : i32
    %234 = arith.addi %c0_i32_160, %233 : i32
    %235 = arith.index_cast %234 : i32 to index
    %c0_161 = arith.constant 0 : index
    %236 = vector.load %arg3[%235, %c0_161] : memref<1392x128xf32, #tpu.memory_space<vmem>>, vector<1x128xf32>
    %237 = vector.extract_strided_slice %236 {offsets = [0, 0], sizes = [1, 32], strides = [1, 1]} : vector<1x128xf32> to vector<1x32xf32>
    %c127_162 = arith.constant 127 : index
    %c0_163 = arith.constant 0 : index
    %238 = vector.load %arg3[%c127_162, %c0_163] : memref<1392x128xf32, #tpu.memory_space<vmem>>, vector<1x32xf32>
    %239 = arith.addf %237, %238 : vector<1x32xf32>
    %c15 = arith.constant 15 : index
    %c0_164 = arith.constant 0 : index
    %240 = vector.load %arg5[%c15, %c0_164] : memref<16x32xf32, #tpu.memory_space<vmem>>, vector<1x32xf32>
    tpu.vector_store %arg5[%c15, %c0_164], %239 {strides = array<i32>} : memref<16x32xf32, #tpu.memory_space<vmem>>, vector<1x32xf32>,
    %c1_i32_165 = arith.constant 1 : i32
    %241 = arith.addi %0, %c1_i32_165 : i32
    %242 = arith.index_cast %241 : i32 to index
    %c0_166 = arith.constant 0 : index
    %243 = memref.load %arg2[%242, %c0_166] : memref<2x8xi32, #tpu.memory_space<smem>>
    %c56_i32_167 = arith.constant 56 : i32
    %244 = arith.addi %c56_i32_167, %243 : i32
    %245 = arith.index_cast %244 : i32 to index
    %c0_168 = arith.constant 0 : index
    %246 = vector.load %arg3[%245, %c0_168] : memref<1392x128xf32, #tpu.memory_space<vmem>>, vector<1x128xf32>
    %247 = vector.extract_strided_slice %246 {offsets = [0, 0], sizes = [1, 32], strides = [1, 1]} : vector<1x128xf32> to vector<1x32xf32>
    %c120_169 = arith.constant 120 : index
    %c0_170 = arith.constant 0 : index
    %248 = vector.load %arg3[%c120_169, %c0_170] : memref<1392x128xf32, #tpu.memory_space<vmem>>, vector<1x32xf32>
    %249 = arith.addf %247, %248 : vector<1x32xf32>
    %c8_171 = arith.constant 8 : index
    %c0_172 = arith.constant 0 : index
    %250 = vector.load %arg6[%c8_171, %c0_172] : memref<16x32xf32, #tpu.memory_space<vmem>>, vector<1x32xf32>
    tpu.vector_store %arg6[%c8_171, %c0_172], %249 {strides = array<i32>} : memref<16x32xf32, #tpu.memory_space<vmem>>, vector<1x32xf32>,
    %c1_i32_173 = arith.constant 1 : i32
    %251 = arith.addi %0, %c1_i32_173 : i32
    %252 = arith.index_cast %251 : i32 to index
    %c1_174 = arith.constant 1 : index
    %253 = memref.load %arg2[%252, %c1_174] : memref<2x8xi32, #tpu.memory_space<smem>>
    %c56_i32_175 = arith.constant 56 : i32
    %254 = arith.addi %c56_i32_175, %253 : i32
    %255 = arith.index_cast %254 : i32 to index
    %c0_176 = arith.constant 0 : index
    %256 = vector.load %arg3[%255, %c0_176] : memref<1392x128xf32, #tpu.memory_space<vmem>>, vector<1x128xf32>
    %257 = vector.extract_strided_slice %256 {offsets = [0, 0], sizes = [1, 32], strides = [1, 1]} : vector<1x128xf32> to vector<1x32xf32>
    %c121_177 = arith.constant 121 : index
    %c0_178 = arith.constant 0 : index
    %258 = vector.load %arg3[%c121_177, %c0_178] : memref<1392x128xf32, #tpu.memory_space<vmem>>, vector<1x32xf32>
    %259 = arith.addf %257, %258 : vector<1x32xf32>
    %c9_179 = arith.constant 9 : index
    %c0_180 = arith.constant 0 : index
    %260 = vector.load %arg6[%c9_179, %c0_180] : memref<16x32xf32, #tpu.memory_space<vmem>>, vector<1x32xf32>
    tpu.vector_store %arg6[%c9_179, %c0_180], %259 {strides = array<i32>} : memref<16x32xf32, #tpu.memory_space<vmem>>, vector<1x32xf32>,
    %c1_i32_181 = arith.constant 1 : i32
    %261 = arith.addi %0, %c1_i32_181 : i32
    %262 = arith.index_cast %261 : i32 to index
    %c2_182 = arith.constant 2 : index
    %263 = memref.load %arg2[%262, %c2_182] : memref<2x8xi32, #tpu.memory_space<smem>>
    %c56_i32_183 = arith.constant 56 : i32
    %264 = arith.addi %c56_i32_183, %263 : i32
    %265 = arith.index_cast %264 : i32 to index
    %c0_184 = arith.constant 0 : index
    %266 = vector.load %arg3[%265, %c0_184] : memref<1392x128xf32, #tpu.memory_space<vmem>>, vector<1x128xf32>
    %267 = vector.extract_strided_slice %266 {offsets = [0, 0], sizes = [1, 32], strides = [1, 1]} : vector<1x128xf32> to vector<1x32xf32>
    %c122_185 = arith.constant 122 : index
    %c0_186 = arith.constant 0 : index
    %268 = vector.load %arg3[%c122_185, %c0_186] : memref<1392x128xf32, #tpu.memory_space<vmem>>, vector<1x32xf32>
    %269 = arith.addf %267, %268 : vector<1x32xf32>
    %c10_187 = arith.constant 10 : index
    %c0_188 = arith.constant 0 : index
    %270 = vector.load %arg6[%c10_187, %c0_188] : memref<16x32xf32, #tpu.memory_space<vmem>>, vector<1x32xf32>
    tpu.vector_store %arg6[%c10_187, %c0_188], %269 {strides = array<i32>} : memref<16x32xf32, #tpu.memory_space<vmem>>, vector<1x32xf32>,
    %c1_i32_189 = arith.constant 1 : i32
    %271 = arith.addi %0, %c1_i32_189 : i32
    %272 = arith.index_cast %271 : i32 to index
    %c3_190 = arith.constant 3 : index
    %273 = memref.load %arg2[%272, %c3_190] : memref<2x8xi32, #tpu.memory_space<smem>>
    %c56_i32_191 = arith.constant 56 : i32
    %274 = arith.addi %c56_i32_191, %273 : i32
    %275 = arith.index_cast %274 : i32 to index
    %c0_192 = arith.constant 0 : index
    %276 = vector.load %arg3[%275, %c0_192] : memref<1392x128xf32, #tpu.memory_space<vmem>>, vector<1x128xf32>
    %277 = vector.extract_strided_slice %276 {offsets = [0, 0], sizes = [1, 32], strides = [1, 1]} : vector<1x128xf32> to vector<1x32xf32>
    %c123_193 = arith.constant 123 : index
    %c0_194 = arith.constant 0 : index
    %278 = vector.load %arg3[%c123_193, %c0_194] : memref<1392x128xf32, #tpu.memory_space<vmem>>, vector<1x32xf32>
    %279 = arith.addf %277, %278 : vector<1x32xf32>
    %c11_195 = arith.constant 11 : index
    %c0_196 = arith.constant 0 : index
    %280 = vector.load %arg6[%c11_195, %c0_196] : memref<16x32xf32, #tpu.memory_space<vmem>>, vector<1x32xf32>
    tpu.vector_store %arg6[%c11_195, %c0_196], %279 {strides = array<i32>} : memref<16x32xf32, #tpu.memory_space<vmem>>, vector<1x32xf32>,
    %c1_i32_197 = arith.constant 1 : i32
    %281 = arith.addi %0, %c1_i32_197 : i32
    %282 = arith.index_cast %281 : i32 to index
    %c4_198 = arith.constant 4 : index
    %283 = memref.load %arg2[%282, %c4_198] : memref<2x8xi32, #tpu.memory_space<smem>>
    %c56_i32_199 = arith.constant 56 : i32
    %284 = arith.addi %c56_i32_199, %283 : i32
    %285 = arith.index_cast %284 : i32 to index
    %c0_200 = arith.constant 0 : index
    %286 = vector.load %arg3[%285, %c0_200] : memref<1392x128xf32, #tpu.memory_space<vmem>>, vector<1x128xf32>
    %287 = vector.extract_strided_slice %286 {offsets = [0, 0], sizes = [1, 32], strides = [1, 1]} : vector<1x128xf32> to vector<1x32xf32>
    %c124_201 = arith.constant 124 : index
    %c0_202 = arith.constant 0 : index
    %288 = vector.load %arg3[%c124_201, %c0_202] : memref<1392x128xf32, #tpu.memory_space<vmem>>, vector<1x32xf32>
    %289 = arith.addf %287, %288 : vector<1x32xf32>
    %c12_203 = arith.constant 12 : index
    %c0_204 = arith.constant 0 : index
    %290 = vector.load %arg6[%c12_203, %c0_204] : memref<16x32xf32, #tpu.memory_space<vmem>>, vector<1x32xf32>
    tpu.vector_store %arg6[%c12_203, %c0_204], %289 {strides = array<i32>} : memref<16x32xf32, #tpu.memory_space<vmem>>, vector<1x32xf32>,
    %c1_i32_205 = arith.constant 1 : i32
    %291 = arith.addi %0, %c1_i32_205 : i32
    %292 = arith.index_cast %291 : i32 to index
    %c5_206 = arith.constant 5 : index
    %293 = memref.load %arg2[%292, %c5_206] : memref<2x8xi32, #tpu.memory_space<smem>>
    %c56_i32_207 = arith.constant 56 : i32
    %294 = arith.addi %c56_i32_207, %293 : i32
    %295 = arith.index_cast %294 : i32 to index
    %c0_208 = arith.constant 0 : index
    %296 = vector.load %arg3[%295, %c0_208] : memref<1392x128xf32, #tpu.memory_space<vmem>>, vector<1x128xf32>
    %297 = vector.extract_strided_slice %296 {offsets = [0, 0], sizes = [1, 32], strides = [1, 1]} : vector<1x128xf32> to vector<1x32xf32>
    %c125_209 = arith.constant 125 : index
    %c0_210 = arith.constant 0 : index
    %298 = vector.load %arg3[%c125_209, %c0_210] : memref<1392x128xf32, #tpu.memory_space<vmem>>, vector<1x32xf32>
    %299 = arith.addf %297, %298 : vector<1x32xf32>
    %c13_211 = arith.constant 13 : index
    %c0_212 = arith.constant 0 : index
    %300 = vector.load %arg6[%c13_211, %c0_212] : memref<16x32xf32, #tpu.memory_space<vmem>>, vector<1x32xf32>
    tpu.vector_store %arg6[%c13_211, %c0_212], %299 {strides = array<i32>} : memref<16x32xf32, #tpu.memory_space<vmem>>, vector<1x32xf32>,
    %c1_i32_213 = arith.constant 1 : i32
    %301 = arith.addi %0, %c1_i32_213 : i32
    %302 = arith.index_cast %301 : i32 to index
    %c6_214 = arith.constant 6 : index
    %303 = memref.load %arg2[%302, %c6_214] : memref<2x8xi32, #tpu.memory_space<smem>>
    %c56_i32_215 = arith.constant 56 : i32
    %304 = arith.addi %c56_i32_215, %303 : i32
    %305 = arith.index_cast %304 : i32 to index
    %c0_216 = arith.constant 0 : index
    %306 = vector.load %arg3[%305, %c0_216] : memref<1392x128xf32, #tpu.memory_space<vmem>>, vector<1x128xf32>
    %307 = vector.extract_strided_slice %306 {offsets = [0, 0], sizes = [1, 32], strides = [1, 1]} : vector<1x128xf32> to vector<1x32xf32>
    %c126_217 = arith.constant 126 : index
    %c0_218 = arith.constant 0 : index
    %308 = vector.load %arg3[%c126_217, %c0_218] : memref<1392x128xf32, #tpu.memory_space<vmem>>, vector<1x32xf32>
    %309 = arith.addf %307, %308 : vector<1x32xf32>
    %c14_219 = arith.constant 14 : index
    %c0_220 = arith.constant 0 : index
    %310 = vector.load %arg6[%c14_219, %c0_220] : memref<16x32xf32, #tpu.memory_space<vmem>>, vector<1x32xf32>
    tpu.vector_store %arg6[%c14_219, %c0_220], %309 {strides = array<i32>} : memref<16x32xf32, #tpu.memory_space<vmem>>, vector<1x32xf32>,
    %c1_i32_221 = arith.constant 1 : i32
    %311 = arith.addi %0, %c1_i32_221 : i32
    %312 = arith.index_cast %311 : i32 to index
    %c7_222 = arith.constant 7 : index
    %313 = memref.load %arg2[%312, %c7_222] : memref<2x8xi32, #tpu.memory_space<smem>>
    %c56_i32_223 = arith.constant 56 : i32
    %314 = arith.addi %c56_i32_223, %313 : i32
    %315 = arith.index_cast %314 : i32 to index
    %c0_224 = arith.constant 0 : index
    %316 = vector.load %arg3[%315, %c0_224] : memref<1392x128xf32, #tpu.memory_space<vmem>>, vector<1x128xf32>
    %317 = vector.extract_strided_slice %316 {offsets = [0, 0], sizes = [1, 32], strides = [1, 1]} : vector<1x128xf32> to vector<1x32xf32>
    %c127_225 = arith.constant 127 : index
    %c0_226 = arith.constant 0 : index
    %318 = vector.load %arg3[%c127_225, %c0_226] : memref<1392x128xf32, #tpu.memory_space<vmem>>, vector<1x32xf32>
    %319 = arith.addf %317, %318 : vector<1x32xf32>
    %c15_227 = arith.constant 15 : index
    %c0_228 = arith.constant 0 : index
    %320 = vector.load %arg6[%c15_227, %c0_228] : memref<16x32xf32, #tpu.memory_space<vmem>>, vector<1x32xf32>
    tpu.vector_store %arg6[%c15_227, %c0_228], %319 {strides = array<i32>} : memref<16x32xf32, #tpu.memory_space<vmem>>, vector<1x32xf32>,
    %c0_229 = arith.constant 0 : index
    %c0_230 = arith.constant 0 : index
    %321 = vector.load %arg5[%c0_229, %c0_230] : memref<16x32xf32, #tpu.memory_space<vmem>>, vector<16x32xf32>
    %c0_231 = arith.constant 0 : index
    %c0_232 = arith.constant 0 : index
    %322 = vector.load %arg6[%c0_231, %c0_232] : memref<16x32xf32, #tpu.memory_space<vmem>>, vector<16x32xf32>
    %c152 = arith.constant 152 : index
    %c0_233 = arith.constant 0 : index
    %323 = vector.load %arg3[%c152, %c0_233] : memref<1392x128xf32, #tpu.memory_space<vmem>>, vector<32x96xf32>
    %324 = arith.truncf %323 : vector<32x96xf32> to vector<32x96xbf16>
    %325 = arith.truncf %321 : vector<16x32xf32> to vector<16x32xbf16>
    %cst = arith.constant dense<0.000000e+00> : vector<16x96xf32>
    %326 = tpu.matmul %325, %324, %cst {dimension_numbers = #tpu.dot_dimension_numbers<[1], [0], [0], [1], [0, 0, 1, 1], [], []>} : vector<16x32xbf16>, vector<32x96xbf16>, vector<16x96xf32> -> vector<16x96xf32>
    %c184 = arith.constant 184 : index
    %c0_234 = arith.constant 0 : index
    %327 = vector.load %arg3[%c184, %c0_234] : memref<1392x128xf32, #tpu.memory_space<vmem>>, vector<1x96xf32>
    %328 = vector.broadcast %327 : vector<1x96xf32> to vector<16x96xf32>
    %329 = arith.addf %326, %328 : vector<16x96xf32>
    %330 = vector.extract_strided_slice %329 {offsets = [0, 0], sizes = [16, 32], strides = [1, 1]} : vector<16x96xf32> to vector<16x32xf32>
    %331 = vector.extract_strided_slice %329 {offsets = [0, 32], sizes = [16, 32], strides = [1, 1]} : vector<16x96xf32> to vector<16x32xf32>
    %332 = vector.extract_strided_slice %329 {offsets = [0, 64], sizes = [16, 32], strides = [1, 1]} : vector<16x96xf32> to vector<16x32xf32>
    %c192 = arith.constant 192 : index
    %c0_235 = arith.constant 0 : index
    %333 = vector.load %arg3[%c192, %c0_235] : memref<1392x128xf32, #tpu.memory_space<vmem>>, vector<32x32xf32>
    %334 = arith.truncf %333 : vector<32x32xf32> to vector<32x32xbf16>
    %335 = vector.extract_strided_slice %330 {offsets = [0, 0], sizes = [8, 32], strides = [1, 1]} : vector<16x32xf32> to vector<8x32xf32>
    %336 = arith.truncf %335 : vector<8x32xf32> to vector<8x32xbf16>
    %337 = vector.extract_strided_slice %331 {offsets = [0, 0], sizes = [8, 32], strides = [1, 1]} : vector<16x32xf32> to vector<8x32xf32>
    %338 = arith.truncf %337 : vector<8x32xf32> to vector<8x32xbf16>
    %339 = vector.extract_strided_slice %332 {offsets = [0, 0], sizes = [8, 32], strides = [1, 1]} : vector<16x32xf32> to vector<8x32xf32>
    %340 = arith.truncf %339 : vector<8x32xf32> to vector<8x32xbf16>
    %341 = vector.extract_strided_slice %336 {offsets = [0, 0], sizes = [8, 8], strides = [1, 1]} : vector<8x32xbf16> to vector<8x8xbf16>
    %342 = vector.extract_strided_slice %338 {offsets = [0, 0], sizes = [8, 8], strides = [1, 1]} : vector<8x32xbf16> to vector<8x8xbf16>
    %cst_236 = arith.constant dense<0.000000e+00> : vector<8x8xf32>
    %343 = tpu.matmul %341, %342, %cst_236 {dimension_numbers = #tpu.dot_dimension_numbers<[1], [1], [0], [0], [0, 0, 1, 0], [], []>} : vector<8x8xbf16>, vector<8x8xbf16>, vector<8x8xf32> -> vector<8x8xf32>
    %cst_237 = arith.constant 0.353553385 : f32
    %344 = vector.broadcast %cst_237 : f32 to vector<8x8xf32>
    %345 = arith.mulf %343, %344 : vector<8x8xf32>
    %cst_238 = arith.constant dense<0xFF800000> : vector<8xf32>
    %346 = vector.multi_reduction <maximumf>, %345, %cst_238 [1] : vector<8x8xf32> to vector<8xf32>
    %347 = vector.shape_cast %346 : vector<8xf32> to vector<8x1xf32>
    %348 = vector.broadcast %347 : vector<8x1xf32> to vector<8x8xf32>
    %349 = arith.subf %345, %348 : vector<8x8xf32>
    %350 = math.exp %349 : vector<8x8xf32>
    %cst_239 = arith.constant dense<0.000000e+00> : vector<8xf32>
    %351 = vector.multi_reduction <add>, %350, %cst_239 [1] : vector<8x8xf32> to vector<8xf32>
    %352 = vector.shape_cast %351 : vector<8xf32> to vector<8x1xf32>
    %353 = tpu.reciprocal %352 {approx = true} : vector<8x1xf32> -> vector<8x1xf32>
    %354 = vector.broadcast %353 : vector<8x1xf32> to vector<8x8xf32>
    %355 = arith.mulf %350, %354 : vector<8x8xf32>
    %356 = arith.truncf %355 : vector<8x8xf32> to vector<8x8xbf16>
    %357 = vector.extract_strided_slice %340 {offsets = [0, 0], sizes = [8, 8], strides = [1, 1]} : vector<8x32xbf16> to vector<8x8xbf16>
    %cst_240 = arith.constant dense<0.000000e+00> : vector<8x8xf32>
    %358 = tpu.matmul %356, %357, %cst_240 {dimension_numbers = #tpu.dot_dimension_numbers<[1], [0], [0], [1], [0, 0, 1, 1], [], []>} : vector<8x8xbf16>, vector<8x8xbf16>, vector<8x8xf32> -> vector<8x8xf32>
    %359 = arith.truncf %358 : vector<8x8xf32> to vector<8x8xbf16>
    %360 = vector.extract_strided_slice %334 {offsets = [0, 0], sizes = [8, 32], strides = [1, 1]} : vector<32x32xbf16> to vector<8x32xbf16>
    %cst_241 = arith.constant dense<0.000000e+00> : vector<8x32xf32>
    %361 = tpu.matmul %359, %360, %cst_241 {dimension_numbers = #tpu.dot_dimension_numbers<[1], [0], [0], [1], [0, 0, 1, 1], [], []>} : vector<8x8xbf16>, vector<8x32xbf16>, vector<8x32xf32> -> vector<8x32xf32>
    %362 = vector.extract_strided_slice %336 {offsets = [0, 8], sizes = [8, 8], strides = [1, 1]} : vector<8x32xbf16> to vector<8x8xbf16>
    %363 = vector.extract_strided_slice %338 {offsets = [0, 8], sizes = [8, 8], strides = [1, 1]} : vector<8x32xbf16> to vector<8x8xbf16>
    %cst_242 = arith.constant dense<0.000000e+00> : vector<8x8xf32>
    %364 = tpu.matmul %362, %363, %cst_242 {dimension_numbers = #tpu.dot_dimension_numbers<[1], [1], [0], [0], [0, 0, 1, 0], [], []>} : vector<8x8xbf16>, vector<8x8xbf16>, vector<8x8xf32> -> vector<8x8xf32>
    %cst_243 = arith.constant 0.353553385 : f32
    %365 = vector.broadcast %cst_243 : f32 to vector<8x8xf32>
    %366 = arith.mulf %364, %365 : vector<8x8xf32>
    %cst_244 = arith.constant dense<0xFF800000> : vector<8xf32>
    %367 = vector.multi_reduction <maximumf>, %366, %cst_244 [1] : vector<8x8xf32> to vector<8xf32>
    %368 = vector.shape_cast %367 : vector<8xf32> to vector<8x1xf32>
    %369 = vector.broadcast %368 : vector<8x1xf32> to vector<8x8xf32>
    %370 = arith.subf %366, %369 : vector<8x8xf32>
    %371 = math.exp %370 : vector<8x8xf32>
    %cst_245 = arith.constant dense<0.000000e+00> : vector<8xf32>
    %372 = vector.multi_reduction <add>, %371, %cst_245 [1] : vector<8x8xf32> to vector<8xf32>
    %373 = vector.shape_cast %372 : vector<8xf32> to vector<8x1xf32>
    %374 = tpu.reciprocal %373 {approx = true} : vector<8x1xf32> -> vector<8x1xf32>
    %375 = vector.broadcast %374 : vector<8x1xf32> to vector<8x8xf32>
    %376 = arith.mulf %371, %375 : vector<8x8xf32>
    %377 = arith.truncf %376 : vector<8x8xf32> to vector<8x8xbf16>
    %378 = vector.extract_strided_slice %340 {offsets = [0, 8], sizes = [8, 8], strides = [1, 1]} : vector<8x32xbf16> to vector<8x8xbf16>
    %cst_246 = arith.constant dense<0.000000e+00> : vector<8x8xf32>
    %379 = tpu.matmul %377, %378, %cst_246 {dimension_numbers = #tpu.dot_dimension_numbers<[1], [0], [0], [1], [0, 0, 1, 1], [], []>} : vector<8x8xbf16>, vector<8x8xbf16>, vector<8x8xf32> -> vector<8x8xf32>
    %380 = arith.truncf %379 : vector<8x8xf32> to vector<8x8xbf16>
    %381 = vector.extract_strided_slice %334 {offsets = [8, 0], sizes = [8, 32], strides = [1, 1]} : vector<32x32xbf16> to vector<8x32xbf16>
    %cst_247 = arith.constant dense<0.000000e+00> : vector<8x32xf32>
    %382 = tpu.matmul %380, %381, %cst_247 {dimension_numbers = #tpu.dot_dimension_numbers<[1], [0], [0], [1], [0, 0, 1, 1], [], []>} : vector<8x8xbf16>, vector<8x32xbf16>, vector<8x32xf32> -> vector<8x32xf32>
    %383 = arith.addf %361, %382 : vector<8x32xf32>
    %384 = vector.extract_strided_slice %336 {offsets = [0, 16], sizes = [8, 8], strides = [1, 1]} : vector<8x32xbf16> to vector<8x8xbf16>
    %385 = vector.extract_strided_slice %338 {offsets = [0, 16], sizes = [8, 8], strides = [1, 1]} : vector<8x32xbf16> to vector<8x8xbf16>
    %cst_248 = arith.constant dense<0.000000e+00> : vector<8x8xf32>
    %386 = tpu.matmul %384, %385, %cst_248 {dimension_numbers = #tpu.dot_dimension_numbers<[1], [1], [0], [0], [0, 0, 1, 0], [], []>} : vector<8x8xbf16>, vector<8x8xbf16>, vector<8x8xf32> -> vector<8x8xf32>
    %cst_249 = arith.constant 0.353553385 : f32
    %387 = vector.broadcast %cst_249 : f32 to vector<8x8xf32>
    %388 = arith.mulf %386, %387 : vector<8x8xf32>
    %cst_250 = arith.constant dense<0xFF800000> : vector<8xf32>
    %389 = vector.multi_reduction <maximumf>, %388, %cst_250 [1] : vector<8x8xf32> to vector<8xf32>
    %390 = vector.shape_cast %389 : vector<8xf32> to vector<8x1xf32>
    %391 = vector.broadcast %390 : vector<8x1xf32> to vector<8x8xf32>
    %392 = arith.subf %388, %391 : vector<8x8xf32>
    %393 = math.exp %392 : vector<8x8xf32>
    %cst_251 = arith.constant dense<0.000000e+00> : vector<8xf32>
    %394 = vector.multi_reduction <add>, %393, %cst_251 [1] : vector<8x8xf32> to vector<8xf32>
    %395 = vector.shape_cast %394 : vector<8xf32> to vector<8x1xf32>
    %396 = tpu.reciprocal %395 {approx = true} : vector<8x1xf32> -> vector<8x1xf32>
    %397 = vector.broadcast %396 : vector<8x1xf32> to vector<8x8xf32>
    %398 = arith.mulf %393, %397 : vector<8x8xf32>
    %399 = arith.truncf %398 : vector<8x8xf32> to vector<8x8xbf16>
    %400 = vector.extract_strided_slice %340 {offsets = [0, 16], sizes = [8, 8], strides = [1, 1]} : vector<8x32xbf16> to vector<8x8xbf16>
    %cst_252 = arith.constant dense<0.000000e+00> : vector<8x8xf32>
    %401 = tpu.matmul %399, %400, %cst_252 {dimension_numbers = #tpu.dot_dimension_numbers<[1], [0], [0], [1], [0, 0, 1, 1], [], []>} : vector<8x8xbf16>, vector<8x8xbf16>, vector<8x8xf32> -> vector<8x8xf32>
    %402 = arith.truncf %401 : vector<8x8xf32> to vector<8x8xbf16>
    %403 = vector.extract_strided_slice %334 {offsets = [16, 0], sizes = [8, 32], strides = [1, 1]} : vector<32x32xbf16> to vector<8x32xbf16>
    %cst_253 = arith.constant dense<0.000000e+00> : vector<8x32xf32>
    %404 = tpu.matmul %402, %403, %cst_253 {dimension_numbers = #tpu.dot_dimension_numbers<[1], [0], [0], [1], [0, 0, 1, 1], [], []>} : vector<8x8xbf16>, vector<8x32xbf16>, vector<8x32xf32> -> vector<8x32xf32>
    %405 = arith.addf %383, %404 : vector<8x32xf32>
    %406 = vector.extract_strided_slice %336 {offsets = [0, 24], sizes = [8, 8], strides = [1, 1]} : vector<8x32xbf16> to vector<8x8xbf16>
    %407 = vector.extract_strided_slice %338 {offsets = [0, 24], sizes = [8, 8], strides = [1, 1]} : vector<8x32xbf16> to vector<8x8xbf16>
    %cst_254 = arith.constant dense<0.000000e+00> : vector<8x8xf32>
    %408 = tpu.matmul %406, %407, %cst_254 {dimension_numbers = #tpu.dot_dimension_numbers<[1], [1], [0], [0], [0, 0, 1, 0], [], []>} : vector<8x8xbf16>, vector<8x8xbf16>, vector<8x8xf32> -> vector<8x8xf32>
    %cst_255 = arith.constant 0.353553385 : f32
    %409 = vector.broadcast %cst_255 : f32 to vector<8x8xf32>
    %410 = arith.mulf %408, %409 : vector<8x8xf32>
    %cst_256 = arith.constant dense<0xFF800000> : vector<8xf32>
    %411 = vector.multi_reduction <maximumf>, %410, %cst_256 [1] : vector<8x8xf32> to vector<8xf32>
    %412 = vector.shape_cast %411 : vector<8xf32> to vector<8x1xf32>
    %413 = vector.broadcast %412 : vector<8x1xf32> to vector<8x8xf32>
    %414 = arith.subf %410, %413 : vector<8x8xf32>
    %415 = math.exp %414 : vector<8x8xf32>
    %cst_257 = arith.constant dense<0.000000e+00> : vector<8xf32>
    %416 = vector.multi_reduction <add>, %415, %cst_257 [1] : vector<8x8xf32> to vector<8xf32>
    %417 = vector.shape_cast %416 : vector<8xf32> to vector<8x1xf32>
    %418 = tpu.reciprocal %417 {approx = true} : vector<8x1xf32> -> vector<8x1xf32>
    %419 = vector.broadcast %418 : vector<8x1xf32> to vector<8x8xf32>
    %420 = arith.mulf %415, %419 : vector<8x8xf32>
    %421 = arith.truncf %420 : vector<8x8xf32> to vector<8x8xbf16>
    %422 = vector.extract_strided_slice %340 {offsets = [0, 24], sizes = [8, 8], strides = [1, 1]} : vector<8x32xbf16> to vector<8x8xbf16>
    %cst_258 = arith.constant dense<0.000000e+00> : vector<8x8xf32>
    %423 = tpu.matmul %421, %422, %cst_258 {dimension_numbers = #tpu.dot_dimension_numbers<[1], [0], [0], [1], [0, 0, 1, 1], [], []>} : vector<8x8xbf16>, vector<8x8xbf16>, vector<8x8xf32> -> vector<8x8xf32>
    %424 = arith.truncf %423 : vector<8x8xf32> to vector<8x8xbf16>
    %425 = vector.extract_strided_slice %334 {offsets = [24, 0], sizes = [8, 32], strides = [1, 1]} : vector<32x32xbf16> to vector<8x32xbf16>
    %cst_259 = arith.constant dense<0.000000e+00> : vector<8x32xf32>
    %426 = tpu.matmul %424, %425, %cst_259 {dimension_numbers = #tpu.dot_dimension_numbers<[1], [0], [0], [1], [0, 0, 1, 1], [], []>} : vector<8x8xbf16>, vector<8x32xbf16>, vector<8x32xf32> -> vector<8x32xf32>
    %427 = arith.addf %405, %426 : vector<8x32xf32>
    %428 = vector.extract_strided_slice %330 {offsets = [8, 0], sizes = [8, 32], strides = [1, 1]} : vector<16x32xf32> to vector<8x32xf32>
    %429 = arith.truncf %428 : vector<8x32xf32> to vector<8x32xbf16>
    %430 = vector.extract_strided_slice %331 {offsets = [8, 0], sizes = [8, 32], strides = [1, 1]} : vector<16x32xf32> to vector<8x32xf32>
    %431 = arith.truncf %430 : vector<8x32xf32> to vector<8x32xbf16>
    %432 = vector.extract_strided_slice %332 {offsets = [8, 0], sizes = [8, 32], strides = [1, 1]} : vector<16x32xf32> to vector<8x32xf32>
    %433 = arith.truncf %432 : vector<8x32xf32> to vector<8x32xbf16>
    %434 = vector.extract_strided_slice %429 {offsets = [0, 0], sizes = [8, 8], strides = [1, 1]} : vector<8x32xbf16> to vector<8x8xbf16>
    %435 = vector.extract_strided_slice %431 {offsets = [0, 0], sizes = [8, 8], strides = [1, 1]} : vector<8x32xbf16> to vector<8x8xbf16>
    %cst_260 = arith.constant dense<0.000000e+00> : vector<8x8xf32>
    %436 = tpu.matmul %434, %435, %cst_260 {dimension_numbers = #tpu.dot_dimension_numbers<[1], [1], [0], [0], [0, 0, 1, 0], [], []>} : vector<8x8xbf16>, vector<8x8xbf16>, vector<8x8xf32> -> vector<8x8xf32>
    %cst_261 = arith.constant 0.353553385 : f32
    %437 = vector.broadcast %cst_261 : f32 to vector<8x8xf32>
    %438 = arith.mulf %436, %437 : vector<8x8xf32>
    %cst_262 = arith.constant dense<0xFF800000> : vector<8xf32>
    %439 = vector.multi_reduction <maximumf>, %438, %cst_262 [1] : vector<8x8xf32> to vector<8xf32>
    %440 = vector.shape_cast %439 : vector<8xf32> to vector<8x1xf32>
    %441 = vector.broadcast %440 : vector<8x1xf32> to vector<8x8xf32>
    %442 = arith.subf %438, %441 : vector<8x8xf32>
    %443 = math.exp %442 : vector<8x8xf32>
    %cst_263 = arith.constant dense<0.000000e+00> : vector<8xf32>
    %444 = vector.multi_reduction <add>, %443, %cst_263 [1] : vector<8x8xf32> to vector<8xf32>
    %445 = vector.shape_cast %444 : vector<8xf32> to vector<8x1xf32>
    %446 = tpu.reciprocal %445 {approx = true} : vector<8x1xf32> -> vector<8x1xf32>
    %447 = vector.broadcast %446 : vector<8x1xf32> to vector<8x8xf32>
    %448 = arith.mulf %443, %447 : vector<8x8xf32>
    %449 = arith.truncf %448 : vector<8x8xf32> to vector<8x8xbf16>
    %450 = vector.extract_strided_slice %433 {offsets = [0, 0], sizes = [8, 8], strides = [1, 1]} : vector<8x32xbf16> to vector<8x8xbf16>
    %cst_264 = arith.constant dense<0.000000e+00> : vector<8x8xf32>
    %451 = tpu.matmul %449, %450, %cst_264 {dimension_numbers = #tpu.dot_dimension_numbers<[1], [0], [0], [1], [0, 0, 1, 1], [], []>} : vector<8x8xbf16>, vector<8x8xbf16>, vector<8x8xf32> -> vector<8x8xf32>
    %452 = arith.truncf %451 : vector<8x8xf32> to vector<8x8xbf16>
    %453 = vector.extract_strided_slice %334 {offsets = [0, 0], sizes = [8, 32], strides = [1, 1]} : vector<32x32xbf16> to vector<8x32xbf16>
    %cst_265 = arith.constant dense<0.000000e+00> : vector<8x32xf32>
    %454 = tpu.matmul %452, %453, %cst_265 {dimension_numbers = #tpu.dot_dimension_numbers<[1], [0], [0], [1], [0, 0, 1, 1], [], []>} : vector<8x8xbf16>, vector<8x32xbf16>, vector<8x32xf32> -> vector<8x32xf32>
    %455 = vector.extract_strided_slice %429 {offsets = [0, 8], sizes = [8, 8], strides = [1, 1]} : vector<8x32xbf16> to vector<8x8xbf16>
    %456 = vector.extract_strided_slice %431 {offsets = [0, 8], sizes = [8, 8], strides = [1, 1]} : vector<8x32xbf16> to vector<8x8xbf16>
    %cst_266 = arith.constant dense<0.000000e+00> : vector<8x8xf32>
    %457 = tpu.matmul %455, %456, %cst_266 {dimension_numbers = #tpu.dot_dimension_numbers<[1], [1], [0], [0], [0, 0, 1, 0], [], []>} : vector<8x8xbf16>, vector<8x8xbf16>, vector<8x8xf32> -> vector<8x8xf32>
    %cst_267 = arith.constant 0.353553385 : f32
    %458 = vector.broadcast %cst_267 : f32 to vector<8x8xf32>
    %459 = arith.mulf %457, %458 : vector<8x8xf32>
    %cst_268 = arith.constant dense<0xFF800000> : vector<8xf32>
    %460 = vector.multi_reduction <maximumf>, %459, %cst_268 [1] : vector<8x8xf32> to vector<8xf32>
    %461 = vector.shape_cast %460 : vector<8xf32> to vector<8x1xf32>
    %462 = vector.broadcast %461 : vector<8x1xf32> to vector<8x8xf32>
    %463 = arith.subf %459, %462 : vector<8x8xf32>
    %464 = math.exp %463 : vector<8x8xf32>
    %cst_269 = arith.constant dense<0.000000e+00> : vector<8xf32>
    %465 = vector.multi_reduction <add>, %464, %cst_269 [1] : vector<8x8xf32> to vector<8xf32>
    %466 = vector.shape_cast %465 : vector<8xf32> to vector<8x1xf32>
    %467 = tpu.reciprocal %466 {approx = true} : vector<8x1xf32> -> vector<8x1xf32>
    %468 = vector.broadcast %467 : vector<8x1xf32> to vector<8x8xf32>
    %469 = arith.mulf %464, %468 : vector<8x8xf32>
    %470 = arith.truncf %469 : vector<8x8xf32> to vector<8x8xbf16>
    %471 = vector.extract_strided_slice %433 {offsets = [0, 8], sizes = [8, 8], strides = [1, 1]} : vector<8x32xbf16> to vector<8x8xbf16>
    %cst_270 = arith.constant dense<0.000000e+00> : vector<8x8xf32>
    %472 = tpu.matmul %470, %471, %cst_270 {dimension_numbers = #tpu.dot_dimension_numbers<[1], [0], [0], [1], [0, 0, 1, 1], [], []>} : vector<8x8xbf16>, vector<8x8xbf16>, vector<8x8xf32> -> vector<8x8xf32>
    %473 = arith.truncf %472 : vector<8x8xf32> to vector<8x8xbf16>
    %474 = vector.extract_strided_slice %334 {offsets = [8, 0], sizes = [8, 32], strides = [1, 1]} : vector<32x32xbf16> to vector<8x32xbf16>
    %cst_271 = arith.constant dense<0.000000e+00> : vector<8x32xf32>
    %475 = tpu.matmul %473, %474, %cst_271 {dimension_numbers = #tpu.dot_dimension_numbers<[1], [0], [0], [1], [0, 0, 1, 1], [], []>} : vector<8x8xbf16>, vector<8x32xbf16>, vector<8x32xf32> -> vector<8x32xf32>
    %476 = arith.addf %454, %475 : vector<8x32xf32>
    %477 = vector.extract_strided_slice %429 {offsets = [0, 16], sizes = [8, 8], strides = [1, 1]} : vector<8x32xbf16> to vector<8x8xbf16>
    %478 = vector.extract_strided_slice %431 {offsets = [0, 16], sizes = [8, 8], strides = [1, 1]} : vector<8x32xbf16> to vector<8x8xbf16>
    %cst_272 = arith.constant dense<0.000000e+00> : vector<8x8xf32>
    %479 = tpu.matmul %477, %478, %cst_272 {dimension_numbers = #tpu.dot_dimension_numbers<[1], [1], [0], [0], [0, 0, 1, 0], [], []>} : vector<8x8xbf16>, vector<8x8xbf16>, vector<8x8xf32> -> vector<8x8xf32>
    %cst_273 = arith.constant 0.353553385 : f32
    %480 = vector.broadcast %cst_273 : f32 to vector<8x8xf32>
    %481 = arith.mulf %479, %480 : vector<8x8xf32>
    %cst_274 = arith.constant dense<0xFF800000> : vector<8xf32>
    %482 = vector.multi_reduction <maximumf>, %481, %cst_274 [1] : vector<8x8xf32> to vector<8xf32>
    %483 = vector.shape_cast %482 : vector<8xf32> to vector<8x1xf32>
    %484 = vector.broadcast %483 : vector<8x1xf32> to vector<8x8xf32>
    %485 = arith.subf %481, %484 : vector<8x8xf32>
    %486 = math.exp %485 : vector<8x8xf32>
    %cst_275 = arith.constant dense<0.000000e+00> : vector<8xf32>
    %487 = vector.multi_reduction <add>, %486, %cst_275 [1] : vector<8x8xf32> to vector<8xf32>
    %488 = vector.shape_cast %487 : vector<8xf32> to vector<8x1xf32>
    %489 = tpu.reciprocal %488 {approx = true} : vector<8x1xf32> -> vector<8x1xf32>
    %490 = vector.broadcast %489 : vector<8x1xf32> to vector<8x8xf32>
    %491 = arith.mulf %486, %490 : vector<8x8xf32>
    %492 = arith.truncf %491 : vector<8x8xf32> to vector<8x8xbf16>
    %493 = vector.extract_strided_slice %433 {offsets = [0, 16], sizes = [8, 8], strides = [1, 1]} : vector<8x32xbf16> to vector<8x8xbf16>
    %cst_276 = arith.constant dense<0.000000e+00> : vector<8x8xf32>
    %494 = tpu.matmul %492, %493, %cst_276 {dimension_numbers = #tpu.dot_dimension_numbers<[1], [0], [0], [1], [0, 0, 1, 1], [], []>} : vector<8x8xbf16>, vector<8x8xbf16>, vector<8x8xf32> -> vector<8x8xf32>
    %495 = arith.truncf %494 : vector<8x8xf32> to vector<8x8xbf16>
    %496 = vector.extract_strided_slice %334 {offsets = [16, 0], sizes = [8, 32], strides = [1, 1]} : vector<32x32xbf16> to vector<8x32xbf16>
    %cst_277 = arith.constant dense<0.000000e+00> : vector<8x32xf32>
    %497 = tpu.matmul %495, %496, %cst_277 {dimension_numbers = #tpu.dot_dimension_numbers<[1], [0], [0], [1], [0, 0, 1, 1], [], []>} : vector<8x8xbf16>, vector<8x32xbf16>, vector<8x32xf32> -> vector<8x32xf32>
    %498 = arith.addf %476, %497 : vector<8x32xf32>
    %499 = vector.extract_strided_slice %429 {offsets = [0, 24], sizes = [8, 8], strides = [1, 1]} : vector<8x32xbf16> to vector<8x8xbf16>
    %500 = vector.extract_strided_slice %431 {offsets = [0, 24], sizes = [8, 8], strides = [1, 1]} : vector<8x32xbf16> to vector<8x8xbf16>
    %cst_278 = arith.constant dense<0.000000e+00> : vector<8x8xf32>
    %501 = tpu.matmul %499, %500, %cst_278 {dimension_numbers = #tpu.dot_dimension_numbers<[1], [1], [0], [0], [0, 0, 1, 0], [], []>} : vector<8x8xbf16>, vector<8x8xbf16>, vector<8x8xf32> -> vector<8x8xf32>
    %cst_279 = arith.constant 0.353553385 : f32
    %502 = vector.broadcast %cst_279 : f32 to vector<8x8xf32>
    %503 = arith.mulf %501, %502 : vector<8x8xf32>
    %cst_280 = arith.constant dense<0xFF800000> : vector<8xf32>
    %504 = vector.multi_reduction <maximumf>, %503, %cst_280 [1] : vector<8x8xf32> to vector<8xf32>
    %505 = vector.shape_cast %504 : vector<8xf32> to vector<8x1xf32>
    %506 = vector.broadcast %505 : vector<8x1xf32> to vector<8x8xf32>
    %507 = arith.subf %503, %506 : vector<8x8xf32>
    %508 = math.exp %507 : vector<8x8xf32>
    %cst_281 = arith.constant dense<0.000000e+00> : vector<8xf32>
    %509 = vector.multi_reduction <add>, %508, %cst_281 [1] : vector<8x8xf32> to vector<8xf32>
    %510 = vector.shape_cast %509 : vector<8xf32> to vector<8x1xf32>
    %511 = tpu.reciprocal %510 {approx = true} : vector<8x1xf32> -> vector<8x1xf32>
    %512 = vector.broadcast %511 : vector<8x1xf32> to vector<8x8xf32>
    %513 = arith.mulf %508, %512 : vector<8x8xf32>
    %514 = arith.truncf %513 : vector<8x8xf32> to vector<8x8xbf16>
    %515 = vector.extract_strided_slice %433 {offsets = [0, 24], sizes = [8, 8], strides = [1, 1]} : vector<8x32xbf16> to vector<8x8xbf16>
    %cst_282 = arith.constant dense<0.000000e+00> : vector<8x8xf32>
    %516 = tpu.matmul %514, %515, %cst_282 {dimension_numbers = #tpu.dot_dimension_numbers<[1], [0], [0], [1], [0, 0, 1, 1], [], []>} : vector<8x8xbf16>, vector<8x8xbf16>, vector<8x8xf32> -> vector<8x8xf32>
    %517 = arith.truncf %516 : vector<8x8xf32> to vector<8x8xbf16>
    %518 = vector.extract_strided_slice %334 {offsets = [24, 0], sizes = [8, 32], strides = [1, 1]} : vector<32x32xbf16> to vector<8x32xbf16>
    %cst_283 = arith.constant dense<0.000000e+00> : vector<8x32xf32>
    %519 = tpu.matmul %517, %518, %cst_283 {dimension_numbers = #tpu.dot_dimension_numbers<[1], [0], [0], [1], [0, 0, 1, 1], [], []>} : vector<8x8xbf16>, vector<8x32xbf16>, vector<8x32xf32> -> vector<8x32xf32>
    %520 = arith.addf %498, %519 : vector<8x32xf32>
    %521 = tpu.concatenate %427, %520 in 0 : vector<8x32xf32>, vector<8x32xf32> -> vector<16x32xf32>
    %c224 = arith.constant 224 : index
    %c0_284 = arith.constant 0 : index
    %522 = vector.load %arg3[%c224, %c0_284] : memref<1392x128xf32, #tpu.memory_space<vmem>>, vector<1x32xf32>
    %523 = vector.broadcast %522 : vector<1x32xf32> to vector<16x32xf32>
    %524 = arith.addf %521, %523 : vector<16x32xf32>
    %525 = arith.addf %321, %524 : vector<16x32xf32>
    %cst_285 = arith.constant dense<0.000000e+00> : vector<16xf32>
    %526 = vector.multi_reduction <add>, %525, %cst_285 [1] : vector<16x32xf32> to vector<16xf32>
    %527 = vector.shape_cast %526 : vector<16xf32> to vector<16x1xf32>
    %cst_286 = arith.constant 3.200000e+01 : f32
    %528 = vector.broadcast %cst_286 : f32 to vector<16x1xf32>
    %529 = arith.divf %527, %528 : vector<16x1xf32>
    %530 = vector.broadcast %529 : vector<16x1xf32> to vector<16x32xf32>
    %531 = arith.subf %525, %530 : vector<16x32xf32>
    %532 = arith.mulf %531, %531 : vector<16x32xf32>
    %cst_287 = arith.constant dense<0.000000e+00> : vector<16xf32>
    %533 = vector.multi_reduction <add>, %532, %cst_287 [1] : vector<16x32xf32> to vector<16xf32>
    %534 = vector.shape_cast %533 : vector<16xf32> to vector<16x1xf32>
    %cst_288 = arith.constant 3.200000e+01 : f32
    %535 = vector.broadcast %cst_288 : f32 to vector<16x1xf32>
    %536 = arith.divf %534, %535 : vector<16x1xf32>
    %cst_289 = arith.constant 9.99999974E-6 : f32
    %537 = vector.broadcast %cst_289 : f32 to vector<16x1xf32>
    %538 = arith.addf %536, %537 : vector<16x1xf32>
    %539 = math.rsqrt %538 : vector<16x1xf32>
    %540 = vector.broadcast %539 : vector<16x1xf32> to vector<16x32xf32>
    %541 = arith.mulf %531, %540 : vector<16x32xf32>
    %c344 = arith.constant 344 : index
    %c0_290 = arith.constant 0 : index
    %542 = vector.load %arg3[%c344, %c0_290] : memref<1392x128xf32, #tpu.memory_space<vmem>>, vector<1x32xf32>
    %543 = vector.broadcast %542 : vector<1x32xf32> to vector<16x32xf32>
    %544 = arith.mulf %541, %543 : vector<16x32xf32>
    %c352 = arith.constant 352 : index
    %c0_291 = arith.constant 0 : index
    %545 = vector.load %arg3[%c352, %c0_291] : memref<1392x128xf32, #tpu.memory_space<vmem>>, vector<1x32xf32>
    %546 = vector.broadcast %545 : vector<1x32xf32> to vector<16x32xf32>
    %547 = arith.addf %544, %546 : vector<16x32xf32>
    %c232 = arith.constant 232 : index
    %c0_292 = arith.constant 0 : index
    %548 = vector.load %arg3[%c232, %c0_292] : memref<1392x128xf32, #tpu.memory_space<vmem>>, vector<32x64xf32>
    %549 = arith.truncf %548 : vector<32x64xf32> to vector<32x64xbf16>
    %550 = arith.truncf %547 : vector<16x32xf32> to vector<16x32xbf16>
    %cst_293 = arith.constant dense<0.000000e+00> : vector<16x64xf32>
    %551 = tpu.matmul %550, %549, %cst_293 {dimension_numbers = #tpu.dot_dimension_numbers<[1], [0], [0], [1], [0, 0, 1, 1], [], []>} : vector<16x32xbf16>, vector<32x64xbf16>, vector<16x64xf32> -> vector<16x64xf32>
    %c264 = arith.constant 264 : index
    %c0_294 = arith.constant 0 : index
    %552 = vector.load %arg3[%c264, %c0_294] : memref<1392x128xf32, #tpu.memory_space<vmem>>, vector<1x64xf32>
    %553 = vector.broadcast %552 : vector<1x64xf32> to vector<16x64xf32>
    %554 = arith.addf %551, %553 : vector<16x64xf32>
    %cst_295 = arith.constant 0.000000e+00 : f32
    %555 = vector.broadcast %cst_295 : f32 to vector<16x64xf32>
    %556 = arith.maximumf %554, %555 : vector<16x64xf32>
    %c272 = arith.constant 272 : index
    %c0_296 = arith.constant 0 : index
    %557 = vector.load %arg3[%c272, %c0_296] : memref<1392x128xf32, #tpu.memory_space<vmem>>, vector<64x32xf32>
    %558 = arith.truncf %557 : vector<64x32xf32> to vector<64x32xbf16>
    %559 = arith.truncf %556 : vector<16x64xf32> to vector<16x64xbf16>
    %cst_297 = arith.constant dense<0.000000e+00> : vector<16x32xf32>
    %560 = tpu.matmul %559, %558, %cst_297 {dimension_numbers = #tpu.dot_dimension_numbers<[1], [0], [0], [1], [0, 0, 1, 1], [], []>} : vector<16x64xbf16>, vector<64x32xbf16>, vector<16x32xf32> -> vector<16x32xf32>
    %c336 = arith.constant 336 : index
    %c0_298 = arith.constant 0 : index
    %561 = vector.load %arg3[%c336, %c0_298] : memref<1392x128xf32, #tpu.memory_space<vmem>>, vector<1x32xf32>
    %562 = vector.broadcast %561 : vector<1x32xf32> to vector<16x32xf32>
    %563 = arith.addf %560, %562 : vector<16x32xf32>
    %564 = arith.addf %547, %563 : vector<16x32xf32>
    %cst_299 = arith.constant dense<0.000000e+00> : vector<16xf32>
    %565 = vector.multi_reduction <add>, %564, %cst_299 [1] : vector<16x32xf32> to vector<16xf32>
    %566 = vector.shape_cast %565 : vector<16xf32> to vector<16x1xf32>
    %cst_300 = arith.constant 3.200000e+01 : f32
    %567 = vector.broadcast %cst_300 : f32 to vector<16x1xf32>
    %568 = arith.divf %566, %567 : vector<16x1xf32>
    %569 = vector.broadcast %568 : vector<16x1xf32> to vector<16x32xf32>
    %570 = arith.subf %564, %569 : vector<16x32xf32>
    %571 = arith.mulf %570, %570 : vector<16x32xf32>
    %cst_301 = arith.constant dense<0.000000e+00> : vector<16xf32>
    %572 = vector.multi_reduction <add>, %571, %cst_301 [1] : vector<16x32xf32> to vector<16xf32>
    %573 = vector.shape_cast %572 : vector<16xf32> to vector<16x1xf32>
    %cst_302 = arith.constant 3.200000e+01 : f32
    %574 = vector.broadcast %cst_302 : f32 to vector<16x1xf32>
    %575 = arith.divf %573, %574 : vector<16x1xf32>
    %cst_303 = arith.constant 9.99999974E-6 : f32
    %576 = vector.broadcast %cst_303 : f32 to vector<16x1xf32>
    %577 = arith.addf %575, %576 : vector<16x1xf32>
    %578 = math.rsqrt %577 : vector<16x1xf32>
    %579 = vector.broadcast %578 : vector<16x1xf32> to vector<16x32xf32>
    %580 = arith.mulf %570, %579 : vector<16x32xf32>
    %c360 = arith.constant 360 : index
    %c0_304 = arith.constant 0 : index
    %581 = vector.load %arg3[%c360, %c0_304] : memref<1392x128xf32, #tpu.memory_space<vmem>>, vector<1x32xf32>
    %582 = vector.broadcast %581 : vector<1x32xf32> to vector<16x32xf32>
    %583 = arith.mulf %580, %582 : vector<16x32xf32>
    %c368 = arith.constant 368 : index
    %c0_305 = arith.constant 0 : index
    %584 = vector.load %arg3[%c368, %c0_305] : memref<1392x128xf32, #tpu.memory_space<vmem>>, vector<1x32xf32>
    %585 = vector.broadcast %584 : vector<1x32xf32> to vector<16x32xf32>
    %586 = arith.addf %583, %585 : vector<16x32xf32>
    %c376 = arith.constant 376 : index
    %c0_306 = arith.constant 0 : index
    %587 = vector.load %arg3[%c376, %c0_306] : memref<1392x128xf32, #tpu.memory_space<vmem>>, vector<32x96xf32>
    %588 = arith.truncf %587 : vector<32x96xf32> to vector<32x96xbf16>
    %589 = arith.truncf %586 : vector<16x32xf32> to vector<16x32xbf16>
    %cst_307 = arith.constant dense<0.000000e+00> : vector<16x96xf32>
    %590 = tpu.matmul %589, %588, %cst_307 {dimension_numbers = #tpu.dot_dimension_numbers<[1], [0], [0], [1], [0, 0, 1, 1], [], []>} : vector<16x32xbf16>, vector<32x96xbf16>, vector<16x96xf32> -> vector<16x96xf32>
    %c408 = arith.constant 408 : index
    %c0_308 = arith.constant 0 : index
    %591 = vector.load %arg3[%c408, %c0_308] : memref<1392x128xf32, #tpu.memory_space<vmem>>, vector<1x96xf32>
    %592 = vector.broadcast %591 : vector<1x96xf32> to vector<16x96xf32>
    %593 = arith.addf %590, %592 : vector<16x96xf32>
    %594 = vector.extract_strided_slice %593 {offsets = [0, 0], sizes = [16, 32], strides = [1, 1]} : vector<16x96xf32> to vector<16x32xf32>
    %595 = vector.extract_strided_slice %593 {offsets = [0, 32], sizes = [16, 32], strides = [1, 1]} : vector<16x96xf32> to vector<16x32xf32>
    %596 = vector.extract_strided_slice %593 {offsets = [0, 64], sizes = [16, 32], strides = [1, 1]} : vector<16x96xf32> to vector<16x32xf32>
    %c416 = arith.constant 416 : index
    %c0_309 = arith.constant 0 : index
    %597 = vector.load %arg3[%c416, %c0_309] : memref<1392x128xf32, #tpu.memory_space<vmem>>, vector<32x32xf32>
    %598 = arith.truncf %597 : vector<32x32xf32> to vector<32x32xbf16>
    %599 = vector.extract_strided_slice %594 {offsets = [0, 0], sizes = [8, 32], strides = [1, 1]} : vector<16x32xf32> to vector<8x32xf32>
    %600 = arith.truncf %599 : vector<8x32xf32> to vector<8x32xbf16>
    %601 = vector.extract_strided_slice %595 {offsets = [0, 0], sizes = [8, 32], strides = [1, 1]} : vector<16x32xf32> to vector<8x32xf32>
    %602 = arith.truncf %601 : vector<8x32xf32> to vector<8x32xbf16>
    %603 = vector.extract_strided_slice %596 {offsets = [0, 0], sizes = [8, 32], strides = [1, 1]} : vector<16x32xf32> to vector<8x32xf32>
    %604 = arith.truncf %603 : vector<8x32xf32> to vector<8x32xbf16>
    %605 = vector.extract_strided_slice %600 {offsets = [0, 0], sizes = [8, 8], strides = [1, 1]} : vector<8x32xbf16> to vector<8x8xbf16>
    %606 = vector.extract_strided_slice %602 {offsets = [0, 0], sizes = [8, 8], strides = [1, 1]} : vector<8x32xbf16> to vector<8x8xbf16>
    %cst_310 = arith.constant dense<0.000000e+00> : vector<8x8xf32>
    %607 = tpu.matmul %605, %606, %cst_310 {dimension_numbers = #tpu.dot_dimension_numbers<[1], [1], [0], [0], [0, 0, 1, 0], [], []>} : vector<8x8xbf16>, vector<8x8xbf16>, vector<8x8xf32> -> vector<8x8xf32>
    %cst_311 = arith.constant 0.353553385 : f32
    %608 = vector.broadcast %cst_311 : f32 to vector<8x8xf32>
    %609 = arith.mulf %607, %608 : vector<8x8xf32>
    %cst_312 = arith.constant dense<0xFF800000> : vector<8xf32>
    %610 = vector.multi_reduction <maximumf>, %609, %cst_312 [1] : vector<8x8xf32> to vector<8xf32>
    %611 = vector.shape_cast %610 : vector<8xf32> to vector<8x1xf32>
    %612 = vector.broadcast %611 : vector<8x1xf32> to vector<8x8xf32>
    %613 = arith.subf %609, %612 : vector<8x8xf32>
    %614 = math.exp %613 : vector<8x8xf32>
    %cst_313 = arith.constant dense<0.000000e+00> : vector<8xf32>
    %615 = vector.multi_reduction <add>, %614, %cst_313 [1] : vector<8x8xf32> to vector<8xf32>
    %616 = vector.shape_cast %615 : vector<8xf32> to vector<8x1xf32>
    %617 = tpu.reciprocal %616 {approx = true} : vector<8x1xf32> -> vector<8x1xf32>
    %618 = vector.broadcast %617 : vector<8x1xf32> to vector<8x8xf32>
    %619 = arith.mulf %614, %618 : vector<8x8xf32>
    %620 = arith.truncf %619 : vector<8x8xf32> to vector<8x8xbf16>
    %621 = vector.extract_strided_slice %604 {offsets = [0, 0], sizes = [8, 8], strides = [1, 1]} : vector<8x32xbf16> to vector<8x8xbf16>
    %cst_314 = arith.constant dense<0.000000e+00> : vector<8x8xf32>
    %622 = tpu.matmul %620, %621, %cst_314 {dimension_numbers = #tpu.dot_dimension_numbers<[1], [0], [0], [1], [0, 0, 1, 1], [], []>} : vector<8x8xbf16>, vector<8x8xbf16>, vector<8x8xf32> -> vector<8x8xf32>
    %623 = arith.truncf %622 : vector<8x8xf32> to vector<8x8xbf16>
    %624 = vector.extract_strided_slice %598 {offsets = [0, 0], sizes = [8, 32], strides = [1, 1]} : vector<32x32xbf16> to vector<8x32xbf16>
    %cst_315 = arith.constant dense<0.000000e+00> : vector<8x32xf32>
    %625 = tpu.matmul %623, %624, %cst_315 {dimension_numbers = #tpu.dot_dimension_numbers<[1], [0], [0], [1], [0, 0, 1, 1], [], []>} : vector<8x8xbf16>, vector<8x32xbf16>, vector<8x32xf32> -> vector<8x32xf32>
    %626 = vector.extract_strided_slice %600 {offsets = [0, 8], sizes = [8, 8], strides = [1, 1]} : vector<8x32xbf16> to vector<8x8xbf16>
    %627 = vector.extract_strided_slice %602 {offsets = [0, 8], sizes = [8, 8], strides = [1, 1]} : vector<8x32xbf16> to vector<8x8xbf16>
    %cst_316 = arith.constant dense<0.000000e+00> : vector<8x8xf32>
    %628 = tpu.matmul %626, %627, %cst_316 {dimension_numbers = #tpu.dot_dimension_numbers<[1], [1], [0], [0], [0, 0, 1, 0], [], []>} : vector<8x8xbf16>, vector<8x8xbf16>, vector<8x8xf32> -> vector<8x8xf32>
    %cst_317 = arith.constant 0.353553385 : f32
    %629 = vector.broadcast %cst_317 : f32 to vector<8x8xf32>
    %630 = arith.mulf %628, %629 : vector<8x8xf32>
    %cst_318 = arith.constant dense<0xFF800000> : vector<8xf32>
    %631 = vector.multi_reduction <maximumf>, %630, %cst_318 [1] : vector<8x8xf32> to vector<8xf32>
    %632 = vector.shape_cast %631 : vector<8xf32> to vector<8x1xf32>
    %633 = vector.broadcast %632 : vector<8x1xf32> to vector<8x8xf32>
    %634 = arith.subf %630, %633 : vector<8x8xf32>
    %635 = math.exp %634 : vector<8x8xf32>
    %cst_319 = arith.constant dense<0.000000e+00> : vector<8xf32>
    %636 = vector.multi_reduction <add>, %635, %cst_319 [1] : vector<8x8xf32> to vector<8xf32>
    %637 = vector.shape_cast %636 : vector<8xf32> to vector<8x1xf32>
    %638 = tpu.reciprocal %637 {approx = true} : vector<8x1xf32> -> vector<8x1xf32>
    %639 = vector.broadcast %638 : vector<8x1xf32> to vector<8x8xf32>
    %640 = arith.mulf %635, %639 : vector<8x8xf32>
    %641 = arith.truncf %640 : vector<8x8xf32> to vector<8x8xbf16>
    %642 = vector.extract_strided_slice %604 {offsets = [0, 8], sizes = [8, 8], strides = [1, 1]} : vector<8x32xbf16> to vector<8x8xbf16>
    %cst_320 = arith.constant dense<0.000000e+00> : vector<8x8xf32>
    %643 = tpu.matmul %641, %642, %cst_320 {dimension_numbers = #tpu.dot_dimension_numbers<[1], [0], [0], [1], [0, 0, 1, 1], [], []>} : vector<8x8xbf16>, vector<8x8xbf16>, vector<8x8xf32> -> vector<8x8xf32>
    %644 = arith.truncf %643 : vector<8x8xf32> to vector<8x8xbf16>
    %645 = vector.extract_strided_slice %598 {offsets = [8, 0], sizes = [8, 32], strides = [1, 1]} : vector<32x32xbf16> to vector<8x32xbf16>
    %cst_321 = arith.constant dense<0.000000e+00> : vector<8x32xf32>
    %646 = tpu.matmul %644, %645, %cst_321 {dimension_numbers = #tpu.dot_dimension_numbers<[1], [0], [0], [1], [0, 0, 1, 1], [], []>} : vector<8x8xbf16>, vector<8x32xbf16>, vector<8x32xf32> -> vector<8x32xf32>
    %647 = arith.addf %625, %646 : vector<8x32xf32>
    %648 = vector.extract_strided_slice %600 {offsets = [0, 16], sizes = [8, 8], strides = [1, 1]} : vector<8x32xbf16> to vector<8x8xbf16>
    %649 = vector.extract_strided_slice %602 {offsets = [0, 16], sizes = [8, 8], strides = [1, 1]} : vector<8x32xbf16> to vector<8x8xbf16>
    %cst_322 = arith.constant dense<0.000000e+00> : vector<8x8xf32>
    %650 = tpu.matmul %648, %649, %cst_322 {dimension_numbers = #tpu.dot_dimension_numbers<[1], [1], [0], [0], [0, 0, 1, 0], [], []>} : vector<8x8xbf16>, vector<8x8xbf16>, vector<8x8xf32> -> vector<8x8xf32>
    %cst_323 = arith.constant 0.353553385 : f32
    %651 = vector.broadcast %cst_323 : f32 to vector<8x8xf32>
    %652 = arith.mulf %650, %651 : vector<8x8xf32>
    %cst_324 = arith.constant dense<0xFF800000> : vector<8xf32>
    %653 = vector.multi_reduction <maximumf>, %652, %cst_324 [1] : vector<8x8xf32> to vector<8xf32>
    %654 = vector.shape_cast %653 : vector<8xf32> to vector<8x1xf32>
    %655 = vector.broadcast %654 : vector<8x1xf32> to vector<8x8xf32>
    %656 = arith.subf %652, %655 : vector<8x8xf32>
    %657 = math.exp %656 : vector<8x8xf32>
    %cst_325 = arith.constant dense<0.000000e+00> : vector<8xf32>
    %658 = vector.multi_reduction <add>, %657, %cst_325 [1] : vector<8x8xf32> to vector<8xf32>
    %659 = vector.shape_cast %658 : vector<8xf32> to vector<8x1xf32>
    %660 = tpu.reciprocal %659 {approx = true} : vector<8x1xf32> -> vector<8x1xf32>
    %661 = vector.broadcast %660 : vector<8x1xf32> to vector<8x8xf32>
    %662 = arith.mulf %657, %661 : vector<8x8xf32>
    %663 = arith.truncf %662 : vector<8x8xf32> to vector<8x8xbf16>
    %664 = vector.extract_strided_slice %604 {offsets = [0, 16], sizes = [8, 8], strides = [1, 1]} : vector<8x32xbf16> to vector<8x8xbf16>
    %cst_326 = arith.constant dense<0.000000e+00> : vector<8x8xf32>
    %665 = tpu.matmul %663, %664, %cst_326 {dimension_numbers = #tpu.dot_dimension_numbers<[1], [0], [0], [1], [0, 0, 1, 1], [], []>} : vector<8x8xbf16>, vector<8x8xbf16>, vector<8x8xf32> -> vector<8x8xf32>
    %666 = arith.truncf %665 : vector<8x8xf32> to vector<8x8xbf16>
    %667 = vector.extract_strided_slice %598 {offsets = [16, 0], sizes = [8, 32], strides = [1, 1]} : vector<32x32xbf16> to vector<8x32xbf16>
    %cst_327 = arith.constant dense<0.000000e+00> : vector<8x32xf32>
    %668 = tpu.matmul %666, %667, %cst_327 {dimension_numbers = #tpu.dot_dimension_numbers<[1], [0], [0], [1], [0, 0, 1, 1], [], []>} : vector<8x8xbf16>, vector<8x32xbf16>, vector<8x32xf32> -> vector<8x32xf32>
    %669 = arith.addf %647, %668 : vector<8x32xf32>
    %670 = vector.extract_strided_slice %600 {offsets = [0, 24], sizes = [8, 8], strides = [1, 1]} : vector<8x32xbf16> to vector<8x8xbf16>
    %671 = vector.extract_strided_slice %602 {offsets = [0, 24], sizes = [8, 8], strides = [1, 1]} : vector<8x32xbf16> to vector<8x8xbf16>
    %cst_328 = arith.constant dense<0.000000e+00> : vector<8x8xf32>
    %672 = tpu.matmul %670, %671, %cst_328 {dimension_numbers = #tpu.dot_dimension_numbers<[1], [1], [0], [0], [0, 0, 1, 0], [], []>} : vector<8x8xbf16>, vector<8x8xbf16>, vector<8x8xf32> -> vector<8x8xf32>
    %cst_329 = arith.constant 0.353553385 : f32
    %673 = vector.broadcast %cst_329 : f32 to vector<8x8xf32>
    %674 = arith.mulf %672, %673 : vector<8x8xf32>
    %cst_330 = arith.constant dense<0xFF800000> : vector<8xf32>
    %675 = vector.multi_reduction <maximumf>, %674, %cst_330 [1] : vector<8x8xf32> to vector<8xf32>
    %676 = vector.shape_cast %675 : vector<8xf32> to vector<8x1xf32>
    %677 = vector.broadcast %676 : vector<8x1xf32> to vector<8x8xf32>
    %678 = arith.subf %674, %677 : vector<8x8xf32>
    %679 = math.exp %678 : vector<8x8xf32>
    %cst_331 = arith.constant dense<0.000000e+00> : vector<8xf32>
    %680 = vector.multi_reduction <add>, %679, %cst_331 [1] : vector<8x8xf32> to vector<8xf32>
    %681 = vector.shape_cast %680 : vector<8xf32> to vector<8x1xf32>
    %682 = tpu.reciprocal %681 {approx = true} : vector<8x1xf32> -> vector<8x1xf32>
    %683 = vector.broadcast %682 : vector<8x1xf32> to vector<8x8xf32>
    %684 = arith.mulf %679, %683 : vector<8x8xf32>
    %685 = arith.truncf %684 : vector<8x8xf32> to vector<8x8xbf16>
    %686 = vector.extract_strided_slice %604 {offsets = [0, 24], sizes = [8, 8], strides = [1, 1]} : vector<8x32xbf16> to vector<8x8xbf16>
    %cst_332 = arith.constant dense<0.000000e+00> : vector<8x8xf32>
    %687 = tpu.matmul %685, %686, %cst_332 {dimension_numbers = #tpu.dot_dimension_numbers<[1], [0], [0], [1], [0, 0, 1, 1], [], []>} : vector<8x8xbf16>, vector<8x8xbf16>, vector<8x8xf32> -> vector<8x8xf32>
    %688 = arith.truncf %687 : vector<8x8xf32> to vector<8x8xbf16>
    %689 = vector.extract_strided_slice %598 {offsets = [24, 0], sizes = [8, 32], strides = [1, 1]} : vector<32x32xbf16> to vector<8x32xbf16>
    %cst_333 = arith.constant dense<0.000000e+00> : vector<8x32xf32>
    %690 = tpu.matmul %688, %689, %cst_333 {dimension_numbers = #tpu.dot_dimension_numbers<[1], [0], [0], [1], [0, 0, 1, 1], [], []>} : vector<8x8xbf16>, vector<8x32xbf16>, vector<8x32xf32> -> vector<8x32xf32>
    %691 = arith.addf %669, %690 : vector<8x32xf32>
    %692 = vector.extract_strided_slice %594 {offsets = [8, 0], sizes = [8, 32], strides = [1, 1]} : vector<16x32xf32> to vector<8x32xf32>
    %693 = arith.truncf %692 : vector<8x32xf32> to vector<8x32xbf16>
    %694 = vector.extract_strided_slice %595 {offsets = [8, 0], sizes = [8, 32], strides = [1, 1]} : vector<16x32xf32> to vector<8x32xf32>
    %695 = arith.truncf %694 : vector<8x32xf32> to vector<8x32xbf16>
    %696 = vector.extract_strided_slice %596 {offsets = [8, 0], sizes = [8, 32], strides = [1, 1]} : vector<16x32xf32> to vector<8x32xf32>
    %697 = arith.truncf %696 : vector<8x32xf32> to vector<8x32xbf16>
    %698 = vector.extract_strided_slice %693 {offsets = [0, 0], sizes = [8, 8], strides = [1, 1]} : vector<8x32xbf16> to vector<8x8xbf16>
    %699 = vector.extract_strided_slice %695 {offsets = [0, 0], sizes = [8, 8], strides = [1, 1]} : vector<8x32xbf16> to vector<8x8xbf16>
    %cst_334 = arith.constant dense<0.000000e+00> : vector<8x8xf32>
    %700 = tpu.matmul %698, %699, %cst_334 {dimension_numbers = #tpu.dot_dimension_numbers<[1], [1], [0], [0], [0, 0, 1, 0], [], []>} : vector<8x8xbf16>, vector<8x8xbf16>, vector<8x8xf32> -> vector<8x8xf32>
    %cst_335 = arith.constant 0.353553385 : f32
    %701 = vector.broadcast %cst_335 : f32 to vector<8x8xf32>
    %702 = arith.mulf %700, %701 : vector<8x8xf32>
    %cst_336 = arith.constant dense<0xFF800000> : vector<8xf32>
    %703 = vector.multi_reduction <maximumf>, %702, %cst_336 [1] : vector<8x8xf32> to vector<8xf32>
    %704 = vector.shape_cast %703 : vector<8xf32> to vector<8x1xf32>
    %705 = vector.broadcast %704 : vector<8x1xf32> to vector<8x8xf32>
    %706 = arith.subf %702, %705 : vector<8x8xf32>
    %707 = math.exp %706 : vector<8x8xf32>
    %cst_337 = arith.constant dense<0.000000e+00> : vector<8xf32>
    %708 = vector.multi_reduction <add>, %707, %cst_337 [1] : vector<8x8xf32> to vector<8xf32>
    %709 = vector.shape_cast %708 : vector<8xf32> to vector<8x1xf32>
    %710 = tpu.reciprocal %709 {approx = true} : vector<8x1xf32> -> vector<8x1xf32>
    %711 = vector.broadcast %710 : vector<8x1xf32> to vector<8x8xf32>
    %712 = arith.mulf %707, %711 : vector<8x8xf32>
    %713 = arith.truncf %712 : vector<8x8xf32> to vector<8x8xbf16>
    %714 = vector.extract_strided_slice %697 {offsets = [0, 0], sizes = [8, 8], strides = [1, 1]} : vector<8x32xbf16> to vector<8x8xbf16>
    %cst_338 = arith.constant dense<0.000000e+00> : vector<8x8xf32>
    %715 = tpu.matmul %713, %714, %cst_338 {dimension_numbers = #tpu.dot_dimension_numbers<[1], [0], [0], [1], [0, 0, 1, 1], [], []>} : vector<8x8xbf16>, vector<8x8xbf16>, vector<8x8xf32> -> vector<8x8xf32>
    %716 = arith.truncf %715 : vector<8x8xf32> to vector<8x8xbf16>
    %717 = vector.extract_strided_slice %598 {offsets = [0, 0], sizes = [8, 32], strides = [1, 1]} : vector<32x32xbf16> to vector<8x32xbf16>
    %cst_339 = arith.constant dense<0.000000e+00> : vector<8x32xf32>
    %718 = tpu.matmul %716, %717, %cst_339 {dimension_numbers = #tpu.dot_dimension_numbers<[1], [0], [0], [1], [0, 0, 1, 1], [], []>} : vector<8x8xbf16>, vector<8x32xbf16>, vector<8x32xf32> -> vector<8x32xf32>
    %719 = vector.extract_strided_slice %693 {offsets = [0, 8], sizes = [8, 8], strides = [1, 1]} : vector<8x32xbf16> to vector<8x8xbf16>
    %720 = vector.extract_strided_slice %695 {offsets = [0, 8], sizes = [8, 8], strides = [1, 1]} : vector<8x32xbf16> to vector<8x8xbf16>
    %cst_340 = arith.constant dense<0.000000e+00> : vector<8x8xf32>
    %721 = tpu.matmul %719, %720, %cst_340 {dimension_numbers = #tpu.dot_dimension_numbers<[1], [1], [0], [0], [0, 0, 1, 0], [], []>} : vector<8x8xbf16>, vector<8x8xbf16>, vector<8x8xf32> -> vector<8x8xf32>
    %cst_341 = arith.constant 0.353553385 : f32
    %722 = vector.broadcast %cst_341 : f32 to vector<8x8xf32>
    %723 = arith.mulf %721, %722 : vector<8x8xf32>
    %cst_342 = arith.constant dense<0xFF800000> : vector<8xf32>
    %724 = vector.multi_reduction <maximumf>, %723, %cst_342 [1] : vector<8x8xf32> to vector<8xf32>
    %725 = vector.shape_cast %724 : vector<8xf32> to vector<8x1xf32>
    %726 = vector.broadcast %725 : vector<8x1xf32> to vector<8x8xf32>
    %727 = arith.subf %723, %726 : vector<8x8xf32>
    %728 = math.exp %727 : vector<8x8xf32>
    %cst_343 = arith.constant dense<0.000000e+00> : vector<8xf32>
    %729 = vector.multi_reduction <add>, %728, %cst_343 [1] : vector<8x8xf32> to vector<8xf32>
    %730 = vector.shape_cast %729 : vector<8xf32> to vector<8x1xf32>
    %731 = tpu.reciprocal %730 {approx = true} : vector<8x1xf32> -> vector<8x1xf32>
    %732 = vector.broadcast %731 : vector<8x1xf32> to vector<8x8xf32>
    %733 = arith.mulf %728, %732 : vector<8x8xf32>
    %734 = arith.truncf %733 : vector<8x8xf32> to vector<8x8xbf16>
    %735 = vector.extract_strided_slice %697 {offsets = [0, 8], sizes = [8, 8], strides = [1, 1]} : vector<8x32xbf16> to vector<8x8xbf16>
    %cst_344 = arith.constant dense<0.000000e+00> : vector<8x8xf32>
    %736 = tpu.matmul %734, %735, %cst_344 {dimension_numbers = #tpu.dot_dimension_numbers<[1], [0], [0], [1], [0, 0, 1, 1], [], []>} : vector<8x8xbf16>, vector<8x8xbf16>, vector<8x8xf32> -> vector<8x8xf32>
    %737 = arith.truncf %736 : vector<8x8xf32> to vector<8x8xbf16>
    %738 = vector.extract_strided_slice %598 {offsets = [8, 0], sizes = [8, 32], strides = [1, 1]} : vector<32x32xbf16> to vector<8x32xbf16>
    %cst_345 = arith.constant dense<0.000000e+00> : vector<8x32xf32>
    %739 = tpu.matmul %737, %738, %cst_345 {dimension_numbers = #tpu.dot_dimension_numbers<[1], [0], [0], [1], [0, 0, 1, 1], [], []>} : vector<8x8xbf16>, vector<8x32xbf16>, vector<8x32xf32> -> vector<8x32xf32>
    %740 = arith.addf %718, %739 : vector<8x32xf32>
    %741 = vector.extract_strided_slice %693 {offsets = [0, 16], sizes = [8, 8], strides = [1, 1]} : vector<8x32xbf16> to vector<8x8xbf16>
    %742 = vector.extract_strided_slice %695 {offsets = [0, 16], sizes = [8, 8], strides = [1, 1]} : vector<8x32xbf16> to vector<8x8xbf16>
    %cst_346 = arith.constant dense<0.000000e+00> : vector<8x8xf32>
    %743 = tpu.matmul %741, %742, %cst_346 {dimension_numbers = #tpu.dot_dimension_numbers<[1], [1], [0], [0], [0, 0, 1, 0], [], []>} : vector<8x8xbf16>, vector<8x8xbf16>, vector<8x8xf32> -> vector<8x8xf32>
    %cst_347 = arith.constant 0.353553385 : f32
    %744 = vector.broadcast %cst_347 : f32 to vector<8x8xf32>
    %745 = arith.mulf %743, %744 : vector<8x8xf32>
    %cst_348 = arith.constant dense<0xFF800000> : vector<8xf32>
    %746 = vector.multi_reduction <maximumf>, %745, %cst_348 [1] : vector<8x8xf32> to vector<8xf32>
    %747 = vector.shape_cast %746 : vector<8xf32> to vector<8x1xf32>
    %748 = vector.broadcast %747 : vector<8x1xf32> to vector<8x8xf32>
    %749 = arith.subf %745, %748 : vector<8x8xf32>
    %750 = math.exp %749 : vector<8x8xf32>
    %cst_349 = arith.constant dense<0.000000e+00> : vector<8xf32>
    %751 = vector.multi_reduction <add>, %750, %cst_349 [1] : vector<8x8xf32> to vector<8xf32>
    %752 = vector.shape_cast %751 : vector<8xf32> to vector<8x1xf32>
    %753 = tpu.reciprocal %752 {approx = true} : vector<8x1xf32> -> vector<8x1xf32>
    %754 = vector.broadcast %753 : vector<8x1xf32> to vector<8x8xf32>
    %755 = arith.mulf %750, %754 : vector<8x8xf32>
    %756 = arith.truncf %755 : vector<8x8xf32> to vector<8x8xbf16>
    %757 = vector.extract_strided_slice %697 {offsets = [0, 16], sizes = [8, 8], strides = [1, 1]} : vector<8x32xbf16> to vector<8x8xbf16>
    %cst_350 = arith.constant dense<0.000000e+00> : vector<8x8xf32>
    %758 = tpu.matmul %756, %757, %cst_350 {dimension_numbers = #tpu.dot_dimension_numbers<[1], [0], [0], [1], [0, 0, 1, 1], [], []>} : vector<8x8xbf16>, vector<8x8xbf16>, vector<8x8xf32> -> vector<8x8xf32>
    %759 = arith.truncf %758 : vector<8x8xf32> to vector<8x8xbf16>
    %760 = vector.extract_strided_slice %598 {offsets = [16, 0], sizes = [8, 32], strides = [1, 1]} : vector<32x32xbf16> to vector<8x32xbf16>
    %cst_351 = arith.constant dense<0.000000e+00> : vector<8x32xf32>
    %761 = tpu.matmul %759, %760, %cst_351 {dimension_numbers = #tpu.dot_dimension_numbers<[1], [0], [0], [1], [0, 0, 1, 1], [], []>} : vector<8x8xbf16>, vector<8x32xbf16>, vector<8x32xf32> -> vector<8x32xf32>
    %762 = arith.addf %740, %761 : vector<8x32xf32>
    %763 = vector.extract_strided_slice %693 {offsets = [0, 24], sizes = [8, 8], strides = [1, 1]} : vector<8x32xbf16> to vector<8x8xbf16>
    %764 = vector.extract_strided_slice %695 {offsets = [0, 24], sizes = [8, 8], strides = [1, 1]} : vector<8x32xbf16> to vector<8x8xbf16>
    %cst_352 = arith.constant dense<0.000000e+00> : vector<8x8xf32>
    %765 = tpu.matmul %763, %764, %cst_352 {dimension_numbers = #tpu.dot_dimension_numbers<[1], [1], [0], [0], [0, 0, 1, 0], [], []>} : vector<8x8xbf16>, vector<8x8xbf16>, vector<8x8xf32> -> vector<8x8xf32>
    %cst_353 = arith.constant 0.353553385 : f32
    %766 = vector.broadcast %cst_353 : f32 to vector<8x8xf32>
    %767 = arith.mulf %765, %766 : vector<8x8xf32>
    %cst_354 = arith.constant dense<0xFF800000> : vector<8xf32>
    %768 = vector.multi_reduction <maximumf>, %767, %cst_354 [1] : vector<8x8xf32> to vector<8xf32>
    %769 = vector.shape_cast %768 : vector<8xf32> to vector<8x1xf32>
    %770 = vector.broadcast %769 : vector<8x1xf32> to vector<8x8xf32>
    %771 = arith.subf %767, %770 : vector<8x8xf32>
    %772 = math.exp %771 : vector<8x8xf32>
    %cst_355 = arith.constant dense<0.000000e+00> : vector<8xf32>
    %773 = vector.multi_reduction <add>, %772, %cst_355 [1] : vector<8x8xf32> to vector<8xf32>
    %774 = vector.shape_cast %773 : vector<8xf32> to vector<8x1xf32>
    %775 = tpu.reciprocal %774 {approx = true} : vector<8x1xf32> -> vector<8x1xf32>
    %776 = vector.broadcast %775 : vector<8x1xf32> to vector<8x8xf32>
    %777 = arith.mulf %772, %776 : vector<8x8xf32>
    %778 = arith.truncf %777 : vector<8x8xf32> to vector<8x8xbf16>
    %779 = vector.extract_strided_slice %697 {offsets = [0, 24], sizes = [8, 8], strides = [1, 1]} : vector<8x32xbf16> to vector<8x8xbf16>
    %cst_356 = arith.constant dense<0.000000e+00> : vector<8x8xf32>
    %780 = tpu.matmul %778, %779, %cst_356 {dimension_numbers = #tpu.dot_dimension_numbers<[1], [0], [0], [1], [0, 0, 1, 1], [], []>} : vector<8x8xbf16>, vector<8x8xbf16>, vector<8x8xf32> -> vector<8x8xf32>
    %781 = arith.truncf %780 : vector<8x8xf32> to vector<8x8xbf16>
    %782 = vector.extract_strided_slice %598 {offsets = [24, 0], sizes = [8, 32], strides = [1, 1]} : vector<32x32xbf16> to vector<8x32xbf16>
    %cst_357 = arith.constant dense<0.000000e+00> : vector<8x32xf32>
    %783 = tpu.matmul %781, %782, %cst_357 {dimension_numbers = #tpu.dot_dimension_numbers<[1], [0], [0], [1], [0, 0, 1, 1], [], []>} : vector<8x8xbf16>, vector<8x32xbf16>, vector<8x32xf32> -> vector<8x32xf32>
    %784 = arith.addf %762, %783 : vector<8x32xf32>
    %785 = tpu.concatenate %691, %784 in 0 : vector<8x32xf32>, vector<8x32xf32> -> vector<16x32xf32>
    %c448 = arith.constant 448 : index
    %c0_358 = arith.constant 0 : index
    %786 = vector.load %arg3[%c448, %c0_358] : memref<1392x128xf32, #tpu.memory_space<vmem>>, vector<1x32xf32>
    %787 = vector.broadcast %786 : vector<1x32xf32> to vector<16x32xf32>
    %788 = arith.addf %785, %787 : vector<16x32xf32>
    %789 = arith.addf %586, %788 : vector<16x32xf32>
    %cst_359 = arith.constant dense<0.000000e+00> : vector<16xf32>
    %790 = vector.multi_reduction <add>, %789, %cst_359 [1] : vector<16x32xf32> to vector<16xf32>
    %791 = vector.shape_cast %790 : vector<16xf32> to vector<16x1xf32>
    %cst_360 = arith.constant 3.200000e+01 : f32
    %792 = vector.broadcast %cst_360 : f32 to vector<16x1xf32>
    %793 = arith.divf %791, %792 : vector<16x1xf32>
    %794 = vector.broadcast %793 : vector<16x1xf32> to vector<16x32xf32>
    %795 = arith.subf %789, %794 : vector<16x32xf32>
    %796 = arith.mulf %795, %795 : vector<16x32xf32>
    %cst_361 = arith.constant dense<0.000000e+00> : vector<16xf32>
    %797 = vector.multi_reduction <add>, %796, %cst_361 [1] : vector<16x32xf32> to vector<16xf32>
    %798 = vector.shape_cast %797 : vector<16xf32> to vector<16x1xf32>
    %cst_362 = arith.constant 3.200000e+01 : f32
    %799 = vector.broadcast %cst_362 : f32 to vector<16x1xf32>
    %800 = arith.divf %798, %799 : vector<16x1xf32>
    %cst_363 = arith.constant 9.99999974E-6 : f32
    %801 = vector.broadcast %cst_363 : f32 to vector<16x1xf32>
    %802 = arith.addf %800, %801 : vector<16x1xf32>
    %803 = math.rsqrt %802 : vector<16x1xf32>
    %804 = vector.broadcast %803 : vector<16x1xf32> to vector<16x32xf32>
    %805 = arith.mulf %795, %804 : vector<16x32xf32>
    %c568 = arith.constant 568 : index
    %c0_364 = arith.constant 0 : index
    %806 = vector.load %arg3[%c568, %c0_364] : memref<1392x128xf32, #tpu.memory_space<vmem>>, vector<1x32xf32>
    %807 = vector.broadcast %806 : vector<1x32xf32> to vector<16x32xf32>
    %808 = arith.mulf %805, %807 : vector<16x32xf32>
    %c576 = arith.constant 576 : index
    %c0_365 = arith.constant 0 : index
    %809 = vector.load %arg3[%c576, %c0_365] : memref<1392x128xf32, #tpu.memory_space<vmem>>, vector<1x32xf32>
    %810 = vector.broadcast %809 : vector<1x32xf32> to vector<16x32xf32>
    %811 = arith.addf %808, %810 : vector<16x32xf32>
    %c456 = arith.constant 456 : index
    %c0_366 = arith.constant 0 : index
    %812 = vector.load %arg3[%c456, %c0_366] : memref<1392x128xf32, #tpu.memory_space<vmem>>, vector<32x64xf32>
    %813 = arith.truncf %812 : vector<32x64xf32> to vector<32x64xbf16>
    %814 = arith.truncf %811 : vector<16x32xf32> to vector<16x32xbf16>
    %cst_367 = arith.constant dense<0.000000e+00> : vector<16x64xf32>
    %815 = tpu.matmul %814, %813, %cst_367 {dimension_numbers = #tpu.dot_dimension_numbers<[1], [0], [0], [1], [0, 0, 1, 1], [], []>} : vector<16x32xbf16>, vector<32x64xbf16>, vector<16x64xf32> -> vector<16x64xf32>
    %c488 = arith.constant 488 : index
    %c0_368 = arith.constant 0 : index
    %816 = vector.load %arg3[%c488, %c0_368] : memref<1392x128xf32, #tpu.memory_space<vmem>>, vector<1x64xf32>
    %817 = vector.broadcast %816 : vector<1x64xf32> to vector<16x64xf32>
    %818 = arith.addf %815, %817 : vector<16x64xf32>
    %cst_369 = arith.constant 0.000000e+00 : f32
    %819 = vector.broadcast %cst_369 : f32 to vector<16x64xf32>
    %820 = arith.maximumf %818, %819 : vector<16x64xf32>
    %c496 = arith.constant 496 : index
    %c0_370 = arith.constant 0 : index
    %821 = vector.load %arg3[%c496, %c0_370] : memref<1392x128xf32, #tpu.memory_space<vmem>>, vector<64x32xf32>
    %822 = arith.truncf %821 : vector<64x32xf32> to vector<64x32xbf16>
    %823 = arith.truncf %820 : vector<16x64xf32> to vector<16x64xbf16>
    %cst_371 = arith.constant dense<0.000000e+00> : vector<16x32xf32>
    %824 = tpu.matmul %823, %822, %cst_371 {dimension_numbers = #tpu.dot_dimension_numbers<[1], [0], [0], [1], [0, 0, 1, 1], [], []>} : vector<16x64xbf16>, vector<64x32xbf16>, vector<16x32xf32> -> vector<16x32xf32>
    %c560 = arith.constant 560 : index
    %c0_372 = arith.constant 0 : index
    %825 = vector.load %arg3[%c560, %c0_372] : memref<1392x128xf32, #tpu.memory_space<vmem>>, vector<1x32xf32>
    %826 = vector.broadcast %825 : vector<1x32xf32> to vector<16x32xf32>
    %827 = arith.addf %824, %826 : vector<16x32xf32>
    %828 = arith.addf %811, %827 : vector<16x32xf32>
    %cst_373 = arith.constant dense<0.000000e+00> : vector<16xf32>
    %829 = vector.multi_reduction <add>, %828, %cst_373 [1] : vector<16x32xf32> to vector<16xf32>
    %830 = vector.shape_cast %829 : vector<16xf32> to vector<16x1xf32>
    %cst_374 = arith.constant 3.200000e+01 : f32
    %831 = vector.broadcast %cst_374 : f32 to vector<16x1xf32>
    %832 = arith.divf %830, %831 : vector<16x1xf32>
    %833 = vector.broadcast %832 : vector<16x1xf32> to vector<16x32xf32>
    %834 = arith.subf %828, %833 : vector<16x32xf32>
    %835 = arith.mulf %834, %834 : vector<16x32xf32>
    %cst_375 = arith.constant dense<0.000000e+00> : vector<16xf32>
    %836 = vector.multi_reduction <add>, %835, %cst_375 [1] : vector<16x32xf32> to vector<16xf32>
    %837 = vector.shape_cast %836 : vector<16xf32> to vector<16x1xf32>
    %cst_376 = arith.constant 3.200000e+01 : f32
    %838 = vector.broadcast %cst_376 : f32 to vector<16x1xf32>
    %839 = arith.divf %837, %838 : vector<16x1xf32>
    %cst_377 = arith.constant 9.99999974E-6 : f32
    %840 = vector.broadcast %cst_377 : f32 to vector<16x1xf32>
    %841 = arith.addf %839, %840 : vector<16x1xf32>
    %842 = math.rsqrt %841 : vector<16x1xf32>
    %843 = vector.broadcast %842 : vector<16x1xf32> to vector<16x32xf32>
    %844 = arith.mulf %834, %843 : vector<16x32xf32>
    %c584 = arith.constant 584 : index
    %c0_378 = arith.constant 0 : index
    %845 = vector.load %arg3[%c584, %c0_378] : memref<1392x128xf32, #tpu.memory_space<vmem>>, vector<1x32xf32>
    %846 = vector.broadcast %845 : vector<1x32xf32> to vector<16x32xf32>
    %847 = arith.mulf %844, %846 : vector<16x32xf32>
    %c592 = arith.constant 592 : index
    %c0_379 = arith.constant 0 : index
    %848 = vector.load %arg3[%c592, %c0_379] : memref<1392x128xf32, #tpu.memory_space<vmem>>, vector<1x32xf32>
    %849 = vector.broadcast %848 : vector<1x32xf32> to vector<16x32xf32>
    %850 = arith.addf %847, %849 : vector<16x32xf32>
    %cst_380 = arith.constant dense<0.000000e+00> : vector<16xf32>
    %851 = vector.multi_reduction <add>, %850, %cst_380 [1] : vector<16x32xf32> to vector<16xf32>
    %852 = vector.shape_cast %851 : vector<16xf32> to vector<16x1xf32>
    %cst_381 = arith.constant 3.200000e+01 : f32
    %853 = vector.broadcast %cst_381 : f32 to vector<16x1xf32>
    %854 = arith.divf %852, %853 : vector<16x1xf32>
    %855 = vector.broadcast %854 : vector<16x1xf32> to vector<16x32xf32>
    %856 = arith.subf %850, %855 : vector<16x32xf32>
    %857 = arith.mulf %856, %856 : vector<16x32xf32>
    %cst_382 = arith.constant dense<0.000000e+00> : vector<16xf32>
    %858 = vector.multi_reduction <add>, %857, %cst_382 [1] : vector<16x32xf32> to vector<16xf32>
    %859 = vector.shape_cast %858 : vector<16xf32> to vector<16x1xf32>
    %cst_383 = arith.constant 3.200000e+01 : f32
    %860 = vector.broadcast %cst_383 : f32 to vector<16x1xf32>
    %861 = arith.divf %859, %860 : vector<16x1xf32>
    %cst_384 = arith.constant 9.99999974E-6 : f32
    %862 = vector.broadcast %cst_384 : f32 to vector<16x1xf32>
    %863 = arith.addf %861, %862 : vector<16x1xf32>
    %864 = math.rsqrt %863 : vector<16x1xf32>
    %865 = vector.broadcast %864 : vector<16x1xf32> to vector<16x32xf32>
    %866 = arith.mulf %856, %865 : vector<16x32xf32>
    %c600 = arith.constant 600 : index
    %c0_385 = arith.constant 0 : index
    %867 = vector.load %arg3[%c600, %c0_385] : memref<1392x128xf32, #tpu.memory_space<vmem>>, vector<1x32xf32>
    %868 = vector.broadcast %867 : vector<1x32xf32> to vector<16x32xf32>
    %869 = arith.mulf %866, %868 : vector<16x32xf32>
    %c608 = arith.constant 608 : index
    %c0_386 = arith.constant 0 : index
    %870 = vector.load %arg3[%c608, %c0_386] : memref<1392x128xf32, #tpu.memory_space<vmem>>, vector<1x32xf32>
    %871 = vector.broadcast %870 : vector<1x32xf32> to vector<16x32xf32>
    %872 = arith.addf %869, %871 : vector<16x32xf32>
    %873 = tpu.iota {dimensions = array<i32: 0>} : vector<8x8xi32>
    %874 = tpu.iota {dimensions = array<i32: 1>} : vector<8x8xi32>
    %875 = arith.cmpi sge, %873, %874 : vector<8x8xi32>
    %cst_387 = arith.constant 0.000000e+00 : f32
    %cst_388 = arith.constant -1.000000e+30 : f32
    %876 = vector.broadcast %cst_387 : f32 to vector<8x8xf32>
    %877 = vector.broadcast %cst_388 : f32 to vector<8x8xf32>
    %878 = arith.select %875, %876, %877 : vector<8x8xi1>, vector<8x8xf32>
    %c616 = arith.constant 616 : index
    %c0_389 = arith.constant 0 : index
    %879 = vector.load %arg3[%c616, %c0_389] : memref<1392x128xf32, #tpu.memory_space<vmem>>, vector<32x96xf32>
    %880 = arith.truncf %879 : vector<32x96xf32> to vector<32x96xbf16>
    %881 = arith.truncf %322 : vector<16x32xf32> to vector<16x32xbf16>
    %cst_390 = arith.constant dense<0.000000e+00> : vector<16x96xf32>
    %882 = tpu.matmul %881, %880, %cst_390 {dimension_numbers = #tpu.dot_dimension_numbers<[1], [0], [0], [1], [0, 0, 1, 1], [], []>} : vector<16x32xbf16>, vector<32x96xbf16>, vector<16x96xf32> -> vector<16x96xf32>
    %c648 = arith.constant 648 : index
    %c0_391 = arith.constant 0 : index
    %883 = vector.load %arg3[%c648, %c0_391] : memref<1392x128xf32, #tpu.memory_space<vmem>>, vector<1x96xf32>
    %884 = vector.broadcast %883 : vector<1x96xf32> to vector<16x96xf32>
    %885 = arith.addf %882, %884 : vector<16x96xf32>
    %886 = vector.extract_strided_slice %885 {offsets = [0, 0], sizes = [16, 32], strides = [1, 1]} : vector<16x96xf32> to vector<16x32xf32>
    %887 = vector.extract_strided_slice %885 {offsets = [0, 32], sizes = [16, 32], strides = [1, 1]} : vector<16x96xf32> to vector<16x32xf32>
    %888 = vector.extract_strided_slice %885 {offsets = [0, 64], sizes = [16, 32], strides = [1, 1]} : vector<16x96xf32> to vector<16x32xf32>
    %c656 = arith.constant 656 : index
    %c0_392 = arith.constant 0 : index
    %889 = vector.load %arg3[%c656, %c0_392] : memref<1392x128xf32, #tpu.memory_space<vmem>>, vector<32x32xf32>
    %890 = arith.truncf %889 : vector<32x32xf32> to vector<32x32xbf16>
    %891 = vector.extract_strided_slice %886 {offsets = [0, 0], sizes = [8, 32], strides = [1, 1]} : vector<16x32xf32> to vector<8x32xf32>
    %892 = arith.truncf %891 : vector<8x32xf32> to vector<8x32xbf16>
    %893 = vector.extract_strided_slice %887 {offsets = [0, 0], sizes = [8, 32], strides = [1, 1]} : vector<16x32xf32> to vector<8x32xf32>
    %894 = arith.truncf %893 : vector<8x32xf32> to vector<8x32xbf16>
    %895 = vector.extract_strided_slice %888 {offsets = [0, 0], sizes = [8, 32], strides = [1, 1]} : vector<16x32xf32> to vector<8x32xf32>
    %896 = arith.truncf %895 : vector<8x32xf32> to vector<8x32xbf16>
    %897 = vector.extract_strided_slice %892 {offsets = [0, 0], sizes = [8, 8], strides = [1, 1]} : vector<8x32xbf16> to vector<8x8xbf16>
    %898 = vector.extract_strided_slice %894 {offsets = [0, 0], sizes = [8, 8], strides = [1, 1]} : vector<8x32xbf16> to vector<8x8xbf16>
    %cst_393 = arith.constant dense<0.000000e+00> : vector<8x8xf32>
    %899 = tpu.matmul %897, %898, %cst_393 {dimension_numbers = #tpu.dot_dimension_numbers<[1], [1], [0], [0], [0, 0, 1, 0], [], []>} : vector<8x8xbf16>, vector<8x8xbf16>, vector<8x8xf32> -> vector<8x8xf32>
    %cst_394 = arith.constant 0.353553385 : f32
    %900 = vector.broadcast %cst_394 : f32 to vector<8x8xf32>
    %901 = arith.mulf %899, %900 : vector<8x8xf32>
    %902 = arith.addf %901, %878 : vector<8x8xf32>
    %cst_395 = arith.constant dense<0xFF800000> : vector<8xf32>
    %903 = vector.multi_reduction <maximumf>, %902, %cst_395 [1] : vector<8x8xf32> to vector<8xf32>
    %904 = vector.shape_cast %903 : vector<8xf32> to vector<8x1xf32>
    %905 = vector.broadcast %904 : vector<8x1xf32> to vector<8x8xf32>
    %906 = arith.subf %902, %905 : vector<8x8xf32>
    %907 = math.exp %906 : vector<8x8xf32>
    %cst_396 = arith.constant dense<0.000000e+00> : vector<8xf32>
    %908 = vector.multi_reduction <add>, %907, %cst_396 [1] : vector<8x8xf32> to vector<8xf32>
    %909 = vector.shape_cast %908 : vector<8xf32> to vector<8x1xf32>
    %910 = tpu.reciprocal %909 {approx = true} : vector<8x1xf32> -> vector<8x1xf32>
    %911 = vector.broadcast %910 : vector<8x1xf32> to vector<8x8xf32>
    %912 = arith.mulf %907, %911 : vector<8x8xf32>
    %913 = arith.truncf %912 : vector<8x8xf32> to vector<8x8xbf16>
    %914 = vector.extract_strided_slice %896 {offsets = [0, 0], sizes = [8, 8], strides = [1, 1]} : vector<8x32xbf16> to vector<8x8xbf16>
    %cst_397 = arith.constant dense<0.000000e+00> : vector<8x8xf32>
    %915 = tpu.matmul %913, %914, %cst_397 {dimension_numbers = #tpu.dot_dimension_numbers<[1], [0], [0], [1], [0, 0, 1, 1], [], []>} : vector<8x8xbf16>, vector<8x8xbf16>, vector<8x8xf32> -> vector<8x8xf32>
    %916 = arith.truncf %915 : vector<8x8xf32> to vector<8x8xbf16>
    %917 = vector.extract_strided_slice %890 {offsets = [0, 0], sizes = [8, 32], strides = [1, 1]} : vector<32x32xbf16> to vector<8x32xbf16>
    %cst_398 = arith.constant dense<0.000000e+00> : vector<8x32xf32>
    %918 = tpu.matmul %916, %917, %cst_398 {dimension_numbers = #tpu.dot_dimension_numbers<[1], [0], [0], [1], [0, 0, 1, 1], [], []>} : vector<8x8xbf16>, vector<8x32xbf16>, vector<8x32xf32> -> vector<8x32xf32>
    %919 = vector.extract_strided_slice %892 {offsets = [0, 8], sizes = [8, 8], strides = [1, 1]} : vector<8x32xbf16> to vector<8x8xbf16>
    %920 = vector.extract_strided_slice %894 {offsets = [0, 8], sizes = [8, 8], strides = [1, 1]} : vector<8x32xbf16> to vector<8x8xbf16>
    %cst_399 = arith.constant dense<0.000000e+00> : vector<8x8xf32>
    %921 = tpu.matmul %919, %920, %cst_399 {dimension_numbers = #tpu.dot_dimension_numbers<[1], [1], [0], [0], [0, 0, 1, 0], [], []>} : vector<8x8xbf16>, vector<8x8xbf16>, vector<8x8xf32> -> vector<8x8xf32>
    %cst_400 = arith.constant 0.353553385 : f32
    %922 = vector.broadcast %cst_400 : f32 to vector<8x8xf32>
    %923 = arith.mulf %921, %922 : vector<8x8xf32>
    %924 = arith.addf %923, %878 : vector<8x8xf32>
    %cst_401 = arith.constant dense<0xFF800000> : vector<8xf32>
    %925 = vector.multi_reduction <maximumf>, %924, %cst_401 [1] : vector<8x8xf32> to vector<8xf32>
    %926 = vector.shape_cast %925 : vector<8xf32> to vector<8x1xf32>
    %927 = vector.broadcast %926 : vector<8x1xf32> to vector<8x8xf32>
    %928 = arith.subf %924, %927 : vector<8x8xf32>
    %929 = math.exp %928 : vector<8x8xf32>
    %cst_402 = arith.constant dense<0.000000e+00> : vector<8xf32>
    %930 = vector.multi_reduction <add>, %929, %cst_402 [1] : vector<8x8xf32> to vector<8xf32>
    %931 = vector.shape_cast %930 : vector<8xf32> to vector<8x1xf32>
    %932 = tpu.reciprocal %931 {approx = true} : vector<8x1xf32> -> vector<8x1xf32>
    %933 = vector.broadcast %932 : vector<8x1xf32> to vector<8x8xf32>
    %934 = arith.mulf %929, %933 : vector<8x8xf32>
    %935 = arith.truncf %934 : vector<8x8xf32> to vector<8x8xbf16>
    %936 = vector.extract_strided_slice %896 {offsets = [0, 8], sizes = [8, 8], strides = [1, 1]} : vector<8x32xbf16> to vector<8x8xbf16>
    %cst_403 = arith.constant dense<0.000000e+00> : vector<8x8xf32>
    %937 = tpu.matmul %935, %936, %cst_403 {dimension_numbers = #tpu.dot_dimension_numbers<[1], [0], [0], [1], [0, 0, 1, 1], [], []>} : vector<8x8xbf16>, vector<8x8xbf16>, vector<8x8xf32> -> vector<8x8xf32>
    %938 = arith.truncf %937 : vector<8x8xf32> to vector<8x8xbf16>
    %939 = vector.extract_strided_slice %890 {offsets = [8, 0], sizes = [8, 32], strides = [1, 1]} : vector<32x32xbf16> to vector<8x32xbf16>
    %cst_404 = arith.constant dense<0.000000e+00> : vector<8x32xf32>
    %940 = tpu.matmul %938, %939, %cst_404 {dimension_numbers = #tpu.dot_dimension_numbers<[1], [0], [0], [1], [0, 0, 1, 1], [], []>} : vector<8x8xbf16>, vector<8x32xbf16>, vector<8x32xf32> -> vector<8x32xf32>
    %941 = arith.addf %918, %940 : vector<8x32xf32>
    %942 = vector.extract_strided_slice %892 {offsets = [0, 16], sizes = [8, 8], strides = [1, 1]} : vector<8x32xbf16> to vector<8x8xbf16>
    %943 = vector.extract_strided_slice %894 {offsets = [0, 16], sizes = [8, 8], strides = [1, 1]} : vector<8x32xbf16> to vector<8x8xbf16>
    %cst_405 = arith.constant dense<0.000000e+00> : vector<8x8xf32>
    %944 = tpu.matmul %942, %943, %cst_405 {dimension_numbers = #tpu.dot_dimension_numbers<[1], [1], [0], [0], [0, 0, 1, 0], [], []>} : vector<8x8xbf16>, vector<8x8xbf16>, vector<8x8xf32> -> vector<8x8xf32>
    %cst_406 = arith.constant 0.353553385 : f32
    %945 = vector.broadcast %cst_406 : f32 to vector<8x8xf32>
    %946 = arith.mulf %944, %945 : vector<8x8xf32>
    %947 = arith.addf %946, %878 : vector<8x8xf32>
    %cst_407 = arith.constant dense<0xFF800000> : vector<8xf32>
    %948 = vector.multi_reduction <maximumf>, %947, %cst_407 [1] : vector<8x8xf32> to vector<8xf32>
    %949 = vector.shape_cast %948 : vector<8xf32> to vector<8x1xf32>
    %950 = vector.broadcast %949 : vector<8x1xf32> to vector<8x8xf32>
    %951 = arith.subf %947, %950 : vector<8x8xf32>
    %952 = math.exp %951 : vector<8x8xf32>
    %cst_408 = arith.constant dense<0.000000e+00> : vector<8xf32>
    %953 = vector.multi_reduction <add>, %952, %cst_408 [1] : vector<8x8xf32> to vector<8xf32>
    %954 = vector.shape_cast %953 : vector<8xf32> to vector<8x1xf32>
    %955 = tpu.reciprocal %954 {approx = true} : vector<8x1xf32> -> vector<8x1xf32>
    %956 = vector.broadcast %955 : vector<8x1xf32> to vector<8x8xf32>
    %957 = arith.mulf %952, %956 : vector<8x8xf32>
    %958 = arith.truncf %957 : vector<8x8xf32> to vector<8x8xbf16>
    %959 = vector.extract_strided_slice %896 {offsets = [0, 16], sizes = [8, 8], strides = [1, 1]} : vector<8x32xbf16> to vector<8x8xbf16>
    %cst_409 = arith.constant dense<0.000000e+00> : vector<8x8xf32>
    %960 = tpu.matmul %958, %959, %cst_409 {dimension_numbers = #tpu.dot_dimension_numbers<[1], [0], [0], [1], [0, 0, 1, 1], [], []>} : vector<8x8xbf16>, vector<8x8xbf16>, vector<8x8xf32> -> vector<8x8xf32>
    %961 = arith.truncf %960 : vector<8x8xf32> to vector<8x8xbf16>
    %962 = vector.extract_strided_slice %890 {offsets = [16, 0], sizes = [8, 32], strides = [1, 1]} : vector<32x32xbf16> to vector<8x32xbf16>
    %cst_410 = arith.constant dense<0.000000e+00> : vector<8x32xf32>
    %963 = tpu.matmul %961, %962, %cst_410 {dimension_numbers = #tpu.dot_dimension_numbers<[1], [0], [0], [1], [0, 0, 1, 1], [], []>} : vector<8x8xbf16>, vector<8x32xbf16>, vector<8x32xf32> -> vector<8x32xf32>
    %964 = arith.addf %941, %963 : vector<8x32xf32>
    %965 = vector.extract_strided_slice %892 {offsets = [0, 24], sizes = [8, 8], strides = [1, 1]} : vector<8x32xbf16> to vector<8x8xbf16>
    %966 = vector.extract_strided_slice %894 {offsets = [0, 24], sizes = [8, 8], strides = [1, 1]} : vector<8x32xbf16> to vector<8x8xbf16>
    %cst_411 = arith.constant dense<0.000000e+00> : vector<8x8xf32>
    %967 = tpu.matmul %965, %966, %cst_411 {dimension_numbers = #tpu.dot_dimension_numbers<[1], [1], [0], [0], [0, 0, 1, 0], [], []>} : vector<8x8xbf16>, vector<8x8xbf16>, vector<8x8xf32> -> vector<8x8xf32>
    %cst_412 = arith.constant 0.353553385 : f32
    %968 = vector.broadcast %cst_412 : f32 to vector<8x8xf32>
    %969 = arith.mulf %967, %968 : vector<8x8xf32>
    %970 = arith.addf %969, %878 : vector<8x8xf32>
    %cst_413 = arith.constant dense<0xFF800000> : vector<8xf32>
    %971 = vector.multi_reduction <maximumf>, %970, %cst_413 [1] : vector<8x8xf32> to vector<8xf32>
    %972 = vector.shape_cast %971 : vector<8xf32> to vector<8x1xf32>
    %973 = vector.broadcast %972 : vector<8x1xf32> to vector<8x8xf32>
    %974 = arith.subf %970, %973 : vector<8x8xf32>
    %975 = math.exp %974 : vector<8x8xf32>
    %cst_414 = arith.constant dense<0.000000e+00> : vector<8xf32>
    %976 = vector.multi_reduction <add>, %975, %cst_414 [1] : vector<8x8xf32> to vector<8xf32>
    %977 = vector.shape_cast %976 : vector<8xf32> to vector<8x1xf32>
    %978 = tpu.reciprocal %977 {approx = true} : vector<8x1xf32> -> vector<8x1xf32>
    %979 = vector.broadcast %978 : vector<8x1xf32> to vector<8x8xf32>
    %980 = arith.mulf %975, %979 : vector<8x8xf32>
    %981 = arith.truncf %980 : vector<8x8xf32> to vector<8x8xbf16>
    %982 = vector.extract_strided_slice %896 {offsets = [0, 24], sizes = [8, 8], strides = [1, 1]} : vector<8x32xbf16> to vector<8x8xbf16>
    %cst_415 = arith.constant dense<0.000000e+00> : vector<8x8xf32>
    %983 = tpu.matmul %981, %982, %cst_415 {dimension_numbers = #tpu.dot_dimension_numbers<[1], [0], [0], [1], [0, 0, 1, 1], [], []>} : vector<8x8xbf16>, vector<8x8xbf16>, vector<8x8xf32> -> vector<8x8xf32>
    %984 = arith.truncf %983 : vector<8x8xf32> to vector<8x8xbf16>
    %985 = vector.extract_strided_slice %890 {offsets = [24, 0], sizes = [8, 32], strides = [1, 1]} : vector<32x32xbf16> to vector<8x32xbf16>
    %cst_416 = arith.constant dense<0.000000e+00> : vector<8x32xf32>
    %986 = tpu.matmul %984, %985, %cst_416 {dimension_numbers = #tpu.dot_dimension_numbers<[1], [0], [0], [1], [0, 0, 1, 1], [], []>} : vector<8x8xbf16>, vector<8x32xbf16>, vector<8x32xf32> -> vector<8x32xf32>
    %987 = arith.addf %964, %986 : vector<8x32xf32>
    %988 = vector.extract_strided_slice %886 {offsets = [8, 0], sizes = [8, 32], strides = [1, 1]} : vector<16x32xf32> to vector<8x32xf32>
    %989 = arith.truncf %988 : vector<8x32xf32> to vector<8x32xbf16>
    %990 = vector.extract_strided_slice %887 {offsets = [8, 0], sizes = [8, 32], strides = [1, 1]} : vector<16x32xf32> to vector<8x32xf32>
    %991 = arith.truncf %990 : vector<8x32xf32> to vector<8x32xbf16>
    %992 = vector.extract_strided_slice %888 {offsets = [8, 0], sizes = [8, 32], strides = [1, 1]} : vector<16x32xf32> to vector<8x32xf32>
    %993 = arith.truncf %992 : vector<8x32xf32> to vector<8x32xbf16>
    %994 = vector.extract_strided_slice %989 {offsets = [0, 0], sizes = [8, 8], strides = [1, 1]} : vector<8x32xbf16> to vector<8x8xbf16>
    %995 = vector.extract_strided_slice %991 {offsets = [0, 0], sizes = [8, 8], strides = [1, 1]} : vector<8x32xbf16> to vector<8x8xbf16>
    %cst_417 = arith.constant dense<0.000000e+00> : vector<8x8xf32>
    %996 = tpu.matmul %994, %995, %cst_417 {dimension_numbers = #tpu.dot_dimension_numbers<[1], [1], [0], [0], [0, 0, 1, 0], [], []>} : vector<8x8xbf16>, vector<8x8xbf16>, vector<8x8xf32> -> vector<8x8xf32>
    %cst_418 = arith.constant 0.353553385 : f32
    %997 = vector.broadcast %cst_418 : f32 to vector<8x8xf32>
    %998 = arith.mulf %996, %997 : vector<8x8xf32>
    %999 = arith.addf %998, %878 : vector<8x8xf32>
    %cst_419 = arith.constant dense<0xFF800000> : vector<8xf32>
    %1000 = vector.multi_reduction <maximumf>, %999, %cst_419 [1] : vector<8x8xf32> to vector<8xf32>
    %1001 = vector.shape_cast %1000 : vector<8xf32> to vector<8x1xf32>
    %1002 = vector.broadcast %1001 : vector<8x1xf32> to vector<8x8xf32>
    %1003 = arith.subf %999, %1002 : vector<8x8xf32>
    %1004 = math.exp %1003 : vector<8x8xf32>
    %cst_420 = arith.constant dense<0.000000e+00> : vector<8xf32>
    %1005 = vector.multi_reduction <add>, %1004, %cst_420 [1] : vector<8x8xf32> to vector<8xf32>
    %1006 = vector.shape_cast %1005 : vector<8xf32> to vector<8x1xf32>
    %1007 = tpu.reciprocal %1006 {approx = true} : vector<8x1xf32> -> vector<8x1xf32>
    %1008 = vector.broadcast %1007 : vector<8x1xf32> to vector<8x8xf32>
    %1009 = arith.mulf %1004, %1008 : vector<8x8xf32>
    %1010 = arith.truncf %1009 : vector<8x8xf32> to vector<8x8xbf16>
    %1011 = vector.extract_strided_slice %993 {offsets = [0, 0], sizes = [8, 8], strides = [1, 1]} : vector<8x32xbf16> to vector<8x8xbf16>
    %cst_421 = arith.constant dense<0.000000e+00> : vector<8x8xf32>
    %1012 = tpu.matmul %1010, %1011, %cst_421 {dimension_numbers = #tpu.dot_dimension_numbers<[1], [0], [0], [1], [0, 0, 1, 1], [], []>} : vector<8x8xbf16>, vector<8x8xbf16>, vector<8x8xf32> -> vector<8x8xf32>
    %1013 = arith.truncf %1012 : vector<8x8xf32> to vector<8x8xbf16>
    %1014 = vector.extract_strided_slice %890 {offsets = [0, 0], sizes = [8, 32], strides = [1, 1]} : vector<32x32xbf16> to vector<8x32xbf16>
    %cst_422 = arith.constant dense<0.000000e+00> : vector<8x32xf32>
    %1015 = tpu.matmul %1013, %1014, %cst_422 {dimension_numbers = #tpu.dot_dimension_numbers<[1], [0], [0], [1], [0, 0, 1, 1], [], []>} : vector<8x8xbf16>, vector<8x32xbf16>, vector<8x32xf32> -> vector<8x32xf32>
    %1016 = vector.extract_strided_slice %989 {offsets = [0, 8], sizes = [8, 8], strides = [1, 1]} : vector<8x32xbf16> to vector<8x8xbf16>
    %1017 = vector.extract_strided_slice %991 {offsets = [0, 8], sizes = [8, 8], strides = [1, 1]} : vector<8x32xbf16> to vector<8x8xbf16>
    %cst_423 = arith.constant dense<0.000000e+00> : vector<8x8xf32>
    %1018 = tpu.matmul %1016, %1017, %cst_423 {dimension_numbers = #tpu.dot_dimension_numbers<[1], [1], [0], [0], [0, 0, 1, 0], [], []>} : vector<8x8xbf16>, vector<8x8xbf16>, vector<8x8xf32> -> vector<8x8xf32>
    %cst_424 = arith.constant 0.353553385 : f32
    %1019 = vector.broadcast %cst_424 : f32 to vector<8x8xf32>
    %1020 = arith.mulf %1018, %1019 : vector<8x8xf32>
    %1021 = arith.addf %1020, %878 : vector<8x8xf32>
    %cst_425 = arith.constant dense<0xFF800000> : vector<8xf32>
    %1022 = vector.multi_reduction <maximumf>, %1021, %cst_425 [1] : vector<8x8xf32> to vector<8xf32>
    %1023 = vector.shape_cast %1022 : vector<8xf32> to vector<8x1xf32>
    %1024 = vector.broadcast %1023 : vector<8x1xf32> to vector<8x8xf32>
    %1025 = arith.subf %1021, %1024 : vector<8x8xf32>
    %1026 = math.exp %1025 : vector<8x8xf32>
    %cst_426 = arith.constant dense<0.000000e+00> : vector<8xf32>
    %1027 = vector.multi_reduction <add>, %1026, %cst_426 [1] : vector<8x8xf32> to vector<8xf32>
    %1028 = vector.shape_cast %1027 : vector<8xf32> to vector<8x1xf32>
    %1029 = tpu.reciprocal %1028 {approx = true} : vector<8x1xf32> -> vector<8x1xf32>
    %1030 = vector.broadcast %1029 : vector<8x1xf32> to vector<8x8xf32>
    %1031 = arith.mulf %1026, %1030 : vector<8x8xf32>
    %1032 = arith.truncf %1031 : vector<8x8xf32> to vector<8x8xbf16>
    %1033 = vector.extract_strided_slice %993 {offsets = [0, 8], sizes = [8, 8], strides = [1, 1]} : vector<8x32xbf16> to vector<8x8xbf16>
    %cst_427 = arith.constant dense<0.000000e+00> : vector<8x8xf32>
    %1034 = tpu.matmul %1032, %1033, %cst_427 {dimension_numbers = #tpu.dot_dimension_numbers<[1], [0], [0], [1], [0, 0, 1, 1], [], []>} : vector<8x8xbf16>, vector<8x8xbf16>, vector<8x8xf32> -> vector<8x8xf32>
    %1035 = arith.truncf %1034 : vector<8x8xf32> to vector<8x8xbf16>
    %1036 = vector.extract_strided_slice %890 {offsets = [8, 0], sizes = [8, 32], strides = [1, 1]} : vector<32x32xbf16> to vector<8x32xbf16>
    %cst_428 = arith.constant dense<0.000000e+00> : vector<8x32xf32>
    %1037 = tpu.matmul %1035, %1036, %cst_428 {dimension_numbers = #tpu.dot_dimension_numbers<[1], [0], [0], [1], [0, 0, 1, 1], [], []>} : vector<8x8xbf16>, vector<8x32xbf16>, vector<8x32xf32> -> vector<8x32xf32>
    %1038 = arith.addf %1015, %1037 : vector<8x32xf32>
    %1039 = vector.extract_strided_slice %989 {offsets = [0, 16], sizes = [8, 8], strides = [1, 1]} : vector<8x32xbf16> to vector<8x8xbf16>
    %1040 = vector.extract_strided_slice %991 {offsets = [0, 16], sizes = [8, 8], strides = [1, 1]} : vector<8x32xbf16> to vector<8x8xbf16>
    %cst_429 = arith.constant dense<0.000000e+00> : vector<8x8xf32>
    %1041 = tpu.matmul %1039, %1040, %cst_429 {dimension_numbers = #tpu.dot_dimension_numbers<[1], [1], [0], [0], [0, 0, 1, 0], [], []>} : vector<8x8xbf16>, vector<8x8xbf16>, vector<8x8xf32> -> vector<8x8xf32>
    %cst_430 = arith.constant 0.353553385 : f32
    %1042 = vector.broadcast %cst_430 : f32 to vector<8x8xf32>
    %1043 = arith.mulf %1041, %1042 : vector<8x8xf32>
    %1044 = arith.addf %1043, %878 : vector<8x8xf32>
    %cst_431 = arith.constant dense<0xFF800000> : vector<8xf32>
    %1045 = vector.multi_reduction <maximumf>, %1044, %cst_431 [1] : vector<8x8xf32> to vector<8xf32>
    %1046 = vector.shape_cast %1045 : vector<8xf32> to vector<8x1xf32>
    %1047 = vector.broadcast %1046 : vector<8x1xf32> to vector<8x8xf32>
    %1048 = arith.subf %1044, %1047 : vector<8x8xf32>
    %1049 = math.exp %1048 : vector<8x8xf32>
    %cst_432 = arith.constant dense<0.000000e+00> : vector<8xf32>
    %1050 = vector.multi_reduction <add>, %1049, %cst_432 [1] : vector<8x8xf32> to vector<8xf32>
    %1051 = vector.shape_cast %1050 : vector<8xf32> to vector<8x1xf32>
    %1052 = tpu.reciprocal %1051 {approx = true} : vector<8x1xf32> -> vector<8x1xf32>
    %1053 = vector.broadcast %1052 : vector<8x1xf32> to vector<8x8xf32>
    %1054 = arith.mulf %1049, %1053 : vector<8x8xf32>
    %1055 = arith.truncf %1054 : vector<8x8xf32> to vector<8x8xbf16>
    %1056 = vector.extract_strided_slice %993 {offsets = [0, 16], sizes = [8, 8], strides = [1, 1]} : vector<8x32xbf16> to vector<8x8xbf16>
    %cst_433 = arith.constant dense<0.000000e+00> : vector<8x8xf32>
    %1057 = tpu.matmul %1055, %1056, %cst_433 {dimension_numbers = #tpu.dot_dimension_numbers<[1], [0], [0], [1], [0, 0, 1, 1], [], []>} : vector<8x8xbf16>, vector<8x8xbf16>, vector<8x8xf32> -> vector<8x8xf32>
    %1058 = arith.truncf %1057 : vector<8x8xf32> to vector<8x8xbf16>
    %1059 = vector.extract_strided_slice %890 {offsets = [16, 0], sizes = [8, 32], strides = [1, 1]} : vector<32x32xbf16> to vector<8x32xbf16>
    %cst_434 = arith.constant dense<0.000000e+00> : vector<8x32xf32>
    %1060 = tpu.matmul %1058, %1059, %cst_434 {dimension_numbers = #tpu.dot_dimension_numbers<[1], [0], [0], [1], [0, 0, 1, 1], [], []>} : vector<8x8xbf16>, vector<8x32xbf16>, vector<8x32xf32> -> vector<8x32xf32>
    %1061 = arith.addf %1038, %1060 : vector<8x32xf32>
    %1062 = vector.extract_strided_slice %989 {offsets = [0, 24], sizes = [8, 8], strides = [1, 1]} : vector<8x32xbf16> to vector<8x8xbf16>
    %1063 = vector.extract_strided_slice %991 {offsets = [0, 24], sizes = [8, 8], strides = [1, 1]} : vector<8x32xbf16> to vector<8x8xbf16>
    %cst_435 = arith.constant dense<0.000000e+00> : vector<8x8xf32>
    %1064 = tpu.matmul %1062, %1063, %cst_435 {dimension_numbers = #tpu.dot_dimension_numbers<[1], [1], [0], [0], [0, 0, 1, 0], [], []>} : vector<8x8xbf16>, vector<8x8xbf16>, vector<8x8xf32> -> vector<8x8xf32>
    %cst_436 = arith.constant 0.353553385 : f32
    %1065 = vector.broadcast %cst_436 : f32 to vector<8x8xf32>
    %1066 = arith.mulf %1064, %1065 : vector<8x8xf32>
    %1067 = arith.addf %1066, %878 : vector<8x8xf32>
    %cst_437 = arith.constant dense<0xFF800000> : vector<8xf32>
    %1068 = vector.multi_reduction <maximumf>, %1067, %cst_437 [1] : vector<8x8xf32> to vector<8xf32>
    %1069 = vector.shape_cast %1068 : vector<8xf32> to vector<8x1xf32>
    %1070 = vector.broadcast %1069 : vector<8x1xf32> to vector<8x8xf32>
    %1071 = arith.subf %1067, %1070 : vector<8x8xf32>
    %1072 = math.exp %1071 : vector<8x8xf32>
    %cst_438 = arith.constant dense<0.000000e+00> : vector<8xf32>
    %1073 = vector.multi_reduction <add>, %1072, %cst_438 [1] : vector<8x8xf32> to vector<8xf32>
    %1074 = vector.shape_cast %1073 : vector<8xf32> to vector<8x1xf32>
    %1075 = tpu.reciprocal %1074 {approx = true} : vector<8x1xf32> -> vector<8x1xf32>
    %1076 = vector.broadcast %1075 : vector<8x1xf32> to vector<8x8xf32>
    %1077 = arith.mulf %1072, %1076 : vector<8x8xf32>
    %1078 = arith.truncf %1077 : vector<8x8xf32> to vector<8x8xbf16>
    %1079 = vector.extract_strided_slice %993 {offsets = [0, 24], sizes = [8, 8], strides = [1, 1]} : vector<8x32xbf16> to vector<8x8xbf16>
    %cst_439 = arith.constant dense<0.000000e+00> : vector<8x8xf32>
    %1080 = tpu.matmul %1078, %1079, %cst_439 {dimension_numbers = #tpu.dot_dimension_numbers<[1], [0], [0], [1], [0, 0, 1, 1], [], []>} : vector<8x8xbf16>, vector<8x8xbf16>, vector<8x8xf32> -> vector<8x8xf32>
    %1081 = arith.truncf %1080 : vector<8x8xf32> to vector<8x8xbf16>
    %1082 = vector.extract_strided_slice %890 {offsets = [24, 0], sizes = [8, 32], strides = [1, 1]} : vector<32x32xbf16> to vector<8x32xbf16>
    %cst_440 = arith.constant dense<0.000000e+00> : vector<8x32xf32>
    %1083 = tpu.matmul %1081, %1082, %cst_440 {dimension_numbers = #tpu.dot_dimension_numbers<[1], [0], [0], [1], [0, 0, 1, 1], [], []>} : vector<8x8xbf16>, vector<8x32xbf16>, vector<8x32xf32> -> vector<8x32xf32>
    %1084 = arith.addf %1061, %1083 : vector<8x32xf32>
    %1085 = tpu.concatenate %987, %1084 in 0 : vector<8x32xf32>, vector<8x32xf32> -> vector<16x32xf32>
    %c688 = arith.constant 688 : index
    %c0_441 = arith.constant 0 : index
    %1086 = vector.load %arg3[%c688, %c0_441] : memref<1392x128xf32, #tpu.memory_space<vmem>>, vector<1x32xf32>
    %1087 = vector.broadcast %1086 : vector<1x32xf32> to vector<16x32xf32>
    %1088 = arith.addf %1085, %1087 : vector<16x32xf32>
    %1089 = arith.addf %322, %1088 : vector<16x32xf32>
    %cst_442 = arith.constant dense<0.000000e+00> : vector<16xf32>
    %1090 = vector.multi_reduction <add>, %1089, %cst_442 [1] : vector<16x32xf32> to vector<16xf32>
    %1091 = vector.shape_cast %1090 : vector<16xf32> to vector<16x1xf32>
    %cst_443 = arith.constant 3.200000e+01 : f32
    %1092 = vector.broadcast %cst_443 : f32 to vector<16x1xf32>
    %1093 = arith.divf %1091, %1092 : vector<16x1xf32>
    %1094 = vector.broadcast %1093 : vector<16x1xf32> to vector<16x32xf32>
    %1095 = arith.subf %1089, %1094 : vector<16x32xf32>
    %1096 = arith.mulf %1095, %1095 : vector<16x32xf32>
    %cst_444 = arith.constant dense<0.000000e+00> : vector<16xf32>
    %1097 = vector.multi_reduction <add>, %1096, %cst_444 [1] : vector<16x32xf32> to vector<16xf32>
    %1098 = vector.shape_cast %1097 : vector<16xf32> to vector<16x1xf32>
    %cst_445 = arith.constant 3.200000e+01 : f32
    %1099 = vector.broadcast %cst_445 : f32 to vector<16x1xf32>
    %1100 = arith.divf %1098, %1099 : vector<16x1xf32>
    %cst_446 = arith.constant 9.99999974E-6 : f32
    %1101 = vector.broadcast %cst_446 : f32 to vector<16x1xf32>
    %1102 = arith.addf %1100, %1101 : vector<16x1xf32>
    %1103 = math.rsqrt %1102 : vector<16x1xf32>
    %1104 = vector.broadcast %1103 : vector<16x1xf32> to vector<16x32xf32>
    %1105 = arith.mulf %1095, %1104 : vector<16x32xf32>
    %c928 = arith.constant 928 : index
    %c0_447 = arith.constant 0 : index
    %1106 = vector.load %arg3[%c928, %c0_447] : memref<1392x128xf32, #tpu.memory_space<vmem>>, vector<1x32xf32>
    %1107 = vector.broadcast %1106 : vector<1x32xf32> to vector<16x32xf32>
    %1108 = arith.mulf %1105, %1107 : vector<16x32xf32>
    %c936 = arith.constant 936 : index
    %c0_448 = arith.constant 0 : index
    %1109 = vector.load %arg3[%c936, %c0_448] : memref<1392x128xf32, #tpu.memory_space<vmem>>, vector<1x32xf32>
    %1110 = vector.broadcast %1109 : vector<1x32xf32> to vector<16x32xf32>
    %1111 = arith.addf %1108, %1110 : vector<16x32xf32>
    %c696 = arith.constant 696 : index
    %c0_449 = arith.constant 0 : index
    %1112 = vector.load %arg3[%c696, %c0_449] : memref<1392x128xf32, #tpu.memory_space<vmem>>, vector<32x32xf32>
    %1113 = arith.truncf %1112 : vector<32x32xf32> to vector<32x32xbf16>
    %1114 = arith.truncf %1111 : vector<16x32xf32> to vector<16x32xbf16>
    %cst_450 = arith.constant dense<0.000000e+00> : vector<16x32xf32>
    %1115 = tpu.matmul %1114, %1113, %cst_450 {dimension_numbers = #tpu.dot_dimension_numbers<[1], [0], [0], [1], [0, 0, 1, 1], [], []>} : vector<16x32xbf16>, vector<32x32xbf16>, vector<16x32xf32> -> vector<16x32xf32>
    %c728 = arith.constant 728 : index
    %c0_451 = arith.constant 0 : index
    %1116 = vector.load %arg3[%c728, %c0_451] : memref<1392x128xf32, #tpu.memory_space<vmem>>, vector<1x32xf32>
    %1117 = vector.broadcast %1116 : vector<1x32xf32> to vector<16x32xf32>
    %1118 = arith.addf %1115, %1117 : vector<16x32xf32>
    %c736 = arith.constant 736 : index
    %c0_452 = arith.constant 0 : index
    %1119 = vector.load %arg3[%c736, %c0_452] : memref<1392x128xf32, #tpu.memory_space<vmem>>, vector<32x64xf32>
    %1120 = arith.truncf %1119 : vector<32x64xf32> to vector<32x64xbf16>
    %1121 = arith.truncf %872 : vector<16x32xf32> to vector<16x32xbf16>
    %cst_453 = arith.constant dense<0.000000e+00> : vector<16x64xf32>
    %1122 = tpu.matmul %1121, %1120, %cst_453 {dimension_numbers = #tpu.dot_dimension_numbers<[1], [0], [0], [1], [0, 0, 1, 1], [], []>} : vector<16x32xbf16>, vector<32x64xbf16>, vector<16x64xf32> -> vector<16x64xf32>
    %c768 = arith.constant 768 : index
    %c0_454 = arith.constant 0 : index
    %1123 = vector.load %arg3[%c768, %c0_454] : memref<1392x128xf32, #tpu.memory_space<vmem>>, vector<1x64xf32>
    %1124 = vector.broadcast %1123 : vector<1x64xf32> to vector<16x64xf32>
    %1125 = arith.addf %1122, %1124 : vector<16x64xf32>
    %1126 = vector.extract_strided_slice %1125 {offsets = [0, 0], sizes = [16, 32], strides = [1, 1]} : vector<16x64xf32> to vector<16x32xf32>
    %1127 = vector.extract_strided_slice %1125 {offsets = [0, 32], sizes = [16, 32], strides = [1, 1]} : vector<16x64xf32> to vector<16x32xf32>
    %c776 = arith.constant 776 : index
    %c0_455 = arith.constant 0 : index
    %1128 = vector.load %arg3[%c776, %c0_455] : memref<1392x128xf32, #tpu.memory_space<vmem>>, vector<32x32xf32>
    %1129 = arith.truncf %1128 : vector<32x32xf32> to vector<32x32xbf16>
    %1130 = vector.extract_strided_slice %1118 {offsets = [0, 0], sizes = [8, 32], strides = [1, 1]} : vector<16x32xf32> to vector<8x32xf32>
    %1131 = arith.truncf %1130 : vector<8x32xf32> to vector<8x32xbf16>
    %1132 = vector.extract_strided_slice %1126 {offsets = [0, 0], sizes = [8, 32], strides = [1, 1]} : vector<16x32xf32> to vector<8x32xf32>
    %1133 = arith.truncf %1132 : vector<8x32xf32> to vector<8x32xbf16>
    %1134 = vector.extract_strided_slice %1127 {offsets = [0, 0], sizes = [8, 32], strides = [1, 1]} : vector<16x32xf32> to vector<8x32xf32>
    %1135 = arith.truncf %1134 : vector<8x32xf32> to vector<8x32xbf16>
    %1136 = vector.extract_strided_slice %1131 {offsets = [0, 0], sizes = [8, 8], strides = [1, 1]} : vector<8x32xbf16> to vector<8x8xbf16>
    %1137 = vector.extract_strided_slice %1133 {offsets = [0, 0], sizes = [8, 8], strides = [1, 1]} : vector<8x32xbf16> to vector<8x8xbf16>
    %cst_456 = arith.constant dense<0.000000e+00> : vector<8x8xf32>
    %1138 = tpu.matmul %1136, %1137, %cst_456 {dimension_numbers = #tpu.dot_dimension_numbers<[1], [1], [0], [0], [0, 0, 1, 0], [], []>} : vector<8x8xbf16>, vector<8x8xbf16>, vector<8x8xf32> -> vector<8x8xf32>
    %cst_457 = arith.constant 0.353553385 : f32
    %1139 = vector.broadcast %cst_457 : f32 to vector<8x8xf32>
    %1140 = arith.mulf %1138, %1139 : vector<8x8xf32>
    %cst_458 = arith.constant dense<0xFF800000> : vector<8xf32>
    %1141 = vector.multi_reduction <maximumf>, %1140, %cst_458 [1] : vector<8x8xf32> to vector<8xf32>
    %1142 = vector.shape_cast %1141 : vector<8xf32> to vector<8x1xf32>
    %1143 = vector.broadcast %1142 : vector<8x1xf32> to vector<8x8xf32>
    %1144 = arith.subf %1140, %1143 : vector<8x8xf32>
    %1145 = math.exp %1144 : vector<8x8xf32>
    %cst_459 = arith.constant dense<0.000000e+00> : vector<8xf32>
    %1146 = vector.multi_reduction <add>, %1145, %cst_459 [1] : vector<8x8xf32> to vector<8xf32>
    %1147 = vector.shape_cast %1146 : vector<8xf32> to vector<8x1xf32>
    %1148 = tpu.reciprocal %1147 {approx = true} : vector<8x1xf32> -> vector<8x1xf32>
    %1149 = vector.broadcast %1148 : vector<8x1xf32> to vector<8x8xf32>
    %1150 = arith.mulf %1145, %1149 : vector<8x8xf32>
    %1151 = arith.truncf %1150 : vector<8x8xf32> to vector<8x8xbf16>
    %1152 = vector.extract_strided_slice %1135 {offsets = [0, 0], sizes = [8, 8], strides = [1, 1]} : vector<8x32xbf16> to vector<8x8xbf16>
    %cst_460 = arith.constant dense<0.000000e+00> : vector<8x8xf32>
    %1153 = tpu.matmul %1151, %1152, %cst_460 {dimension_numbers = #tpu.dot_dimension_numbers<[1], [0], [0], [1], [0, 0, 1, 1], [], []>} : vector<8x8xbf16>, vector<8x8xbf16>, vector<8x8xf32> -> vector<8x8xf32>
    %1154 = arith.truncf %1153 : vector<8x8xf32> to vector<8x8xbf16>
    %1155 = vector.extract_strided_slice %1129 {offsets = [0, 0], sizes = [8, 32], strides = [1, 1]} : vector<32x32xbf16> to vector<8x32xbf16>
    %cst_461 = arith.constant dense<0.000000e+00> : vector<8x32xf32>
    %1156 = tpu.matmul %1154, %1155, %cst_461 {dimension_numbers = #tpu.dot_dimension_numbers<[1], [0], [0], [1], [0, 0, 1, 1], [], []>} : vector<8x8xbf16>, vector<8x32xbf16>, vector<8x32xf32> -> vector<8x32xf32>
    %1157 = vector.extract_strided_slice %1131 {offsets = [0, 8], sizes = [8, 8], strides = [1, 1]} : vector<8x32xbf16> to vector<8x8xbf16>
    %1158 = vector.extract_strided_slice %1133 {offsets = [0, 8], sizes = [8, 8], strides = [1, 1]} : vector<8x32xbf16> to vector<8x8xbf16>
    %cst_462 = arith.constant dense<0.000000e+00> : vector<8x8xf32>
    %1159 = tpu.matmul %1157, %1158, %cst_462 {dimension_numbers = #tpu.dot_dimension_numbers<[1], [1], [0], [0], [0, 0, 1, 0], [], []>} : vector<8x8xbf16>, vector<8x8xbf16>, vector<8x8xf32> -> vector<8x8xf32>
    %cst_463 = arith.constant 0.353553385 : f32
    %1160 = vector.broadcast %cst_463 : f32 to vector<8x8xf32>
    %1161 = arith.mulf %1159, %1160 : vector<8x8xf32>
    %cst_464 = arith.constant dense<0xFF800000> : vector<8xf32>
    %1162 = vector.multi_reduction <maximumf>, %1161, %cst_464 [1] : vector<8x8xf32> to vector<8xf32>
    %1163 = vector.shape_cast %1162 : vector<8xf32> to vector<8x1xf32>
    %1164 = vector.broadcast %1163 : vector<8x1xf32> to vector<8x8xf32>
    %1165 = arith.subf %1161, %1164 : vector<8x8xf32>
    %1166 = math.exp %1165 : vector<8x8xf32>
    %cst_465 = arith.constant dense<0.000000e+00> : vector<8xf32>
    %1167 = vector.multi_reduction <add>, %1166, %cst_465 [1] : vector<8x8xf32> to vector<8xf32>
    %1168 = vector.shape_cast %1167 : vector<8xf32> to vector<8x1xf32>
    %1169 = tpu.reciprocal %1168 {approx = true} : vector<8x1xf32> -> vector<8x1xf32>
    %1170 = vector.broadcast %1169 : vector<8x1xf32> to vector<8x8xf32>
    %1171 = arith.mulf %1166, %1170 : vector<8x8xf32>
    %1172 = arith.truncf %1171 : vector<8x8xf32> to vector<8x8xbf16>
    %1173 = vector.extract_strided_slice %1135 {offsets = [0, 8], sizes = [8, 8], strides = [1, 1]} : vector<8x32xbf16> to vector<8x8xbf16>
    %cst_466 = arith.constant dense<0.000000e+00> : vector<8x8xf32>
    %1174 = tpu.matmul %1172, %1173, %cst_466 {dimension_numbers = #tpu.dot_dimension_numbers<[1], [0], [0], [1], [0, 0, 1, 1], [], []>} : vector<8x8xbf16>, vector<8x8xbf16>, vector<8x8xf32> -> vector<8x8xf32>
    %1175 = arith.truncf %1174 : vector<8x8xf32> to vector<8x8xbf16>
    %1176 = vector.extract_strided_slice %1129 {offsets = [8, 0], sizes = [8, 32], strides = [1, 1]} : vector<32x32xbf16> to vector<8x32xbf16>
    %cst_467 = arith.constant dense<0.000000e+00> : vector<8x32xf32>
    %1177 = tpu.matmul %1175, %1176, %cst_467 {dimension_numbers = #tpu.dot_dimension_numbers<[1], [0], [0], [1], [0, 0, 1, 1], [], []>} : vector<8x8xbf16>, vector<8x32xbf16>, vector<8x32xf32> -> vector<8x32xf32>
    %1178 = arith.addf %1156, %1177 : vector<8x32xf32>
    %1179 = vector.extract_strided_slice %1131 {offsets = [0, 16], sizes = [8, 8], strides = [1, 1]} : vector<8x32xbf16> to vector<8x8xbf16>
    %1180 = vector.extract_strided_slice %1133 {offsets = [0, 16], sizes = [8, 8], strides = [1, 1]} : vector<8x32xbf16> to vector<8x8xbf16>
    %cst_468 = arith.constant dense<0.000000e+00> : vector<8x8xf32>
    %1181 = tpu.matmul %1179, %1180, %cst_468 {dimension_numbers = #tpu.dot_dimension_numbers<[1], [1], [0], [0], [0, 0, 1, 0], [], []>} : vector<8x8xbf16>, vector<8x8xbf16>, vector<8x8xf32> -> vector<8x8xf32>
    %cst_469 = arith.constant 0.353553385 : f32
    %1182 = vector.broadcast %cst_469 : f32 to vector<8x8xf32>
    %1183 = arith.mulf %1181, %1182 : vector<8x8xf32>
    %cst_470 = arith.constant dense<0xFF800000> : vector<8xf32>
    %1184 = vector.multi_reduction <maximumf>, %1183, %cst_470 [1] : vector<8x8xf32> to vector<8xf32>
    %1185 = vector.shape_cast %1184 : vector<8xf32> to vector<8x1xf32>
    %1186 = vector.broadcast %1185 : vector<8x1xf32> to vector<8x8xf32>
    %1187 = arith.subf %1183, %1186 : vector<8x8xf32>
    %1188 = math.exp %1187 : vector<8x8xf32>
    %cst_471 = arith.constant dense<0.000000e+00> : vector<8xf32>
    %1189 = vector.multi_reduction <add>, %1188, %cst_471 [1] : vector<8x8xf32> to vector<8xf32>
    %1190 = vector.shape_cast %1189 : vector<8xf32> to vector<8x1xf32>
    %1191 = tpu.reciprocal %1190 {approx = true} : vector<8x1xf32> -> vector<8x1xf32>
    %1192 = vector.broadcast %1191 : vector<8x1xf32> to vector<8x8xf32>
    %1193 = arith.mulf %1188, %1192 : vector<8x8xf32>
    %1194 = arith.truncf %1193 : vector<8x8xf32> to vector<8x8xbf16>
    %1195 = vector.extract_strided_slice %1135 {offsets = [0, 16], sizes = [8, 8], strides = [1, 1]} : vector<8x32xbf16> to vector<8x8xbf16>
    %cst_472 = arith.constant dense<0.000000e+00> : vector<8x8xf32>
    %1196 = tpu.matmul %1194, %1195, %cst_472 {dimension_numbers = #tpu.dot_dimension_numbers<[1], [0], [0], [1], [0, 0, 1, 1], [], []>} : vector<8x8xbf16>, vector<8x8xbf16>, vector<8x8xf32> -> vector<8x8xf32>
    %1197 = arith.truncf %1196 : vector<8x8xf32> to vector<8x8xbf16>
    %1198 = vector.extract_strided_slice %1129 {offsets = [16, 0], sizes = [8, 32], strides = [1, 1]} : vector<32x32xbf16> to vector<8x32xbf16>
    %cst_473 = arith.constant dense<0.000000e+00> : vector<8x32xf32>
    %1199 = tpu.matmul %1197, %1198, %cst_473 {dimension_numbers = #tpu.dot_dimension_numbers<[1], [0], [0], [1], [0, 0, 1, 1], [], []>} : vector<8x8xbf16>, vector<8x32xbf16>, vector<8x32xf32> -> vector<8x32xf32>
    %1200 = arith.addf %1178, %1199 : vector<8x32xf32>
    %1201 = vector.extract_strided_slice %1131 {offsets = [0, 24], sizes = [8, 8], strides = [1, 1]} : vector<8x32xbf16> to vector<8x8xbf16>
    %1202 = vector.extract_strided_slice %1133 {offsets = [0, 24], sizes = [8, 8], strides = [1, 1]} : vector<8x32xbf16> to vector<8x8xbf16>
    %cst_474 = arith.constant dense<0.000000e+00> : vector<8x8xf32>
    %1203 = tpu.matmul %1201, %1202, %cst_474 {dimension_numbers = #tpu.dot_dimension_numbers<[1], [1], [0], [0], [0, 0, 1, 0], [], []>} : vector<8x8xbf16>, vector<8x8xbf16>, vector<8x8xf32> -> vector<8x8xf32>
    %cst_475 = arith.constant 0.353553385 : f32
    %1204 = vector.broadcast %cst_475 : f32 to vector<8x8xf32>
    %1205 = arith.mulf %1203, %1204 : vector<8x8xf32>
    %cst_476 = arith.constant dense<0xFF800000> : vector<8xf32>
    %1206 = vector.multi_reduction <maximumf>, %1205, %cst_476 [1] : vector<8x8xf32> to vector<8xf32>
    %1207 = vector.shape_cast %1206 : vector<8xf32> to vector<8x1xf32>
    %1208 = vector.broadcast %1207 : vector<8x1xf32> to vector<8x8xf32>
    %1209 = arith.subf %1205, %1208 : vector<8x8xf32>
    %1210 = math.exp %1209 : vector<8x8xf32>
    %cst_477 = arith.constant dense<0.000000e+00> : vector<8xf32>
    %1211 = vector.multi_reduction <add>, %1210, %cst_477 [1] : vector<8x8xf32> to vector<8xf32>
    %1212 = vector.shape_cast %1211 : vector<8xf32> to vector<8x1xf32>
    %1213 = tpu.reciprocal %1212 {approx = true} : vector<8x1xf32> -> vector<8x1xf32>
    %1214 = vector.broadcast %1213 : vector<8x1xf32> to vector<8x8xf32>
    %1215 = arith.mulf %1210, %1214 : vector<8x8xf32>
    %1216 = arith.truncf %1215 : vector<8x8xf32> to vector<8x8xbf16>
    %1217 = vector.extract_strided_slice %1135 {offsets = [0, 24], sizes = [8, 8], strides = [1, 1]} : vector<8x32xbf16> to vector<8x8xbf16>
    %cst_478 = arith.constant dense<0.000000e+00> : vector<8x8xf32>
    %1218 = tpu.matmul %1216, %1217, %cst_478 {dimension_numbers = #tpu.dot_dimension_numbers<[1], [0], [0], [1], [0, 0, 1, 1], [], []>} : vector<8x8xbf16>, vector<8x8xbf16>, vector<8x8xf32> -> vector<8x8xf32>
    %1219 = arith.truncf %1218 : vector<8x8xf32> to vector<8x8xbf16>
    %1220 = vector.extract_strided_slice %1129 {offsets = [24, 0], sizes = [8, 32], strides = [1, 1]} : vector<32x32xbf16> to vector<8x32xbf16>
    %cst_479 = arith.constant dense<0.000000e+00> : vector<8x32xf32>
    %1221 = tpu.matmul %1219, %1220, %cst_479 {dimension_numbers = #tpu.dot_dimension_numbers<[1], [0], [0], [1], [0, 0, 1, 1], [], []>} : vector<8x8xbf16>, vector<8x32xbf16>, vector<8x32xf32> -> vector<8x32xf32>
    %1222 = arith.addf %1200, %1221 : vector<8x32xf32>
    %1223 = vector.extract_strided_slice %1118 {offsets = [8, 0], sizes = [8, 32], strides = [1, 1]} : vector<16x32xf32> to vector<8x32xf32>
    %1224 = arith.truncf %1223 : vector<8x32xf32> to vector<8x32xbf16>
    %1225 = vector.extract_strided_slice %1126 {offsets = [8, 0], sizes = [8, 32], strides = [1, 1]} : vector<16x32xf32> to vector<8x32xf32>
    %1226 = arith.truncf %1225 : vector<8x32xf32> to vector<8x32xbf16>
    %1227 = vector.extract_strided_slice %1127 {offsets = [8, 0], sizes = [8, 32], strides = [1, 1]} : vector<16x32xf32> to vector<8x32xf32>
    %1228 = arith.truncf %1227 : vector<8x32xf32> to vector<8x32xbf16>
    %1229 = vector.extract_strided_slice %1224 {offsets = [0, 0], sizes = [8, 8], strides = [1, 1]} : vector<8x32xbf16> to vector<8x8xbf16>
    %1230 = vector.extract_strided_slice %1226 {offsets = [0, 0], sizes = [8, 8], strides = [1, 1]} : vector<8x32xbf16> to vector<8x8xbf16>
    %cst_480 = arith.constant dense<0.000000e+00> : vector<8x8xf32>
    %1231 = tpu.matmul %1229, %1230, %cst_480 {dimension_numbers = #tpu.dot_dimension_numbers<[1], [1], [0], [0], [0, 0, 1, 0], [], []>} : vector<8x8xbf16>, vector<8x8xbf16>, vector<8x8xf32> -> vector<8x8xf32>
    %cst_481 = arith.constant 0.353553385 : f32
    %1232 = vector.broadcast %cst_481 : f32 to vector<8x8xf32>
    %1233 = arith.mulf %1231, %1232 : vector<8x8xf32>
    %cst_482 = arith.constant dense<0xFF800000> : vector<8xf32>
    %1234 = vector.multi_reduction <maximumf>, %1233, %cst_482 [1] : vector<8x8xf32> to vector<8xf32>
    %1235 = vector.shape_cast %1234 : vector<8xf32> to vector<8x1xf32>
    %1236 = vector.broadcast %1235 : vector<8x1xf32> to vector<8x8xf32>
    %1237 = arith.subf %1233, %1236 : vector<8x8xf32>
    %1238 = math.exp %1237 : vector<8x8xf32>
    %cst_483 = arith.constant dense<0.000000e+00> : vector<8xf32>
    %1239 = vector.multi_reduction <add>, %1238, %cst_483 [1] : vector<8x8xf32> to vector<8xf32>
    %1240 = vector.shape_cast %1239 : vector<8xf32> to vector<8x1xf32>
    %1241 = tpu.reciprocal %1240 {approx = true} : vector<8x1xf32> -> vector<8x1xf32>
    %1242 = vector.broadcast %1241 : vector<8x1xf32> to vector<8x8xf32>
    %1243 = arith.mulf %1238, %1242 : vector<8x8xf32>
    %1244 = arith.truncf %1243 : vector<8x8xf32> to vector<8x8xbf16>
    %1245 = vector.extract_strided_slice %1228 {offsets = [0, 0], sizes = [8, 8], strides = [1, 1]} : vector<8x32xbf16> to vector<8x8xbf16>
    %cst_484 = arith.constant dense<0.000000e+00> : vector<8x8xf32>
    %1246 = tpu.matmul %1244, %1245, %cst_484 {dimension_numbers = #tpu.dot_dimension_numbers<[1], [0], [0], [1], [0, 0, 1, 1], [], []>} : vector<8x8xbf16>, vector<8x8xbf16>, vector<8x8xf32> -> vector<8x8xf32>
    %1247 = arith.truncf %1246 : vector<8x8xf32> to vector<8x8xbf16>
    %1248 = vector.extract_strided_slice %1129 {offsets = [0, 0], sizes = [8, 32], strides = [1, 1]} : vector<32x32xbf16> to vector<8x32xbf16>
    %cst_485 = arith.constant dense<0.000000e+00> : vector<8x32xf32>
    %1249 = tpu.matmul %1247, %1248, %cst_485 {dimension_numbers = #tpu.dot_dimension_numbers<[1], [0], [0], [1], [0, 0, 1, 1], [], []>} : vector<8x8xbf16>, vector<8x32xbf16>, vector<8x32xf32> -> vector<8x32xf32>
    %1250 = vector.extract_strided_slice %1224 {offsets = [0, 8], sizes = [8, 8], strides = [1, 1]} : vector<8x32xbf16> to vector<8x8xbf16>
    %1251 = vector.extract_strided_slice %1226 {offsets = [0, 8], sizes = [8, 8], strides = [1, 1]} : vector<8x32xbf16> to vector<8x8xbf16>
    %cst_486 = arith.constant dense<0.000000e+00> : vector<8x8xf32>
    %1252 = tpu.matmul %1250, %1251, %cst_486 {dimension_numbers = #tpu.dot_dimension_numbers<[1], [1], [0], [0], [0, 0, 1, 0], [], []>} : vector<8x8xbf16>, vector<8x8xbf16>, vector<8x8xf32> -> vector<8x8xf32>
    %cst_487 = arith.constant 0.353553385 : f32
    %1253 = vector.broadcast %cst_487 : f32 to vector<8x8xf32>
    %1254 = arith.mulf %1252, %1253 : vector<8x8xf32>
    %cst_488 = arith.constant dense<0xFF800000> : vector<8xf32>
    %1255 = vector.multi_reduction <maximumf>, %1254, %cst_488 [1] : vector<8x8xf32> to vector<8xf32>
    %1256 = vector.shape_cast %1255 : vector<8xf32> to vector<8x1xf32>
    %1257 = vector.broadcast %1256 : vector<8x1xf32> to vector<8x8xf32>
    %1258 = arith.subf %1254, %1257 : vector<8x8xf32>
    %1259 = math.exp %1258 : vector<8x8xf32>
    %cst_489 = arith.constant dense<0.000000e+00> : vector<8xf32>
    %1260 = vector.multi_reduction <add>, %1259, %cst_489 [1] : vector<8x8xf32> to vector<8xf32>
    %1261 = vector.shape_cast %1260 : vector<8xf32> to vector<8x1xf32>
    %1262 = tpu.reciprocal %1261 {approx = true} : vector<8x1xf32> -> vector<8x1xf32>
    %1263 = vector.broadcast %1262 : vector<8x1xf32> to vector<8x8xf32>
    %1264 = arith.mulf %1259, %1263 : vector<8x8xf32>
    %1265 = arith.truncf %1264 : vector<8x8xf32> to vector<8x8xbf16>
    %1266 = vector.extract_strided_slice %1228 {offsets = [0, 8], sizes = [8, 8], strides = [1, 1]} : vector<8x32xbf16> to vector<8x8xbf16>
    %cst_490 = arith.constant dense<0.000000e+00> : vector<8x8xf32>
    %1267 = tpu.matmul %1265, %1266, %cst_490 {dimension_numbers = #tpu.dot_dimension_numbers<[1], [0], [0], [1], [0, 0, 1, 1], [], []>} : vector<8x8xbf16>, vector<8x8xbf16>, vector<8x8xf32> -> vector<8x8xf32>
    %1268 = arith.truncf %1267 : vector<8x8xf32> to vector<8x8xbf16>
    %1269 = vector.extract_strided_slice %1129 {offsets = [8, 0], sizes = [8, 32], strides = [1, 1]} : vector<32x32xbf16> to vector<8x32xbf16>
    %cst_491 = arith.constant dense<0.000000e+00> : vector<8x32xf32>
    %1270 = tpu.matmul %1268, %1269, %cst_491 {dimension_numbers = #tpu.dot_dimension_numbers<[1], [0], [0], [1], [0, 0, 1, 1], [], []>} : vector<8x8xbf16>, vector<8x32xbf16>, vector<8x32xf32> -> vector<8x32xf32>
    %1271 = arith.addf %1249, %1270 : vector<8x32xf32>
    %1272 = vector.extract_strided_slice %1224 {offsets = [0, 16], sizes = [8, 8], strides = [1, 1]} : vector<8x32xbf16> to vector<8x8xbf16>
    %1273 = vector.extract_strided_slice %1226 {offsets = [0, 16], sizes = [8, 8], strides = [1, 1]} : vector<8x32xbf16> to vector<8x8xbf16>
    %cst_492 = arith.constant dense<0.000000e+00> : vector<8x8xf32>
    %1274 = tpu.matmul %1272, %1273, %cst_492 {dimension_numbers = #tpu.dot_dimension_numbers<[1], [1], [0], [0], [0, 0, 1, 0], [], []>} : vector<8x8xbf16>, vector<8x8xbf16>, vector<8x8xf32> -> vector<8x8xf32>
    %cst_493 = arith.constant 0.353553385 : f32
    %1275 = vector.broadcast %cst_493 : f32 to vector<8x8xf32>
    %1276 = arith.mulf %1274, %1275 : vector<8x8xf32>
    %cst_494 = arith.constant dense<0xFF800000> : vector<8xf32>
    %1277 = vector.multi_reduction <maximumf>, %1276, %cst_494 [1] : vector<8x8xf32> to vector<8xf32>
    %1278 = vector.shape_cast %1277 : vector<8xf32> to vector<8x1xf32>
    %1279 = vector.broadcast %1278 : vector<8x1xf32> to vector<8x8xf32>
    %1280 = arith.subf %1276, %1279 : vector<8x8xf32>
    %1281 = math.exp %1280 : vector<8x8xf32>
    %cst_495 = arith.constant dense<0.000000e+00> : vector<8xf32>
    %1282 = vector.multi_reduction <add>, %1281, %cst_495 [1] : vector<8x8xf32> to vector<8xf32>
    %1283 = vector.shape_cast %1282 : vector<8xf32> to vector<8x1xf32>
    %1284 = tpu.reciprocal %1283 {approx = true} : vector<8x1xf32> -> vector<8x1xf32>
    %1285 = vector.broadcast %1284 : vector<8x1xf32> to vector<8x8xf32>
    %1286 = arith.mulf %1281, %1285 : vector<8x8xf32>
    %1287 = arith.truncf %1286 : vector<8x8xf32> to vector<8x8xbf16>
    %1288 = vector.extract_strided_slice %1228 {offsets = [0, 16], sizes = [8, 8], strides = [1, 1]} : vector<8x32xbf16> to vector<8x8xbf16>
    %cst_496 = arith.constant dense<0.000000e+00> : vector<8x8xf32>
    %1289 = tpu.matmul %1287, %1288, %cst_496 {dimension_numbers = #tpu.dot_dimension_numbers<[1], [0], [0], [1], [0, 0, 1, 1], [], []>} : vector<8x8xbf16>, vector<8x8xbf16>, vector<8x8xf32> -> vector<8x8xf32>
    %1290 = arith.truncf %1289 : vector<8x8xf32> to vector<8x8xbf16>
    %1291 = vector.extract_strided_slice %1129 {offsets = [16, 0], sizes = [8, 32], strides = [1, 1]} : vector<32x32xbf16> to vector<8x32xbf16>
    %cst_497 = arith.constant dense<0.000000e+00> : vector<8x32xf32>
    %1292 = tpu.matmul %1290, %1291, %cst_497 {dimension_numbers = #tpu.dot_dimension_numbers<[1], [0], [0], [1], [0, 0, 1, 1], [], []>} : vector<8x8xbf16>, vector<8x32xbf16>, vector<8x32xf32> -> vector<8x32xf32>
    %1293 = arith.addf %1271, %1292 : vector<8x32xf32>
    %1294 = vector.extract_strided_slice %1224 {offsets = [0, 24], sizes = [8, 8], strides = [1, 1]} : vector<8x32xbf16> to vector<8x8xbf16>
    %1295 = vector.extract_strided_slice %1226 {offsets = [0, 24], sizes = [8, 8], strides = [1, 1]} : vector<8x32xbf16> to vector<8x8xbf16>
    %cst_498 = arith.constant dense<0.000000e+00> : vector<8x8xf32>
    %1296 = tpu.matmul %1294, %1295, %cst_498 {dimension_numbers = #tpu.dot_dimension_numbers<[1], [1], [0], [0], [0, 0, 1, 0], [], []>} : vector<8x8xbf16>, vector<8x8xbf16>, vector<8x8xf32> -> vector<8x8xf32>
    %cst_499 = arith.constant 0.353553385 : f32
    %1297 = vector.broadcast %cst_499 : f32 to vector<8x8xf32>
    %1298 = arith.mulf %1296, %1297 : vector<8x8xf32>
    %cst_500 = arith.constant dense<0xFF800000> : vector<8xf32>
    %1299 = vector.multi_reduction <maximumf>, %1298, %cst_500 [1] : vector<8x8xf32> to vector<8xf32>
    %1300 = vector.shape_cast %1299 : vector<8xf32> to vector<8x1xf32>
    %1301 = vector.broadcast %1300 : vector<8x1xf32> to vector<8x8xf32>
    %1302 = arith.subf %1298, %1301 : vector<8x8xf32>
    %1303 = math.exp %1302 : vector<8x8xf32>
    %cst_501 = arith.constant dense<0.000000e+00> : vector<8xf32>
    %1304 = vector.multi_reduction <add>, %1303, %cst_501 [1] : vector<8x8xf32> to vector<8xf32>
    %1305 = vector.shape_cast %1304 : vector<8xf32> to vector<8x1xf32>
    %1306 = tpu.reciprocal %1305 {approx = true} : vector<8x1xf32> -> vector<8x1xf32>
    %1307 = vector.broadcast %1306 : vector<8x1xf32> to vector<8x8xf32>
    %1308 = arith.mulf %1303, %1307 : vector<8x8xf32>
    %1309 = arith.truncf %1308 : vector<8x8xf32> to vector<8x8xbf16>
    %1310 = vector.extract_strided_slice %1228 {offsets = [0, 24], sizes = [8, 8], strides = [1, 1]} : vector<8x32xbf16> to vector<8x8xbf16>
    %cst_502 = arith.constant dense<0.000000e+00> : vector<8x8xf32>
    %1311 = tpu.matmul %1309, %1310, %cst_502 {dimension_numbers = #tpu.dot_dimension_numbers<[1], [0], [0], [1], [0, 0, 1, 1], [], []>} : vector<8x8xbf16>, vector<8x8xbf16>, vector<8x8xf32> -> vector<8x8xf32>
    %1312 = arith.truncf %1311 : vector<8x8xf32> to vector<8x8xbf16>
    %1313 = vector.extract_strided_slice %1129 {offsets = [24, 0], sizes = [8, 32], strides = [1, 1]} : vector<32x32xbf16> to vector<8x32xbf16>
    %cst_503 = arith.constant dense<0.000000e+00> : vector<8x32xf32>
    %1314 = tpu.matmul %1312, %1313, %cst_503 {dimension_numbers = #tpu.dot_dimension_numbers<[1], [0], [0], [1], [0, 0, 1, 1], [], []>} : vector<8x8xbf16>, vector<8x32xbf16>, vector<8x32xf32> -> vector<8x32xf32>
    %1315 = arith.addf %1293, %1314 : vector<8x32xf32>
    %1316 = tpu.concatenate %1222, %1315 in 0 : vector<8x32xf32>, vector<8x32xf32> -> vector<16x32xf32>
    %c808 = arith.constant 808 : index
    %c0_504 = arith.constant 0 : index
    %1317 = vector.load %arg3[%c808, %c0_504] : memref<1392x128xf32, #tpu.memory_space<vmem>>, vector<1x32xf32>
    %1318 = vector.broadcast %1317 : vector<1x32xf32> to vector<16x32xf32>
    %1319 = arith.addf %1316, %1318 : vector<16x32xf32>
    %1320 = arith.addf %1111, %1319 : vector<16x32xf32>
    %cst_505 = arith.constant dense<0.000000e+00> : vector<16xf32>
    %1321 = vector.multi_reduction <add>, %1320, %cst_505 [1] : vector<16x32xf32> to vector<16xf32>
    %1322 = vector.shape_cast %1321 : vector<16xf32> to vector<16x1xf32>
    %cst_506 = arith.constant 3.200000e+01 : f32
    %1323 = vector.broadcast %cst_506 : f32 to vector<16x1xf32>
    %1324 = arith.divf %1322, %1323 : vector<16x1xf32>
    %1325 = vector.broadcast %1324 : vector<16x1xf32> to vector<16x32xf32>
    %1326 = arith.subf %1320, %1325 : vector<16x32xf32>
    %1327 = arith.mulf %1326, %1326 : vector<16x32xf32>
    %cst_507 = arith.constant dense<0.000000e+00> : vector<16xf32>
    %1328 = vector.multi_reduction <add>, %1327, %cst_507 [1] : vector<16x32xf32> to vector<16xf32>
    %1329 = vector.shape_cast %1328 : vector<16xf32> to vector<16x1xf32>
    %cst_508 = arith.constant 3.200000e+01 : f32
    %1330 = vector.broadcast %cst_508 : f32 to vector<16x1xf32>
    %1331 = arith.divf %1329, %1330 : vector<16x1xf32>
    %cst_509 = arith.constant 9.99999974E-6 : f32
    %1332 = vector.broadcast %cst_509 : f32 to vector<16x1xf32>
    %1333 = arith.addf %1331, %1332 : vector<16x1xf32>
    %1334 = math.rsqrt %1333 : vector<16x1xf32>
    %1335 = vector.broadcast %1334 : vector<16x1xf32> to vector<16x32xf32>
    %1336 = arith.mulf %1326, %1335 : vector<16x32xf32>
    %c944 = arith.constant 944 : index
    %c0_510 = arith.constant 0 : index
    %1337 = vector.load %arg3[%c944, %c0_510] : memref<1392x128xf32, #tpu.memory_space<vmem>>, vector<1x32xf32>
    %1338 = vector.broadcast %1337 : vector<1x32xf32> to vector<16x32xf32>
    %1339 = arith.mulf %1336, %1338 : vector<16x32xf32>
    %c952 = arith.constant 952 : index
    %c0_511 = arith.constant 0 : index
    %1340 = vector.load %arg3[%c952, %c0_511] : memref<1392x128xf32, #tpu.memory_space<vmem>>, vector<1x32xf32>
    %1341 = vector.broadcast %1340 : vector<1x32xf32> to vector<16x32xf32>
    %1342 = arith.addf %1339, %1341 : vector<16x32xf32>
    %c816 = arith.constant 816 : index
    %c0_512 = arith.constant 0 : index
    %1343 = vector.load %arg3[%c816, %c0_512] : memref<1392x128xf32, #tpu.memory_space<vmem>>, vector<32x64xf32>
    %1344 = arith.truncf %1343 : vector<32x64xf32> to vector<32x64xbf16>
    %1345 = arith.truncf %1342 : vector<16x32xf32> to vector<16x32xbf16>
    %cst_513 = arith.constant dense<0.000000e+00> : vector<16x64xf32>
    %1346 = tpu.matmul %1345, %1344, %cst_513 {dimension_numbers = #tpu.dot_dimension_numbers<[1], [0], [0], [1], [0, 0, 1, 1], [], []>} : vector<16x32xbf16>, vector<32x64xbf16>, vector<16x64xf32> -> vector<16x64xf32>
    %c848 = arith.constant 848 : index
    %c0_514 = arith.constant 0 : index
    %1347 = vector.load %arg3[%c848, %c0_514] : memref<1392x128xf32, #tpu.memory_space<vmem>>, vector<1x64xf32>
    %1348 = vector.broadcast %1347 : vector<1x64xf32> to vector<16x64xf32>
    %1349 = arith.addf %1346, %1348 : vector<16x64xf32>
    %cst_515 = arith.constant 0.000000e+00 : f32
    %1350 = vector.broadcast %cst_515 : f32 to vector<16x64xf32>
    %1351 = arith.maximumf %1349, %1350 : vector<16x64xf32>
    %c856 = arith.constant 856 : index
    %c0_516 = arith.constant 0 : index
    %1352 = vector.load %arg3[%c856, %c0_516] : memref<1392x128xf32, #tpu.memory_space<vmem>>, vector<64x32xf32>
    %1353 = arith.truncf %1352 : vector<64x32xf32> to vector<64x32xbf16>
    %1354 = arith.truncf %1351 : vector<16x64xf32> to vector<16x64xbf16>
    %cst_517 = arith.constant dense<0.000000e+00> : vector<16x32xf32>
    %1355 = tpu.matmul %1354, %1353, %cst_517 {dimension_numbers = #tpu.dot_dimension_numbers<[1], [0], [0], [1], [0, 0, 1, 1], [], []>} : vector<16x64xbf16>, vector<64x32xbf16>, vector<16x32xf32> -> vector<16x32xf32>
    %c920 = arith.constant 920 : index
    %c0_518 = arith.constant 0 : index
    %1356 = vector.load %arg3[%c920, %c0_518] : memref<1392x128xf32, #tpu.memory_space<vmem>>, vector<1x32xf32>
    %1357 = vector.broadcast %1356 : vector<1x32xf32> to vector<16x32xf32>
    %1358 = arith.addf %1355, %1357 : vector<16x32xf32>
    %1359 = arith.addf %1342, %1358 : vector<16x32xf32>
    %cst_519 = arith.constant dense<0.000000e+00> : vector<16xf32>
    %1360 = vector.multi_reduction <add>, %1359, %cst_519 [1] : vector<16x32xf32> to vector<16xf32>
    %1361 = vector.shape_cast %1360 : vector<16xf32> to vector<16x1xf32>
    %cst_520 = arith.constant 3.200000e+01 : f32
    %1362 = vector.broadcast %cst_520 : f32 to vector<16x1xf32>
    %1363 = arith.divf %1361, %1362 : vector<16x1xf32>
    %1364 = vector.broadcast %1363 : vector<16x1xf32> to vector<16x32xf32>
    %1365 = arith.subf %1359, %1364 : vector<16x32xf32>
    %1366 = arith.mulf %1365, %1365 : vector<16x32xf32>
    %cst_521 = arith.constant dense<0.000000e+00> : vector<16xf32>
    %1367 = vector.multi_reduction <add>, %1366, %cst_521 [1] : vector<16x32xf32> to vector<16xf32>
    %1368 = vector.shape_cast %1367 : vector<16xf32> to vector<16x1xf32>
    %cst_522 = arith.constant 3.200000e+01 : f32
    %1369 = vector.broadcast %cst_522 : f32 to vector<16x1xf32>
    %1370 = arith.divf %1368, %1369 : vector<16x1xf32>
    %cst_523 = arith.constant 9.99999974E-6 : f32
    %1371 = vector.broadcast %cst_523 : f32 to vector<16x1xf32>
    %1372 = arith.addf %1370, %1371 : vector<16x1xf32>
    %1373 = math.rsqrt %1372 : vector<16x1xf32>
    %1374 = vector.broadcast %1373 : vector<16x1xf32> to vector<16x32xf32>
    %1375 = arith.mulf %1365, %1374 : vector<16x32xf32>
    %c960 = arith.constant 960 : index
    %c0_524 = arith.constant 0 : index
    %1376 = vector.load %arg3[%c960, %c0_524] : memref<1392x128xf32, #tpu.memory_space<vmem>>, vector<1x32xf32>
    %1377 = vector.broadcast %1376 : vector<1x32xf32> to vector<16x32xf32>
    %1378 = arith.mulf %1375, %1377 : vector<16x32xf32>
    %c968 = arith.constant 968 : index
    %c0_525 = arith.constant 0 : index
    %1379 = vector.load %arg3[%c968, %c0_525] : memref<1392x128xf32, #tpu.memory_space<vmem>>, vector<1x32xf32>
    %1380 = vector.broadcast %1379 : vector<1x32xf32> to vector<16x32xf32>
    %1381 = arith.addf %1378, %1380 : vector<16x32xf32>
    %c976 = arith.constant 976 : index
    %c0_526 = arith.constant 0 : index
    %1382 = vector.load %arg3[%c976, %c0_526] : memref<1392x128xf32, #tpu.memory_space<vmem>>, vector<32x96xf32>
    %1383 = arith.truncf %1382 : vector<32x96xf32> to vector<32x96xbf16>
    %1384 = arith.truncf %1381 : vector<16x32xf32> to vector<16x32xbf16>
    %cst_527 = arith.constant dense<0.000000e+00> : vector<16x96xf32>
    %1385 = tpu.matmul %1384, %1383, %cst_527 {dimension_numbers = #tpu.dot_dimension_numbers<[1], [0], [0], [1], [0, 0, 1, 1], [], []>} : vector<16x32xbf16>, vector<32x96xbf16>, vector<16x96xf32> -> vector<16x96xf32>
    %c1008 = arith.constant 1008 : index
    %c0_528 = arith.constant 0 : index
    %1386 = vector.load %arg3[%c1008, %c0_528] : memref<1392x128xf32, #tpu.memory_space<vmem>>, vector<1x96xf32>
    %1387 = vector.broadcast %1386 : vector<1x96xf32> to vector<16x96xf32>
    %1388 = arith.addf %1385, %1387 : vector<16x96xf32>
    %1389 = vector.extract_strided_slice %1388 {offsets = [0, 0], sizes = [16, 32], strides = [1, 1]} : vector<16x96xf32> to vector<16x32xf32>
    %1390 = vector.extract_strided_slice %1388 {offsets = [0, 32], sizes = [16, 32], strides = [1, 1]} : vector<16x96xf32> to vector<16x32xf32>
    %1391 = vector.extract_strided_slice %1388 {offsets = [0, 64], sizes = [16, 32], strides = [1, 1]} : vector<16x96xf32> to vector<16x32xf32>
    %c1016 = arith.constant 1016 : index
    %c0_529 = arith.constant 0 : index
    %1392 = vector.load %arg3[%c1016, %c0_529] : memref<1392x128xf32, #tpu.memory_space<vmem>>, vector<32x32xf32>
    %1393 = arith.truncf %1392 : vector<32x32xf32> to vector<32x32xbf16>
    %1394 = vector.extract_strided_slice %1389 {offsets = [0, 0], sizes = [8, 32], strides = [1, 1]} : vector<16x32xf32> to vector<8x32xf32>
    %1395 = arith.truncf %1394 : vector<8x32xf32> to vector<8x32xbf16>
    %1396 = vector.extract_strided_slice %1390 {offsets = [0, 0], sizes = [8, 32], strides = [1, 1]} : vector<16x32xf32> to vector<8x32xf32>
    %1397 = arith.truncf %1396 : vector<8x32xf32> to vector<8x32xbf16>
    %1398 = vector.extract_strided_slice %1391 {offsets = [0, 0], sizes = [8, 32], strides = [1, 1]} : vector<16x32xf32> to vector<8x32xf32>
    %1399 = arith.truncf %1398 : vector<8x32xf32> to vector<8x32xbf16>
    %1400 = vector.extract_strided_slice %1395 {offsets = [0, 0], sizes = [8, 8], strides = [1, 1]} : vector<8x32xbf16> to vector<8x8xbf16>
    %1401 = vector.extract_strided_slice %1397 {offsets = [0, 0], sizes = [8, 8], strides = [1, 1]} : vector<8x32xbf16> to vector<8x8xbf16>
    %cst_530 = arith.constant dense<0.000000e+00> : vector<8x8xf32>
    %1402 = tpu.matmul %1400, %1401, %cst_530 {dimension_numbers = #tpu.dot_dimension_numbers<[1], [1], [0], [0], [0, 0, 1, 0], [], []>} : vector<8x8xbf16>, vector<8x8xbf16>, vector<8x8xf32> -> vector<8x8xf32>
    %cst_531 = arith.constant 0.353553385 : f32
    %1403 = vector.broadcast %cst_531 : f32 to vector<8x8xf32>
    %1404 = arith.mulf %1402, %1403 : vector<8x8xf32>
    %1405 = arith.addf %1404, %878 : vector<8x8xf32>
    %cst_532 = arith.constant dense<0xFF800000> : vector<8xf32>
    %1406 = vector.multi_reduction <maximumf>, %1405, %cst_532 [1] : vector<8x8xf32> to vector<8xf32>
    %1407 = vector.shape_cast %1406 : vector<8xf32> to vector<8x1xf32>
    %1408 = vector.broadcast %1407 : vector<8x1xf32> to vector<8x8xf32>
    %1409 = arith.subf %1405, %1408 : vector<8x8xf32>
    %1410 = math.exp %1409 : vector<8x8xf32>
    %cst_533 = arith.constant dense<0.000000e+00> : vector<8xf32>
    %1411 = vector.multi_reduction <add>, %1410, %cst_533 [1] : vector<8x8xf32> to vector<8xf32>
    %1412 = vector.shape_cast %1411 : vector<8xf32> to vector<8x1xf32>
    %1413 = tpu.reciprocal %1412 {approx = true} : vector<8x1xf32> -> vector<8x1xf32>
    %1414 = vector.broadcast %1413 : vector<8x1xf32> to vector<8x8xf32>
    %1415 = arith.mulf %1410, %1414 : vector<8x8xf32>
    %1416 = arith.truncf %1415 : vector<8x8xf32> to vector<8x8xbf16>
    %1417 = vector.extract_strided_slice %1399 {offsets = [0, 0], sizes = [8, 8], strides = [1, 1]} : vector<8x32xbf16> to vector<8x8xbf16>
    %cst_534 = arith.constant dense<0.000000e+00> : vector<8x8xf32>
    %1418 = tpu.matmul %1416, %1417, %cst_534 {dimension_numbers = #tpu.dot_dimension_numbers<[1], [0], [0], [1], [0, 0, 1, 1], [], []>} : vector<8x8xbf16>, vector<8x8xbf16>, vector<8x8xf32> -> vector<8x8xf32>
    %1419 = arith.truncf %1418 : vector<8x8xf32> to vector<8x8xbf16>
    %1420 = vector.extract_strided_slice %1393 {offsets = [0, 0], sizes = [8, 32], strides = [1, 1]} : vector<32x32xbf16> to vector<8x32xbf16>
    %cst_535 = arith.constant dense<0.000000e+00> : vector<8x32xf32>
    %1421 = tpu.matmul %1419, %1420, %cst_535 {dimension_numbers = #tpu.dot_dimension_numbers<[1], [0], [0], [1], [0, 0, 1, 1], [], []>} : vector<8x8xbf16>, vector<8x32xbf16>, vector<8x32xf32> -> vector<8x32xf32>
    %1422 = vector.extract_strided_slice %1395 {offsets = [0, 8], sizes = [8, 8], strides = [1, 1]} : vector<8x32xbf16> to vector<8x8xbf16>
    %1423 = vector.extract_strided_slice %1397 {offsets = [0, 8], sizes = [8, 8], strides = [1, 1]} : vector<8x32xbf16> to vector<8x8xbf16>
    %cst_536 = arith.constant dense<0.000000e+00> : vector<8x8xf32>
    %1424 = tpu.matmul %1422, %1423, %cst_536 {dimension_numbers = #tpu.dot_dimension_numbers<[1], [1], [0], [0], [0, 0, 1, 0], [], []>} : vector<8x8xbf16>, vector<8x8xbf16>, vector<8x8xf32> -> vector<8x8xf32>
    %cst_537 = arith.constant 0.353553385 : f32
    %1425 = vector.broadcast %cst_537 : f32 to vector<8x8xf32>
    %1426 = arith.mulf %1424, %1425 : vector<8x8xf32>
    %1427 = arith.addf %1426, %878 : vector<8x8xf32>
    %cst_538 = arith.constant dense<0xFF800000> : vector<8xf32>
    %1428 = vector.multi_reduction <maximumf>, %1427, %cst_538 [1] : vector<8x8xf32> to vector<8xf32>
    %1429 = vector.shape_cast %1428 : vector<8xf32> to vector<8x1xf32>
    %1430 = vector.broadcast %1429 : vector<8x1xf32> to vector<8x8xf32>
    %1431 = arith.subf %1427, %1430 : vector<8x8xf32>
    %1432 = math.exp %1431 : vector<8x8xf32>
    %cst_539 = arith.constant dense<0.000000e+00> : vector<8xf32>
    %1433 = vector.multi_reduction <add>, %1432, %cst_539 [1] : vector<8x8xf32> to vector<8xf32>
    %1434 = vector.shape_cast %1433 : vector<8xf32> to vector<8x1xf32>
    %1435 = tpu.reciprocal %1434 {approx = true} : vector<8x1xf32> -> vector<8x1xf32>
    %1436 = vector.broadcast %1435 : vector<8x1xf32> to vector<8x8xf32>
    %1437 = arith.mulf %1432, %1436 : vector<8x8xf32>
    %1438 = arith.truncf %1437 : vector<8x8xf32> to vector<8x8xbf16>
    %1439 = vector.extract_strided_slice %1399 {offsets = [0, 8], sizes = [8, 8], strides = [1, 1]} : vector<8x32xbf16> to vector<8x8xbf16>
    %cst_540 = arith.constant dense<0.000000e+00> : vector<8x8xf32>
    %1440 = tpu.matmul %1438, %1439, %cst_540 {dimension_numbers = #tpu.dot_dimension_numbers<[1], [0], [0], [1], [0, 0, 1, 1], [], []>} : vector<8x8xbf16>, vector<8x8xbf16>, vector<8x8xf32> -> vector<8x8xf32>
    %1441 = arith.truncf %1440 : vector<8x8xf32> to vector<8x8xbf16>
    %1442 = vector.extract_strided_slice %1393 {offsets = [8, 0], sizes = [8, 32], strides = [1, 1]} : vector<32x32xbf16> to vector<8x32xbf16>
    %cst_541 = arith.constant dense<0.000000e+00> : vector<8x32xf32>
    %1443 = tpu.matmul %1441, %1442, %cst_541 {dimension_numbers = #tpu.dot_dimension_numbers<[1], [0], [0], [1], [0, 0, 1, 1], [], []>} : vector<8x8xbf16>, vector<8x32xbf16>, vector<8x32xf32> -> vector<8x32xf32>
    %1444 = arith.addf %1421, %1443 : vector<8x32xf32>
    %1445 = vector.extract_strided_slice %1395 {offsets = [0, 16], sizes = [8, 8], strides = [1, 1]} : vector<8x32xbf16> to vector<8x8xbf16>
    %1446 = vector.extract_strided_slice %1397 {offsets = [0, 16], sizes = [8, 8], strides = [1, 1]} : vector<8x32xbf16> to vector<8x8xbf16>
    %cst_542 = arith.constant dense<0.000000e+00> : vector<8x8xf32>
    %1447 = tpu.matmul %1445, %1446, %cst_542 {dimension_numbers = #tpu.dot_dimension_numbers<[1], [1], [0], [0], [0, 0, 1, 0], [], []>} : vector<8x8xbf16>, vector<8x8xbf16>, vector<8x8xf32> -> vector<8x8xf32>
    %cst_543 = arith.constant 0.353553385 : f32
    %1448 = vector.broadcast %cst_543 : f32 to vector<8x8xf32>
    %1449 = arith.mulf %1447, %1448 : vector<8x8xf32>
    %1450 = arith.addf %1449, %878 : vector<8x8xf32>
    %cst_544 = arith.constant dense<0xFF800000> : vector<8xf32>
    %1451 = vector.multi_reduction <maximumf>, %1450, %cst_544 [1] : vector<8x8xf32> to vector<8xf32>
    %1452 = vector.shape_cast %1451 : vector<8xf32> to vector<8x1xf32>
    %1453 = vector.broadcast %1452 : vector<8x1xf32> to vector<8x8xf32>
    %1454 = arith.subf %1450, %1453 : vector<8x8xf32>
    %1455 = math.exp %1454 : vector<8x8xf32>
    %cst_545 = arith.constant dense<0.000000e+00> : vector<8xf32>
    %1456 = vector.multi_reduction <add>, %1455, %cst_545 [1] : vector<8x8xf32> to vector<8xf32>
    %1457 = vector.shape_cast %1456 : vector<8xf32> to vector<8x1xf32>
    %1458 = tpu.reciprocal %1457 {approx = true} : vector<8x1xf32> -> vector<8x1xf32>
    %1459 = vector.broadcast %1458 : vector<8x1xf32> to vector<8x8xf32>
    %1460 = arith.mulf %1455, %1459 : vector<8x8xf32>
    %1461 = arith.truncf %1460 : vector<8x8xf32> to vector<8x8xbf16>
    %1462 = vector.extract_strided_slice %1399 {offsets = [0, 16], sizes = [8, 8], strides = [1, 1]} : vector<8x32xbf16> to vector<8x8xbf16>
    %cst_546 = arith.constant dense<0.000000e+00> : vector<8x8xf32>
    %1463 = tpu.matmul %1461, %1462, %cst_546 {dimension_numbers = #tpu.dot_dimension_numbers<[1], [0], [0], [1], [0, 0, 1, 1], [], []>} : vector<8x8xbf16>, vector<8x8xbf16>, vector<8x8xf32> -> vector<8x8xf32>
    %1464 = arith.truncf %1463 : vector<8x8xf32> to vector<8x8xbf16>
    %1465 = vector.extract_strided_slice %1393 {offsets = [16, 0], sizes = [8, 32], strides = [1, 1]} : vector<32x32xbf16> to vector<8x32xbf16>
    %cst_547 = arith.constant dense<0.000000e+00> : vector<8x32xf32>
    %1466 = tpu.matmul %1464, %1465, %cst_547 {dimension_numbers = #tpu.dot_dimension_numbers<[1], [0], [0], [1], [0, 0, 1, 1], [], []>} : vector<8x8xbf16>, vector<8x32xbf16>, vector<8x32xf32> -> vector<8x32xf32>
    %1467 = arith.addf %1444, %1466 : vector<8x32xf32>
    %1468 = vector.extract_strided_slice %1395 {offsets = [0, 24], sizes = [8, 8], strides = [1, 1]} : vector<8x32xbf16> to vector<8x8xbf16>
    %1469 = vector.extract_strided_slice %1397 {offsets = [0, 24], sizes = [8, 8], strides = [1, 1]} : vector<8x32xbf16> to vector<8x8xbf16>
    %cst_548 = arith.constant dense<0.000000e+00> : vector<8x8xf32>
    %1470 = tpu.matmul %1468, %1469, %cst_548 {dimension_numbers = #tpu.dot_dimension_numbers<[1], [1], [0], [0], [0, 0, 1, 0], [], []>} : vector<8x8xbf16>, vector<8x8xbf16>, vector<8x8xf32> -> vector<8x8xf32>
    %cst_549 = arith.constant 0.353553385 : f32
    %1471 = vector.broadcast %cst_549 : f32 to vector<8x8xf32>
    %1472 = arith.mulf %1470, %1471 : vector<8x8xf32>
    %1473 = arith.addf %1472, %878 : vector<8x8xf32>
    %cst_550 = arith.constant dense<0xFF800000> : vector<8xf32>
    %1474 = vector.multi_reduction <maximumf>, %1473, %cst_550 [1] : vector<8x8xf32> to vector<8xf32>
    %1475 = vector.shape_cast %1474 : vector<8xf32> to vector<8x1xf32>
    %1476 = vector.broadcast %1475 : vector<8x1xf32> to vector<8x8xf32>
    %1477 = arith.subf %1473, %1476 : vector<8x8xf32>
    %1478 = math.exp %1477 : vector<8x8xf32>
    %cst_551 = arith.constant dense<0.000000e+00> : vector<8xf32>
    %1479 = vector.multi_reduction <add>, %1478, %cst_551 [1] : vector<8x8xf32> to vector<8xf32>
    %1480 = vector.shape_cast %1479 : vector<8xf32> to vector<8x1xf32>
    %1481 = tpu.reciprocal %1480 {approx = true} : vector<8x1xf32> -> vector<8x1xf32>
    %1482 = vector.broadcast %1481 : vector<8x1xf32> to vector<8x8xf32>
    %1483 = arith.mulf %1478, %1482 : vector<8x8xf32>
    %1484 = arith.truncf %1483 : vector<8x8xf32> to vector<8x8xbf16>
    %1485 = vector.extract_strided_slice %1399 {offsets = [0, 24], sizes = [8, 8], strides = [1, 1]} : vector<8x32xbf16> to vector<8x8xbf16>
    %cst_552 = arith.constant dense<0.000000e+00> : vector<8x8xf32>
    %1486 = tpu.matmul %1484, %1485, %cst_552 {dimension_numbers = #tpu.dot_dimension_numbers<[1], [0], [0], [1], [0, 0, 1, 1], [], []>} : vector<8x8xbf16>, vector<8x8xbf16>, vector<8x8xf32> -> vector<8x8xf32>
    %1487 = arith.truncf %1486 : vector<8x8xf32> to vector<8x8xbf16>
    %1488 = vector.extract_strided_slice %1393 {offsets = [24, 0], sizes = [8, 32], strides = [1, 1]} : vector<32x32xbf16> to vector<8x32xbf16>
    %cst_553 = arith.constant dense<0.000000e+00> : vector<8x32xf32>
    %1489 = tpu.matmul %1487, %1488, %cst_553 {dimension_numbers = #tpu.dot_dimension_numbers<[1], [0], [0], [1], [0, 0, 1, 1], [], []>} : vector<8x8xbf16>, vector<8x32xbf16>, vector<8x32xf32> -> vector<8x32xf32>
    %1490 = arith.addf %1467, %1489 : vector<8x32xf32>
    %1491 = vector.extract_strided_slice %1389 {offsets = [8, 0], sizes = [8, 32], strides = [1, 1]} : vector<16x32xf32> to vector<8x32xf32>
    %1492 = arith.truncf %1491 : vector<8x32xf32> to vector<8x32xbf16>
    %1493 = vector.extract_strided_slice %1390 {offsets = [8, 0], sizes = [8, 32], strides = [1, 1]} : vector<16x32xf32> to vector<8x32xf32>
    %1494 = arith.truncf %1493 : vector<8x32xf32> to vector<8x32xbf16>
    %1495 = vector.extract_strided_slice %1391 {offsets = [8, 0], sizes = [8, 32], strides = [1, 1]} : vector<16x32xf32> to vector<8x32xf32>
    %1496 = arith.truncf %1495 : vector<8x32xf32> to vector<8x32xbf16>
    %1497 = vector.extract_strided_slice %1492 {offsets = [0, 0], sizes = [8, 8], strides = [1, 1]} : vector<8x32xbf16> to vector<8x8xbf16>
    %1498 = vector.extract_strided_slice %1494 {offsets = [0, 0], sizes = [8, 8], strides = [1, 1]} : vector<8x32xbf16> to vector<8x8xbf16>
    %cst_554 = arith.constant dense<0.000000e+00> : vector<8x8xf32>
    %1499 = tpu.matmul %1497, %1498, %cst_554 {dimension_numbers = #tpu.dot_dimension_numbers<[1], [1], [0], [0], [0, 0, 1, 0], [], []>} : vector<8x8xbf16>, vector<8x8xbf16>, vector<8x8xf32> -> vector<8x8xf32>
    %cst_555 = arith.constant 0.353553385 : f32
    %1500 = vector.broadcast %cst_555 : f32 to vector<8x8xf32>
    %1501 = arith.mulf %1499, %1500 : vector<8x8xf32>
    %1502 = arith.addf %1501, %878 : vector<8x8xf32>
    %cst_556 = arith.constant dense<0xFF800000> : vector<8xf32>
    %1503 = vector.multi_reduction <maximumf>, %1502, %cst_556 [1] : vector<8x8xf32> to vector<8xf32>
    %1504 = vector.shape_cast %1503 : vector<8xf32> to vector<8x1xf32>
    %1505 = vector.broadcast %1504 : vector<8x1xf32> to vector<8x8xf32>
    %1506 = arith.subf %1502, %1505 : vector<8x8xf32>
    %1507 = math.exp %1506 : vector<8x8xf32>
    %cst_557 = arith.constant dense<0.000000e+00> : vector<8xf32>
    %1508 = vector.multi_reduction <add>, %1507, %cst_557 [1] : vector<8x8xf32> to vector<8xf32>
    %1509 = vector.shape_cast %1508 : vector<8xf32> to vector<8x1xf32>
    %1510 = tpu.reciprocal %1509 {approx = true} : vector<8x1xf32> -> vector<8x1xf32>
    %1511 = vector.broadcast %1510 : vector<8x1xf32> to vector<8x8xf32>
    %1512 = arith.mulf %1507, %1511 : vector<8x8xf32>
    %1513 = arith.truncf %1512 : vector<8x8xf32> to vector<8x8xbf16>
    %1514 = vector.extract_strided_slice %1496 {offsets = [0, 0], sizes = [8, 8], strides = [1, 1]} : vector<8x32xbf16> to vector<8x8xbf16>
    %cst_558 = arith.constant dense<0.000000e+00> : vector<8x8xf32>
    %1515 = tpu.matmul %1513, %1514, %cst_558 {dimension_numbers = #tpu.dot_dimension_numbers<[1], [0], [0], [1], [0, 0, 1, 1], [], []>} : vector<8x8xbf16>, vector<8x8xbf16>, vector<8x8xf32> -> vector<8x8xf32>
    %1516 = arith.truncf %1515 : vector<8x8xf32> to vector<8x8xbf16>
    %1517 = vector.extract_strided_slice %1393 {offsets = [0, 0], sizes = [8, 32], strides = [1, 1]} : vector<32x32xbf16> to vector<8x32xbf16>
    %cst_559 = arith.constant dense<0.000000e+00> : vector<8x32xf32>
    %1518 = tpu.matmul %1516, %1517, %cst_559 {dimension_numbers = #tpu.dot_dimension_numbers<[1], [0], [0], [1], [0, 0, 1, 1], [], []>} : vector<8x8xbf16>, vector<8x32xbf16>, vector<8x32xf32> -> vector<8x32xf32>
    %1519 = vector.extract_strided_slice %1492 {offsets = [0, 8], sizes = [8, 8], strides = [1, 1]} : vector<8x32xbf16> to vector<8x8xbf16>
    %1520 = vector.extract_strided_slice %1494 {offsets = [0, 8], sizes = [8, 8], strides = [1, 1]} : vector<8x32xbf16> to vector<8x8xbf16>
    %cst_560 = arith.constant dense<0.000000e+00> : vector<8x8xf32>
    %1521 = tpu.matmul %1519, %1520, %cst_560 {dimension_numbers = #tpu.dot_dimension_numbers<[1], [1], [0], [0], [0, 0, 1, 0], [], []>} : vector<8x8xbf16>, vector<8x8xbf16>, vector<8x8xf32> -> vector<8x8xf32>
    %cst_561 = arith.constant 0.353553385 : f32
    %1522 = vector.broadcast %cst_561 : f32 to vector<8x8xf32>
    %1523 = arith.mulf %1521, %1522 : vector<8x8xf32>
    %1524 = arith.addf %1523, %878 : vector<8x8xf32>
    %cst_562 = arith.constant dense<0xFF800000> : vector<8xf32>
    %1525 = vector.multi_reduction <maximumf>, %1524, %cst_562 [1] : vector<8x8xf32> to vector<8xf32>
    %1526 = vector.shape_cast %1525 : vector<8xf32> to vector<8x1xf32>
    %1527 = vector.broadcast %1526 : vector<8x1xf32> to vector<8x8xf32>
    %1528 = arith.subf %1524, %1527 : vector<8x8xf32>
    %1529 = math.exp %1528 : vector<8x8xf32>
    %cst_563 = arith.constant dense<0.000000e+00> : vector<8xf32>
    %1530 = vector.multi_reduction <add>, %1529, %cst_563 [1] : vector<8x8xf32> to vector<8xf32>
    %1531 = vector.shape_cast %1530 : vector<8xf32> to vector<8x1xf32>
    %1532 = tpu.reciprocal %1531 {approx = true} : vector<8x1xf32> -> vector<8x1xf32>
    %1533 = vector.broadcast %1532 : vector<8x1xf32> to vector<8x8xf32>
    %1534 = arith.mulf %1529, %1533 : vector<8x8xf32>
    %1535 = arith.truncf %1534 : vector<8x8xf32> to vector<8x8xbf16>
    %1536 = vector.extract_strided_slice %1496 {offsets = [0, 8], sizes = [8, 8], strides = [1, 1]} : vector<8x32xbf16> to vector<8x8xbf16>
    %cst_564 = arith.constant dense<0.000000e+00> : vector<8x8xf32>
    %1537 = tpu.matmul %1535, %1536, %cst_564 {dimension_numbers = #tpu.dot_dimension_numbers<[1], [0], [0], [1], [0, 0, 1, 1], [], []>} : vector<8x8xbf16>, vector<8x8xbf16>, vector<8x8xf32> -> vector<8x8xf32>
    %1538 = arith.truncf %1537 : vector<8x8xf32> to vector<8x8xbf16>
    %1539 = vector.extract_strided_slice %1393 {offsets = [8, 0], sizes = [8, 32], strides = [1, 1]} : vector<32x32xbf16> to vector<8x32xbf16>
    %cst_565 = arith.constant dense<0.000000e+00> : vector<8x32xf32>
    %1540 = tpu.matmul %1538, %1539, %cst_565 {dimension_numbers = #tpu.dot_dimension_numbers<[1], [0], [0], [1], [0, 0, 1, 1], [], []>} : vector<8x8xbf16>, vector<8x32xbf16>, vector<8x32xf32> -> vector<8x32xf32>
    %1541 = arith.addf %1518, %1540 : vector<8x32xf32>
    %1542 = vector.extract_strided_slice %1492 {offsets = [0, 16], sizes = [8, 8], strides = [1, 1]} : vector<8x32xbf16> to vector<8x8xbf16>
    %1543 = vector.extract_strided_slice %1494 {offsets = [0, 16], sizes = [8, 8], strides = [1, 1]} : vector<8x32xbf16> to vector<8x8xbf16>
    %cst_566 = arith.constant dense<0.000000e+00> : vector<8x8xf32>
    %1544 = tpu.matmul %1542, %1543, %cst_566 {dimension_numbers = #tpu.dot_dimension_numbers<[1], [1], [0], [0], [0, 0, 1, 0], [], []>} : vector<8x8xbf16>, vector<8x8xbf16>, vector<8x8xf32> -> vector<8x8xf32>
    %cst_567 = arith.constant 0.353553385 : f32
    %1545 = vector.broadcast %cst_567 : f32 to vector<8x8xf32>
    %1546 = arith.mulf %1544, %1545 : vector<8x8xf32>
    %1547 = arith.addf %1546, %878 : vector<8x8xf32>
    %cst_568 = arith.constant dense<0xFF800000> : vector<8xf32>
    %1548 = vector.multi_reduction <maximumf>, %1547, %cst_568 [1] : vector<8x8xf32> to vector<8xf32>
    %1549 = vector.shape_cast %1548 : vector<8xf32> to vector<8x1xf32>
    %1550 = vector.broadcast %1549 : vector<8x1xf32> to vector<8x8xf32>
    %1551 = arith.subf %1547, %1550 : vector<8x8xf32>
    %1552 = math.exp %1551 : vector<8x8xf32>
    %cst_569 = arith.constant dense<0.000000e+00> : vector<8xf32>
    %1553 = vector.multi_reduction <add>, %1552, %cst_569 [1] : vector<8x8xf32> to vector<8xf32>
    %1554 = vector.shape_cast %1553 : vector<8xf32> to vector<8x1xf32>
    %1555 = tpu.reciprocal %1554 {approx = true} : vector<8x1xf32> -> vector<8x1xf32>
    %1556 = vector.broadcast %1555 : vector<8x1xf32> to vector<8x8xf32>
    %1557 = arith.mulf %1552, %1556 : vector<8x8xf32>
    %1558 = arith.truncf %1557 : vector<8x8xf32> to vector<8x8xbf16>
    %1559 = vector.extract_strided_slice %1496 {offsets = [0, 16], sizes = [8, 8], strides = [1, 1]} : vector<8x32xbf16> to vector<8x8xbf16>
    %cst_570 = arith.constant dense<0.000000e+00> : vector<8x8xf32>
    %1560 = tpu.matmul %1558, %1559, %cst_570 {dimension_numbers = #tpu.dot_dimension_numbers<[1], [0], [0], [1], [0, 0, 1, 1], [], []>} : vector<8x8xbf16>, vector<8x8xbf16>, vector<8x8xf32> -> vector<8x8xf32>
    %1561 = arith.truncf %1560 : vector<8x8xf32> to vector<8x8xbf16>
    %1562 = vector.extract_strided_slice %1393 {offsets = [16, 0], sizes = [8, 32], strides = [1, 1]} : vector<32x32xbf16> to vector<8x32xbf16>
    %cst_571 = arith.constant dense<0.000000e+00> : vector<8x32xf32>
    %1563 = tpu.matmul %1561, %1562, %cst_571 {dimension_numbers = #tpu.dot_dimension_numbers<[1], [0], [0], [1], [0, 0, 1, 1], [], []>} : vector<8x8xbf16>, vector<8x32xbf16>, vector<8x32xf32> -> vector<8x32xf32>
    %1564 = arith.addf %1541, %1563 : vector<8x32xf32>
    %1565 = vector.extract_strided_slice %1492 {offsets = [0, 24], sizes = [8, 8], strides = [1, 1]} : vector<8x32xbf16> to vector<8x8xbf16>
    %1566 = vector.extract_strided_slice %1494 {offsets = [0, 24], sizes = [8, 8], strides = [1, 1]} : vector<8x32xbf16> to vector<8x8xbf16>
    %cst_572 = arith.constant dense<0.000000e+00> : vector<8x8xf32>
    %1567 = tpu.matmul %1565, %1566, %cst_572 {dimension_numbers = #tpu.dot_dimension_numbers<[1], [1], [0], [0], [0, 0, 1, 0], [], []>} : vector<8x8xbf16>, vector<8x8xbf16>, vector<8x8xf32> -> vector<8x8xf32>
    %cst_573 = arith.constant 0.353553385 : f32
    %1568 = vector.broadcast %cst_573 : f32 to vector<8x8xf32>
    %1569 = arith.mulf %1567, %1568 : vector<8x8xf32>
    %1570 = arith.addf %1569, %878 : vector<8x8xf32>
    %cst_574 = arith.constant dense<0xFF800000> : vector<8xf32>
    %1571 = vector.multi_reduction <maximumf>, %1570, %cst_574 [1] : vector<8x8xf32> to vector<8xf32>
    %1572 = vector.shape_cast %1571 : vector<8xf32> to vector<8x1xf32>
    %1573 = vector.broadcast %1572 : vector<8x1xf32> to vector<8x8xf32>
    %1574 = arith.subf %1570, %1573 : vector<8x8xf32>
    %1575 = math.exp %1574 : vector<8x8xf32>
    %cst_575 = arith.constant dense<0.000000e+00> : vector<8xf32>
    %1576 = vector.multi_reduction <add>, %1575, %cst_575 [1] : vector<8x8xf32> to vector<8xf32>
    %1577 = vector.shape_cast %1576 : vector<8xf32> to vector<8x1xf32>
    %1578 = tpu.reciprocal %1577 {approx = true} : vector<8x1xf32> -> vector<8x1xf32>
    %1579 = vector.broadcast %1578 : vector<8x1xf32> to vector<8x8xf32>
    %1580 = arith.mulf %1575, %1579 : vector<8x8xf32>
    %1581 = arith.truncf %1580 : vector<8x8xf32> to vector<8x8xbf16>
    %1582 = vector.extract_strided_slice %1496 {offsets = [0, 24], sizes = [8, 8], strides = [1, 1]} : vector<8x32xbf16> to vector<8x8xbf16>
    %cst_576 = arith.constant dense<0.000000e+00> : vector<8x8xf32>
    %1583 = tpu.matmul %1581, %1582, %cst_576 {dimension_numbers = #tpu.dot_dimension_numbers<[1], [0], [0], [1], [0, 0, 1, 1], [], []>} : vector<8x8xbf16>, vector<8x8xbf16>, vector<8x8xf32> -> vector<8x8xf32>
    %1584 = arith.truncf %1583 : vector<8x8xf32> to vector<8x8xbf16>
    %1585 = vector.extract_strided_slice %1393 {offsets = [24, 0], sizes = [8, 32], strides = [1, 1]} : vector<32x32xbf16> to vector<8x32xbf16>
    %cst_577 = arith.constant dense<0.000000e+00> : vector<8x32xf32>
    %1586 = tpu.matmul %1584, %1585, %cst_577 {dimension_numbers = #tpu.dot_dimension_numbers<[1], [0], [0], [1], [0, 0, 1, 1], [], []>} : vector<8x8xbf16>, vector<8x32xbf16>, vector<8x32xf32> -> vector<8x32xf32>
    %1587 = arith.addf %1564, %1586 : vector<8x32xf32>
    %1588 = tpu.concatenate %1490, %1587 in 0 : vector<8x32xf32>, vector<8x32xf32> -> vector<16x32xf32>
    %c1048 = arith.constant 1048 : index
    %c0_578 = arith.constant 0 : index
    %1589 = vector.load %arg3[%c1048, %c0_578] : memref<1392x128xf32, #tpu.memory_space<vmem>>, vector<1x32xf32>
    %1590 = vector.broadcast %1589 : vector<1x32xf32> to vector<16x32xf32>
    %1591 = arith.addf %1588, %1590 : vector<16x32xf32>
    %1592 = arith.addf %1381, %1591 : vector<16x32xf32>
    %cst_579 = arith.constant dense<0.000000e+00> : vector<16xf32>
    %1593 = vector.multi_reduction <add>, %1592, %cst_579 [1] : vector<16x32xf32> to vector<16xf32>
    %1594 = vector.shape_cast %1593 : vector<16xf32> to vector<16x1xf32>
    %cst_580 = arith.constant 3.200000e+01 : f32
    %1595 = vector.broadcast %cst_580 : f32 to vector<16x1xf32>
    %1596 = arith.divf %1594, %1595 : vector<16x1xf32>
    %1597 = vector.broadcast %1596 : vector<16x1xf32> to vector<16x32xf32>
    %1598 = arith.subf %1592, %1597 : vector<16x32xf32>
    %1599 = arith.mulf %1598, %1598 : vector<16x32xf32>
    %cst_581 = arith.constant dense<0.000000e+00> : vector<16xf32>
    %1600 = vector.multi_reduction <add>, %1599, %cst_581 [1] : vector<16x32xf32> to vector<16xf32>
    %1601 = vector.shape_cast %1600 : vector<16xf32> to vector<16x1xf32>
    %cst_582 = arith.constant 3.200000e+01 : f32
    %1602 = vector.broadcast %cst_582 : f32 to vector<16x1xf32>
    %1603 = arith.divf %1601, %1602 : vector<16x1xf32>
    %cst_583 = arith.constant 9.99999974E-6 : f32
    %1604 = vector.broadcast %cst_583 : f32 to vector<16x1xf32>
    %1605 = arith.addf %1603, %1604 : vector<16x1xf32>
    %1606 = math.rsqrt %1605 : vector<16x1xf32>
    %1607 = vector.broadcast %1606 : vector<16x1xf32> to vector<16x32xf32>
    %1608 = arith.mulf %1598, %1607 : vector<16x32xf32>
    %c1288 = arith.constant 1288 : index
    %c0_584 = arith.constant 0 : index
    %1609 = vector.load %arg3[%c1288, %c0_584] : memref<1392x128xf32, #tpu.memory_space<vmem>>, vector<1x32xf32>
    %1610 = vector.broadcast %1609 : vector<1x32xf32> to vector<16x32xf32>
    %1611 = arith.mulf %1608, %1610 : vector<16x32xf32>
    %c1296 = arith.constant 1296 : index
    %c0_585 = arith.constant 0 : index
    %1612 = vector.load %arg3[%c1296, %c0_585] : memref<1392x128xf32, #tpu.memory_space<vmem>>, vector<1x32xf32>
    %1613 = vector.broadcast %1612 : vector<1x32xf32> to vector<16x32xf32>
    %1614 = arith.addf %1611, %1613 : vector<16x32xf32>
    %c1056 = arith.constant 1056 : index
    %c0_586 = arith.constant 0 : index
    %1615 = vector.load %arg3[%c1056, %c0_586] : memref<1392x128xf32, #tpu.memory_space<vmem>>, vector<32x32xf32>
    %1616 = arith.truncf %1615 : vector<32x32xf32> to vector<32x32xbf16>
    %1617 = arith.truncf %1614 : vector<16x32xf32> to vector<16x32xbf16>
    %cst_587 = arith.constant dense<0.000000e+00> : vector<16x32xf32>
    %1618 = tpu.matmul %1617, %1616, %cst_587 {dimension_numbers = #tpu.dot_dimension_numbers<[1], [0], [0], [1], [0, 0, 1, 1], [], []>} : vector<16x32xbf16>, vector<32x32xbf16>, vector<16x32xf32> -> vector<16x32xf32>
    %c1088 = arith.constant 1088 : index
    %c0_588 = arith.constant 0 : index
    %1619 = vector.load %arg3[%c1088, %c0_588] : memref<1392x128xf32, #tpu.memory_space<vmem>>, vector<1x32xf32>
    %1620 = vector.broadcast %1619 : vector<1x32xf32> to vector<16x32xf32>
    %1621 = arith.addf %1618, %1620 : vector<16x32xf32>
    %c1096 = arith.constant 1096 : index
    %c0_589 = arith.constant 0 : index
    %1622 = vector.load %arg3[%c1096, %c0_589] : memref<1392x128xf32, #tpu.memory_space<vmem>>, vector<32x64xf32>
    %1623 = arith.truncf %1622 : vector<32x64xf32> to vector<32x64xbf16>
    %1624 = arith.truncf %872 : vector<16x32xf32> to vector<16x32xbf16>
    %cst_590 = arith.constant dense<0.000000e+00> : vector<16x64xf32>
    %1625 = tpu.matmul %1624, %1623, %cst_590 {dimension_numbers = #tpu.dot_dimension_numbers<[1], [0], [0], [1], [0, 0, 1, 1], [], []>} : vector<16x32xbf16>, vector<32x64xbf16>, vector<16x64xf32> -> vector<16x64xf32>
    %c1128 = arith.constant 1128 : index
    %c0_591 = arith.constant 0 : index
    %1626 = vector.load %arg3[%c1128, %c0_591] : memref<1392x128xf32, #tpu.memory_space<vmem>>, vector<1x64xf32>
    %1627 = vector.broadcast %1626 : vector<1x64xf32> to vector<16x64xf32>
    %1628 = arith.addf %1625, %1627 : vector<16x64xf32>
    %1629 = vector.extract_strided_slice %1628 {offsets = [0, 0], sizes = [16, 32], strides = [1, 1]} : vector<16x64xf32> to vector<16x32xf32>
    %1630 = vector.extract_strided_slice %1628 {offsets = [0, 32], sizes = [16, 32], strides = [1, 1]} : vector<16x64xf32> to vector<16x32xf32>
    %c1136 = arith.constant 1136 : index
    %c0_592 = arith.constant 0 : index
    %1631 = vector.load %arg3[%c1136, %c0_592] : memref<1392x128xf32, #tpu.memory_space<vmem>>, vector<32x32xf32>
    %1632 = arith.truncf %1631 : vector<32x32xf32> to vector<32x32xbf16>
    %1633 = vector.extract_strided_slice %1621 {offsets = [0, 0], sizes = [8, 32], strides = [1, 1]} : vector<16x32xf32> to vector<8x32xf32>
    %1634 = arith.truncf %1633 : vector<8x32xf32> to vector<8x32xbf16>
    %1635 = vector.extract_strided_slice %1629 {offsets = [0, 0], sizes = [8, 32], strides = [1, 1]} : vector<16x32xf32> to vector<8x32xf32>
    %1636 = arith.truncf %1635 : vector<8x32xf32> to vector<8x32xbf16>
    %1637 = vector.extract_strided_slice %1630 {offsets = [0, 0], sizes = [8, 32], strides = [1, 1]} : vector<16x32xf32> to vector<8x32xf32>
    %1638 = arith.truncf %1637 : vector<8x32xf32> to vector<8x32xbf16>
    %1639 = vector.extract_strided_slice %1634 {offsets = [0, 0], sizes = [8, 8], strides = [1, 1]} : vector<8x32xbf16> to vector<8x8xbf16>
    %1640 = vector.extract_strided_slice %1636 {offsets = [0, 0], sizes = [8, 8], strides = [1, 1]} : vector<8x32xbf16> to vector<8x8xbf16>
    %cst_593 = arith.constant dense<0.000000e+00> : vector<8x8xf32>
    %1641 = tpu.matmul %1639, %1640, %cst_593 {dimension_numbers = #tpu.dot_dimension_numbers<[1], [1], [0], [0], [0, 0, 1, 0], [], []>} : vector<8x8xbf16>, vector<8x8xbf16>, vector<8x8xf32> -> vector<8x8xf32>
    %cst_594 = arith.constant 0.353553385 : f32
    %1642 = vector.broadcast %cst_594 : f32 to vector<8x8xf32>
    %1643 = arith.mulf %1641, %1642 : vector<8x8xf32>
    %cst_595 = arith.constant dense<0xFF800000> : vector<8xf32>
    %1644 = vector.multi_reduction <maximumf>, %1643, %cst_595 [1] : vector<8x8xf32> to vector<8xf32>
    %1645 = vector.shape_cast %1644 : vector<8xf32> to vector<8x1xf32>
    %1646 = vector.broadcast %1645 : vector<8x1xf32> to vector<8x8xf32>
    %1647 = arith.subf %1643, %1646 : vector<8x8xf32>
    %1648 = math.exp %1647 : vector<8x8xf32>
    %cst_596 = arith.constant dense<0.000000e+00> : vector<8xf32>
    %1649 = vector.multi_reduction <add>, %1648, %cst_596 [1] : vector<8x8xf32> to vector<8xf32>
    %1650 = vector.shape_cast %1649 : vector<8xf32> to vector<8x1xf32>
    %1651 = tpu.reciprocal %1650 {approx = true} : vector<8x1xf32> -> vector<8x1xf32>
    %1652 = vector.broadcast %1651 : vector<8x1xf32> to vector<8x8xf32>
    %1653 = arith.mulf %1648, %1652 : vector<8x8xf32>
    %1654 = arith.truncf %1653 : vector<8x8xf32> to vector<8x8xbf16>
    %1655 = vector.extract_strided_slice %1638 {offsets = [0, 0], sizes = [8, 8], strides = [1, 1]} : vector<8x32xbf16> to vector<8x8xbf16>
    %cst_597 = arith.constant dense<0.000000e+00> : vector<8x8xf32>
    %1656 = tpu.matmul %1654, %1655, %cst_597 {dimension_numbers = #tpu.dot_dimension_numbers<[1], [0], [0], [1], [0, 0, 1, 1], [], []>} : vector<8x8xbf16>, vector<8x8xbf16>, vector<8x8xf32> -> vector<8x8xf32>
    %1657 = arith.truncf %1656 : vector<8x8xf32> to vector<8x8xbf16>
    %1658 = vector.extract_strided_slice %1632 {offsets = [0, 0], sizes = [8, 32], strides = [1, 1]} : vector<32x32xbf16> to vector<8x32xbf16>
    %cst_598 = arith.constant dense<0.000000e+00> : vector<8x32xf32>
    %1659 = tpu.matmul %1657, %1658, %cst_598 {dimension_numbers = #tpu.dot_dimension_numbers<[1], [0], [0], [1], [0, 0, 1, 1], [], []>} : vector<8x8xbf16>, vector<8x32xbf16>, vector<8x32xf32> -> vector<8x32xf32>
    %1660 = vector.extract_strided_slice %1634 {offsets = [0, 8], sizes = [8, 8], strides = [1, 1]} : vector<8x32xbf16> to vector<8x8xbf16>
    %1661 = vector.extract_strided_slice %1636 {offsets = [0, 8], sizes = [8, 8], strides = [1, 1]} : vector<8x32xbf16> to vector<8x8xbf16>
    %cst_599 = arith.constant dense<0.000000e+00> : vector<8x8xf32>
    %1662 = tpu.matmul %1660, %1661, %cst_599 {dimension_numbers = #tpu.dot_dimension_numbers<[1], [1], [0], [0], [0, 0, 1, 0], [], []>} : vector<8x8xbf16>, vector<8x8xbf16>, vector<8x8xf32> -> vector<8x8xf32>
    %cst_600 = arith.constant 0.353553385 : f32
    %1663 = vector.broadcast %cst_600 : f32 to vector<8x8xf32>
    %1664 = arith.mulf %1662, %1663 : vector<8x8xf32>
    %cst_601 = arith.constant dense<0xFF800000> : vector<8xf32>
    %1665 = vector.multi_reduction <maximumf>, %1664, %cst_601 [1] : vector<8x8xf32> to vector<8xf32>
    %1666 = vector.shape_cast %1665 : vector<8xf32> to vector<8x1xf32>
    %1667 = vector.broadcast %1666 : vector<8x1xf32> to vector<8x8xf32>
    %1668 = arith.subf %1664, %1667 : vector<8x8xf32>
    %1669 = math.exp %1668 : vector<8x8xf32>
    %cst_602 = arith.constant dense<0.000000e+00> : vector<8xf32>
    %1670 = vector.multi_reduction <add>, %1669, %cst_602 [1] : vector<8x8xf32> to vector<8xf32>
    %1671 = vector.shape_cast %1670 : vector<8xf32> to vector<8x1xf32>
    %1672 = tpu.reciprocal %1671 {approx = true} : vector<8x1xf32> -> vector<8x1xf32>
    %1673 = vector.broadcast %1672 : vector<8x1xf32> to vector<8x8xf32>
    %1674 = arith.mulf %1669, %1673 : vector<8x8xf32>
    %1675 = arith.truncf %1674 : vector<8x8xf32> to vector<8x8xbf16>
    %1676 = vector.extract_strided_slice %1638 {offsets = [0, 8], sizes = [8, 8], strides = [1, 1]} : vector<8x32xbf16> to vector<8x8xbf16>
    %cst_603 = arith.constant dense<0.000000e+00> : vector<8x8xf32>
    %1677 = tpu.matmul %1675, %1676, %cst_603 {dimension_numbers = #tpu.dot_dimension_numbers<[1], [0], [0], [1], [0, 0, 1, 1], [], []>} : vector<8x8xbf16>, vector<8x8xbf16>, vector<8x8xf32> -> vector<8x8xf32>
    %1678 = arith.truncf %1677 : vector<8x8xf32> to vector<8x8xbf16>
    %1679 = vector.extract_strided_slice %1632 {offsets = [8, 0], sizes = [8, 32], strides = [1, 1]} : vector<32x32xbf16> to vector<8x32xbf16>
    %cst_604 = arith.constant dense<0.000000e+00> : vector<8x32xf32>
    %1680 = tpu.matmul %1678, %1679, %cst_604 {dimension_numbers = #tpu.dot_dimension_numbers<[1], [0], [0], [1], [0, 0, 1, 1], [], []>} : vector<8x8xbf16>, vector<8x32xbf16>, vector<8x32xf32> -> vector<8x32xf32>
    %1681 = arith.addf %1659, %1680 : vector<8x32xf32>
    %1682 = vector.extract_strided_slice %1634 {offsets = [0, 16], sizes = [8, 8], strides = [1, 1]} : vector<8x32xbf16> to vector<8x8xbf16>
    %1683 = vector.extract_strided_slice %1636 {offsets = [0, 16], sizes = [8, 8], strides = [1, 1]} : vector<8x32xbf16> to vector<8x8xbf16>
    %cst_605 = arith.constant dense<0.000000e+00> : vector<8x8xf32>
    %1684 = tpu.matmul %1682, %1683, %cst_605 {dimension_numbers = #tpu.dot_dimension_numbers<[1], [1], [0], [0], [0, 0, 1, 0], [], []>} : vector<8x8xbf16>, vector<8x8xbf16>, vector<8x8xf32> -> vector<8x8xf32>
    %cst_606 = arith.constant 0.353553385 : f32
    %1685 = vector.broadcast %cst_606 : f32 to vector<8x8xf32>
    %1686 = arith.mulf %1684, %1685 : vector<8x8xf32>
    %cst_607 = arith.constant dense<0xFF800000> : vector<8xf32>
    %1687 = vector.multi_reduction <maximumf>, %1686, %cst_607 [1] : vector<8x8xf32> to vector<8xf32>
    %1688 = vector.shape_cast %1687 : vector<8xf32> to vector<8x1xf32>
    %1689 = vector.broadcast %1688 : vector<8x1xf32> to vector<8x8xf32>
    %1690 = arith.subf %1686, %1689 : vector<8x8xf32>
    %1691 = math.exp %1690 : vector<8x8xf32>
    %cst_608 = arith.constant dense<0.000000e+00> : vector<8xf32>
    %1692 = vector.multi_reduction <add>, %1691, %cst_608 [1] : vector<8x8xf32> to vector<8xf32>
    %1693 = vector.shape_cast %1692 : vector<8xf32> to vector<8x1xf32>
    %1694 = tpu.reciprocal %1693 {approx = true} : vector<8x1xf32> -> vector<8x1xf32>
    %1695 = vector.broadcast %1694 : vector<8x1xf32> to vector<8x8xf32>
    %1696 = arith.mulf %1691, %1695 : vector<8x8xf32>
    %1697 = arith.truncf %1696 : vector<8x8xf32> to vector<8x8xbf16>
    %1698 = vector.extract_strided_slice %1638 {offsets = [0, 16], sizes = [8, 8], strides = [1, 1]} : vector<8x32xbf16> to vector<8x8xbf16>
    %cst_609 = arith.constant dense<0.000000e+00> : vector<8x8xf32>
    %1699 = tpu.matmul %1697, %1698, %cst_609 {dimension_numbers = #tpu.dot_dimension_numbers<[1], [0], [0], [1], [0, 0, 1, 1], [], []>} : vector<8x8xbf16>, vector<8x8xbf16>, vector<8x8xf32> -> vector<8x8xf32>
    %1700 = arith.truncf %1699 : vector<8x8xf32> to vector<8x8xbf16>
    %1701 = vector.extract_strided_slice %1632 {offsets = [16, 0], sizes = [8, 32], strides = [1, 1]} : vector<32x32xbf16> to vector<8x32xbf16>
    %cst_610 = arith.constant dense<0.000000e+00> : vector<8x32xf32>
    %1702 = tpu.matmul %1700, %1701, %cst_610 {dimension_numbers = #tpu.dot_dimension_numbers<[1], [0], [0], [1], [0, 0, 1, 1], [], []>} : vector<8x8xbf16>, vector<8x32xbf16>, vector<8x32xf32> -> vector<8x32xf32>
    %1703 = arith.addf %1681, %1702 : vector<8x32xf32>
    %1704 = vector.extract_strided_slice %1634 {offsets = [0, 24], sizes = [8, 8], strides = [1, 1]} : vector<8x32xbf16> to vector<8x8xbf16>
    %1705 = vector.extract_strided_slice %1636 {offsets = [0, 24], sizes = [8, 8], strides = [1, 1]} : vector<8x32xbf16> to vector<8x8xbf16>
    %cst_611 = arith.constant dense<0.000000e+00> : vector<8x8xf32>
    %1706 = tpu.matmul %1704, %1705, %cst_611 {dimension_numbers = #tpu.dot_dimension_numbers<[1], [1], [0], [0], [0, 0, 1, 0], [], []>} : vector<8x8xbf16>, vector<8x8xbf16>, vector<8x8xf32> -> vector<8x8xf32>
    %cst_612 = arith.constant 0.353553385 : f32
    %1707 = vector.broadcast %cst_612 : f32 to vector<8x8xf32>
    %1708 = arith.mulf %1706, %1707 : vector<8x8xf32>
    %cst_613 = arith.constant dense<0xFF800000> : vector<8xf32>
    %1709 = vector.multi_reduction <maximumf>, %1708, %cst_613 [1] : vector<8x8xf32> to vector<8xf32>
    %1710 = vector.shape_cast %1709 : vector<8xf32> to vector<8x1xf32>
    %1711 = vector.broadcast %1710 : vector<8x1xf32> to vector<8x8xf32>
    %1712 = arith.subf %1708, %1711 : vector<8x8xf32>
    %1713 = math.exp %1712 : vector<8x8xf32>
    %cst_614 = arith.constant dense<0.000000e+00> : vector<8xf32>
    %1714 = vector.multi_reduction <add>, %1713, %cst_614 [1] : vector<8x8xf32> to vector<8xf32>
    %1715 = vector.shape_cast %1714 : vector<8xf32> to vector<8x1xf32>
    %1716 = tpu.reciprocal %1715 {approx = true} : vector<8x1xf32> -> vector<8x1xf32>
    %1717 = vector.broadcast %1716 : vector<8x1xf32> to vector<8x8xf32>
    %1718 = arith.mulf %1713, %1717 : vector<8x8xf32>
    %1719 = arith.truncf %1718 : vector<8x8xf32> to vector<8x8xbf16>
    %1720 = vector.extract_strided_slice %1638 {offsets = [0, 24], sizes = [8, 8], strides = [1, 1]} : vector<8x32xbf16> to vector<8x8xbf16>
    %cst_615 = arith.constant dense<0.000000e+00> : vector<8x8xf32>
    %1721 = tpu.matmul %1719, %1720, %cst_615 {dimension_numbers = #tpu.dot_dimension_numbers<[1], [0], [0], [1], [0, 0, 1, 1], [], []>} : vector<8x8xbf16>, vector<8x8xbf16>, vector<8x8xf32> -> vector<8x8xf32>
    %1722 = arith.truncf %1721 : vector<8x8xf32> to vector<8x8xbf16>
    %1723 = vector.extract_strided_slice %1632 {offsets = [24, 0], sizes = [8, 32], strides = [1, 1]} : vector<32x32xbf16> to vector<8x32xbf16>
    %cst_616 = arith.constant dense<0.000000e+00> : vector<8x32xf32>
    %1724 = tpu.matmul %1722, %1723, %cst_616 {dimension_numbers = #tpu.dot_dimension_numbers<[1], [0], [0], [1], [0, 0, 1, 1], [], []>} : vector<8x8xbf16>, vector<8x32xbf16>, vector<8x32xf32> -> vector<8x32xf32>
    %1725 = arith.addf %1703, %1724 : vector<8x32xf32>
    %1726 = vector.extract_strided_slice %1621 {offsets = [8, 0], sizes = [8, 32], strides = [1, 1]} : vector<16x32xf32> to vector<8x32xf32>
    %1727 = arith.truncf %1726 : vector<8x32xf32> to vector<8x32xbf16>
    %1728 = vector.extract_strided_slice %1629 {offsets = [8, 0], sizes = [8, 32], strides = [1, 1]} : vector<16x32xf32> to vector<8x32xf32>
    %1729 = arith.truncf %1728 : vector<8x32xf32> to vector<8x32xbf16>
    %1730 = vector.extract_strided_slice %1630 {offsets = [8, 0], sizes = [8, 32], strides = [1, 1]} : vector<16x32xf32> to vector<8x32xf32>
    %1731 = arith.truncf %1730 : vector<8x32xf32> to vector<8x32xbf16>
    %1732 = vector.extract_strided_slice %1727 {offsets = [0, 0], sizes = [8, 8], strides = [1, 1]} : vector<8x32xbf16> to vector<8x8xbf16>
    %1733 = vector.extract_strided_slice %1729 {offsets = [0, 0], sizes = [8, 8], strides = [1, 1]} : vector<8x32xbf16> to vector<8x8xbf16>
    %cst_617 = arith.constant dense<0.000000e+00> : vector<8x8xf32>
    %1734 = tpu.matmul %1732, %1733, %cst_617 {dimension_numbers = #tpu.dot_dimension_numbers<[1], [1], [0], [0], [0, 0, 1, 0], [], []>} : vector<8x8xbf16>, vector<8x8xbf16>, vector<8x8xf32> -> vector<8x8xf32>
    %cst_618 = arith.constant 0.353553385 : f32
    %1735 = vector.broadcast %cst_618 : f32 to vector<8x8xf32>
    %1736 = arith.mulf %1734, %1735 : vector<8x8xf32>
    %cst_619 = arith.constant dense<0xFF800000> : vector<8xf32>
    %1737 = vector.multi_reduction <maximumf>, %1736, %cst_619 [1] : vector<8x8xf32> to vector<8xf32>
    %1738 = vector.shape_cast %1737 : vector<8xf32> to vector<8x1xf32>
    %1739 = vector.broadcast %1738 : vector<8x1xf32> to vector<8x8xf32>
    %1740 = arith.subf %1736, %1739 : vector<8x8xf32>
    %1741 = math.exp %1740 : vector<8x8xf32>
    %cst_620 = arith.constant dense<0.000000e+00> : vector<8xf32>
    %1742 = vector.multi_reduction <add>, %1741, %cst_620 [1] : vector<8x8xf32> to vector<8xf32>
    %1743 = vector.shape_cast %1742 : vector<8xf32> to vector<8x1xf32>
    %1744 = tpu.reciprocal %1743 {approx = true} : vector<8x1xf32> -> vector<8x1xf32>
    %1745 = vector.broadcast %1744 : vector<8x1xf32> to vector<8x8xf32>
    %1746 = arith.mulf %1741, %1745 : vector<8x8xf32>
    %1747 = arith.truncf %1746 : vector<8x8xf32> to vector<8x8xbf16>
    %1748 = vector.extract_strided_slice %1731 {offsets = [0, 0], sizes = [8, 8], strides = [1, 1]} : vector<8x32xbf16> to vector<8x8xbf16>
    %cst_621 = arith.constant dense<0.000000e+00> : vector<8x8xf32>
    %1749 = tpu.matmul %1747, %1748, %cst_621 {dimension_numbers = #tpu.dot_dimension_numbers<[1], [0], [0], [1], [0, 0, 1, 1], [], []>} : vector<8x8xbf16>, vector<8x8xbf16>, vector<8x8xf32> -> vector<8x8xf32>
    %1750 = arith.truncf %1749 : vector<8x8xf32> to vector<8x8xbf16>
    %1751 = vector.extract_strided_slice %1632 {offsets = [0, 0], sizes = [8, 32], strides = [1, 1]} : vector<32x32xbf16> to vector<8x32xbf16>
    %cst_622 = arith.constant dense<0.000000e+00> : vector<8x32xf32>
    %1752 = tpu.matmul %1750, %1751, %cst_622 {dimension_numbers = #tpu.dot_dimension_numbers<[1], [0], [0], [1], [0, 0, 1, 1], [], []>} : vector<8x8xbf16>, vector<8x32xbf16>, vector<8x32xf32> -> vector<8x32xf32>
    %1753 = vector.extract_strided_slice %1727 {offsets = [0, 8], sizes = [8, 8], strides = [1, 1]} : vector<8x32xbf16> to vector<8x8xbf16>
    %1754 = vector.extract_strided_slice %1729 {offsets = [0, 8], sizes = [8, 8], strides = [1, 1]} : vector<8x32xbf16> to vector<8x8xbf16>
    %cst_623 = arith.constant dense<0.000000e+00> : vector<8x8xf32>
    %1755 = tpu.matmul %1753, %1754, %cst_623 {dimension_numbers = #tpu.dot_dimension_numbers<[1], [1], [0], [0], [0, 0, 1, 0], [], []>} : vector<8x8xbf16>, vector<8x8xbf16>, vector<8x8xf32> -> vector<8x8xf32>
    %cst_624 = arith.constant 0.353553385 : f32
    %1756 = vector.broadcast %cst_624 : f32 to vector<8x8xf32>
    %1757 = arith.mulf %1755, %1756 : vector<8x8xf32>
    %cst_625 = arith.constant dense<0xFF800000> : vector<8xf32>
    %1758 = vector.multi_reduction <maximumf>, %1757, %cst_625 [1] : vector<8x8xf32> to vector<8xf32>
    %1759 = vector.shape_cast %1758 : vector<8xf32> to vector<8x1xf32>
    %1760 = vector.broadcast %1759 : vector<8x1xf32> to vector<8x8xf32>
    %1761 = arith.subf %1757, %1760 : vector<8x8xf32>
    %1762 = math.exp %1761 : vector<8x8xf32>
    %cst_626 = arith.constant dense<0.000000e+00> : vector<8xf32>
    %1763 = vector.multi_reduction <add>, %1762, %cst_626 [1] : vector<8x8xf32> to vector<8xf32>
    %1764 = vector.shape_cast %1763 : vector<8xf32> to vector<8x1xf32>
    %1765 = tpu.reciprocal %1764 {approx = true} : vector<8x1xf32> -> vector<8x1xf32>
    %1766 = vector.broadcast %1765 : vector<8x1xf32> to vector<8x8xf32>
    %1767 = arith.mulf %1762, %1766 : vector<8x8xf32>
    %1768 = arith.truncf %1767 : vector<8x8xf32> to vector<8x8xbf16>
    %1769 = vector.extract_strided_slice %1731 {offsets = [0, 8], sizes = [8, 8], strides = [1, 1]} : vector<8x32xbf16> to vector<8x8xbf16>
    %cst_627 = arith.constant dense<0.000000e+00> : vector<8x8xf32>
    %1770 = tpu.matmul %1768, %1769, %cst_627 {dimension_numbers = #tpu.dot_dimension_numbers<[1], [0], [0], [1], [0, 0, 1, 1], [], []>} : vector<8x8xbf16>, vector<8x8xbf16>, vector<8x8xf32> -> vector<8x8xf32>
    %1771 = arith.truncf %1770 : vector<8x8xf32> to vector<8x8xbf16>
    %1772 = vector.extract_strided_slice %1632 {offsets = [8, 0], sizes = [8, 32], strides = [1, 1]} : vector<32x32xbf16> to vector<8x32xbf16>
    %cst_628 = arith.constant dense<0.000000e+00> : vector<8x32xf32>
    %1773 = tpu.matmul %1771, %1772, %cst_628 {dimension_numbers = #tpu.dot_dimension_numbers<[1], [0], [0], [1], [0, 0, 1, 1], [], []>} : vector<8x8xbf16>, vector<8x32xbf16>, vector<8x32xf32> -> vector<8x32xf32>
    %1774 = arith.addf %1752, %1773 : vector<8x32xf32>
    %1775 = vector.extract_strided_slice %1727 {offsets = [0, 16], sizes = [8, 8], strides = [1, 1]} : vector<8x32xbf16> to vector<8x8xbf16>
    %1776 = vector.extract_strided_slice %1729 {offsets = [0, 16], sizes = [8, 8], strides = [1, 1]} : vector<8x32xbf16> to vector<8x8xbf16>
    %cst_629 = arith.constant dense<0.000000e+00> : vector<8x8xf32>
    %1777 = tpu.matmul %1775, %1776, %cst_629 {dimension_numbers = #tpu.dot_dimension_numbers<[1], [1], [0], [0], [0, 0, 1, 0], [], []>} : vector<8x8xbf16>, vector<8x8xbf16>, vector<8x8xf32> -> vector<8x8xf32>
    %cst_630 = arith.constant 0.353553385 : f32
    %1778 = vector.broadcast %cst_630 : f32 to vector<8x8xf32>
    %1779 = arith.mulf %1777, %1778 : vector<8x8xf32>
    %cst_631 = arith.constant dense<0xFF800000> : vector<8xf32>
    %1780 = vector.multi_reduction <maximumf>, %1779, %cst_631 [1] : vector<8x8xf32> to vector<8xf32>
    %1781 = vector.shape_cast %1780 : vector<8xf32> to vector<8x1xf32>
    %1782 = vector.broadcast %1781 : vector<8x1xf32> to vector<8x8xf32>
    %1783 = arith.subf %1779, %1782 : vector<8x8xf32>
    %1784 = math.exp %1783 : vector<8x8xf32>
    %cst_632 = arith.constant dense<0.000000e+00> : vector<8xf32>
    %1785 = vector.multi_reduction <add>, %1784, %cst_632 [1] : vector<8x8xf32> to vector<8xf32>
    %1786 = vector.shape_cast %1785 : vector<8xf32> to vector<8x1xf32>
    %1787 = tpu.reciprocal %1786 {approx = true} : vector<8x1xf32> -> vector<8x1xf32>
    %1788 = vector.broadcast %1787 : vector<8x1xf32> to vector<8x8xf32>
    %1789 = arith.mulf %1784, %1788 : vector<8x8xf32>
    %1790 = arith.truncf %1789 : vector<8x8xf32> to vector<8x8xbf16>
    %1791 = vector.extract_strided_slice %1731 {offsets = [0, 16], sizes = [8, 8], strides = [1, 1]} : vector<8x32xbf16> to vector<8x8xbf16>
    %cst_633 = arith.constant dense<0.000000e+00> : vector<8x8xf32>
    %1792 = tpu.matmul %1790, %1791, %cst_633 {dimension_numbers = #tpu.dot_dimension_numbers<[1], [0], [0], [1], [0, 0, 1, 1], [], []>} : vector<8x8xbf16>, vector<8x8xbf16>, vector<8x8xf32> -> vector<8x8xf32>
    %1793 = arith.truncf %1792 : vector<8x8xf32> to vector<8x8xbf16>
    %1794 = vector.extract_strided_slice %1632 {offsets = [16, 0], sizes = [8, 32], strides = [1, 1]} : vector<32x32xbf16> to vector<8x32xbf16>
    %cst_634 = arith.constant dense<0.000000e+00> : vector<8x32xf32>
    %1795 = tpu.matmul %1793, %1794, %cst_634 {dimension_numbers = #tpu.dot_dimension_numbers<[1], [0], [0], [1], [0, 0, 1, 1], [], []>} : vector<8x8xbf16>, vector<8x32xbf16>, vector<8x32xf32> -> vector<8x32xf32>
    %1796 = arith.addf %1774, %1795 : vector<8x32xf32>
    %1797 = vector.extract_strided_slice %1727 {offsets = [0, 24], sizes = [8, 8], strides = [1, 1]} : vector<8x32xbf16> to vector<8x8xbf16>
    %1798 = vector.extract_strided_slice %1729 {offsets = [0, 24], sizes = [8, 8], strides = [1, 1]} : vector<8x32xbf16> to vector<8x8xbf16>
    %cst_635 = arith.constant dense<0.000000e+00> : vector<8x8xf32>
    %1799 = tpu.matmul %1797, %1798, %cst_635 {dimension_numbers = #tpu.dot_dimension_numbers<[1], [1], [0], [0], [0, 0, 1, 0], [], []>} : vector<8x8xbf16>, vector<8x8xbf16>, vector<8x8xf32> -> vector<8x8xf32>
    %cst_636 = arith.constant 0.353553385 : f32
    %1800 = vector.broadcast %cst_636 : f32 to vector<8x8xf32>
    %1801 = arith.mulf %1799, %1800 : vector<8x8xf32>
    %cst_637 = arith.constant dense<0xFF800000> : vector<8xf32>
    %1802 = vector.multi_reduction <maximumf>, %1801, %cst_637 [1] : vector<8x8xf32> to vector<8xf32>
    %1803 = vector.shape_cast %1802 : vector<8xf32> to vector<8x1xf32>
    %1804 = vector.broadcast %1803 : vector<8x1xf32> to vector<8x8xf32>
    %1805 = arith.subf %1801, %1804 : vector<8x8xf32>
    %1806 = math.exp %1805 : vector<8x8xf32>
    %cst_638 = arith.constant dense<0.000000e+00> : vector<8xf32>
    %1807 = vector.multi_reduction <add>, %1806, %cst_638 [1] : vector<8x8xf32> to vector<8xf32>
    %1808 = vector.shape_cast %1807 : vector<8xf32> to vector<8x1xf32>
    %1809 = tpu.reciprocal %1808 {approx = true} : vector<8x1xf32> -> vector<8x1xf32>
    %1810 = vector.broadcast %1809 : vector<8x1xf32> to vector<8x8xf32>
    %1811 = arith.mulf %1806, %1810 : vector<8x8xf32>
    %1812 = arith.truncf %1811 : vector<8x8xf32> to vector<8x8xbf16>
    %1813 = vector.extract_strided_slice %1731 {offsets = [0, 24], sizes = [8, 8], strides = [1, 1]} : vector<8x32xbf16> to vector<8x8xbf16>
    %cst_639 = arith.constant dense<0.000000e+00> : vector<8x8xf32>
    %1814 = tpu.matmul %1812, %1813, %cst_639 {dimension_numbers = #tpu.dot_dimension_numbers<[1], [0], [0], [1], [0, 0, 1, 1], [], []>} : vector<8x8xbf16>, vector<8x8xbf16>, vector<8x8xf32> -> vector<8x8xf32>
    %1815 = arith.truncf %1814 : vector<8x8xf32> to vector<8x8xbf16>
    %1816 = vector.extract_strided_slice %1632 {offsets = [24, 0], sizes = [8, 32], strides = [1, 1]} : vector<32x32xbf16> to vector<8x32xbf16>
    %cst_640 = arith.constant dense<0.000000e+00> : vector<8x32xf32>
    %1817 = tpu.matmul %1815, %1816, %cst_640 {dimension_numbers = #tpu.dot_dimension_numbers<[1], [0], [0], [1], [0, 0, 1, 1], [], []>} : vector<8x8xbf16>, vector<8x32xbf16>, vector<8x32xf32> -> vector<8x32xf32>
    %1818 = arith.addf %1796, %1817 : vector<8x32xf32>
    %1819 = tpu.concatenate %1725, %1818 in 0 : vector<8x32xf32>, vector<8x32xf32> -> vector<16x32xf32>
    %c1168 = arith.constant 1168 : index
    %c0_641 = arith.constant 0 : index
    %1820 = vector.load %arg3[%c1168, %c0_641] : memref<1392x128xf32, #tpu.memory_space<vmem>>, vector<1x32xf32>
    %1821 = vector.broadcast %1820 : vector<1x32xf32> to vector<16x32xf32>
    %1822 = arith.addf %1819, %1821 : vector<16x32xf32>
    %1823 = arith.addf %1614, %1822 : vector<16x32xf32>
    %cst_642 = arith.constant dense<0.000000e+00> : vector<16xf32>
    %1824 = vector.multi_reduction <add>, %1823, %cst_642 [1] : vector<16x32xf32> to vector<16xf32>
    %1825 = vector.shape_cast %1824 : vector<16xf32> to vector<16x1xf32>
    %cst_643 = arith.constant 3.200000e+01 : f32
    %1826 = vector.broadcast %cst_643 : f32 to vector<16x1xf32>
    %1827 = arith.divf %1825, %1826 : vector<16x1xf32>
    %1828 = vector.broadcast %1827 : vector<16x1xf32> to vector<16x32xf32>
    %1829 = arith.subf %1823, %1828 : vector<16x32xf32>
    %1830 = arith.mulf %1829, %1829 : vector<16x32xf32>
    %cst_644 = arith.constant dense<0.000000e+00> : vector<16xf32>
    %1831 = vector.multi_reduction <add>, %1830, %cst_644 [1] : vector<16x32xf32> to vector<16xf32>
    %1832 = vector.shape_cast %1831 : vector<16xf32> to vector<16x1xf32>
    %cst_645 = arith.constant 3.200000e+01 : f32
    %1833 = vector.broadcast %cst_645 : f32 to vector<16x1xf32>
    %1834 = arith.divf %1832, %1833 : vector<16x1xf32>
    %cst_646 = arith.constant 9.99999974E-6 : f32
    %1835 = vector.broadcast %cst_646 : f32 to vector<16x1xf32>
    %1836 = arith.addf %1834, %1835 : vector<16x1xf32>
    %1837 = math.rsqrt %1836 : vector<16x1xf32>
    %1838 = vector.broadcast %1837 : vector<16x1xf32> to vector<16x32xf32>
    %1839 = arith.mulf %1829, %1838 : vector<16x32xf32>
    %c1304 = arith.constant 1304 : index
    %c0_647 = arith.constant 0 : index
    %1840 = vector.load %arg3[%c1304, %c0_647] : memref<1392x128xf32, #tpu.memory_space<vmem>>, vector<1x32xf32>
    %1841 = vector.broadcast %1840 : vector<1x32xf32> to vector<16x32xf32>
    %1842 = arith.mulf %1839, %1841 : vector<16x32xf32>
    %c1312 = arith.constant 1312 : index
    %c0_648 = arith.constant 0 : index
    %1843 = vector.load %arg3[%c1312, %c0_648] : memref<1392x128xf32, #tpu.memory_space<vmem>>, vector<1x32xf32>
    %1844 = vector.broadcast %1843 : vector<1x32xf32> to vector<16x32xf32>
    %1845 = arith.addf %1842, %1844 : vector<16x32xf32>
    %c1176 = arith.constant 1176 : index
    %c0_649 = arith.constant 0 : index
    %1846 = vector.load %arg3[%c1176, %c0_649] : memref<1392x128xf32, #tpu.memory_space<vmem>>, vector<32x64xf32>
    %1847 = arith.truncf %1846 : vector<32x64xf32> to vector<32x64xbf16>
    %1848 = arith.truncf %1845 : vector<16x32xf32> to vector<16x32xbf16>
    %cst_650 = arith.constant dense<0.000000e+00> : vector<16x64xf32>
    %1849 = tpu.matmul %1848, %1847, %cst_650 {dimension_numbers = #tpu.dot_dimension_numbers<[1], [0], [0], [1], [0, 0, 1, 1], [], []>} : vector<16x32xbf16>, vector<32x64xbf16>, vector<16x64xf32> -> vector<16x64xf32>
    %c1208 = arith.constant 1208 : index
    %c0_651 = arith.constant 0 : index
    %1850 = vector.load %arg3[%c1208, %c0_651] : memref<1392x128xf32, #tpu.memory_space<vmem>>, vector<1x64xf32>
    %1851 = vector.broadcast %1850 : vector<1x64xf32> to vector<16x64xf32>
    %1852 = arith.addf %1849, %1851 : vector<16x64xf32>
    %cst_652 = arith.constant 0.000000e+00 : f32
    %1853 = vector.broadcast %cst_652 : f32 to vector<16x64xf32>
    %1854 = arith.maximumf %1852, %1853 : vector<16x64xf32>
    %c1216 = arith.constant 1216 : index
    %c0_653 = arith.constant 0 : index
    %1855 = vector.load %arg3[%c1216, %c0_653] : memref<1392x128xf32, #tpu.memory_space<vmem>>, vector<64x32xf32>
    %1856 = arith.truncf %1855 : vector<64x32xf32> to vector<64x32xbf16>
    %1857 = arith.truncf %1854 : vector<16x64xf32> to vector<16x64xbf16>
    %cst_654 = arith.constant dense<0.000000e+00> : vector<16x32xf32>
    %1858 = tpu.matmul %1857, %1856, %cst_654 {dimension_numbers = #tpu.dot_dimension_numbers<[1], [0], [0], [1], [0, 0, 1, 1], [], []>} : vector<16x64xbf16>, vector<64x32xbf16>, vector<16x32xf32> -> vector<16x32xf32>
    %c1280 = arith.constant 1280 : index
    %c0_655 = arith.constant 0 : index
    %1859 = vector.load %arg3[%c1280, %c0_655] : memref<1392x128xf32, #tpu.memory_space<vmem>>, vector<1x32xf32>
    %1860 = vector.broadcast %1859 : vector<1x32xf32> to vector<16x32xf32>
    %1861 = arith.addf %1858, %1860 : vector<16x32xf32>
    %1862 = arith.addf %1845, %1861 : vector<16x32xf32>
    %cst_656 = arith.constant dense<0.000000e+00> : vector<16xf32>
    %1863 = vector.multi_reduction <add>, %1862, %cst_656 [1] : vector<16x32xf32> to vector<16xf32>
    %1864 = vector.shape_cast %1863 : vector<16xf32> to vector<16x1xf32>
    %cst_657 = arith.constant 3.200000e+01 : f32
    %1865 = vector.broadcast %cst_657 : f32 to vector<16x1xf32>
    %1866 = arith.divf %1864, %1865 : vector<16x1xf32>
    %1867 = vector.broadcast %1866 : vector<16x1xf32> to vector<16x32xf32>
    %1868 = arith.subf %1862, %1867 : vector<16x32xf32>
    %1869 = arith.mulf %1868, %1868 : vector<16x32xf32>
    %cst_658 = arith.constant dense<0.000000e+00> : vector<16xf32>
    %1870 = vector.multi_reduction <add>, %1869, %cst_658 [1] : vector<16x32xf32> to vector<16xf32>
    %1871 = vector.shape_cast %1870 : vector<16xf32> to vector<16x1xf32>
    %cst_659 = arith.constant 3.200000e+01 : f32
    %1872 = vector.broadcast %cst_659 : f32 to vector<16x1xf32>
    %1873 = arith.divf %1871, %1872 : vector<16x1xf32>
    %cst_660 = arith.constant 9.99999974E-6 : f32
    %1874 = vector.broadcast %cst_660 : f32 to vector<16x1xf32>
    %1875 = arith.addf %1873, %1874 : vector<16x1xf32>
    %1876 = math.rsqrt %1875 : vector<16x1xf32>
    %1877 = vector.broadcast %1876 : vector<16x1xf32> to vector<16x32xf32>
    %1878 = arith.mulf %1868, %1877 : vector<16x32xf32>
    %c1320 = arith.constant 1320 : index
    %c0_661 = arith.constant 0 : index
    %1879 = vector.load %arg3[%c1320, %c0_661] : memref<1392x128xf32, #tpu.memory_space<vmem>>, vector<1x32xf32>
    %1880 = vector.broadcast %1879 : vector<1x32xf32> to vector<16x32xf32>
    %1881 = arith.mulf %1878, %1880 : vector<16x32xf32>
    %c1328 = arith.constant 1328 : index
    %c0_662 = arith.constant 0 : index
    %1882 = vector.load %arg3[%c1328, %c0_662] : memref<1392x128xf32, #tpu.memory_space<vmem>>, vector<1x32xf32>
    %1883 = vector.broadcast %1882 : vector<1x32xf32> to vector<16x32xf32>
    %1884 = arith.addf %1881, %1883 : vector<16x32xf32>
    %cst_663 = arith.constant dense<0.000000e+00> : vector<16xf32>
    %1885 = vector.multi_reduction <add>, %1884, %cst_663 [1] : vector<16x32xf32> to vector<16xf32>
    %1886 = vector.shape_cast %1885 : vector<16xf32> to vector<16x1xf32>
    %cst_664 = arith.constant 3.200000e+01 : f32
    %1887 = vector.broadcast %cst_664 : f32 to vector<16x1xf32>
    %1888 = arith.divf %1886, %1887 : vector<16x1xf32>
    %1889 = vector.broadcast %1888 : vector<16x1xf32> to vector<16x32xf32>
    %1890 = arith.subf %1884, %1889 : vector<16x32xf32>
    %1891 = arith.mulf %1890, %1890 : vector<16x32xf32>
    %cst_665 = arith.constant dense<0.000000e+00> : vector<16xf32>
    %1892 = vector.multi_reduction <add>, %1891, %cst_665 [1] : vector<16x32xf32> to vector<16xf32>
    %1893 = vector.shape_cast %1892 : vector<16xf32> to vector<16x1xf32>
    %cst_666 = arith.constant 3.200000e+01 : f32
    %1894 = vector.broadcast %cst_666 : f32 to vector<16x1xf32>
    %1895 = arith.divf %1893, %1894 : vector<16x1xf32>
    %cst_667 = arith.constant 9.99999974E-6 : f32
    %1896 = vector.broadcast %cst_667 : f32 to vector<16x1xf32>
    %1897 = arith.addf %1895, %1896 : vector<16x1xf32>
    %1898 = math.rsqrt %1897 : vector<16x1xf32>
    %1899 = vector.broadcast %1898 : vector<16x1xf32> to vector<16x32xf32>
    %1900 = arith.mulf %1890, %1899 : vector<16x32xf32>
    %c1336 = arith.constant 1336 : index
    %c0_668 = arith.constant 0 : index
    %1901 = vector.load %arg3[%c1336, %c0_668] : memref<1392x128xf32, #tpu.memory_space<vmem>>, vector<1x32xf32>
    %1902 = vector.broadcast %1901 : vector<1x32xf32> to vector<16x32xf32>
    %1903 = arith.mulf %1900, %1902 : vector<16x32xf32>
    %c1344 = arith.constant 1344 : index
    %c0_669 = arith.constant 0 : index
    %1904 = vector.load %arg3[%c1344, %c0_669] : memref<1392x128xf32, #tpu.memory_space<vmem>>, vector<1x32xf32>
    %1905 = vector.broadcast %1904 : vector<1x32xf32> to vector<16x32xf32>
    %1906 = arith.addf %1903, %1905 : vector<16x32xf32>
    %c1352 = arith.constant 1352 : index
    %c0_670 = arith.constant 0 : index
    %1907 = vector.load %arg3[%c1352, %c0_670] : memref<1392x128xf32, #tpu.memory_space<vmem>>, vector<32x128xf32>
    %1908 = arith.truncf %1907 : vector<32x128xf32> to vector<32x128xbf16>
    %1909 = arith.truncf %1906 : vector<16x32xf32> to vector<16x32xbf16>
    %cst_671 = arith.constant dense<0.000000e+00> : vector<16x128xf32>
    %1910 = tpu.matmul %1909, %1908, %cst_671 {dimension_numbers = #tpu.dot_dimension_numbers<[1], [0], [0], [1], [0, 0, 1, 1], [], []>} : vector<16x32xbf16>, vector<32x128xbf16>, vector<16x128xf32> -> vector<16x128xf32>
    %c1384 = arith.constant 1384 : index
    %c0_672 = arith.constant 0 : index
    %1911 = vector.load %arg3[%c1384, %c0_672] : memref<1392x128xf32, #tpu.memory_space<vmem>>, vector<1x128xf32>
    %1912 = vector.broadcast %1911 : vector<1x128xf32> to vector<16x128xf32>
    %1913 = arith.addf %1910, %1912 : vector<16x128xf32>
    %c0_673 = arith.constant 0 : index
    %c0_674 = arith.constant 0 : index
    %1914 = vector.load %arg4[%c0_673, %c0_674] : memref<16x128xf32, #tpu.memory_space<vmem>>, vector<16x128xf32>
    tpu.vector_store %arg4[%c0_673, %c0_674], %1913 {strides = array<i32>} : memref<16x128xf32, #tpu.memory_space<vmem>>, vector<16x128xf32>,
    return
  }
  func.func @transform_0(%arg0: i32, %arg1: memref<2x8xi32, #tpu.memory_space<smem>>, %arg2: memref<2x8xi32, #tpu.memory_space<smem>>) -> (i32, i32) {
    %c0_i32 = arith.constant 0 : i32
    %c0_i32_0 = arith.constant 0 : i32
    %c0_i32_1 = arith.constant 0 : i32
    return %c0_i32, %c0_i32_0 : i32, i32
  }
  func.func @transform_1(%arg0: i32, %arg1: memref<2x8xi32, #tpu.memory_space<smem>>, %arg2: memref<2x8xi32, #tpu.memory_space<smem>>) -> (i32, i32) {
    %c0_i32 = arith.constant 0 : i32
    %c0_i32_0 = arith.constant 0 : i32
    return %arg0, %c0_i32 : i32, i32
  }
}

</mosaic_0001>

<bundles_post_ra>
// kernel: forward.1
= control target key start
LH: loop header
LB: loop body
LE: loop exit
PB: predicated region body
PF: predicated region fallthrough
CT: control target
= control target key end

     0   :  { %s13147_s0 = inlined_call_operand.vmem [shape: s32[2,8], index: 0, kind: input, shape index: {}]   ;;  %s13148_s2 = inlined_call_operand.hbm [shape: f32[1392,128], index: 2, kind: input, shape index: {}]   ;;  %s13149_s3 = inlined_call_operand.hbm [shape: f32[16,128], index: 3, kind: output, shape index: {}]   ;;  %s13150_s1 = inlined_call_operand.vmem [shape: s32[2,8], index: 1, kind: input, shape index: {}]  }
   0x1   :  { %s8_s14 = sshll.u32 %s13147_s0, 4  ;;  %s12_s17 = sshll.u32 %s13150_s1, 4  ;;  %s9_s14 = int_to_ptr.vmem [resolvable:$true] %s8_s14  ;;  %s13_s17 = int_to_ptr.vmem [resolvable:$true] %s12_s17 }
   0x2   :  { %s11356_s18 = scalar_lea.vmem %s9_s14, 32  ;;  %p11361_p1 = scmp.lt.s32.totalorder %s9_s14, %s9_s14 }
   0x3   :  { %p11357_p0 = scmp.ne.s32.totalorder %s9_s14, %s11356_s18  ;;  %p11362_p2 = scmp.lt.s32.totalorder %s11356_s18, %s11356_s18 }
   0x5   :  { %p11363_p3 = por %p11362_p2, %p11361_p1 }
   0x7   :  { %p11364_p4 = pnand %p11363_p3, %p11357_p0 }
   0x9   :  { %11367 = shalt.err (!%p11364_p4)  }
   0xa   :  { %s11430_s19 = smov [#allocation5]   ;;  %s11368_s20 = scalar_lea.vmem %s13_s17, 32 }
   0xb   :  { %11 = dma.vmem_to_smem %s9_s14, 32, %s11430_s19, [#allocation4] }
   0xc   :  { %p11369_p5 = scmp.ne.s32.totalorder %s13_s17, %s11368_s20  ;;  %p11373_p6 = scmp.lt.s32.totalorder %s13_s17, %s13_s17 }
   0xd   :  { %p11374_p7 = scmp.lt.s32.totalorder %s11368_s20, %s11368_s20 }
   0xf   :  { %p11375_p8 = por %p11374_p7, %p11373_p6 }
  0x11   :  { %p11376_p9 = pnand %p11375_p8, %p11369_p5 }
  0x13   :  { %11379 = shalt.err (!%p11376_p9)  }
  0x14   :  { %s11431_s0 = smov [#allocation6]  }
  0x15   :  { %15 = dma.vmem_to_smem %s13_s17, 32, %s11431_s0, [#allocation4] }
  0x16   :  { %11424 = dma.done.wait [#allocation4], 64 }
  0x17   :  { %11425 = vsyncadd [#allocation4], 4294967232 }
  0x18   :  { %17 = sfence }
  0x19   :  { %18 = vsyncpa [#allocation8], 0 }
  0x1a   :  { %19 = vsyncpa [#allocation9], 0  ;;  %s11432_s1 = smov [#allocation7]   ;;  %s11380_s24 = scalar_lea.hbm %s13148_s2, 22272 }
  0x1b   :  { %s25_s21 = sshll.u32 %s11432_s1, 4  ;;  %p11381_p10 = scmp.ne.s32.totalorder %s13148_s2, %s11380_s24  ;;  %s26_s21 = int_to_ptr.vmem [resolvable:$true] %s25_s21 }
  0x1c   :  { %p11384_p11 = scmp.lt.u32.totalorder %s11380_s24, %s13148_s2 }
  0x1e   :  { %p11386_p12 = pnand %p11384_p11, %p11381_p10 }
  0x20   :  { %11389 = shalt.err (!%p11386_p12)
}
  0x21   :  { %s11390_s29 = scalar_lea.vmem %s26_s21, 22272  ;;  %p11395_p0 = scmp.lt.s32.totalorder %s26_s21, %s26_s21 }
  0x22   :  { %p11391_p13 = scmp.ne.s32.totalorder %s26_s21, %s11390_s29  ;;  %p11396_p1 = scmp.lt.s32.totalorder %s11390_s29, %s11390_s29 }
  0x24   :  { %p11397_p2 = por %p11396_p1, %p11395_p0 }
  0x26   :  { %p11398_p3 = pnand %p11397_p2, %p11391_p13 }
  0x28   :  { %11401 = shalt.err (!%p11398_p3)
}
  0x29   :  { %s11433_s30 = smov 128   ;;  %s11434_s4 = smov 8  }
  0x2a   :  { %31 = dma.hbm_to_vmem [thread:$0]  %s13148_s2, 22272, %s26_s21, [#allocation8], %s11433_s30, %s11433_s30, %s11434_s4  }
  0x2b   :  { %11426 = dma.done.wait [#allocation8], 22272  }
  0x2c   :  { %11427 = vsyncadd [#allocation8], 4294945024  ;;  %v11435_v0 = vmov 0.0   ;;  %vm11436_vm0 = vmmov 0   ;;  %s38_s7 = sld [smem:[#allocation5]]  ;;  %s9479_s8 = sld [smem:[#allocation5 + $0x1]] }
  0x2d   :  { %10080 = vmatprep.subr.bf16.mxu0 %v11435_v0  ;;  %10084 = vmatprep.mubr.msk.bf16.mxu0 %vm11436_vm0, %v11435_v0  ;;  %s9480_s9 = sld [smem:[#allocation5 + $0x2]]  ;;  %s11494_s10 = sld [smem:[#allocation5 + $0x3]]  ;;  %v267_v1 = vld [vmem:[#allocation7 + $0x98] sm:$0xff]  ;;  %v268_v2 = vld [vmem:[#allocation7 + $0xa0] sm:$0xff]  ;;  %v269_v3 = vld [vmem:[#allocation7 + $0xa8] sm:$0xff]  ;;  %vm43_vm1 = vcmask 253952  }
  0x2e   :  { %10088 = vmatprep.subr.bf16.mxu1 %v11435_v0  ;;  %10090 = vmatprep.mubr.msk.bf16.mxu1 %vm11436_vm0, %v11435_v0  ;;  %s11499_s2 = sld [smem:[#allocation5 + $0x4]]  ;;  %s11501_s11 = sld [smem:[#allocation5 + $0x5]]  ;;  %v271_v4 = vpack.c.bf16 %v268_v2, %v267_v1  ;;  %v270_v5 = vld [vmem:[#allocation7 + $0xb0] sm:$0xff]  ;;  %v41_v7 = vld [vmem:[#allocation7 + $0x78] sm:$0x1]  ;;  %vm279_vm2 = vcmask 261120  }
  0x2f   :  { %s11503_s12 = sld [smem:[#allocation5 + $0x6]]  ;;  %s11505_s13 = sld [smem:[#allocation5 + $0x7]]  ;;  %v49_v10 = vld [vmem:[#allocation7 + $0x79] sm:$0x1]  ;;  %v272_v12 = vpack.c.bf16 %v270_v5, %v269_v3  ;;  %v56_v14 = vld [vmem:[#allocation7 + $0x7a] sm:$0x1] }
  0x30   :  { %s11507_s14 = sld [smem:[#allocation5 + $0x80]]  ;;  %s11509_s15 = sld [smem:[#allocation5 + $0x81]]  ;;  %10081 = vmatpush3.bf16.msra.mxu0 %v271_v4  ;;  %v63_v15 = vld [vmem:[#allocation7 + $0x7b] sm:$0x1]  ;;  %v70_v19 = vld [vmem:[#allocation7 + $0x7c] sm:$0x1] }
  0x31   :  { %s11511_s16 = sld [smem:[#allocation5 + $0x82]]  ;;  %s11513_s17 = sld [smem:[#allocation5 + $0x83]]  ;;  %10082 = vmatprep.subr.bf16.mxu0 %v11435_v0  ;;  %v77_v22 = vld [vmem:[#allocation7 + $0x7d] sm:$0x1]  ;;  %v84_v23 = vld [vmem:[#allocation7 + $0x7e] sm:$0x1] }
  0x32   :  { %s39_s18 = scalar_lea.vmem [#allocation7], %s38_s7  ;;  %s47_s19 = scalar_lea.vmem [#allocation7], %s9479_s8  ;;  %v91_v29 = vld [vmem:[#allocation7 + $0x7f] sm:$0x1]  ;;  %v155_v32 = vld [vmem:[#allocation7 + $0x78] sm:$0x1] }
  0x33   :  { %v40_v6 = vld [vmem:[%s39_s18] sm:$0x1]  ;;  %s54_s20 = scalar_lea.vmem [#allocation7], %s9480_s9  ;;  %s61_s0 = scalar_lea.vmem [#allocation7], %s11494_s10  ;;  %v162_v33 = vld [vmem:[#allocation7 + $0x79] sm:$0x1] }
  0x34   :  { %v42_v8 = vadd.f32 %v41_v7, %v40_v6  ;;  %v48_v9 = vld [vmem:[%s47_s19] sm:$0x1]  ;;  %s68_s1 = scalar_lea.vmem [#allocation7], %s11499_s2  ;;  %s75_s21 = scalar_lea.vmem [#allocation7], %s11501_s11  ;;  %10083 = vmatpush3.bf16.msra.mxu0 %v272_v12  ;;  %v169_v37 = vld [vmem:[#allocation7 + $0x7a] sm:$0x1] }
  0x35   :  { %v55_v11 = vld [vmem:[%s54_s20] sm:$0x1]  ;;  %v50_v13 = vadd.f32 %v49_v10, %v48_v9  ;;  %s82_s22 = scalar_lea.vmem [#allocation7], %s11503_s12  ;;  %s89_s23 = scalar_lea.vmem [#allocation7], %s11505_s13  ;;  %10094 = vmatprep.subr.bf16.mxu0 %v11435_v0  ;;  %v176_v40 = vld [vmem:[#allocation7 + $0x7b] sm:$0x1] }
  0x36   :  { %44 = vst.msk [vmem:[#allocation2] sm:$0x1] %vm43_vm1, %v42_v8  ;;  %v57_v16 = vadd.f32 %v56_v14, %v55_v11  ;;  %v62_v17 = vld [vmem:[%s61_s0] sm:$0x1]  ;;  %s153_s24 = scalar_lea.vmem [#allocation7], %s11507_s14  ;;  %s160_s25 = scalar_lea.vmem [#allocation7], %s11509_s15 }
  0x37   :  { %v69_v18 = vld [vmem:[%s68_s1] sm:$0x1]  ;;  %51 = vst.msk [vmem:[#allocation2 + $0x1] sm:$0x1] %vm43_vm1, %v50_v13  ;;  %v64_v20 = vadd.f32 %v63_v15, %v62_v17  ;;  %s167_s26 = scalar_lea.vmem [#allocation7], %s11511_s16  ;;  %s9505_s27 = sld [smem:[#allocation5 + $0x84]] }
  0x38   :  { %v71_v21 = vadd.f32 %v70_v19, %v69_v18  ;;  %58 = vst.msk [vmem:[#allocation2 + $0x2] sm:$0x1] %vm43_vm1, %v57_v16  ;;  %v76_v24 = vld [vmem:[%s75_s21] sm:$0x1]  ;;  %s174_s28 = scalar_lea.vmem [#allocation7], %s11513_s17  ;;  %s9506_s29 = sld [smem:[#allocation5 + $0x85]] }
  0x39   :  { %v83_v25 = vld [vmem:[%s82_s22] sm:$0x1]  ;;  %65 = vst.msk [vmem:[#allocation2 + $0x3] sm:$0x1] %vm43_vm1, %v64_v20  ;;  %v78_v26 = vadd.f32 %v77_v22, %v76_v24  ;;  %s9507_s5 = sld [smem:[#allocation5 + $0x86]]  ;;  %s9508_s6 = sld [smem:[#allocation5 + $0x87]] }
  0x3a   :  { %72 = vst.msk [vmem:[#allocation2 + $0x4] sm:$0x1] %vm43_vm1, %v71_v21  ;;  %v85_v27 = vadd.f32 %v84_v23, %v83_v25  ;;  %v90_v28 = vld [vmem:[%s89_s23] sm:$0x1]  ;;  %v183_v43 = vld [vmem:[#allocation7 + $0x7c] sm:$0x1] }
  0x3b   :  { %v154_v30 = vld [vmem:[%s153_s24] sm:$0x1]  ;;  %v92_v31 = vadd.f32 %v91_v29, %v90_v28  ;;  %79 = vst.msk [vmem:[#allocation2 + $0x5] sm:$0x1] %vm43_vm1, %v78_v26  ;;  %v190_v44 = vld [vmem:[#allocation7 + $0x7d] sm:$0x1] }
  0x3c   :  { %86 = vst.msk [vmem:[#allocation2 + $0x6] sm:$0x1] %vm43_vm1, %v85_v27  ;;  %v156_v34 = vadd.f32 %v155_v32, %v154_v30  ;;  %v161_v35 = vld [vmem:[%s160_s25] sm:$0x1]  ;;  %v197_v46 = vld [vmem:[#allocation7 + $0x7e] sm:$0x1] }
  0x3d   :  { %v168_v36 = vld [vmem:[%s167_s26] sm:$0x1]  ;;  %93 = vst.msk [vmem:[#allocation2 + $0x7] sm:$0x1] %vm43_vm1, %v92_v31  ;;  %v163_v38 = vadd.f32 %v162_v33, %v161_v35  ;;  %s181_s7 = scalar_lea.vmem [#allocation7], %s9505_s27  ;;  %s11437_s2 = smov 120  }
  0x3e   :  { %v170_v39 = vadd.f32 %v169_v37, %v168_v36  ;;  %157 = vst.msk [vmem:[#allocation2 + $0x8] sm:$0x1] %vm43_vm1, %v156_v34  ;;  %v175_v41 = vld [vmem:[%s174_s28] sm:$0x1]  ;;  %s188_s8 = scalar_lea.vmem [#allocation7], %s9506_s29  ;;  %s11438_s11 = smov 96  }
  0x3f   :  { %164 = vst.msk [vmem:[#allocation2 + $0x9] sm:$0x1] %vm43_vm1, %v163_v38  ;;  %v177_v42 = vadd.f32 %v176_v40, %v175_v41  ;;  %v182_v45 = vld [vmem:[%s181_s7] sm:$0x1]  ;;  %v204_v49 = vld [vmem:[#allocation7 + $0x7f] sm:$0x1] }
  0x40   :  { %171 = vst.msk [vmem:[#allocation2 + $0xa] sm:$0x1] %vm43_vm1, %v170_v39  ;;  %v184_v47 = vadd.f32 %v183_v43, %v182_v45  ;;  %v189_v48 = vld [vmem:[%s188_s8] sm:$0x1]  ;;  %s195_s9 = scalar_lea.vmem [#allocation7], %s9507_s5  ;;  %s202_s10 = scalar_lea.vmem [#allocation7], %s9508_s6 }
  0x41   :  { %178 = vst.msk [vmem:[#allocation2 + $0xb] sm:$0x1] %vm43_vm1, %v177_v42  ;;  %v191_v50 = vadd.f32 %v190_v44, %v189_v48  ;;  %v196_v51 = vld [vmem:[%s195_s9] sm:$0x1]  ;;  %v9525_v58 = vld [vmem:[#allocation7 + $0xb8] ss:$0 sm:$0xff] }
  0x42   :  { %185 = vst.msk [vmem:[#allocation2 + $0xc] sm:$0x1] %vm43_vm1, %v184_v47  ;;  %v198_v52 = vadd.f32 %v197_v46, %v196_v51  ;;  %v203_v53 = vld [vmem:[%s202_s10] sm:$0x1]  ;;  %s11439_s12 = smov 88   ;;  %vm334_vm3 = vcmask 64512  }
  0x43   :  { %192 = vst.msk [vmem:[#allocation2 + $0xd] sm:$0x1] %vm43_vm1, %v191_v50  ;;  %v205_v54 = vadd.f32 %v204_v49, %v203_v53  ;;  %s11440_s13 = smov 64   ;;  %s11441_s14 = smov 56   ;;  %vm399_vm4 = vcmask 1043456   ;;  %v324_v42 = vld [vmem:[#allocation7 + $0xc0] sm:$0xff] }
  0x44   :  { %199 = vst.msk [vmem:[#allocation2 + $0xe] sm:$0x1] %vm43_vm1, %v198_v52  ;;  %v11542_v55 = vld [vmem:[#allocation2] sm:$0xff]  ;;  %s11442_s15 = smov 112   ;;  %s11443_s16 = smov 80   ;;  %v325_v43 = vld [vmem:[#allocation7 + $0xc8] sm:$0xff] }
  0x45   :  { %206 = vst.msk [vmem:[#allocation2 + $0xf] sm:$0x1] %vm43_vm1, %v205_v54  ;;  %v328_v44 = vpack.c.bf16 %v325_v43, %v324_v42  ;;  %s11444_s17 = smov 72   ;;  %s11445_s18 = smov 104   ;;  %vm1718_vm5 = vcmask 523264  }
  0x46   :  { %s11446_s19 = smov 48   ;;  %s11447_s20 = smov 40  }
  0x47   :  { %v11595_v45 = vsel %vm399_vm4, %v328_v44, 0  ;;  %v557_v46 = vrot.slane %v328_v44, 4  ;;  %s94_s0 = sld [smem:[#allocation6]]  ;;  %s9487_s1 = sld [smem:[#allocation6 + $0x1]] }
  0x48   :  { %s12034_s21 = sld [smem:[#allocation6 + $0x2]]  ;;  %s12036_s22 = sld [smem:[#allocation6 + $0x3]] }
  0x49   :  { %v11599_v47 = vsel %vm399_vm4, %v557_v46, 0  ;;  %s12038_s23 = sld [smem:[#allocation6 + $0x4]]  ;;  %s12040_s24 = sld [smem:[#allocation6 + $0x5]] }
  0x4a   :  { %s12042_s25 = sld [smem:[#allocation6 + $0x6]]  ;;  %s12044_s26 = sld [smem:[#allocation6 + $0x7]] }
  0x4b   :  { %s12046_s27 = sld [smem:[#allocation6 + $0x80]]  ;;  %s12048_s28 = sld [smem:[#allocation6 + $0x81]] }
  0x4c   :  { %v11544_v56 = vld [vmem:[#allocation2 + $0x8] sm:$0xff]  ;;  %s12050_s29 = sld [smem:[#allocation6 + $0x82]]  ;;  %s12052_s5 = sld [smem:[#allocation6 + $0x83]] }
  0x4d   :  { %v273_v57 = vpack.c.bf16 %v11544_v56, %v11542_v55  ;;  %s9439_s6 = scalar_lea.vmem [#allocation7], %s94_s0  ;;  %s9441_s7 = scalar_lea.vmem [#allocation7], %s9487_s1 }
  0x4e   :  { %s9443_s8 = scalar_lea.vmem [#allocation7], %s12034_s21  ;;  %s9445_s9 = scalar_lea.vmem [#allocation7], %s12036_s22 }
  0x4f   :  { %10085 = vmatmul.mubr.msk.bf16.vlgmr.msra.gmra.mrb[0].mxu0 %vm279_vm2, %v273_v57  ;;  %s9447_s10 = scalar_lea.vmem [#allocation7], %s12038_s23  ;;  %s9449_s0 = scalar_lea.vmem [#allocation7], %s12040_s24 }
  0x50   :  { %10096 = vmatprep.mubr.msk.bf16.mxu0 %vm11436_vm0, %v11435_v0  ;;  %s9451_s1 = scalar_lea.vmem [#allocation7], %s12042_s25  ;;  %s9453_s21 = scalar_lea.vmem [#allocation7], %s12044_s26 }
  0x51   :  { %s9463_s22 = scalar_lea.vmem [#allocation7], %s12046_s27  ;;  %s9465_s23 = scalar_lea.vmem [#allocation7], %s12048_s28 }
  0x52   :  { %s9467_s24 = scalar_lea.vmem [#allocation7], %s12050_s29  ;;  %s9469_s25 = scalar_lea.vmem [#allocation7], %s12052_s5 }
  0x53   :  { %s9517_s26 = sld [smem:[#allocation6 + $0x84]]  ;;  %s9519_s27 = sld [smem:[#allocation6 + $0x85]] }
  0x54   :  { %s9521_s28 = sld [smem:[#allocation6 + $0x86]] }
  0x59   :  { %s9471_s29 = scalar_lea.vmem [#allocation7], %s9517_s26  ;;  %s9473_s5 = scalar_lea.vmem [#allocation7], %s9519_s27 }
 0x122   :  { %v317_v59 = vpop.f32.mrb[0].mxu0 }
 0x123   :  { %v318_v60 = vadd.f32 %v9525_v58, %v317_v59  ;;  %v10086_v61 = vpop.f32.mrb[1].mxu0 }
 0x124   :  { %v320_v62 = vpop.f32.mrb[2].mxu0 }
 0x125   :  { %v11551_v63 = vpack.c.bf16 %v318_v60, %v318_v60  ;;  %v11553_v1 = vadd.f32 %v9525_v58, %v320_v62  ;;  %v10087_v2 = vpop.f32.mrb[3].mxu0 }
 0x127   :  { %444 = vrot.lane.b32.xlu1 %v11551_v63, %s11437_s2  ;;  %332 = vrot.lane.b32.xlu0 %v11551_v63, %s11438_s11 }
 0x12b   :  { %446 = vrot.lane.b32.xlu0 %v11551_v63, %s11439_s12 }
 0x199   :  { %v333_v3 = vpop.permute.xlu0 %332  ;;  %v445_v7 = vpop.permute.xlu1 %444 }
 0x19a   :  { %v339_v4 = vsel %vm334_vm3, %v333_v3, 0 }
 0x19b   :  { %10089 = vmatpush3.bf16.xpose.msra.mxu1 %v339_v4 }
 0x19c   :  { %10100 = vmatprep.subr.bf16.mxu1 %v11435_v0 }
 0x19d   :  { %v447_v5 = vpop.permute.xlu0 %446 }
 0x19e   :  { %v452_v6 = vsel %vm334_vm3, %v447_v5, 0 }
 0x1a2   :  { %10091 = vmatmul.mubr.msk.bf16.vlgmr.msra.gmra.mrb[0].mxu1 %vm334_vm3, %v11551_v63 }
 0x1a3   :  { %10101 = vmatpush3.bf16.xpose.msra.mxu1 %v452_v6  ;;  %10102 = vmatprep.mubr.msk.bf16.mxu1 %vm11436_vm0, %v11435_v0 }
 0x1a4   :  { %10112 = vmatprep.subr.bf16.mxu1 %v11435_v0 }
 0x1aa   :  { %10103 = vmatmul.mubr.msk.bf16.vlgmr.msra.gmra.mrb[4].mxu1 %vm334_vm3, %v445_v7 }
 0x1ab   :  { %10114 = vmatprep.mubr.msk.bf16.mxu1 %vm11436_vm0, %v11435_v0  ;;  %10113 = vmatpush3.bf16.msra.mxu1 %v11599_v47 }
 0x1ac   :  { %10124 = vmatprep.subr.bf16.mxu1 %v11435_v0 }
 0x275   :  { %v375_v8 = vpop.f32.mrb[0].mxu1 }
 0x276   :  { %v10092_v9 = vpop.f32.mrb[1].mxu1  ;;  %v381_v10 = vmul.f32 0.35355338, %v375_v8 }
 0x277   :  { %v378_v11 = vpop.f32.mrb[2].mxu1 }
 0x278   :  { %v10093_v12 = vpop.f32.mrb[3].mxu1  ;;  %v382_v13 = vsel %vm334_vm3, %v381_v10, -inf }
 0x279   :  { %383 = vmax.xlane.f32.xlu1 %v382_v13 }
 0x27d   :  { %v488_v14 = vpop.f32.mrb[4].mxu1 }
 0x27e   :  { %v10104_v15 = vpop.f32.mrb[5].mxu1  ;;  %v494_v16 = vmul.f32 0.35355338, %v488_v14 }
 0x27f   :  { %v491_v17 = vpop.f32.mrb[6].mxu1 }
 0x280   :  { %v10105_v18 = vpop.f32.mrb[7].mxu1  ;;  %v495_v19 = vsel %vm334_vm3, %v494_v16, -inf }
 0x281   :  { %496 = vmax.xlane.f32.xlu0 %v495_v19 }
 0x306   :  { %v384_v20 = vpop.xlane.xlu1 %383 }
 0x307   :  { %v385_v21 = vsub.f32 %v381_v10, %v384_v20 }
 0x309   :  { %v386_v22 = vmul.f32 1.442695, %v385_v21 }
 0x30b   :  { %11116 = vpow2.f32 %v386_v22 }
 0x30e   :  { %v497_v23 = vpop.xlane.xlu0 %496 }
 0x30f   :  { %v498_v24 = vsub.f32 %v494_v16, %v497_v23 }
 0x311   :  { %v499_v25 = vmul.f32 1.442695, %v498_v24 }
 0x313   :  { %11118 = vpow2.f32 %v499_v25 }
 0x315   :  { %v11117_v26 = vpop.eup %11116 }
 0x316   :  { %v388_v27 = vsel %vm334_vm3, %v11117_v26, 0.0 }
 0x317   :  { %389 = vadd.xlane.f32.xlu0 %v388_v27 }
 0x31d   :  { %v11119_v28 = vpop.eup %11118 }
 0x31e   :  { %v501_v29 = vsel %vm334_vm3, %v11119_v28, 0.0 }
 0x31f   :  { %502 = vadd.xlane.f32.xlu1 %v501_v29 }
 0x32d   :  { %394 = vrot.lane.b32.xlu0 %v11551_v63, %s11440_s13 }
 0x330   :  { %507 = vrot.lane.b32.xlu1 %v11551_v63, %s11441_s14 }
 0x331   :  { %650 = vrot.lane.b32.xlu0 %v11551_v63, %s11442_s15 }
 0x334   :  { %652 = vrot.lane.b32.xlu1 %v11551_v63, %s11443_s16 }
 0x3a4   :  { %v390_v30 = vpop.xlane.xlu0 %389 }
 0x3a5   :  { %11120 = vrcp.f32 %v390_v30 }
 0x3a8   :  { %v395_v31 = vpop.permute.xlu0 %394 }
 0x3a9   :  { %v401_v32 = vsel %vm399_vm4, %v395_v31, 0  ;;  %v326_v31 = vld [vmem:[#allocation7 + $0xd0] sm:$0xff] }
 0x3aa   :  { %10095 = vmatpush3.bf16.msra.mxu0 %v401_v32  ;;  %v327_v32 = vld [vmem:[#allocation7 + $0xd8] sm:$0xff] }
 0x3ab   :  { %10106 = vmatprep.subr.bf16.mxu0 %v11435_v0 }
 0x3ac   :  { %v503_v33 = vpop.xlane.xlu1 %502  ;;  %v651_v62 = vpop.permute.xlu0 %650 }
 0x3ad   :  { %11122 = vrcp.f32 %v503_v33  ;;  %v11635_v33 = vpack.c.bf16 %v327_v32, %v326_v31 }
 0x3af   :  { %v11121_v34 = vpop.eup %11120 }
 0x3b0   :  { %v392_v35 = vmul.f32 %v11121_v34, %v11117_v26  ;;  %v508_v36 = vpop.permute.xlu1 %507  ;;  %v11639_v34 = vsel %vm399_vm4, %v11635_v33, 0 }
 0x3b1   :  { %v513_v38 = vsel %vm399_vm4, %v508_v36, 0 }
 0x3b2   :  { %v393_v37 = vpack.c.bf16 %v392_v35, %v392_v35 }
 0x3b4   :  { %10097 = vmatmul.mubr.msk.bf16.vlgmr.msra.gmra.mrb[4].mxu0 %vm334_vm3, %v393_v37  ;;  %v653_v53 = vpop.permute.xlu1 %652 }
 0x3b5   :  { %10107 = vmatpush3.bf16.msra.mxu0 %v513_v38  ;;  %10108 = vmatprep.mubr.msk.bf16.mxu0 %vm11436_vm0, %v11435_v0  ;;  %v658_v60 = vsel %vm334_vm3, %v653_v53, 0 }
 0x3b6   :  { %10118 = vmatprep.subr.bf16.mxu0 %v11435_v0 }
 0x3b7   :  { %v11123_v39 = vpop.eup %11122 }
 0x3b8   :  { %v505_v40 = vmul.f32 %v11123_v39, %v11119_v28 }
 0x3ba   :  { %v506_v41 = vpack.c.bf16 %v505_v40, %v505_v40 }
 0x3bc   :  { %10109 = vmatmul.mubr.msk.bf16.vlgmr.msra.gmra.mrb[8].mxu0 %vm334_vm3, %v506_v41 }
 0x3bd   :  { %10120 = vmatprep.mubr.msk.bf16.mxu0 %vm11436_vm0, %v11435_v0  ;;  %10119 = vmatpush3.bf16.msra.mxu0 %v11595_v45 }
 0x3be   :  { %10130 = vmatprep.subr.bf16.mxu0 %v11435_v0 }
 0x487   :  { %v437_v48 = vpop.f32.mrb[4].mxu0 }
 0x488   :  { %v443_v49 = vpack.c.bf16 %v437_v48, %v437_v48  ;;  %v10098_v50 = vpop.f32.mrb[5].mxu0  ;;  %v11651_v48 = vpack.c.bf16 %v11553_v1, %v11553_v1 }
 0x489   :  { %v440_v51 = vpop.f32.mrb[6].mxu0 }
 0x48a   :  { %v10099_v52 = vpop.f32.mrb[7].mxu0  ;;  %10121 = vmatmul.mubr.msk.bf16.vlgmr.msra.gmra.mrb[12].mxu0 %vm334_vm3, %v443_v49 }
 0x48b   :  { %10132 = vmatprep.mubr.msk.bf16.mxu0 %vm11436_vm0, %v11435_v0 }
 0x48f   :  { %v549_v54 = vpop.f32.mrb[8].mxu0 }
 0x490   :  { %v555_v57 = vpack.c.bf16 %v549_v54, %v549_v54  ;;  %v10110_v58 = vpop.f32.mrb[9].mxu0 }
 0x491   :  { %v552_v59 = vpop.f32.mrb[10].mxu0 }
 0x492   :  { %v10111_v61 = vpop.f32.mrb[11].mxu0  ;;  %10115 = vmatmul.mubr.msk.bf16.vlgmr.msra.gmra.mrb[8].mxu1 %vm334_vm3, %v555_v57 }
 0x493   :  { %10125 = vmatpush3.bf16.xpose.msra.mxu1 %v658_v60  ;;  %10126 = vmatprep.mubr.msk.bf16.mxu1 %vm11436_vm0, %v11435_v0 }
 0x494   :  { %10136 = vmatprep.subr.bf16.mxu1 %v11435_v0 }
 0x49a   :  { %10127 = vmatmul.mubr.msk.bf16.vlgmr.msra.gmra.mrb[12].mxu1 %vm334_vm3, %v651_v62 }
 0x49b   :  { %10138 = vmatprep.mubr.msk.bf16.mxu1 %vm11436_vm0, %v11435_v0  ;;  %10137 = vmatpush3.bf16.msra.mxu1 %v11639_v34 }
 0x49c   :  { %10148 = vmatprep.subr.bf16.mxu1 %v11435_v0 }
 0x55d   :  { %v644_v2 = vpop.f32.mrb[12].mxu0 }
 0x55e   :  { %v10122_v3 = vpop.f32.mrb[13].mxu0 }
 0x55f   :  { %v647_v4 = vpop.f32.mrb[14].mxu0 }
 0x560   :  { %v10123_v5 = vpop.f32.mrb[15].mxu0 }
 0x565   :  { %v598_v6 = vpop.f32.mrb[8].mxu1 }
 0x566   :  { %v11615_v7 = vadd.f32 %v644_v2, %v598_v6  ;;  %v10116_v8 = vpop.f32.mrb[9].mxu1 }
 0x567   :  { %v601_v9 = vpop.f32.mrb[10].mxu1 }
 0x568   :  { %v10117_v10 = vpop.f32.mrb[11].mxu1  ;;  %v922_v9 = vrot.slane %v11635_v33, 4 }
 0x56a   :  { %v11683_v10 = vsel %vm399_vm4, %v922_v9, 0 }
 0x56d   :  { %v694_v11 = vpop.f32.mrb[12].mxu1 }
 0x56e   :  { %v10128_v12 = vpop.f32.mrb[13].mxu1  ;;  %v700_v13 = vmul.f32 0.35355338, %v694_v11 }
 0x56f   :  { %v697_v14 = vpop.f32.mrb[14].mxu1 }
 0x570   :  { %v10129_v15 = vpop.f32.mrb[15].mxu1  ;;  %v701_v16 = vsel %vm334_vm3, %v700_v13, -inf }
 0x571   :  { %702 = vmax.xlane.f32.xlu1 %v701_v16 }
 0x582   :  { %811 = vrot.lane.b32.xlu1 %v11551_v63, %s11444_s17 }
 0x586   :  { %809 = vrot.lane.b32.xlu1 %v11551_v63, %s11445_s18 }
 0x5fe   :  { %v703_v17 = vpop.xlane.xlu1 %702 }
 0x5ff   :  { %v704_v18 = vsub.f32 %v700_v13, %v703_v17 }
 0x601   :  { %v705_v19 = vmul.f32 1.442695, %v704_v18 }
 0x602   :  { %v812_v27 = vpop.permute.xlu1 %811 }
 0x603   :  { %11124 = vpow2.f32 %v705_v19  ;;  %v817_v29 = vsel %vm334_vm3, %v812_v27, 0 }
 0x606   :  { %v810_v30 = vpop.permute.xlu1 %809 }
 0x60d   :  { %v11125_v20 = vpop.eup %11124 }
 0x60e   :  { %v707_v21 = vsel %vm334_vm3, %v11125_v20, 0.0 }
 0x60f   :  { %708 = vadd.xlane.f32.xlu0 %v707_v21 }
 0x625   :  { %713 = vrot.lane.b32.xlu0 %v11551_v63, %s11446_s19 }
 0x69c   :  { %v709_v22 = vpop.xlane.xlu0 %708 }
 0x69d   :  { %11126 = vrcp.f32 %v709_v22 }
 0x6a0   :  { %v714_v23 = vpop.permute.xlu0 %713 }
 0x6a1   :  { %v719_v24 = vsel %vm399_vm4, %v714_v23, 0 }
 0x6a2   :  { %10131 = vmatpush3.bf16.msra.mxu0 %v719_v24 }
 0x6a3   :  { %10142 = vmatprep.subr.bf16.mxu0 %v11435_v0 }
 0x6a7   :  { %v11127_v25 = vpop.eup %11126 }
 0x6a8   :  { %v711_v26 = vmul.f32 %v11127_v25, %v11125_v20 }
 0x6aa   :  { %v712_v28 = vpack.c.bf16 %v711_v26, %v711_v26 }
 0x6ac   :  { %10133 = vmatmul.mubr.msk.bf16.vlgmr.msra.gmra.mrb[16].mxu0 %vm334_vm3, %v712_v28 }
 0x6ad   :  { %10143 = vmatpush3.bf16.xpose.msra.mxu0 %v817_v29  ;;  %10144 = vmatprep.mubr.msk.bf16.mxu0 %vm11436_vm0, %v11435_v0 }
 0x6ae   :  { %10154 = vmatprep.subr.bf16.mxu0 %v11435_v0 }
 0x6b4   :  { %10145 = vmatmul.mubr.msk.bf16.vlgmr.msra.gmra.mrb[20].mxu0 %vm334_vm3, %v810_v30 }
 0x6b5   :  { %10156 = vmatprep.mubr.msk.bf16.mxu0 %vm11436_vm0, %v11435_v0  ;;  %10155 = vmatpush3.bf16.msra.mxu0 %v11683_v10 }
 0x6b6   :  { %10166 = vmatprep.subr.bf16.mxu0 %v11435_v0 }
 0x77f   :  { %v755_v35 = vpop.f32.mrb[16].mxu0 }
 0x780   :  { %v761_v36 = vpack.c.bf16 %v755_v35, %v755_v35  ;;  %v10134_v37 = vpop.f32.mrb[17].mxu0 }
 0x781   :  { %v758_v38 = vpop.f32.mrb[18].mxu0 }
 0x782   :  { %v10135_v39 = vpop.f32.mrb[19].mxu0  ;;  %10139 = vmatmul.mubr.msk.bf16.vlgmr.msra.gmra.mrb[16].mxu1 %vm334_vm3, %v761_v36 }
 0x783   :  { %10150 = vmatprep.mubr.msk.bf16.mxu1 %vm11436_vm0, %v11435_v0 }
 0x787   :  { %v853_v40 = vpop.f32.mrb[20].mxu0 }
 0x788   :  { %v10146_v41 = vpop.f32.mrb[21].mxu0  ;;  %v859_v42 = vmul.f32 0.35355338, %v853_v40 }
 0x789   :  { %v856_v43 = vpop.f32.mrb[22].mxu0 }
 0x78a   :  { %v10147_v44 = vpop.f32.mrb[23].mxu0  ;;  %v860_v46 = vsel %vm334_vm3, %v859_v42, -inf }
 0x78b   :  { %861 = vmax.xlane.f32.xlu0 %v860_v46 }
 0x7a1   :  { %872 = vrot.lane.b32.xlu0 %v11551_v63, %s11447_s20 }
 0x7a5   :  { %1084 = vrot.lane.b32.xlu0 %v11651_v48, %s11439_s12 }
 0x818   :  { %v862_v49 = vpop.xlane.xlu0 %861 }
 0x819   :  { %v863_v50 = vsub.f32 %v859_v42, %v862_v49 }
 0x81b   :  { %v864_v51 = vmul.f32 1.442695, %v863_v50 }
 0x81c   :  { %v873_v52 = vpop.permute.xlu0 %872 }
 0x81d   :  { %11128 = vpow2.f32 %v864_v51  ;;  %v878_v53 = vsel %vm399_vm4, %v873_v52, 0 }
 0x81e   :  { %10149 = vmatpush3.bf16.msra.mxu1 %v878_v53 }
 0x81f   :  { %10160 = vmatprep.subr.bf16.mxu1 %v11435_v0 }
 0x820   :  { %v1085_v6 = vpop.permute.xlu0 %1084 }
 0x827   :  { %v11129_v54 = vpop.eup %11128 }
 0x828   :  { %v866_v63 = vsel %vm334_vm3, %v11129_v54, 0.0 }
 0x829   :  { %867 = vadd.xlane.f32.xlu1 %v866_v63 }
 0x83a   :  { %972 = vrot.lane.b32.xlu1 %v11651_v48, %s11438_s11 }
 0x83e   :  { %1082 = vrot.lane.b32.xlu1 %v11651_v48, %s11437_s2 }
 0x855   :  { %v802_v1 = vpop.f32.mrb[16].mxu1 }
 0x856   :  { %v11663_v57 = vadd.f32 %v802_v1, %v11615_v7  ;;  %v10140_v58 = vpop.f32.mrb[17].mxu1  ;;  %v1090_v7 = vsel %vm334_vm3, %v1085_v6, 0 }
 0x857   :  { %v805_v59 = vpop.f32.mrb[18].mxu1 }
 0x858   :  { %v10141_v60 = vpop.f32.mrb[19].mxu1 }
 0x8b6   :  { %v868_v61 = vpop.xlane.xlu1 %867 }
 0x8b7   :  { %11130 = vrcp.f32 %v868_v61 }
 0x8ba   :  { %v973_v3 = vpop.permute.xlu1 %972 }
 0x8bb   :  { %v978_v5 = vsel %vm334_vm3, %v973_v3, 0 }
 0x8be   :  { %v1083_v8 = vpop.permute.xlu1 %1082 }
 0x8c1   :  { %v11131_v62 = vpop.eup %11130 }
 0x8c2   :  { %v870_v2 = vmul.f32 %v11131_v62, %v11129_v54 }
 0x8c4   :  { %v871_v4 = vpack.c.bf16 %v870_v2, %v870_v2 }
 0x8c6   :  { %10151 = vmatmul.mubr.msk.bf16.vlgmr.msra.gmra.mrb[20].mxu1 %vm334_vm3, %v871_v4 }
 0x8c7   :  { %10161 = vmatpush3.bf16.xpose.msra.mxu1 %v978_v5  ;;  %10162 = vmatprep.mubr.msk.bf16.mxu1 %vm11436_vm0, %v11435_v0 }
 0x8c8   :  { %10172 = vmatprep.subr.bf16.mxu1 %v11435_v0 }
 0x8ce   :  { %10163 = vmatmul.mubr.msk.bf16.vlgmr.msra.gmra.mrb[24].mxu1 %vm334_vm3, %v11651_v48 }
 0x8cf   :  { %10173 = vmatpush3.bf16.xpose.msra.mxu1 %v1090_v7  ;;  %10174 = vmatprep.mubr.msk.bf16.mxu1 %vm11436_vm0, %v11435_v0 }
 0x8d0   :  { %10184 = vmatprep.subr.bf16.mxu1 %v11435_v0 }
 0x8d6   :  { %10175 = vmatmul.mubr.msk.bf16.vlgmr.msra.gmra.mrb[28].mxu1 %vm334_vm3, %v1083_v8 }
 0x8d7   :  { %10185 = vmatpush3.bf16.msra.mxu1 %v11599_v47  ;;  %10186 = vmatprep.mubr.msk.bf16.mxu1 %vm11436_vm0, %v11435_v0 }
 0x8d8   :  { %10196 = vmatprep.subr.bf16.mxu1 %v11435_v0 }
 0x999   :  { %v914_v11 = vpop.f32.mrb[20].mxu1 }
 0x99a   :  { %v920_v12 = vpack.c.bf16 %v914_v11, %v914_v11  ;;  %v10152_v13 = vpop.f32.mrb[21].mxu1 }
 0x99b   :  { %v917_v14 = vpop.f32.mrb[22].mxu1 }
 0x99c   :  { %v10153_v15 = vpop.f32.mrb[23].mxu1  ;;  %10157 = vmatmul.mubr.msk.bf16.vlgmr.msra.gmra.mrb[24].mxu0 %vm334_vm3, %v920_v12 }
 0x99d   :  { %10168 = vmatprep.mubr.msk.bf16.mxu0 %vm11436_vm0, %v11435_v0 }
 0x9a1   :  { %v1014_v47 = vpop.f32.mrb[24].mxu1 }
 0x9a2   :  { %v10164_v16 = vpop.f32.mrb[25].mxu1  ;;  %v1020_v17 = vmul.f32 0.35355338, %v1014_v47 }
 0x9a3   :  { %v1017_v18 = vpop.f32.mrb[26].mxu1 }
 0x9a4   :  { %v10165_v19 = vpop.f32.mrb[27].mxu1  ;;  %v1021_v20 = vsel %vm334_vm3, %v1020_v17, -inf }
 0x9a5   :  { %1022 = vmax.xlane.f32.xlu0 %v1021_v20 }
 0x9a9   :  { %v1126_v21 = vpop.f32.mrb[28].mxu1 }
 0x9aa   :  { %v10176_v22 = vpop.f32.mrb[29].mxu1  ;;  %v1132_v23 = vmul.f32 0.35355338, %v1126_v21 }
 0x9ab   :  { %v1129_v24 = vpop.f32.mrb[30].mxu1 }
 0x9ac   :  { %v10177_v25 = vpop.f32.mrb[31].mxu1  ;;  %v1133_v26 = vsel %vm334_vm3, %v1132_v23, -inf }
 0x9ad   :  { %1134 = vmax.xlane.f32.xlu1 %v1133_v26 }
 0x9be   :  { %1033 = vrot.lane.b32.xlu1 %v11651_v48, %s11440_s13 }
 0x9c2   :  { %1282 = vrot.lane.b32.xlu1 %v11651_v48, %s11443_s16 }
 0x9c6   :  { %1280 = vrot.lane.b32.xlu1 %v11651_v48, %s11442_s15 }
 0xa32   :  { %v1023_v27 = vpop.xlane.xlu0 %1022 }
 0xa33   :  { %v1024_v28 = vsub.f32 %v1020_v17, %v1023_v27 }
 0xa35   :  { %v1025_v29 = vmul.f32 1.442695, %v1024_v28 }
 0xa37   :  { %11132 = vpow2.f32 %v1025_v29 }
 0xa3a   :  { %v1135_v30 = vpop.xlane.xlu1 %1134 }
 0xa3b   :  { %v1136_v31 = vsub.f32 %v1132_v23, %v1135_v30 }
 0xa3d   :  { %v1137_v32 = vmul.f32 1.442695, %v1136_v31 }
 0xa3e   :  { %v1034_v33 = vpop.permute.xlu1 %1033 }
 0xa3f   :  { %11134 = vpow2.f32 %v1137_v32  ;;  %v1039_v35 = vsel %vm399_vm4, %v1034_v33, 0 }
 0xa40   :  { %10167 = vmatpush3.bf16.msra.mxu0 %v1039_v35 }
 0xa41   :  { %v11133_v36 = vpop.eup %11132  ;;  %10178 = vmatprep.subr.bf16.mxu0 %v11435_v0 }
 0xa42   :  { %v1027_v37 = vsel %vm334_vm3, %v11133_v36, 0.0  ;;  %v1283_v2 = vpop.permute.xlu1 %1282 }
 0xa43   :  { %1028 = vadd.xlane.f32.xlu0 %v1027_v37  ;;  %v1288_v6 = vsel %vm334_vm3, %v1283_v2, 0 }
 0xa46   :  { %v1281_v8 = vpop.permute.xlu1 %1280 }
 0xa49   :  { %v11135_v38 = vpop.eup %11134 }
 0xa4a   :  { %v1139_v39 = vsel %vm334_vm3, %v11135_v38, 0.0 }
 0xa4b   :  { %1140 = vadd.xlane.f32.xlu0 %v1139_v39 }
 0xa61   :  { %1145 = vrot.lane.b32.xlu0 %v11651_v48, %s11441_s14 }
 0xa6f   :  { %v963_v40 = vpop.f32.mrb[24].mxu0 }
 0xa70   :  { %v11705_v41 = vadd.f32 %v963_v40, %v11663_v57  ;;  %v10158_v42 = vpop.f32.mrb[25].mxu0 }
 0xa71   :  { %v966_v43 = vpop.f32.mrb[26].mxu0 }
 0xa72   :  { %v10159_v44 = vpop.f32.mrb[27].mxu0 }
 0xa73   :  { %v9551_v44 = vld [vmem:[#allocation7 + $0xe0] ss:$0 sm:$0xff] }
 0xad0   :  { %v1029_v46 = vpop.xlane.xlu0 %1028 }
 0xad1   :  { %11136 = vrcp.f32 %v1029_v46  ;;  %v1597_v46 = vadd.f32 %v9551_v44, %v11705_v41 }
 0xad8   :  { %v1141_v49 = vpop.xlane.xlu0 %1140 }
 0xad9   :  { %11138 = vrcp.f32 %v1141_v49 }
 0xadb   :  { %v11137_v50 = vpop.eup %11136 }
 0xadc   :  { %v1031_v51 = vmul.f32 %v11137_v50, %v11133_v36  ;;  %v1146_v52 = vpop.permute.xlu0 %1145 }
 0xadd   :  { %v1151_v54 = vsel %vm399_vm4, %v1146_v52, 0 }
 0xade   :  { %v1032_v53 = vpack.c.bf16 %v1031_v51, %v1031_v51 }
 0xae0   :  { %10169 = vmatmul.mubr.msk.bf16.vlgmr.msra.gmra.mrb[28].mxu0 %vm334_vm3, %v1032_v53 }
 0xae1   :  { %10179 = vmatpush3.bf16.msra.mxu0 %v1151_v54  ;;  %10180 = vmatprep.mubr.msk.bf16.mxu0 %vm11436_vm0, %v11435_v0  ;;  %v1599_v54 = vadd.f32 %v1597_v46, %v11542_v55 }
 0xae2   :  { %10190 = vmatprep.subr.bf16.mxu0 %v11435_v0 }
 0xae3   :  { %v11139_v63 = vpop.eup %11138 }
 0xae4   :  { %v1143_v1 = vmul.f32 %v11139_v63, %v11135_v38  ;;  %v1601_v63 = vsel %vm279_vm2, %v1599_v54, 0.0 }
 0xae6   :  { %v1144_v57 = vpack.c.bf16 %v1143_v1, %v1143_v1 }
 0xae8   :  { %10181 = vmatmul.mubr.msk.bf16.vlgmr.msra.gmra.mrb[32].mxu0 %vm334_vm3, %v1144_v57 }
 0xae9   :  { %10191 = vmatpush3.bf16.msra.mxu0 %v11595_v45  ;;  %10192 = vmatprep.mubr.msk.bf16.mxu0 %vm11436_vm0, %v11435_v0 }
 0xaea   :  { %10202 = vmatprep.subr.bf16.mxu0 %v11435_v0 }
 0xbb3   :  { %v1075_v58 = vpop.f32.mrb[28].mxu0 }
 0xbb4   :  { %v1081_v59 = vpack.c.bf16 %v1075_v58, %v1075_v58  ;;  %v10170_v60 = vpop.f32.mrb[29].mxu0 }
 0xbb5   :  { %v1078_v61 = vpop.f32.mrb[30].mxu0 }
 0xbb6   :  { %v10171_v62 = vpop.f32.mrb[31].mxu0  ;;  %10193 = vmatmul.mubr.msk.bf16.vlgmr.msra.gmra.mrb[36].mxu0 %vm334_vm3, %v1081_v59 }
 0xbb7   :  { %10204 = vmatprep.mubr.msk.bf16.mxu0 %vm11436_vm0, %v11435_v0 }
 0xbbb   :  { %v1187_v3 = vpop.f32.mrb[32].mxu0 }
 0xbbc   :  { %v1193_v4 = vpack.c.bf16 %v1187_v3, %v1187_v3  ;;  %v10182_v5 = vpop.f32.mrb[33].mxu0 }
 0xbbd   :  { %v1190_v45 = vpop.f32.mrb[34].mxu0 }
 0xbbe   :  { %v10183_v7 = vpop.f32.mrb[35].mxu0  ;;  %10187 = vmatmul.mubr.msk.bf16.vlgmr.msra.gmra.mrb[32].mxu1 %vm334_vm3, %v1193_v4 }
 0xbbf   :  { %10197 = vmatpush3.bf16.xpose.msra.mxu1 %v1288_v6  ;;  %10198 = vmatprep.mubr.msk.bf16.mxu1 %vm11436_vm0, %v11435_v0 }
 0xbc0   :  { %10208 = vmatprep.subr.bf16.mxu1 %v11435_v0 }
 0xbc6   :  { %10199 = vmatmul.mubr.msk.bf16.vlgmr.msra.gmra.mrb[36].mxu1 %vm334_vm3, %v1281_v8 }
 0xbc7   :  { %10209 = vmatpush3.bf16.msra.mxu1 %v11639_v34  ;;  %10210 = vmatprep.mubr.msk.bf16.mxu1 %vm11436_vm0, %v11435_v0 }
 0xbc8   :  { %10220 = vmatprep.subr.bf16.mxu1 %v11435_v0 }
 0xc89   :  { %v1274_v9 = vpop.f32.mrb[36].mxu0 }
 0xc8a   :  { %v10194_v11 = vpop.f32.mrb[37].mxu0 }
 0xc8b   :  { %v1277_v12 = vpop.f32.mrb[38].mxu0 }
 0xc8c   :  { %v10195_v13 = vpop.f32.mrb[39].mxu0 }
 0xc91   :  { %v1231_v14 = vpop.f32.mrb[32].mxu1 }
 0xc92   :  { %v11730_v15 = vadd.f32 %v1274_v9, %v1231_v14  ;;  %v10188_v47 = vpop.f32.mrb[33].mxu1 }
 0xc93   :  { %v1234_v16 = vpop.f32.mrb[34].mxu1 }
 0xc94   :  { %v10189_v17 = vpop.f32.mrb[35].mxu1 }
 0xc99   :  { %v1324_v18 = vpop.f32.mrb[36].mxu1 }
 0xc9a   :  { %v10200_v19 = vpop.f32.mrb[37].mxu1  ;;  %v1330_v20 = vmul.f32 0.35355338, %v1324_v18 }
 0xc9b   :  { %v1327_v21 = vpop.f32.mrb[38].mxu1 }
 0xc9c   :  { %v10201_v34 = vpop.f32.mrb[39].mxu1  ;;  %v1331_v22 = vsel %vm334_vm3, %v1330_v20, -inf }
 0xc9d   :  { %1332 = vmax.xlane.f32.xlu0 %v1331_v22 }
 0xcb3   :  { %1343 = vrot.lane.b32.xlu0 %v11651_v48, %s11446_s19 }
 0xcb7   :  { %1436 = vrot.lane.b32.xlu0 %v11651_v48, %s11445_s18 }
 0xd2a   :  { %v1333_v23 = vpop.xlane.xlu0 %1332 }
 0xd2b   :  { %v1334_v24 = vsub.f32 %v1330_v20, %v1333_v23 }
 0xd2d   :  { %v1335_v25 = vmul.f32 1.442695, %v1334_v24 }
 0xd2e   :  { %v1344_v26 = vpop.permute.xlu0 %1343 }
 0xd2f   :  { %11140 = vpow2.f32 %v1335_v25  ;;  %v1349_v27 = vsel %vm399_vm4, %v1344_v26, 0 }
 0xd30   :  { %10203 = vmatpush3.bf16.msra.mxu0 %v1349_v27 }
 0xd31   :  { %10214 = vmatprep.subr.bf16.mxu0 %v11435_v0 }
 0xd32   :  { %v1437_v37 = vpop.permute.xlu0 %1436 }
 0xd39   :  { %v11141_v28 = vpop.eup %11140 }
 0xd3a   :  { %v1337_v29 = vsel %vm334_vm3, %v11141_v28, 0.0 }
 0xd3b   :  { %1338 = vadd.xlane.f32.xlu1 %v1337_v29  ;;  %v1642_v29 = vld [vmem:[#allocation7 + $0xe8] sm:$0xff] }
 0xd4c   :  { %1438 = vrot.lane.b32.xlu1 %v11651_v48, %s11444_s17 }
 0xdc8   :  { %v1339_v30 = vpop.xlane.xlu1 %1338 }
 0xdc9   :  { %11142 = vrcp.f32 %v1339_v30  ;;  %v1643_v30 = vld [vmem:[#allocation7 + $0xf0] sm:$0xff] }
 0xdcc   :  { %v1439_v33 = vpop.permute.xlu1 %1438 }
 0xdcd   :  { %v1444_v36 = vsel %vm334_vm3, %v1439_v33, 0 }
 0xdd3   :  { %v11143_v31 = vpop.eup %11142 }
 0xdd4   :  { %v1341_v32 = vmul.f32 %v11143_v31, %v11141_v28  ;;  %v1646_v31 = vpack.c.bf16 %v1643_v30, %v1642_v29 }
 0xdd6   :  { %v1342_v35 = vpack.c.bf16 %v1341_v32, %v1341_v32  ;;  %v1644_v32 = vld [vmem:[#allocation7 + $0xf8] sm:$0xff] }
 0xdd8   :  { %10205 = vmatmul.mubr.msk.bf16.vlgmr.msra.gmra.mrb[40].mxu0 %vm334_vm3, %v1342_v35  ;;  %v1700_v35 = vld [vmem:[#allocation7 + $0x110] sm:$0xff] }
 0xdd9   :  { %10215 = vmatpush3.bf16.xpose.msra.mxu0 %v1444_v36  ;;  %10216 = vmatprep.mubr.msk.bf16.mxu0 %vm11436_vm0, %v11435_v0  ;;  %v1701_v36 = vld [vmem:[#allocation7 + $0x118] sm:$0xff] }
 0xdda   :  { %10226 = vmatprep.subr.bf16.mxu0 %v11435_v0 }
 0xde0   :  { %10217 = vmatmul.mubr.msk.bf16.vlgmr.msra.gmra.mrb[44].mxu0 %vm334_vm3, %v1437_v37  ;;  %v1702_v37 = vld [vmem:[#allocation7 + $0x120] sm:$0xff] }
 0xde1   :  { %10227 = vmatpush3.bf16.msra.mxu0 %v11683_v10  ;;  %10228 = vmatprep.mubr.msk.bf16.mxu0 %vm11436_vm0, %v11435_v0 }
 0xde2   :  { %10240 = vmatprep.subr.bf16.mxu0 %v11435_v0 }
 0xeab   :  { %v1385_v38 = vpop.f32.mrb[40].mxu0 }
 0xeac   :  { %v1391_v39 = vpack.c.bf16 %v1385_v38, %v1385_v38  ;;  %v10206_v40 = vpop.f32.mrb[41].mxu0  ;;  %v1708_v38 = vpack.c.bf16 %v1701_v36, %v1700_v35  ;;  %v1807_v35 = vld [vmem:[#allocation7 + $0x188] sm:$0xff]  ;;  %v1808_v36 = vld [vmem:[#allocation7 + $0x190] sm:$0xff] }
 0xead   :  { %v1388_v42 = vpop.f32.mrb[42].mxu0 }
 0xeae   :  { %v10207_v43 = vpop.f32.mrb[43].mxu0  ;;  %10211 = vmatmul.mubr.msk.bf16.vlgmr.msra.gmra.mrb[40].mxu1 %vm334_vm3, %v1391_v39  ;;  %v1703_v39 = vld [vmem:[#allocation7 + $0x128] sm:$0xff] }
 0xeaf   :  { %10222 = vmatprep.mubr.msk.bf16.mxu1 %vm11436_vm0, %v11435_v0  ;;  %v1709_v40 = vpack.c.bf16 %v1703_v39, %v1702_v37  ;;  %v1810_v37 = vpack.c.bf16 %v1808_v36, %v1807_v35 }
 0xeb3   :  { %v1480_v49 = vpop.f32.mrb[44].mxu0 }
 0xeb4   :  { %v10218_v10 = vpop.f32.mrb[45].mxu0  ;;  %v1486_v50 = vmul.f32 0.35355338, %v1480_v49 }
 0xeb5   :  { %v1483_v51 = vpop.f32.mrb[46].mxu0 }
 0xeb6   :  { %v10219_v52 = vpop.f32.mrb[47].mxu0  ;;  %v1487_v53 = vsel %vm334_vm3, %v1486_v50, -inf }
 0xeb7   :  { %1488 = vmax.xlane.f32.xlu1 %v1487_v53  ;;  %v9552_v52 = vld [vmem:[#allocation7 + $0x158] ss:$0 sm:$0xff] }
 0xebb   :  { %1602 = vadd.xlane.f32.xlu1 %v1601_v63 }
 0xf44   :  { %v1489_v1 = vpop.xlane.xlu1 %1488 }
 0xf45   :  { %v1490_v57 = vsub.f32 %v1486_v50, %v1489_v1  ;;  %v9553_v1 = vld [vmem:[#allocation7 + $0x160] ss:$0 sm:$0xff] }
 0xf47   :  { %v1491_v58 = vmul.f32 1.442695, %v1490_v57 }
 0xf48   :  { %v1603_v13 = vpop.xlane.xlu1 %1602 }
 0xf49   :  { %11144 = vpow2.f32 %v1491_v58  ;;  %v1608_v14 = vmul.f32 0.03125, %v1603_v13  ;;  %v9556_v13 = vld [vmem:[#allocation7 + $0x150] ss:$0 sm:$0xff] }
 0xf4b   :  { %v1610_v18 = vsub.f32 %v1599_v54, %v1608_v14 }
 0xf4d   :  { %v1612_v22 = vmul.f32 %v1610_v18, %v1610_v18 }
 0xf4f   :  { %v1614_v23 = vsel %vm279_vm2, %v1612_v22, 0.0 }
 0xf53   :  { %v11145_v59 = vpop.eup %11144 }
 0xf54   :  { %v1493_v41 = vsel %vm334_vm3, %v11145_v59, 0.0 }
 0xf55   :  { %1494 = vadd.xlane.f32.xlu0 %v1493_v41 }
 0xf6b   :  { %1499 = vrot.lane.b32.xlu0 %v11651_v48, %s11447_s20 }
 0xf81   :  { %v1429_v60 = vpop.f32.mrb[40].mxu1 }
 0xf82   :  { %v1435_v61 = vadd.f32 %v1429_v60, %v11730_v15  ;;  %v10212_v62 = vpop.f32.mrb[41].mxu1  ;;  %v1704_v60 = vld [vmem:[#allocation7 + $0x130] sm:$0xff] }
 0xf83   :  { %v1432_v55 = vpop.f32.mrb[42].mxu1 }
 0xf84   :  { %v10213_v2 = vpop.f32.mrb[43].mxu1  ;;  %v1706_v55 = vld [vmem:[#allocation7 + $0x140] sm:$0xff] }
 0xf85   :  { %v1707_v2 = vld [vmem:[#allocation7 + $0x148] sm:$0xff] }
 0xfe2   :  { %v1495_v3 = vpop.xlane.xlu0 %1494 }
 0xfe3   :  { %11146 = vrcp.f32 %v1495_v3  ;;  %v1711_v3 = vpack.c.bf16 %v1707_v2, %v1706_v55 }
 0xfe6   :  { %v1500_v4 = vpop.permute.xlu0 %1499 }
 0xfe7   :  { %v1505_v5 = vsel %vm399_vm4, %v1500_v4, 0  ;;  %v9554_v4 = vld [vmem:[#allocation7 + $0x108] ss:$0 sm:$0xff] }
 0xfe8   :  { %10221 = vmatpush3.bf16.msra.mxu1 %v1505_v5 }
 0xfe9   :  { %10232 = vmatprep.subr.bf16.mxu1 %v11435_v0 }
 0xfed   :  { %v11147_v45 = vpop.eup %11146 }
 0xfee   :  { %v1497_v6 = vmul.f32 %v11147_v45, %v11145_v59 }
 0xff0   :  { %v1498_v7 = vpack.c.bf16 %v1497_v6, %v1497_v6 }
 0xff2   :  { %10223 = vmatmul.mubr.msk.bf16.vlgmr.msra.gmra.mrb[44].mxu1 %vm334_vm3, %v1498_v7 }
 0xff3   :  { %10236 = vmatprep.mubr.msk.bf16.mxu1 %vm11436_vm0, %v11435_v0  ;;  %10233 = vmatpush3.bf16.msra.mxu1 %v1646_v31 }
 0xff4   :  { %10234 = vmatprep.subr.bf16.mxu1 %v11435_v0 }
0x10c5   :  { %v1541_v48 = vpop.f32.mrb[44].mxu1 }
0x10c6   :  { %v1547_v8 = vpack.c.bf16 %v1541_v48, %v1541_v48  ;;  %v10224_v9 = vpop.f32.mrb[45].mxu1 }
0x10c7   :  { %v1544_v11 = vpop.f32.mrb[46].mxu1 }
0x10c8   :  { %v10225_v12 = vpop.f32.mrb[47].mxu1  ;;  %10229 = vmatmul.mubr.msk.bf16.vlgmr.msra.gmra.mrb[48].mxu0 %vm334_vm3, %v1547_v8 }
0x10c9   :  { %10248 = vmatprep.mubr.msk.bf16.mxu0 %vm11436_vm0, %v11435_v0  ;;  %10241 = vmatpush3.bf16.msra.mxu0 %v1708_v38 }
0x10ca   :  { %10242 = vmatprep.subr.bf16.mxu0 %v11435_v0 }
0x10cd   :  { %10243 = vmatpush3.bf16.msra.mxu0 %v1709_v40 }
0x10ce   :  { %10244 = vmatprep.subr.bf16.mxu0 %v11435_v0 }
0x119b   :  { %v1585_v15 = vpop.f32.mrb[48].mxu0 }
0x119c   :  { %v1591_v47 = vadd.f32 %v1585_v15, %v1435_v61  ;;  %v10230_v16 = vpop.f32.mrb[49].mxu0  ;;  %v1705_v61 = vld [vmem:[#allocation7 + $0x138] sm:$0xff] }
0x119d   :  { %v1588_v17 = vpop.f32.mrb[50].mxu0  ;;  %v1710_v62 = vpack.c.bf16 %v1705_v61, %v1704_v60 }
0x119e   :  { %v10231_v19 = vpop.f32.mrb[51].mxu0  ;;  %v1598_v20 = vadd.f32 %v9551_v44, %v1591_v47 }
0x119f   :  { %10245 = vmatpush3.bf16.msra.mxu0 %v1710_v62 }
0x11a0   :  { %v1600_v21 = vadd.f32 %v1598_v20, %v11544_v56  ;;  %v1645_v56 = vld [vmem:[#allocation7 + $0x100] sm:$0xff]  ;;  %10246 = vmatprep.subr.bf16.mxu0 %v11435_v0 }
0x11a1   :  { %v1647_v33 = vpack.c.bf16 %v1645_v56, %v1644_v32  ;;  %v1805_v32 = vld [vmem:[#allocation7 + $0x178] sm:$0xff]  ;;  %v1806_v56 = vld [vmem:[#allocation7 + $0x180] sm:$0xff] }
0x11a2   :  { %v1604_v34 = vsel %vm279_vm2, %v1600_v21, 0.0 }
0x11a3   :  { %1605 = vadd.xlane.f32.xlu1 %v1604_v34  ;;  %10235 = vmatpush3.bf16.msra.mxu1 %v1647_v33  ;;  %v1809_v33 = vpack.c.bf16 %v1806_v56, %v1805_v32 }
0x11a4   :  { %10252 = vmatprep.subr.bf16.mxu1 %v11435_v0  ;;  %10247 = vmatpush3.bf16.msra.mxu0 %v1711_v3 }
0x11a5   :  { %10266 = vmatprep.subr.bf16.mxu0 %v11435_v0 }
0x11a7   :  { %1615 = vadd.xlane.f32.xlu1 %v1614_v23 }
0x1230   :  { %v1606_v24 = vpop.xlane.xlu1 %1605 }
0x1231   :  { %v1609_v25 = vmul.f32 0.03125, %v1606_v24 }
0x1233   :  { %v1611_v26 = vsub.f32 %v1600_v21, %v1609_v25 }
0x1234   :  { %v1616_v42 = vpop.xlane.xlu1 %1615 }
0x1235   :  { %v1613_v27 = vmul.f32 %v1611_v26, %v1611_v26  ;;  %v1620_v43 = vmul.f32 0.03125, %v1616_v42 }
0x1237   :  { %v1617_v28 = vsel %vm279_vm2, %v1613_v27, 0.0  ;;  %v1622_v44 = vadd.f32 1e-05, %v1620_v43 }
0x1238   :  { %1618 = vadd.xlane.f32.xlu1 %v1617_v28 }
0x1239   :  { %11148 = vrsqrt.f32 %v1622_v44 }
0x1243   :  { %v11149_v50 = vpop.eup %11148 }
0x1244   :  { %v1626_v51 = vmul.f32 %v11149_v50, %v1610_v18 }
0x1246   :  { %v1633_v54 = vmul.f32 %v9552_v52, %v1626_v51 }
0x1248   :  { %v1640_v58 = vadd.f32 %v9553_v1, %v1633_v54 }
0x12c5   :  { %v1619_v46 = vpop.xlane.xlu1 %1618 }
0x12c6   :  { %v1621_v49 = vmul.f32 0.03125, %v1619_v46 }
0x12c8   :  { %v1623_v10 = vadd.f32 1e-05, %v1621_v49 }
0x12ca   :  { %11150 = vrsqrt.f32 %v1623_v10  ;;  %v9558_v10 = vld [vmem:[#allocation7 + $0x168] ss:$0 sm:$0xff] }
0x12d4   :  { %v11151_v53 = vpop.eup %11150 }
0x12d5   :  { %v1627_v63 = vmul.f32 %v11151_v53, %v1611_v26  ;;  %v9559_v53 = vld [vmem:[#allocation7 + $0x170] ss:$0 sm:$0xff] }
0x12d7   :  { %v1634_v57 = vmul.f32 %v9552_v52, %v1627_v63 }
0x12d9   :  { %v1641_v59 = vadd.f32 %v9553_v1, %v1634_v57 }
0x12db   :  { %v1648_v41 = vpack.c.bf16 %v1641_v59, %v1640_v58 }
0x12dd   :  { %10237 = vmatmul.mubr.msk.bf16.vlgmr.msra.gmra.mrb[48].mxu1 %vm279_vm2, %v1648_v41 }
0x12de   :  { %10256 = vmatprep.mubr.msk.bf16.mxu1 %vm11436_vm0, %v11435_v0  ;;  %10253 = vmatpush3.bf16.msra.mxu1 %v1809_v33 }
0x12df   :  { %10254 = vmatprep.subr.bf16.mxu1 %v11435_v0 }
0x12e2   :  { %10255 = vmatpush3.bf16.msra.mxu1 %v1810_v37 }
0x12e3   :  { %10260 = vmatprep.subr.bf16.mxu1 %v11435_v0 }
0x13b0   :  { %v1691_v5 = vpop.f32.mrb[48].mxu1 }
0x13b1   :  { %v1692_v45 = vadd.f32 %v9554_v4, %v1691_v5  ;;  %v10238_v6 = vpop.f32.mrb[49].mxu1 }
0x13b2   :  { %v1694_v7 = vpop.f32.mrb[50].mxu1 }
0x13b3   :  { %v1695_v48 = vadd.f32 %v9554_v4, %v1694_v7  ;;  %v10239_v8 = vpop.f32.mrb[51].mxu1  ;;  %v1698_v9 = vmax.f32 %v1692_v45, 0.0 }
0x13b5   :  { %v1699_v11 = vmax.f32 %v1695_v48, 0.0 }
0x13b7   :  { %v1712_v12 = vpack.c.bf16 %v1699_v11, %v1698_v9 }
0x13b9   :  { %10249 = vmatmul.mubr.msk.bf16.vlgmr.msra.gmra.mrb[52].mxu0 %vm1718_vm5, %v1712_v12 }
0x13ba   :  { %10268 = vmatprep.mubr.msk.bf16.mxu0 %vm11436_vm0, %v11435_v0 }
0x148c   :  { %v1756_v14 = vpop.f32.mrb[52].mxu0 }
0x148d   :  { %v1757_v15 = vadd.f32 %v9556_v13, %v1756_v14  ;;  %v10250_v47 = vpop.f32.mrb[53].mxu0 }
0x148e   :  { %v1759_v16 = vpop.f32.mrb[54].mxu0 }
0x148f   :  { %v1760_v17 = vadd.f32 %v9556_v13, %v1759_v16  ;;  %v10251_v18 = vpop.f32.mrb[55].mxu0  ;;  %v1763_v19 = vadd.f32 %v1757_v15, %v1640_v58  ;;  %v9560_v58 = vld [vmem:[#allocation7 + $0x198] ss:$0 sm:$0xff] }
0x1491   :  { %v1765_v20 = vsel %vm279_vm2, %v1763_v19, 0.0  ;;  %v1764_v21 = vadd.f32 %v1760_v17, %v1641_v59 }
0x1492   :  { %1766 = vadd.xlane.f32.xlu1 %v1765_v20 }
0x1493   :  { %v1768_v34 = vsel %vm279_vm2, %v1764_v21, 0.0 }
0x1496   :  { %1769 = vadd.xlane.f32.xlu1 %v1768_v34 }
0x151f   :  { %v1767_v22 = vpop.xlane.xlu1 %1766 }
0x1520   :  { %v1771_v23 = vmul.f32 0.03125, %v1767_v22 }
0x1522   :  { %v1773_v24 = vsub.f32 %v1763_v19, %v1771_v23 }
0x1523   :  { %v1770_v25 = vpop.xlane.xlu1 %1769 }
0x1524   :  { %v1772_v26 = vmul.f32 0.03125, %v1770_v25  ;;  %v1775_v27 = vmul.f32 %v1773_v24, %v1773_v24 }
0x1526   :  { %v1774_v28 = vsub.f32 %v1764_v21, %v1772_v26  ;;  %v1777_v29 = vsel %vm279_vm2, %v1775_v27, 0.0 }
0x1527   :  { %1778 = vadd.xlane.f32.xlu0 %v1777_v29 }
0x1528   :  { %v1776_v30 = vmul.f32 %v1774_v28, %v1774_v28 }
0x152a   :  { %v1780_v31 = vsel %vm279_vm2, %v1776_v30, 0.0 }
0x152b   :  { %1781 = vadd.xlane.f32.xlu1 %v1780_v31 }
0x15b4   :  { %v1779_v38 = vpop.xlane.xlu0 %1778 }
0x15b5   :  { %v1783_v39 = vmul.f32 0.03125, %v1779_v38 }
0x15b7   :  { %v1785_v40 = vadd.f32 1e-05, %v1783_v39  ;;  %v1861_v39 = vld [vmem:[#allocation7 + $0x1a0] sm:$0xff] }
0x15b8   :  { %v1782_v42 = vpop.xlane.xlu1 %1781 }
0x15b9   :  { %11152 = vrsqrt.f32 %v1785_v40  ;;  %v1784_v43 = vmul.f32 0.03125, %v1782_v42  ;;  %v1862_v40 = vld [vmem:[#allocation7 + $0x1a8] sm:$0xff] }
0x15ba   :  { %v1865_v42 = vpack.c.bf16 %v1862_v40, %v1861_v39 }
0x15bb   :  { %v1786_v44 = vadd.f32 1e-05, %v1784_v43 }
0x15bc   :  { %v11846_v43 = vsel %vm399_vm4, %v1865_v42, 0 }
0x15bd   :  { %11154 = vrsqrt.f32 %v1786_v44  ;;  %v2092_v44 = vrot.slane %v1865_v42, 4 }
0x15c3   :  { %v11153_v46 = vpop.eup %11152 }
0x15c4   :  { %v1789_v49 = vmul.f32 %v11153_v46, %v1773_v24  ;;  %v11850_v46 = vsel %vm399_vm4, %v2092_v44, 0 }
0x15c6   :  { %v1796_v51 = vmul.f32 %v9558_v10, %v1789_v49 }
0x15c7   :  { %v11155_v50 = vpop.eup %11154 }
0x15c8   :  { %v1790_v52 = vmul.f32 %v11155_v50, %v1774_v28  ;;  %v11793_v63 = vadd.f32 %v9559_v53, %v1796_v51 }
0x15ca   :  { %v1797_v54 = vmul.f32 %v9558_v10, %v1790_v52 }
0x15cc   :  { %v11795_v1 = vadd.f32 %v9559_v53, %v1797_v54 }
0x15ce   :  { %v1811_v57 = vpack.c.bf16 %v11795_v1, %v11793_v63 }
0x15d0   :  { %10257 = vmatmul.mubr.msk.bf16.vlgmr.msra.gmra.mrb[52].mxu1 %vm279_vm2, %v1811_v57 }
0x15d1   :  { %10262 = vmatprep.mubr.msk.bf16.mxu1 %vm11436_vm0, %v11435_v0 }
0x16a3   :  { %v1854_v59 = vpop.f32.mrb[52].mxu1 }
0x16a4   :  { %v1855_v41 = vadd.f32 %v9560_v58, %v1854_v59  ;;  %v10258_v60 = vpop.f32.mrb[53].mxu1 }
0x16a5   :  { %v1857_v61 = vpop.f32.mrb[54].mxu1 }
0x16a6   :  { %v11802_v62 = vpack.c.bf16 %v1855_v41, %v1855_v41  ;;  %v11804_v55 = vadd.f32 %v9560_v58, %v1857_v61  ;;  %v10259_v2 = vpop.f32.mrb[55].mxu1 }
0x16a8   :  { %1869 = vrot.lane.b32.xlu1 %v11802_v62, %s11438_s11 }
0x16ac   :  { %1981 = vrot.lane.b32.xlu1 %v11802_v62, %s11439_s12 }
0x16b0   :  { %1979 = vrot.lane.b32.xlu1 %v11802_v62, %s11437_s2 }
0x171a   :  { %v1870_v3 = vpop.permute.xlu1 %1869 }
0x171b   :  { %v1875_v4 = vsel %vm334_vm3, %v1870_v3, 0 }
0x171c   :  { %10261 = vmatpush3.bf16.xpose.msra.mxu1 %v1875_v4 }
0x171d   :  { %10272 = vmatprep.subr.bf16.mxu1 %v11435_v0 }
0x171e   :  { %v1982_v5 = vpop.permute.xlu1 %1981 }
0x171f   :  { %v1987_v45 = vsel %vm334_vm3, %v1982_v5, 0 }
0x1722   :  { %v1980_v6 = vpop.permute.xlu1 %1979 }
0x1723   :  { %10263 = vmatmul.mubr.msk.bf16.vlgmr.msra.gmra.mrb[56].mxu1 %vm334_vm3, %v11802_v62 }
0x1724   :  { %10273 = vmatpush3.bf16.xpose.msra.mxu1 %v1987_v45  ;;  %10274 = vmatprep.mubr.msk.bf16.mxu1 %vm11436_vm0, %v11435_v0 }
0x1725   :  { %10284 = vmatprep.subr.bf16.mxu1 %v11435_v0 }
0x172b   :  { %10275 = vmatmul.mubr.msk.bf16.vlgmr.msra.gmra.mrb[60].mxu1 %vm334_vm3, %v1980_v6 }
0x172c   :  { %10286 = vmatprep.mubr.msk.bf16.mxu1 %vm11436_vm0, %v11435_v0  ;;  %10285 = vmatpush3.bf16.msra.mxu1 %v11850_v46 }
0x172d   :  { %10296 = vmatprep.subr.bf16.mxu1 %v11435_v0 }
0x17f6   :  { %v1911_v7 = vpop.f32.mrb[56].mxu1 }
0x17f7   :  { %v10264_v48 = vpop.f32.mrb[57].mxu1  ;;  %v1917_v8 = vmul.f32 0.35355338, %v1911_v7 }
0x17f8   :  { %v1914_v9 = vpop.f32.mrb[58].mxu1 }
0x17f9   :  { %v10265_v11 = vpop.f32.mrb[59].mxu1  ;;  %v1918_v12 = vsel %vm334_vm3, %v1917_v8, -inf }
0x17fa   :  { %1919 = vmax.xlane.f32.xlu0 %v1918_v12 }
0x17fe   :  { %v2023_v13 = vpop.f32.mrb[60].mxu1 }
0x17ff   :  { %v10276_v14 = vpop.f32.mrb[61].mxu1  ;;  %v2029_v15 = vmul.f32 0.35355338, %v2023_v13 }
0x1800   :  { %v2026_v47 = vpop.f32.mrb[62].mxu1 }
0x1801   :  { %v10277_v16 = vpop.f32.mrb[63].mxu1  ;;  %v2030_v17 = vsel %vm334_vm3, %v2029_v15, -inf }
0x1802   :  { %2031 = vmax.xlane.f32.xlu1 %v2030_v17 }
0x1810   :  { %1930 = vrot.lane.b32.xlu0 %v11802_v62, %s11440_s13 }
0x1813   :  { %2187 = vrot.lane.b32.xlu1 %v11802_v62, %s11443_s16 }
0x1887   :  { %v1920_v18 = vpop.xlane.xlu0 %1919 }
0x1888   :  { %v1921_v19 = vsub.f32 %v1917_v8, %v1920_v18 }
0x188a   :  { %v1922_v20 = vmul.f32 1.442695, %v1921_v19 }
0x188b   :  { %v1931_v21 = vpop.permute.xlu0 %1930 }
0x188c   :  { %11156 = vpow2.f32 %v1922_v20  ;;  %v1936_v34 = vsel %vm399_vm4, %v1931_v21, 0 }
0x188d   :  { %10267 = vmatpush3.bf16.msra.mxu0 %v1936_v34 }
0x188e   :  { %10278 = vmatprep.subr.bf16.mxu0 %v11435_v0 }
0x188f   :  { %v2032_v22 = vpop.xlane.xlu1 %2031 }
0x1890   :  { %v2033_v23 = vsub.f32 %v2029_v15, %v2032_v22 }
0x1892   :  { %v2034_v24 = vmul.f32 1.442695, %v2033_v23 }
0x1893   :  { %v2188_v53 = vpop.permute.xlu1 %2187 }
0x1894   :  { %11158 = vpow2.f32 %v2034_v24  ;;  %v2193_v41 = vsel %vm334_vm3, %v2188_v53, 0 }
0x1896   :  { %v11157_v25 = vpop.eup %11156 }
0x1897   :  { %v1924_v26 = vsel %vm334_vm3, %v11157_v25, 0.0 }
0x1898   :  { %1925 = vadd.xlane.f32.xlu0 %v1924_v26 }
0x189e   :  { %v11159_v27 = vpop.eup %11158 }
0x189f   :  { %v2036_v28 = vsel %vm334_vm3, %v11159_v27, 0.0 }
0x18a0   :  { %2037 = vadd.xlane.f32.xlu0 %v2036_v28  ;;  %v1863_v28 = vld [vmem:[#allocation7 + $0x1b0] sm:$0xff] }
0x18b6   :  { %2042 = vrot.lane.b32.xlu0 %v11802_v62, %s11441_s14 }
0x18ba   :  { %2185 = vrot.lane.b32.xlu0 %v11802_v62, %s11442_s15 }
0x1925   :  { %v1926_v29 = vpop.xlane.xlu0 %1925 }
0x1926   :  { %11160 = vrcp.f32 %v1926_v29  ;;  %v1864_v29 = vld [vmem:[#allocation7 + $0x1b8] sm:$0xff] }
0x192d   :  { %v2038_v30 = vpop.xlane.xlu0 %2037 }
0x192e   :  { %11162 = vrcp.f32 %v2038_v30  ;;  %v11886_v30 = vpack.c.bf16 %v1864_v29, %v1863_v28 }
0x1930   :  { %v11161_v31 = vpop.eup %11160 }
0x1931   :  { %v1928_v32 = vmul.f32 %v11161_v31, %v11157_v25  ;;  %v2043_v56 = vpop.permute.xlu0 %2042  ;;  %v11890_v31 = vsel %vm399_vm4, %v11886_v30, 0 }
0x1932   :  { %v2048_v35 = vsel %vm399_vm4, %v2043_v56, 0 }
0x1933   :  { %v1929_v33 = vpack.c.bf16 %v1928_v32, %v1928_v32 }
0x1935   :  { %10269 = vmatmul.mubr.msk.bf16.vlgmr.msra.gmra.mrb[56].mxu0 %vm334_vm3, %v1929_v33  ;;  %v2186_v61 = vpop.permute.xlu0 %2185 }
0x1936   :  { %10279 = vmatpush3.bf16.msra.mxu0 %v2048_v35  ;;  %10280 = vmatprep.mubr.msk.bf16.mxu0 %vm11436_vm0, %v11435_v0 }
0x1937   :  { %10290 = vmatprep.subr.bf16.mxu0 %v11435_v0 }
0x1938   :  { %v11163_v36 = vpop.eup %11162 }
0x1939   :  { %v2040_v37 = vmul.f32 %v11163_v36, %v11159_v27 }
0x193b   :  { %v2041_v38 = vpack.c.bf16 %v2040_v37, %v2040_v37 }
0x193d   :  { %10281 = vmatmul.mubr.msk.bf16.vlgmr.msra.gmra.mrb[60].mxu0 %vm334_vm3, %v2041_v38 }
0x193e   :  { %10292 = vmatprep.mubr.msk.bf16.mxu0 %vm11436_vm0, %v11435_v0  ;;  %10291 = vmatpush3.bf16.msra.mxu0 %v11846_v43 }
0x193f   :  { %10302 = vmatprep.subr.bf16.mxu0 %v11435_v0 }
0x1a08   :  { %v1972_v49 = vpop.f32.mrb[56].mxu0 }
0x1a09   :  { %v1978_v10 = vpack.c.bf16 %v1972_v49, %v1972_v49  ;;  %v10270_v50 = vpop.f32.mrb[57].mxu0  ;;  %v11902_v49 = vpack.c.bf16 %v11804_v55, %v11804_v55 }
0x1a0a   :  { %v1975_v51 = vpop.f32.mrb[58].mxu0 }
0x1a0b   :  { %v10271_v52 = vpop.f32.mrb[59].mxu0  ;;  %10293 = vmatmul.mubr.msk.bf16.vlgmr.msra.gmra.mrb[64].mxu0 %vm334_vm3, %v1978_v10 }
0x1a0c   :  { %10304 = vmatprep.mubr.msk.bf16.mxu0 %vm11436_vm0, %v11435_v0 }
0x1a10   :  { %v2084_v54 = vpop.f32.mrb[60].mxu0 }
0x1a11   :  { %v2090_v57 = vpack.c.bf16 %v2084_v54, %v2084_v54  ;;  %v10282_v58 = vpop.f32.mrb[61].mxu0 }
0x1a12   :  { %v2087_v59 = vpop.f32.mrb[62].mxu0 }
0x1a13   :  { %v10283_v60 = vpop.f32.mrb[63].mxu0  ;;  %10287 = vmatmul.mubr.msk.bf16.vlgmr.msra.gmra.mrb[64].mxu1 %vm334_vm3, %v2090_v57 }
0x1a14   :  { %10297 = vmatpush3.bf16.xpose.msra.mxu1 %v2193_v41  ;;  %10298 = vmatprep.mubr.msk.bf16.mxu1 %vm11436_vm0, %v11435_v0 }
0x1a15   :  { %10308 = vmatprep.subr.bf16.mxu1 %v11435_v0 }
0x1a1b   :  { %10299 = vmatmul.mubr.msk.bf16.vlgmr.msra.gmra.mrb[68].mxu1 %vm334_vm3, %v2186_v61 }
0x1a1c   :  { %10310 = vmatprep.mubr.msk.bf16.mxu1 %vm11436_vm0, %v11435_v0  ;;  %10309 = vmatpush3.bf16.msra.mxu1 %v11890_v31 }
0x1a1d   :  { %10320 = vmatprep.subr.bf16.mxu1 %v11435_v0 }
0x1ade   :  { %v2179_v2 = vpop.f32.mrb[64].mxu0 }
0x1adf   :  { %v10294_v3 = vpop.f32.mrb[65].mxu0 }
0x1ae0   :  { %v2182_v4 = vpop.f32.mrb[66].mxu0 }
0x1ae1   :  { %v10295_v5 = vpop.f32.mrb[67].mxu0 }
0x1ae6   :  { %v2133_v45 = vpop.f32.mrb[64].mxu1 }
0x1ae7   :  { %v10288_v6 = vpop.f32.mrb[65].mxu1  ;;  %v11866_v7 = vadd.f32 %v2179_v2, %v2133_v45 }
0x1ae8   :  { %v2136_v48 = vpop.f32.mrb[66].mxu1 }
0x1ae9   :  { %v10289_v8 = vpop.f32.mrb[67].mxu1  ;;  %v2457_v48 = vrot.slane %v11886_v30, 4 }
0x1aeb   :  { %v11934_v8 = vsel %vm399_vm4, %v2457_v48, 0 }
0x1aee   :  { %v2229_v9 = vpop.f32.mrb[68].mxu1 }
0x1aef   :  { %v10300_v11 = vpop.f32.mrb[69].mxu1  ;;  %v2235_v12 = vmul.f32 0.35355338, %v2229_v9 }
0x1af0   :  { %v2232_v13 = vpop.f32.mrb[70].mxu1 }
0x1af1   :  { %v10301_v14 = vpop.f32.mrb[71].mxu1  ;;  %v2236_v15 = vsel %vm334_vm3, %v2235_v12, -inf }
0x1af2   :  { %2237 = vmax.xlane.f32.xlu0 %v2236_v15 }
0x1b08   :  { %2248 = vrot.lane.b32.xlu0 %v11802_v62, %s11446_s19 }
0x1b0c   :  { %2344 = vrot.lane.b32.xlu0 %v11802_v62, %s11445_s18 }
0x1b7f   :  { %v2238_v47 = vpop.xlane.xlu0 %2237 }
0x1b80   :  { %v2239_v16 = vsub.f32 %v2235_v12, %v2238_v47 }
0x1b82   :  { %v2240_v17 = vmul.f32 1.442695, %v2239_v16 }
0x1b83   :  { %v2249_v18 = vpop.permute.xlu0 %2248 }
0x1b84   :  { %11164 = vpow2.f32 %v2240_v17  ;;  %v2254_v19 = vsel %vm399_vm4, %v2249_v18, 0 }
0x1b85   :  { %10303 = vmatpush3.bf16.msra.mxu0 %v2254_v19 }
0x1b86   :  { %10314 = vmatprep.subr.bf16.mxu0 %v11435_v0 }
0x1b87   :  { %v2345_v27 = vpop.permute.xlu0 %2344 }
0x1b8e   :  { %v11165_v20 = vpop.eup %11164 }
0x1b8f   :  { %v2242_v21 = vsel %vm334_vm3, %v11165_v20, 0.0 }
0x1b90   :  { %2243 = vadd.xlane.f32.xlu1 %v2242_v21 }
0x1ba1   :  { %2346 = vrot.lane.b32.xlu1 %v11802_v62, %s11444_s17 }
0x1c1d   :  { %v2244_v34 = vpop.xlane.xlu1 %2243 }
0x1c1e   :  { %11166 = vrcp.f32 %v2244_v34 }
0x1c21   :  { %v2347_v24 = vpop.permute.xlu1 %2346 }
0x1c22   :  { %v2352_v26 = vsel %vm334_vm3, %v2347_v24, 0 }
0x1c28   :  { %v11167_v22 = vpop.eup %11166 }
0x1c29   :  { %v2246_v23 = vmul.f32 %v11167_v22, %v11165_v20 }
0x1c2b   :  { %v2247_v25 = vpack.c.bf16 %v2246_v23, %v2246_v23 }
0x1c2d   :  { %10305 = vmatmul.mubr.msk.bf16.vlgmr.msra.gmra.mrb[68].mxu0 %vm334_vm3, %v2247_v25 }
0x1c2e   :  { %10315 = vmatpush3.bf16.xpose.msra.mxu0 %v2352_v26  ;;  %10316 = vmatprep.mubr.msk.bf16.mxu0 %vm11436_vm0, %v11435_v0 }
0x1c2f   :  { %10326 = vmatprep.subr.bf16.mxu0 %v11435_v0 }
0x1c35   :  { %10317 = vmatmul.mubr.msk.bf16.vlgmr.msra.gmra.mrb[72].mxu0 %vm334_vm3, %v2345_v27 }
0x1c36   :  { %10328 = vmatprep.mubr.msk.bf16.mxu0 %vm11436_vm0, %v11435_v0  ;;  %10327 = vmatpush3.bf16.msra.mxu0 %v11934_v8 }
0x1c37   :  { %10338 = vmatprep.subr.bf16.mxu0 %v11435_v0 }
0x1d00   :  { %v2290_v32 = vpop.f32.mrb[68].mxu0 }
0x1d01   :  { %v2296_v56 = vpack.c.bf16 %v2290_v32, %v2290_v32  ;;  %v10306_v33 = vpop.f32.mrb[69].mxu0 }
0x1d02   :  { %v2293_v35 = vpop.f32.mrb[70].mxu0 }
0x1d03   :  { %v10307_v36 = vpop.f32.mrb[71].mxu0  ;;  %10311 = vmatmul.mubr.msk.bf16.vlgmr.msra.gmra.mrb[72].mxu1 %vm334_vm3, %v2296_v56 }
0x1d04   :  { %10322 = vmatprep.mubr.msk.bf16.mxu1 %vm11436_vm0, %v11435_v0 }
0x1d08   :  { %v2388_v37 = vpop.f32.mrb[72].mxu0 }
0x1d09   :  { %v2394_v38 = vmul.f32 0.35355338, %v2388_v37  ;;  %v10318_v39 = vpop.f32.mrb[73].mxu0 }
0x1d0a   :  { %v2391_v40 = vpop.f32.mrb[74].mxu0 }
0x1d0b   :  { %v10319_v42 = vpop.f32.mrb[75].mxu0  ;;  %v2395_v44 = vsel %vm334_vm3, %v2394_v38, -inf }
0x1d0c   :  { %2396 = vmax.xlane.f32.xlu0 %v2395_v44 }
0x1d22   :  { %2407 = vrot.lane.b32.xlu0 %v11802_v62, %s11447_s20 }
0x1d26   :  { %2619 = vrot.lane.b32.xlu0 %v11902_v49, %s11439_s12 }
0x1d2a   :  { %2617 = vrot.lane.b32.xlu0 %v11902_v49, %s11437_s2 }
0x1d99   :  { %v2397_v10 = vpop.xlane.xlu0 %2396 }
0x1d9a   :  { %v2398_v50 = vsub.f32 %v2394_v38, %v2397_v10 }
0x1d9c   :  { %v2399_v51 = vmul.f32 1.442695, %v2398_v50 }
0x1d9d   :  { %v2408_v52 = vpop.permute.xlu0 %2407 }
0x1d9e   :  { %11168 = vpow2.f32 %v2399_v51  ;;  %v2413_v53 = vsel %vm399_vm4, %v2408_v52, 0 }
0x1d9f   :  { %10321 = vmatpush3.bf16.msra.mxu1 %v2413_v53 }
0x1da0   :  { %10332 = vmatprep.subr.bf16.mxu1 %v11435_v0 }
0x1da1   :  { %v2620_v45 = vpop.permute.xlu0 %2619 }
0x1da2   :  { %v2625_v6 = vsel %vm334_vm3, %v2620_v45, 0 }
0x1da8   :  { %v11169_v62 = vpop.eup %11168 }
0x1da9   :  { %v2401_v55 = vsel %vm334_vm3, %v11169_v62, 0.0 }
0x1daa   :  { %2402 = vadd.xlane.f32.xlu1 %v2401_v55 }
0x1dbb   :  { %2507 = vrot.lane.b32.xlu1 %v11902_v49, %s11438_s11 }
0x1dd6   :  { %v2337_v54 = vpop.f32.mrb[72].mxu1 }
0x1dd7   :  { %v11914_v57 = vadd.f32 %v2337_v54, %v11866_v7  ;;  %v10312_v58 = vpop.f32.mrb[73].mxu1  ;;  %v2618_v7 = vpop.permute.xlu0 %2617 }
0x1dd8   :  { %v2340_v59 = vpop.f32.mrb[74].mxu1 }
0x1dd9   :  { %v10313_v41 = vpop.f32.mrb[75].mxu1 }
0x1e37   :  { %v2403_v60 = vpop.xlane.xlu1 %2402 }
0x1e38   :  { %11170 = vrcp.f32 %v2403_v60 }
0x1e3b   :  { %v2508_v3 = vpop.permute.xlu1 %2507 }
0x1e3c   :  { %v2513_v5 = vsel %vm334_vm3, %v2508_v3, 0 }
0x1e42   :  { %v11171_v61 = vpop.eup %11170 }
0x1e43   :  { %v2405_v2 = vmul.f32 %v11171_v61, %v11169_v62 }
0x1e45   :  { %v2406_v4 = vpack.c.bf16 %v2405_v2, %v2405_v2 }
0x1e47   :  { %10323 = vmatmul.mubr.msk.bf16.vlgmr.msra.gmra.mrb[76].mxu1 %vm334_vm3, %v2406_v4 }
0x1e48   :  { %10333 = vmatpush3.bf16.xpose.msra.mxu1 %v2513_v5  ;;  %10334 = vmatprep.mubr.msk.bf16.mxu1 %vm11436_vm0, %v11435_v0 }
0x1e49   :  { %10344 = vmatprep.subr.bf16.mxu1 %v11435_v0 }
0x1e4f   :  { %10335 = vmatmul.mubr.msk.bf16.vlgmr.msra.gmra.mrb[80].mxu1 %vm334_vm3, %v11902_v49 }
0x1e50   :  { %10345 = vmatpush3.bf16.xpose.msra.mxu1 %v2625_v6  ;;  %10346 = vmatprep.mubr.msk.bf16.mxu1 %vm11436_vm0, %v11435_v0 }
0x1e51   :  { %10356 = vmatprep.subr.bf16.mxu1 %v11435_v0 }
0x1e57   :  { %10347 = vmatmul.mubr.msk.bf16.vlgmr.msra.gmra.mrb[84].mxu1 %vm334_vm3, %v2618_v7 }
0x1e58   :  { %10357 = vmatpush3.bf16.msra.mxu1 %v11850_v46  ;;  %10358 = vmatprep.mubr.msk.bf16.mxu1 %vm11436_vm0, %v11435_v0 }
0x1e59   :  { %10368 = vmatprep.subr.bf16.mxu1 %v11435_v0 }
0x1f1a   :  { %v2449_v9 = vpop.f32.mrb[76].mxu1 }
0x1f1b   :  { %v2455_v11 = vpack.c.bf16 %v2449_v9, %v2449_v9  ;;  %v10324_v12 = vpop.f32.mrb[77].mxu1 }
0x1f1c   :  { %v2452_v13 = vpop.f32.mrb[78].mxu1 }
0x1f1d   :  { %v10325_v14 = vpop.f32.mrb[79].mxu1  ;;  %10329 = vmatmul.mubr.msk.bf16.vlgmr.msra.gmra.mrb[76].mxu0 %vm334_vm3, %v2455_v11 }
0x1f1e   :  { %10340 = vmatprep.mubr.msk.bf16.mxu0 %vm11436_vm0, %v11435_v0 }
0x1f22   :  { %v2549_v46 = vpop.f32.mrb[80].mxu1 }
0x1f23   :  { %v2555_v15 = vmul.f32 0.35355338, %v2549_v46  ;;  %v10336_v47 = vpop.f32.mrb[81].mxu1 }
0x1f24   :  { %v2552_v16 = vpop.f32.mrb[82].mxu1 }
0x1f25   :  { %v10337_v17 = vpop.f32.mrb[83].mxu1  ;;  %v2556_v18 = vsel %vm334_vm3, %v2555_v15, -inf }
0x1f26   :  { %2557 = vmax.xlane.f32.xlu0 %v2556_v18 }
0x1f2a   :  { %v2661_v19 = vpop.f32.mrb[84].mxu1 }
0x1f2b   :  { %v2667_v20 = vmul.f32 0.35355338, %v2661_v19  ;;  %v10348_v21 = vpop.f32.mrb[85].mxu1 }
0x1f2c   :  { %v2664_v34 = vpop.f32.mrb[86].mxu1 }
0x1f2d   :  { %v10349_v22 = vpop.f32.mrb[87].mxu1  ;;  %v2668_v23 = vsel %vm334_vm3, %v2667_v20, -inf }
0x1f2e   :  { %2669 = vmax.xlane.f32.xlu1 %v2668_v23 }
0x1f3f   :  { %2568 = vrot.lane.b32.xlu1 %v11902_v49, %s11440_s13 }
0x1f43   :  { %2817 = vrot.lane.b32.xlu1 %v11902_v49, %s11443_s16 }
0x1f47   :  { %2815 = vrot.lane.b32.xlu1 %v11902_v49, %s11442_s15 }
0x1fb3   :  { %v2558_v24 = vpop.xlane.xlu0 %2557 }
0x1fb4   :  { %v2559_v25 = vsub.f32 %v2555_v15, %v2558_v24 }
0x1fb6   :  { %v2560_v26 = vmul.f32 1.442695, %v2559_v25 }
0x1fb8   :  { %11172 = vpow2.f32 %v2560_v26 }
0x1fbb   :  { %v2670_v27 = vpop.xlane.xlu1 %2669 }
0x1fbc   :  { %v2671_v28 = vsub.f32 %v2667_v20, %v2670_v27 }
0x1fbe   :  { %v2672_v29 = vmul.f32 1.442695, %v2671_v28 }
0x1fbf   :  { %v2569_v30 = vpop.permute.xlu1 %2568 }
0x1fc0   :  { %11174 = vpow2.f32 %v2672_v29  ;;  %v2574_v32 = vsel %vm399_vm4, %v2569_v30, 0 }
0x1fc1   :  { %10339 = vmatpush3.bf16.msra.mxu0 %v2574_v32 }
0x1fc2   :  { %v11173_v56 = vpop.eup %11172  ;;  %10350 = vmatprep.subr.bf16.mxu0 %v11435_v0 }
0x1fc3   :  { %v2562_v33 = vsel %vm334_vm3, %v11173_v56, 0.0  ;;  %v2818_v2 = vpop.permute.xlu1 %2817 }
0x1fc4   :  { %2563 = vadd.xlane.f32.xlu0 %v2562_v33  ;;  %v2823_v45 = vsel %vm334_vm3, %v2818_v2, 0 }
0x1fc7   :  { %v2816_v7 = vpop.permute.xlu1 %2815 }
0x1fca   :  { %v11175_v35 = vpop.eup %11174 }
0x1fcb   :  { %v2674_v36 = vsel %vm334_vm3, %v11175_v35, 0.0 }
0x1fcc   :  { %2675 = vadd.xlane.f32.xlu0 %v2674_v36 }
0x1fe2   :  { %2680 = vrot.lane.b32.xlu0 %v11902_v49, %s11441_s14 }
0x1ff0   :  { %v2498_v37 = vpop.f32.mrb[76].mxu0 }
0x1ff1   :  { %v11956_v38 = vadd.f32 %v2498_v37, %v11914_v57  ;;  %v10330_v39 = vpop.f32.mrb[77].mxu0 }
0x1ff2   :  { %v2501_v40 = vpop.f32.mrb[78].mxu0 }
0x1ff3   :  { %v10331_v42 = vpop.f32.mrb[79].mxu0 }
0x1ff4   :  { %v9586_v42 = vld [vmem:[#allocation7 + $0x1c0] ss:$0 sm:$0xff] }
0x2051   :  { %v2564_v44 = vpop.xlane.xlu0 %2563 }
0x2052   :  { %11176 = vrcp.f32 %v2564_v44  ;;  %v3132_v44 = vadd.f32 %v9586_v42, %v11956_v38 }
0x2059   :  { %v2676_v10 = vpop.xlane.xlu0 %2675 }
0x205a   :  { %11178 = vrcp.f32 %v2676_v10 }
0x205c   :  { %v11177_v50 = vpop.eup %11176 }
0x205d   :  { %v2566_v51 = vmul.f32 %v11177_v50, %v11173_v56  ;;  %v2681_v52 = vpop.permute.xlu0 %2680 }
0x205e   :  { %v2686_v62 = vsel %vm399_vm4, %v2681_v52, 0 }
0x205f   :  { %v2567_v53 = vpack.c.bf16 %v2566_v51, %v2566_v51 }
0x2061   :  { %10341 = vmatmul.mubr.msk.bf16.vlgmr.msra.gmra.mrb[80].mxu0 %vm334_vm3, %v2567_v53 }
0x2062   :  { %10351 = vmatpush3.bf16.msra.mxu0 %v2686_v62  ;;  %10352 = vmatprep.mubr.msk.bf16.mxu0 %vm11436_vm0, %v11435_v0  ;;  %v3134_v62 = vadd.f32 %v3132_v44, %v11793_v63  ;;  %v119_v44 = vld [vmem:[#allocation7 + $0x7b] sm:$0x1] }
0x2063   :  { %10362 = vmatprep.subr.bf16.mxu0 %v11435_v0 }
0x2064   :  { %v11179_v55 = vpop.eup %11178 }
0x2065   :  { %v2678_v54 = vmul.f32 %v11179_v55, %v11175_v35  ;;  %v3136_v55 = vsel %vm279_vm2, %v3134_v62, 0.0 }
0x2067   :  { %v2679_v57 = vpack.c.bf16 %v2678_v54, %v2678_v54 }
0x2069   :  { %10353 = vmatmul.mubr.msk.bf16.vlgmr.msra.gmra.mrb[84].mxu0 %vm334_vm3, %v2679_v57 }
0x206a   :  { %10363 = vmatpush3.bf16.msra.mxu0 %v11846_v43  ;;  %10364 = vmatprep.mubr.msk.bf16.mxu0 %vm11436_vm0, %v11435_v0 }
0x206b   :  { %10374 = vmatprep.subr.bf16.mxu0 %v11435_v0 }
0x2134   :  { %v2610_v58 = vpop.f32.mrb[80].mxu0 }
0x2135   :  { %v2616_v59 = vpack.c.bf16 %v2610_v58, %v2610_v58  ;;  %v10342_v41 = vpop.f32.mrb[81].mxu0 }
0x2136   :  { %v2613_v60 = vpop.f32.mrb[82].mxu0 }
0x2137   :  { %v10343_v61 = vpop.f32.mrb[83].mxu0  ;;  %10365 = vmatmul.mubr.msk.bf16.vlgmr.msra.gmra.mrb[88].mxu0 %vm334_vm3, %v2616_v59 }
0x2138   :  { %10376 = vmatprep.mubr.msk.bf16.mxu0 %vm11436_vm0, %v11435_v0 }
0x213c   :  { %v2722_v3 = vpop.f32.mrb[84].mxu0 }
0x213d   :  { %v2728_v4 = vpack.c.bf16 %v2722_v3, %v2722_v3  ;;  %v10354_v5 = vpop.f32.mrb[85].mxu0 }
0x213e   :  { %v2725_v43 = vpop.f32.mrb[86].mxu0 }
0x213f   :  { %v10355_v6 = vpop.f32.mrb[87].mxu0  ;;  %10359 = vmatmul.mubr.msk.bf16.vlgmr.msra.gmra.mrb[88].mxu1 %vm334_vm3, %v2728_v4 }
0x2140   :  { %10369 = vmatpush3.bf16.xpose.msra.mxu1 %v2823_v45  ;;  %10370 = vmatprep.mubr.msk.bf16.mxu1 %vm11436_vm0, %v11435_v0 }
0x2141   :  { %10380 = vmatprep.subr.bf16.mxu1 %v11435_v0 }
0x2147   :  { %10371 = vmatmul.mubr.msk.bf16.vlgmr.msra.gmra.mrb[92].mxu1 %vm334_vm3, %v2816_v7 }
0x2148   :  { %10381 = vmatpush3.bf16.msra.mxu1 %v11890_v31  ;;  %10382 = vmatprep.mubr.msk.bf16.mxu1 %vm11436_vm0, %v11435_v0 }
0x2149   :  { %10392 = vmatprep.subr.bf16.mxu1 %v11435_v0 }
0x220a   :  { %v2809_v48 = vpop.f32.mrb[88].mxu0 }
0x220b   :  { %v10366_v9 = vpop.f32.mrb[89].mxu0 }
0x220c   :  { %v2812_v11 = vpop.f32.mrb[90].mxu0 }
0x220d   :  { %v10367_v12 = vpop.f32.mrb[91].mxu0 }
0x2212   :  { %v2766_v13 = vpop.f32.mrb[88].mxu1 }
0x2213   :  { %v11981_v14 = vadd.f32 %v2809_v48, %v2766_v13  ;;  %v10360_v46 = vpop.f32.mrb[89].mxu1 }
0x2214   :  { %v2769_v15 = vpop.f32.mrb[90].mxu1 }
0x2215   :  { %v10361_v47 = vpop.f32.mrb[91].mxu1 }
0x221a   :  { %v2859_v16 = vpop.f32.mrb[92].mxu1 }
0x221b   :  { %v2865_v17 = vmul.f32 0.35355338, %v2859_v16  ;;  %v10372_v18 = vpop.f32.mrb[93].mxu1 }
0x221c   :  { %v2862_v19 = vpop.f32.mrb[94].mxu1 }
0x221d   :  { %v10373_v31 = vpop.f32.mrb[95].mxu1  ;;  %v2866_v20 = vsel %vm334_vm3, %v2865_v17, -inf }
0x221e   :  { %2867 = vmax.xlane.f32.xlu0 %v2866_v20 }
0x2234   :  { %2878 = vrot.lane.b32.xlu0 %v11902_v49, %s11446_s19 }
0x2238   :  { %2971 = vrot.lane.b32.xlu0 %v11902_v49, %s11445_s18 }
0x22ab   :  { %v2868_v21 = vpop.xlane.xlu0 %2867 }
0x22ac   :  { %v2869_v34 = vsub.f32 %v2865_v17, %v2868_v21 }
0x22ae   :  { %v2870_v22 = vmul.f32 1.442695, %v2869_v34 }
0x22af   :  { %v2879_v23 = vpop.permute.xlu0 %2878 }
0x22b0   :  { %11180 = vpow2.f32 %v2870_v22  ;;  %v2884_v24 = vsel %vm399_vm4, %v2879_v23, 0 }
0x22b1   :  { %10375 = vmatpush3.bf16.msra.mxu0 %v2884_v24 }
0x22b2   :  { %10386 = vmatprep.subr.bf16.mxu0 %v11435_v0 }
0x22b3   :  { %v2972_v33 = vpop.permute.xlu0 %2971 }
0x22ba   :  { %v11181_v25 = vpop.eup %11180 }
0x22bb   :  { %v2872_v26 = vsel %vm334_vm3, %v11181_v25, 0.0 }
0x22bc   :  { %2873 = vadd.xlane.f32.xlu1 %v2872_v26  ;;  %v3177_v26 = vld [vmem:[#allocation7 + $0x1d0] sm:$0xff] }
0x22cd   :  { %2973 = vrot.lane.b32.xlu1 %v11902_v49, %s11444_s17 }
0x2349   :  { %v2874_v27 = vpop.xlane.xlu1 %2873 }
0x234a   :  { %11182 = vrcp.f32 %v2874_v27 }
0x234d   :  { %v2974_v30 = vpop.permute.xlu1 %2973 }
0x234e   :  { %v2979_v56 = vsel %vm334_vm3, %v2974_v30, 0 }
0x2354   :  { %v11183_v28 = vpop.eup %11182 }
0x2355   :  { %v2876_v29 = vmul.f32 %v11183_v28, %v11181_v25  ;;  %v3178_v28 = vld [vmem:[#allocation7 + $0x1d8] sm:$0xff] }
0x2357   :  { %v2877_v32 = vpack.c.bf16 %v2876_v29, %v2876_v29  ;;  %v3179_v29 = vld [vmem:[#allocation7 + $0x1e0] sm:$0xff] }
0x2358   :  { %v3181_v30 = vpack.c.bf16 %v3179_v29, %v3178_v28 }
0x2359   :  { %10377 = vmatmul.mubr.msk.bf16.vlgmr.msra.gmra.mrb[92].mxu0 %vm334_vm3, %v2877_v32  ;;  %v9486_v32 = vld [vmem:[%s9439_s6 + $0x38] sm:$0x1]  ;;  %s9523_s6 = sld [smem:[#allocation6 + $0x87]] }
0x235a   :  { %10387 = vmatpush3.bf16.xpose.msra.mxu0 %v2979_v56  ;;  %10388 = vmatprep.mubr.msk.bf16.mxu0 %vm11436_vm0, %v11435_v0  ;;  %v98_v56 = vld [vmem:[#allocation7 + $0x78] sm:$0x1] }
0x235b   :  { %10398 = vmatprep.subr.bf16.mxu0 %v11435_v0 }
0x2361   :  { %10389 = vmatmul.mubr.msk.bf16.vlgmr.msra.gmra.mrb[96].mxu0 %vm334_vm3, %v2972_v33  ;;  %v9488_v33 = vld [vmem:[%s9441_s7 + $0x38] sm:$0x1]  ;;  %s9475_s7 = scalar_lea.vmem [#allocation7], %s9521_s28 }
0x2362   :  { %10399 = vmatpush3.bf16.msra.mxu0 %v11934_v8  ;;  %10400 = vmatprep.mubr.msk.bf16.mxu0 %vm11436_vm0, %v11435_v0 }
0x2363   :  { %10412 = vmatprep.subr.bf16.mxu0 %v11435_v0 }
0x242c   :  { %v2920_v35 = vpop.f32.mrb[92].mxu0 }
0x242d   :  { %v2926_v36 = vpack.c.bf16 %v2920_v35, %v2920_v35  ;;  %v10378_v37 = vpop.f32.mrb[93].mxu0  ;;  %v99_v35 = vadd.f32 %v9486_v32, %v98_v56  ;;  %v9587_v56 = vld [vmem:[#allocation7 + $0x238] ss:$0 sm:$0xff] }
0x242e   :  { %v2923_v39 = vpop.f32.mrb[94].mxu0  ;;  %v112_v37 = vld [vmem:[#allocation7 + $0x7a] sm:$0x1] }
0x242f   :  { %v10379_v40 = vpop.f32.mrb[95].mxu0  ;;  %10383 = vmatmul.mubr.msk.bf16.vlgmr.msra.gmra.mrb[96].mxu1 %vm334_vm3, %v2926_v36  ;;  %v105_v36 = vld [vmem:[#allocation7 + $0x79] sm:$0x1]  ;;  %100 = vst.msk [vmem:[#allocation3] sm:$0x1] %vm43_vm1, %v99_v35 }
0x2430   :  { %10394 = vmatprep.mubr.msk.bf16.mxu1 %vm11436_vm0, %v11435_v0  ;;  %v106_v39 = vadd.f32 %v9488_v33, %v105_v36  ;;  %v9490_v40 = vld [vmem:[%s9443_s8 + $0x38] sm:$0x1]  ;;  %s9477_s8 = scalar_lea.vmem [#allocation7], %s9523_s6 }
0x2432   :  { %107 = vst.msk [vmem:[#allocation3 + $0x1] sm:$0x1] %vm43_vm1, %v106_v39 }
0x2434   :  { %v3015_v10 = vpop.f32.mrb[96].mxu0 }
0x2435   :  { %v3021_v8 = vmul.f32 0.35355338, %v3015_v10  ;;  %v10390_v50 = vpop.f32.mrb[97].mxu0  ;;  %v113_v10 = vadd.f32 %v9490_v40, %v112_v37  ;;  %v9588_v37 = vld [vmem:[#allocation7 + $0x240] ss:$0 sm:$0xff]  ;;  %v3384_v40 = vld [vmem:[#allocation7 + $0x268] sm:$0xff] }
0x2436   :  { %v3018_v51 = vpop.f32.mrb[98].mxu0  ;;  %v126_v50 = vld [vmem:[#allocation7 + $0x7c] sm:$0x1] }
0x2437   :  { %v10391_v52 = vpop.f32.mrb[99].mxu0  ;;  %v3022_v53 = vsel %vm334_vm3, %v3021_v8, -inf  ;;  %v9494_v51 = vld [vmem:[%s9447_s10 + $0x38] sm:$0x1]  ;;  %114 = vst.msk [vmem:[#allocation3 + $0x2] sm:$0x1] %vm43_vm1, %v113_v10 }
0x2438   :  { %3023 = vmax.xlane.f32.xlu1 %v3022_v53  ;;  %v9496_v52 = vld [vmem:[%s9449_s0 + $0x38] sm:$0x1]  ;;  %v133_v53 = vld [vmem:[#allocation7 + $0x7d] sm:$0x1] }
0x243c   :  { %3137 = vadd.xlane.f32.xlu1 %v3136_v55  ;;  %v134_v55 = vadd.f32 %v9496_v52, %v133_v53  ;;  %v3387_v52 = vld [vmem:[#allocation7 + $0x280] sm:$0xff] }
0x243e   :  { %135 = vst.msk [vmem:[#allocation3 + $0x5] sm:$0x1] %vm43_vm1, %v134_v55  ;;  %v3238_v55 = vld [vmem:[#allocation7 + $0x210] sm:$0xff] }
0x24c5   :  { %v3024_v54 = vpop.xlane.xlu1 %3023 }
0x24c6   :  { %v3025_v57 = vsub.f32 %v3021_v8, %v3024_v54  ;;  %v140_v54 = vld [vmem:[#allocation7 + $0x7e] sm:$0x1] }
0x24c8   :  { %v3026_v58 = vmul.f32 1.442695, %v3025_v57  ;;  %v147_v57 = vld [vmem:[#allocation7 + $0x7f] sm:$0x1] }
0x24c9   :  { %v3138_v12 = vpop.xlane.xlu1 %3137 }
0x24ca   :  { %11184 = vpow2.f32 %v3026_v58  ;;  %v3142_v13 = vmul.f32 0.03125, %v3138_v12  ;;  %v9498_v58 = vld [vmem:[%s9451_s1 + $0x38] sm:$0x1] }
0x24cc   :  { %v12022_v16 = vsub.f32 %v3134_v62, %v3142_v13  ;;  %v127_v62 = vadd.f32 %v9494_v51, %v126_v50  ;;  %v3237_v13 = vld [vmem:[#allocation7 + $0x208] sm:$0xff]  ;;  %v3386_v51 = vld [vmem:[#allocation7 + $0x278] sm:$0xff] }
0x24ce   :  { %v3146_v20 = vmul.f32 %v12022_v16, %v12022_v16  ;;  %128 = vst.msk [vmem:[#allocation3 + $0x4] sm:$0x1] %vm43_vm1, %v127_v62 }
0x24d0   :  { %v3148_v21 = vsel %vm279_vm2, %v3146_v20, 0.0  ;;  %v9522_v20 = vld [vmem:[%s9475_s7 + $0x38] sm:$0x1] }
0x24d4   :  { %v11185_v59 = vpop.eup %11184 }
0x24d5   :  { %v3028_v38 = vsel %vm334_vm3, %v11185_v59, 0.0 }
0x24d6   :  { %3029 = vadd.xlane.f32.xlu0 %v3028_v38  ;;  %v9500_v38 = vld [vmem:[%s9453_s21 + $0x38] sm:$0x1] }
0x24ec   :  { %3034 = vrot.lane.b32.xlu0 %v11902_v49, %s11447_s20 }
0x2502   :  { %v2964_v41 = vpop.f32.mrb[96].mxu1 }
0x2503   :  { %v2970_v60 = vadd.f32 %v2964_v41, %v11981_v14  ;;  %v10384_v61 = vpop.f32.mrb[97].mxu1  ;;  %v9510_v41 = vld [vmem:[%s9463_s22 + $0x38] sm:$0x1] }
0x2504   :  { %v2967_v63 = vpop.f32.mrb[98].mxu1  ;;  %v148_v61 = vadd.f32 %v9500_v38, %v147_v57 }
0x2505   :  { %v10385_v2 = vpop.f32.mrb[99].mxu1 }
0x2506   :  { %v9512_v2 = vld [vmem:[%s9465_s23 + $0x38] sm:$0x1]  ;;  %149 = vst.msk [vmem:[#allocation3 + $0x7] sm:$0x1] %vm43_vm1, %v148_v61 }
0x2563   :  { %v3030_v3 = vpop.xlane.xlu0 %3029 }
0x2564   :  { %11186 = vrcp.f32 %v3030_v3  ;;  %v218_v3 = vld [vmem:[#allocation7 + $0x79] sm:$0x1] }
0x2567   :  { %v3035_v4 = vpop.permute.xlu0 %3034 }
0x2568   :  { %v3040_v5 = vsel %vm399_vm4, %v3035_v4, 0  ;;  %v219_v4 = vadd.f32 %v9512_v2, %v218_v3 }
0x2569   :  { %10393 = vmatpush3.bf16.msra.mxu1 %v3040_v5  ;;  %v9514_v5 = vld [vmem:[%s9467_s24 + $0x38] sm:$0x1] }
0x256a   :  { %10404 = vmatprep.subr.bf16.mxu1 %v11435_v0  ;;  %220 = vst.msk [vmem:[#allocation3 + $0x9] sm:$0x1] %vm43_vm1, %v219_v4 }
0x256e   :  { %v11187_v43 = vpop.eup %11186 }
0x256f   :  { %v3032_v45 = vmul.f32 %v11187_v43, %v11185_v59  ;;  %v141_v59 = vadd.f32 %v9498_v58, %v140_v54  ;;  %v225_v43 = vld [vmem:[#allocation7 + $0x7a] sm:$0x1]  ;;  %v3240_v58 = vld [vmem:[#allocation7 + $0x220] sm:$0xff] }
0x2570   :  { %v3239_v54 = vld [vmem:[#allocation7 + $0x218] sm:$0xff] }
0x2571   :  { %v3033_v6 = vpack.c.bf16 %v3032_v45, %v3032_v45  ;;  %142 = vst.msk [vmem:[#allocation3 + $0x6] sm:$0x1] %vm43_vm1, %v141_v59  ;;  %v9516_v45 = vld [vmem:[%s9469_s25 + $0x38] sm:$0x1]  ;;  %v3244_v57 = vpack.c.bf16 %v3239_v54, %v3238_v55  ;;  %v3241_v59 = vld [vmem:[#allocation7 + $0x228] sm:$0xff] }
0x2572   :  { %v3245_v38 = vpack.c.bf16 %v3241_v59, %v3240_v58 }
0x2573   :  { %10395 = vmatmul.mubr.msk.bf16.vlgmr.msra.gmra.mrb[100].mxu1 %vm334_vm3, %v3033_v6  ;;  %v226_v6 = vadd.f32 %v9514_v5, %v225_v43 }
0x2574   :  { %10408 = vmatprep.mubr.msk.bf16.mxu1 %vm11436_vm0, %v11435_v0 }
0x2575   :  { %227 = vst.msk [vmem:[#allocation3 + $0xa] sm:$0x1] %vm43_vm1, %v226_v6 }
0x2646   :  { %v3076_v49 = vpop.f32.mrb[100].mxu1 }
0x2647   :  { %v3082_v7 = vpack.c.bf16 %v3076_v49, %v3076_v49  ;;  %v10396_v48 = vpop.f32.mrb[101].mxu1  ;;  %v232_v49 = vld [vmem:[#allocation7 + $0x7b] sm:$0x1] }
0x2648   :  { %v3079_v9 = vpop.f32.mrb[102].mxu1  ;;  %v3234_v48 = vld [vmem:[#allocation7 + $0x1f0] sm:$0xff] }
0x2649   :  { %v10397_v11 = vpop.f32.mrb[103].mxu1  ;;  %10401 = vmatmul.mubr.msk.bf16.vlgmr.msra.gmra.mrb[100].mxu0 %vm334_vm3, %v3082_v7  ;;  %v233_v7 = vadd.f32 %v9516_v45, %v232_v49  ;;  %v3235_v9 = vld [vmem:[#allocation7 + $0x1f8] sm:$0xff]  ;;  %v9597_v45 = vld [vmem:[#allocation7 + $0x288] ss:$0 sm:$0xff] }
0x264a   :  { %10420 = vmatprep.mubr.msk.bf16.mxu0 %vm11436_vm0, %v11435_v0  ;;  %v3236_v11 = vld [vmem:[#allocation7 + $0x200] sm:$0xff]  ;;  %v3242_v12 = vpack.c.bf16 %v3235_v9, %v3234_v48 }
0x264b   :  { %234 = vst.msk [vmem:[#allocation3 + $0xb] sm:$0x1] %vm43_vm1, %v233_v7 }
0x264c   :  { %10413 = vmatpush3.bf16.msra.mxu0 %v3242_v12 }
0x264d   :  { %10414 = vmatprep.subr.bf16.mxu0 %v11435_v0 }
0x271c   :  { %v3120_v14 = vpop.f32.mrb[100].mxu0 }
0x271d   :  { %v3126_v46 = vadd.f32 %v3120_v14, %v2970_v60  ;;  %v10402_v15 = vpop.f32.mrb[101].mxu0  ;;  %v211_v60 = vld [vmem:[#allocation7 + $0x78] sm:$0x1]  ;;  %v239_v14 = vld [vmem:[#allocation7 + $0x7c] sm:$0x1] }
0x271e   :  { %v3123_v47 = vpop.f32.mrb[102].mxu0  ;;  %v212_v63 = vadd.f32 %v9510_v41, %v211_v60  ;;  %v253_v15 = vld [vmem:[#allocation7 + $0x7e] sm:$0x1]  ;;  %v9589_v41 = vld [vmem:[#allocation7 + $0x1e8] ss:$0 sm:$0xff] }
0x271f   :  { %v3133_v17 = vadd.f32 %v9586_v42, %v3126_v46  ;;  %v10403_v18 = vpop.f32.mrb[103].mxu0  ;;  %v9492_v42 = vld [vmem:[%s9445_s9 + $0x38] sm:$0x1]  ;;  %v246_v46 = vld [vmem:[#allocation7 + $0x7d] sm:$0x1]  ;;  %v3243_v47 = vpack.c.bf16 %v3237_v13, %v3236_v11 }
0x2720   :  { %v120_v8 = vadd.f32 %v9492_v42, %v119_v44  ;;  %213 = vst.msk [vmem:[#allocation3 + $0x8] sm:$0x1] %vm43_vm1, %v212_v63  ;;  %v260_v18 = vld [vmem:[#allocation7 + $0x7f] sm:$0x1]  ;;  %v3385_v42 = vld [vmem:[#allocation7 + $0x270] sm:$0xff] }
0x2721   :  { %v3135_v19 = vadd.f32 %v3133_v17, %v11795_v1  ;;  %v3176_v1 = vld [vmem:[#allocation7 + $0x1c8] sm:$0xff]  ;;  %v9518_v17 = vld [vmem:[%s9471_s29 + $0x38] sm:$0x1]  ;;  %10415 = vmatpush3.bf16.msra.mxu0 %v3243_v47 }
0x2722   :  { %v3180_v27 = vpack.c.bf16 %v3177_v26, %v3176_v1  ;;  %121 = vst.msk [vmem:[#allocation3 + $0x3] sm:$0x1] %vm43_vm1, %v120_v8  ;;  %10416 = vmatprep.subr.bf16.mxu0 %v11435_v0  ;;  %v3388_v8 = vpack.c.bf16 %v3385_v42, %v3384_v40 }
0x2723   :  { %v3139_v31 = vsel %vm279_vm2, %v3135_v19, 0.0 }
0x2724   :  { %3140 = vadd.xlane.f32.xlu1 %v3139_v31  ;;  %10405 = vmatpush3.bf16.msra.mxu1 %v3180_v27  ;;  %v9520_v31 = vld [vmem:[%s9473_s5 + $0x38] sm:$0x1] }
0x2725   :  { %10406 = vmatprep.subr.bf16.mxu1 %v11435_v0  ;;  %10417 = vmatpush3.bf16.msra.mxu0 %v3244_v57 }
0x2726   :  { %10418 = vmatprep.subr.bf16.mxu0 %v11435_v0 }
0x2728   :  { %3149 = vadd.xlane.f32.xlu1 %v3148_v21  ;;  %10407 = vmatpush3.bf16.msra.mxu1 %v3181_v30  ;;  %v247_v21 = vadd.f32 %v9520_v31, %v246_v46 }
0x2729   :  { %10424 = vmatprep.subr.bf16.mxu1 %v11435_v0  ;;  %10419 = vmatpush3.bf16.msra.mxu0 %v3245_v38 }
0x272a   :  { %248 = vst.msk [vmem:[#allocation3 + $0xd] sm:$0x1] %vm43_vm1, %v247_v21  ;;  %10438 = vmatprep.subr.bf16.mxu0 %v11435_v0  ;;  %v3378_v21 = vlaneseq }
0x27b1   :  { %v3141_v34 = vpop.xlane.xlu1 %3140 }
0x27b2   :  { %v3143_v22 = vmul.f32 0.03125, %v3141_v34  ;;  %v254_v34 = vadd.f32 %v9522_v20, %v253_v15 }
0x27b4   :  { %v12029_v23 = vsub.f32 %v3135_v19, %v3143_v22  ;;  %v240_v19 = vadd.f32 %v9518_v17, %v239_v14  ;;  %v9524_v22 = vld [vmem:[%s9477_s8 + $0x38] sm:$0x1]  ;;  %255 = vst.msk [vmem:[#allocation3 + $0xe] sm:$0x1] %vm43_vm1, %v254_v34  ;;  %v3379_v34 = vshrl.u32 %v3378_v21, 7 }
0x27b6   :  { %v3147_v24 = vmul.f32 %v12029_v23, %v12029_v23  ;;  %241 = vst.msk [vmem:[#allocation3 + $0xc] sm:$0x1] %vm43_vm1, %v240_v19 }
0x27b8   :  { %v3151_v25 = vsel %vm279_vm2, %v3147_v24, 0.0  ;;  %v261_v24 = vadd.f32 %v9524_v22, %v260_v18  ;;  %v3381_v22 = vand.u32 127, %v3378_v21 }
0x27b9   :  { %3152 = vadd.xlane.f32.xlu1 %v3151_v25  ;;  %v3150_v25 = vpop.xlane.xlu1 %3149 }
0x27ba   :  { %262 = vst.msk [vmem:[#allocation3 + $0xf] sm:$0x1] %vm43_vm1, %v261_v24  ;;  %v3154_v1 = vmul.f32 0.03125, %v3150_v25  ;;  %vm3382_vm6 = vcmp.ge.s32.totalorder %v3379_v34, %v3381_v22  ;;  %v11448_v25 = vmov -1e+30  }
0x27bc   :  { %v3156_v26 = vadd.f32 1e-05, %v3154_v1  ;;  %v12136_v1 = vsel %vm3382_vm6, 0.0, %v11448_v25 }
0x27be   :  { %11188 = vrsqrt.f32 %v3156_v26 }
0x27c1   :  { %v12097_v53 = vld [vmem:[#allocation3 + $0x8] sm:$0xff] }
0x27c8   :  { %v11189_v30 = vpop.eup %11188 }
0x27c9   :  { %v3160_v32 = vmul.f32 %v11189_v30, %v12022_v16  ;;  %v3389_v16 = vpack.c.bf16 %v3387_v52, %v3386_v51 }
0x27cb   :  { %v3167_v35 = vmul.f32 %v9587_v56, %v3160_v32 }
0x27cd   :  { %v12086_v44 = vadd.f32 %v9588_v37, %v3167_v35 }
0x2846   :  { %v3153_v27 = vpop.xlane.xlu1 %3152 }
0x2847   :  { %v3155_v28 = vmul.f32 0.03125, %v3153_v27 }
0x2849   :  { %v3157_v29 = vadd.f32 1e-05, %v3155_v28 }
0x284b   :  { %11190 = vrsqrt.f32 %v3157_v29 }
0x2855   :  { %v11191_v33 = vpop.eup %11190 }
0x2856   :  { %v3161_v36 = vmul.f32 %v11191_v33, %v12029_v23  ;;  %v12095_v23 = vld [vmem:[#allocation3] sm:$0xff] }
0x2857   :  { %v3390_v62 = vpack.c.bf16 %v12097_v53, %v12095_v23 }
0x2858   :  { %v3168_v39 = vmul.f32 %v9587_v56, %v3161_v36 }
0x285a   :  { %v12088_v10 = vadd.f32 %v9588_v37, %v3168_v39 }
0x285c   :  { %v3182_v50 = vpack.c.bf16 %v12088_v10, %v12086_v44 }
0x285e   :  { %10409 = vmatmul.mubr.msk.bf16.vlgmr.msra.gmra.mrb[104].mxu1 %vm279_vm2, %v3182_v50 }
0x285f   :  { %10425 = vmatpush3.bf16.msra.mxu1 %v3388_v8  ;;  %10428 = vmatprep.mubr.msk.bf16.mxu1 %vm11436_vm0, %v11435_v0 }
0x2860   :  { %10426 = vmatprep.subr.bf16.mxu1 %v11435_v0 }
0x2863   :  { %10427 = vmatpush3.bf16.msra.mxu1 %v3389_v16 }
0x2864   :  { %10432 = vmatprep.subr.bf16.mxu1 %v11435_v0 }
0x2866   :  { %10429 = vmatmul.mubr.msk.bf16.vlgmr.msra.gmra.mrb[108].mxu1 %vm279_vm2, %v3390_v62 }
0x2867   :  { %10434 = vmatprep.mubr.msk.bf16.mxu1 %vm11436_vm0, %v11435_v0 }
0x2931   :  { %v3225_v60 = vpop.f32.mrb[104].mxu1 }
0x2932   :  { %v3226_v61 = vadd.f32 %v9589_v41, %v3225_v60  ;;  %v10410_v63 = vpop.f32.mrb[105].mxu1 }
0x2933   :  { %v3228_v2 = vpop.f32.mrb[106].mxu1 }
0x2934   :  { %v3229_v3 = vadd.f32 %v9589_v41, %v3228_v2  ;;  %v10411_v4 = vpop.f32.mrb[107].mxu1  ;;  %v3232_v5 = vmax.f32 %v3226_v61, 0.0 }
0x2936   :  { %v3233_v43 = vmax.f32 %v3229_v3, 0.0 }
0x2938   :  { %v3246_v6 = vpack.c.bf16 %v3233_v43, %v3232_v5 }
0x2939   :  { %v3433_v49 = vpop.f32.mrb[108].mxu1 }
0x293a   :  { %v3434_v7 = vadd.f32 %v9597_v45, %v3433_v49  ;;  %10421 = vmatmul.mubr.msk.bf16.vlgmr.msra.gmra.mrb[104].mxu0 %vm1718_vm5, %v3246_v6  ;;  %v10430_v48 = vpop.f32.mrb[109].mxu1  ;;  %v3441_v6 = vld [vmem:[#allocation7 + $0x298] sm:$0xff] }
0x293b   :  { %v3436_v9 = vpop.f32.mrb[110].mxu1  ;;  %10440 = vmatprep.mubr.msk.bf16.mxu0 %vm11436_vm0, %v11435_v0 }
0x293c   :  { %v12111_v11 = vpack.c.bf16 %v3434_v7, %v3434_v7  ;;  %v12113_v12 = vadd.f32 %v9597_v45, %v3436_v9  ;;  %v10431_v13 = vpop.f32.mrb[111].mxu1  ;;  %v3440_v45 = vld [vmem:[#allocation7 + $0x290] sm:$0xff] }
0x293d   :  { %v3444_v49 = vpack.c.bf16 %v3441_v6, %v3440_v45 }
0x293e   :  { %3561 = vrot.lane.b32.xlu0 %v12111_v11, %s11439_s12  ;;  %3448 = vrot.lane.b32.xlu1 %v12111_v11, %s11438_s11 }
0x293f   :  { %v12163_v7 = vsel %vm399_vm4, %v3444_v49, 0  ;;  %v3673_v48 = vrot.slane %v3444_v49, 4 }
0x2941   :  { %v12167_v9 = vsel %vm399_vm4, %v3673_v48, 0 }
0x2942   :  { %3559 = vrot.lane.b32.xlu0 %v12111_v11, %s11437_s2 }
0x29b0   :  { %v3449_v14 = vpop.permute.xlu1 %3448  ;;  %v3562_v15 = vpop.permute.xlu0 %3561 }
0x29b1   :  { %v3454_v46 = vsel %vm334_vm3, %v3449_v14, 0  ;;  %v3567_v47 = vsel %vm334_vm3, %v3562_v15, 0 }
0x29b2   :  { %10433 = vmatpush3.bf16.xpose.msra.mxu1 %v3454_v46 }
0x29b3   :  { %10444 = vmatprep.subr.bf16.mxu1 %v11435_v0 }
0x29b4   :  { %v3560_v17 = vpop.permute.xlu0 %3559 }
0x29b9   :  { %10435 = vmatmul.mubr.msk.bf16.vlgmr.msra.gmra.mrb[112].mxu1 %vm334_vm3, %v12111_v11 }
0x29ba   :  { %10445 = vmatpush3.bf16.xpose.msra.mxu1 %v3567_v47  ;;  %10446 = vmatprep.mubr.msk.bf16.mxu1 %vm11436_vm0, %v11435_v0 }
0x29bb   :  { %10456 = vmatprep.subr.bf16.mxu1 %v11435_v0 }
0x29c1   :  { %10447 = vmatmul.mubr.msk.bf16.vlgmr.msra.gmra.mrb[116].mxu1 %vm334_vm3, %v3560_v17 }
0x29c2   :  { %10458 = vmatprep.mubr.msk.bf16.mxu1 %vm11436_vm0, %v11435_v0  ;;  %10457 = vmatpush3.bf16.msra.mxu1 %v12167_v9 }
0x29c3   :  { %10468 = vmatprep.subr.bf16.mxu1 %v11435_v0 }
0x2a0d   :  { %v12132_v18 = vpop.f32.mrb[104].mxu0 }
0x2a0e   :  { %v10422_v19 = vpop.f32.mrb[105].mxu0 }
0x2a0f   :  { %v12134_v31 = vpop.f32.mrb[106].mxu0 }
0x2a10   :  { %v10423_v20 = vpop.f32.mrb[107].mxu0 }
0x2a8c   :  { %v3490_v24 = vpop.f32.mrb[112].mxu1 }
0x2a8d   :  { %v3496_v26 = vmul.f32 0.35355338, %v3490_v24  ;;  %v10436_v27 = vpop.f32.mrb[113].mxu1 }
0x2a8e   :  { %v3493_v28 = vpop.f32.mrb[114].mxu1 }
0x2a8f   :  { %v10437_v29 = vpop.f32.mrb[115].mxu1  ;;  %v3497_v30 = vadd.f32 %v3496_v26, %v12136_v1 }
0x2a91   :  { %v3498_v32 = vsel %vm334_vm3, %v3497_v30, -inf }
0x2a92   :  { %3499 = vmax.xlane.f32.xlu0 %v3498_v32 }
0x2a94   :  { %v3603_v56 = vpop.f32.mrb[116].mxu1 }
0x2a95   :  { %v3609_v33 = vmul.f32 0.35355338, %v3603_v56  ;;  %v10448_v35 = vpop.f32.mrb[117].mxu1 }
0x2a96   :  { %v3606_v36 = vpop.f32.mrb[118].mxu1 }
0x2a97   :  { %v10449_v37 = vpop.f32.mrb[119].mxu1  ;;  %v3610_v39 = vadd.f32 %v3609_v33, %v12136_v1 }
0x2a99   :  { %v3611_v40 = vsel %vm334_vm3, %v3610_v39, -inf }
0x2a9a   :  { %3612 = vmax.xlane.f32.xlu1 %v3611_v40 }
0x2aab   :  { %3623 = vrot.lane.b32.xlu1 %v12111_v11, %s11441_s14 }
0x2aaf   :  { %3768 = vrot.lane.b32.xlu1 %v12111_v11, %s11443_s16 }
0x2b1f   :  { %v3500_v42 = vpop.xlane.xlu0 %3499 }
0x2b20   :  { %v3501_v8 = vsub.f32 %v3497_v30, %v3500_v42 }
0x2b22   :  { %v3502_v50 = vmul.f32 1.442695, %v3501_v8 }
0x2b24   :  { %11192 = vpow2.f32 %v3502_v50 }
0x2b27   :  { %v3613_v51 = vpop.xlane.xlu1 %3612 }
0x2b28   :  { %v3614_v52 = vsub.f32 %v3610_v39, %v3613_v51 }
0x2b2a   :  { %v3615_v16 = vmul.f32 1.442695, %v3614_v52 }
0x2b2b   :  { %v3624_v63 = vpop.permute.xlu1 %3623 }
0x2b2c   :  { %11194 = vpow2.f32 %v3615_v16  ;;  %v3629_v3 = vsel %vm399_vm4, %v3624_v63, 0 }
0x2b2e   :  { %v11193_v62 = vpop.eup %11192 }
0x2b2f   :  { %v3504_v55 = vsel %vm334_vm3, %v11193_v62, 0.0  ;;  %v3769_v17 = vpop.permute.xlu1 %3768 }
0x2b30   :  { %3505 = vadd.xlane.f32.xlu0 %v3504_v55  ;;  %v3774_v22 = vsel %vm334_vm3, %v3769_v17, 0 }
0x2b36   :  { %v11195_v54 = vpop.eup %11194 }
0x2b37   :  { %v3617_v57 = vsel %vm334_vm3, %v11195_v54, 0.0 }
0x2b38   :  { %3618 = vadd.xlane.f32.xlu0 %v3617_v57 }
0x2b4e   :  { %3510 = vrot.lane.b32.xlu0 %v12111_v11, %s11440_s13 }
0x2b52   :  { %3766 = vrot.lane.b32.xlu0 %v12111_v11, %s11442_s15 }
0x2bbd   :  { %v3506_v58 = vpop.xlane.xlu0 %3505 }
0x2bbe   :  { %11196 = vrcp.f32 %v3506_v58 }
0x2bc5   :  { %v3619_v59 = vpop.xlane.xlu0 %3618 }
0x2bc6   :  { %11198 = vrcp.f32 %v3619_v59 }
0x2bc8   :  { %v11197_v38 = vpop.eup %11196 }
0x2bc9   :  { %v3511_v41 = vpop.permute.xlu0 %3510  ;;  %v3508_v60 = vmul.f32 %v11197_v38, %v11193_v62 }
0x2bca   :  { %v3516_v61 = vsel %vm399_vm4, %v3511_v41, 0 }
0x2bcb   :  { %10439 = vmatpush3.bf16.msra.mxu0 %v3516_v61  ;;  %v3509_v2 = vpack.c.bf16 %v3508_v60, %v3508_v60 }
0x2bcc   :  { %10450 = vmatprep.subr.bf16.mxu0 %v11435_v0 }
0x2bcd   :  { %v3767_v25 = vpop.permute.xlu0 %3766 }
0x2bce   :  { %10441 = vmatmul.mubr.msk.bf16.vlgmr.msra.gmra.mrb[108].mxu0 %vm334_vm3, %v3509_v2  ;;  %v3442_v2 = vld [vmem:[#allocation7 + $0x2a0] sm:$0xff] }
0x2bcf   :  { %10451 = vmatpush3.bf16.msra.mxu0 %v3629_v3  ;;  %10452 = vmatprep.mubr.msk.bf16.mxu0 %vm11436_vm0, %v11435_v0  ;;  %v3443_v3 = vld [vmem:[#allocation7 + $0x2a8] sm:$0xff] }
0x2bd0   :  { %v11199_v4 = vpop.eup %11198  ;;  %10462 = vmatprep.subr.bf16.mxu0 %v11435_v0 }
0x2bd1   :  { %v3621_v5 = vmul.f32 %v11199_v4, %v11195_v54  ;;  %v12204_v4 = vpack.c.bf16 %v3443_v3, %v3442_v2 }
0x2bd3   :  { %v3622_v43 = vpack.c.bf16 %v3621_v5, %v3621_v5  ;;  %v12208_v5 = vsel %vm399_vm4, %v12204_v4, 0 }
0x2bd6   :  { %10453 = vmatmul.mubr.msk.bf16.vlgmr.msra.gmra.mrb[112].mxu0 %vm334_vm3, %v3622_v43 }
0x2bd7   :  { %10464 = vmatprep.mubr.msk.bf16.mxu0 %vm11436_vm0, %v11435_v0  ;;  %10463 = vmatpush3.bf16.msra.mxu0 %v12163_v7 }
0x2bd8   :  { %10474 = vmatprep.subr.bf16.mxu0 %v11435_v0 }
0x2ca1   :  { %v3552_v13 = vpop.f32.mrb[108].mxu0 }
0x2ca2   :  { %v3558_v14 = vpack.c.bf16 %v3552_v13, %v3552_v13  ;;  %v10442_v46 = vpop.f32.mrb[109].mxu0 }
0x2ca3   :  { %v3555_v15 = vpop.f32.mrb[110].mxu0 }
0x2ca4   :  { %v10443_v47 = vpop.f32.mrb[111].mxu0  ;;  %10465 = vmatmul.mubr.msk.bf16.vlgmr.msra.gmra.mrb[116].mxu0 %vm334_vm3, %v3558_v14 }
0x2ca5   :  { %10476 = vmatprep.mubr.msk.bf16.mxu0 %vm11436_vm0, %v11435_v0 }
0x2ca9   :  { %v3665_v19 = vpop.f32.mrb[112].mxu0 }
0x2caa   :  { %v3671_v20 = vpack.c.bf16 %v3665_v19, %v3665_v19  ;;  %v10454_v21 = vpop.f32.mrb[113].mxu0 }
0x2cab   :  { %v3668_v34 = vpop.f32.mrb[114].mxu0 }
0x2cac   :  { %v10455_v24 = vpop.f32.mrb[115].mxu0  ;;  %10459 = vmatmul.mubr.msk.bf16.vlgmr.msra.gmra.mrb[120].mxu1 %vm334_vm3, %v3671_v20  ;;  %v12221_v20 = vpack.c.bf16 %v12113_v12, %v12113_v12 }
0x2cad   :  { %10469 = vmatpush3.bf16.xpose.msra.mxu1 %v3774_v22  ;;  %10470 = vmatprep.mubr.msk.bf16.mxu1 %vm11436_vm0, %v11435_v0 }
0x2cae   :  { %10480 = vmatprep.subr.bf16.mxu1 %v11435_v0 }
0x2cb4   :  { %10471 = vmatmul.mubr.msk.bf16.vlgmr.msra.gmra.mrb[124].mxu1 %vm334_vm3, %v3767_v25 }
0x2cb5   :  { %10482 = vmatprep.mubr.msk.bf16.mxu1 %vm11436_vm0, %v11435_v0  ;;  %10481 = vmatpush3.bf16.msra.mxu1 %v12208_v5 }
0x2cb6   :  { %10492 = vmatprep.subr.bf16.mxu1 %v11435_v0 }
0x2d77   :  { %v3760_v26 = vpop.f32.mrb[116].mxu0 }
0x2d78   :  { %v10466_v27 = vpop.f32.mrb[117].mxu0 }
0x2d79   :  { %v3763_v28 = vpop.f32.mrb[118].mxu0 }
0x2d7a   :  { %v10467_v29 = vpop.f32.mrb[119].mxu0 }
0x2d7f   :  { %v3714_v30 = vpop.f32.mrb[120].mxu1 }
0x2d80   :  { %v12183_v32 = vadd.f32 %v3760_v26, %v3714_v30  ;;  %v10460_v56 = vpop.f32.mrb[121].mxu1 }
0x2d81   :  { %v3717_v33 = vpop.f32.mrb[122].mxu1 }
0x2d82   :  { %v10461_v35 = vpop.f32.mrb[123].mxu1 }
0x2d87   :  { %v3810_v36 = vpop.f32.mrb[124].mxu1 }
0x2d88   :  { %v3816_v37 = vmul.f32 0.35355338, %v3810_v36  ;;  %v10472_v39 = vpop.f32.mrb[125].mxu1 }
0x2d89   :  { %v3813_v40 = vpop.f32.mrb[126].mxu1 }
0x2d8a   :  { %v3817_v42 = vadd.f32 %v3816_v37, %v12136_v1  ;;  %v10473_v8 = vpop.f32.mrb[127].mxu1 }
0x2d8b   :  { %v4040_v8 = vrot.slane %v12204_v4, 4 }
0x2d8c   :  { %v3818_v50 = vsel %vm334_vm3, %v3817_v42, -inf }
0x2d8d   :  { %3819 = vmax.xlane.f32.xlu1 %v3818_v50  ;;  %v12253_v50 = vsel %vm399_vm4, %v4040_v8, 0 }
0x2d9e   :  { %3928 = vrot.lane.b32.xlu1 %v12111_v11, %s11444_s17 }
0x2da2   :  { %3926 = vrot.lane.b32.xlu1 %v12111_v11, %s11445_s18 }
0x2e1a   :  { %v3820_v51 = vpop.xlane.xlu1 %3819 }
0x2e1b   :  { %v3821_v52 = vsub.f32 %v3817_v42, %v3820_v51 }
0x2e1d   :  { %v3822_v16 = vmul.f32 1.442695, %v3821_v52 }
0x2e1e   :  { %v3929_v41 = vpop.permute.xlu1 %3928 }
0x2e1f   :  { %11200 = vpow2.f32 %v3822_v16  ;;  %v3934_v61 = vsel %vm334_vm3, %v3929_v41, 0 }
0x2e22   :  { %v3927_v63 = vpop.permute.xlu1 %3926 }
0x2e29   :  { %v11201_v62 = vpop.eup %11200 }
0x2e2a   :  { %v3824_v55 = vsel %vm334_vm3, %v11201_v62, 0.0 }
0x2e2b   :  { %3825 = vadd.xlane.f32.xlu0 %v3824_v55 }
0x2e41   :  { %3830 = vrot.lane.b32.xlu0 %v12111_v11, %s11446_s19 }
0x2eb8   :  { %v3826_v54 = vpop.xlane.xlu0 %3825 }
0x2eb9   :  { %11202 = vrcp.f32 %v3826_v54 }
0x2ebc   :  { %v3831_v57 = vpop.permute.xlu0 %3830 }
0x2ebd   :  { %v3836_v58 = vsel %vm399_vm4, %v3831_v57, 0 }
0x2ebe   :  { %10475 = vmatpush3.bf16.msra.mxu0 %v3836_v58 }
0x2ebf   :  { %10486 = vmatprep.subr.bf16.mxu0 %v11435_v0 }
0x2ec3   :  { %v11203_v59 = vpop.eup %11202 }
0x2ec4   :  { %v3828_v38 = vmul.f32 %v11203_v59, %v11201_v62 }
0x2ec6   :  { %v3829_v60 = vpack.c.bf16 %v3828_v38, %v3828_v38 }
0x2ec8   :  { %10477 = vmatmul.mubr.msk.bf16.vlgmr.msra.gmra.mrb[120].mxu0 %vm334_vm3, %v3829_v60 }
0x2ec9   :  { %10487 = vmatpush3.bf16.xpose.msra.mxu0 %v3934_v61  ;;  %10488 = vmatprep.mubr.msk.bf16.mxu0 %vm11436_vm0, %v11435_v0 }
0x2eca   :  { %10498 = vmatprep.subr.bf16.mxu0 %v11435_v0 }
0x2ed0   :  { %10489 = vmatmul.mubr.msk.bf16.vlgmr.msra.gmra.mrb[124].mxu0 %vm334_vm3, %v3927_v63 }
0x2ed1   :  { %10500 = vmatprep.mubr.msk.bf16.mxu0 %vm11436_vm0, %v11435_v0  ;;  %10499 = vmatpush3.bf16.msra.mxu0 %v12253_v50 }
0x2ed2   :  { %10510 = vmatprep.subr.bf16.mxu0 %v11435_v0 }
0x2f9b   :  { %v3872_v43 = vpop.f32.mrb[120].mxu0 }
0x2f9c   :  { %v3878_v45 = vpack.c.bf16 %v3872_v43, %v3872_v43  ;;  %v10478_v6 = vpop.f32.mrb[121].mxu0 }
0x2f9d   :  { %v3875_v49 = vpop.f32.mrb[122].mxu0 }
0x2f9e   :  { %v10479_v48 = vpop.f32.mrb[123].mxu0  ;;  %10483 = vmatmul.mubr.msk.bf16.vlgmr.msra.gmra.mrb[128].mxu1 %vm334_vm3, %v3878_v45 }
0x2f9f   :  { %10494 = vmatprep.mubr.msk.bf16.mxu1 %vm11436_vm0, %v11435_v0 }
0x2fa3   :  { %v3970_v13 = vpop.f32.mrb[124].mxu0 }
0x2fa4   :  { %v3976_v14 = vmul.f32 0.35355338, %v3970_v13  ;;  %v10490_v46 = vpop.f32.mrb[125].mxu0 }
0x2fa5   :  { %v3973_v15 = vpop.f32.mrb[126].mxu0 }
0x2fa6   :  { %v3977_v47 = vadd.f32 %v3976_v14, %v12136_v1  ;;  %v10491_v17 = vpop.f32.mrb[127].mxu0 }
0x2fa8   :  { %v3978_v19 = vsel %vm334_vm3, %v3977_v47, -inf }
0x2fa9   :  { %3979 = vmax.xlane.f32.xlu0 %v3978_v19 }
0x2fbf   :  { %3990 = vrot.lane.b32.xlu0 %v12111_v11, %s11447_s20 }
0x2fc3   :  { %4203 = vrot.lane.b32.xlu0 %v12221_v20, %s11439_s12 }
0x3036   :  { %v3980_v21 = vpop.xlane.xlu0 %3979 }
0x3037   :  { %v3981_v34 = vsub.f32 %v3977_v47, %v3980_v21 }
0x3039   :  { %v3982_v22 = vmul.f32 1.442695, %v3981_v34 }
0x303a   :  { %v3991_v24 = vpop.permute.xlu0 %3990 }
0x303b   :  { %11204 = vpow2.f32 %v3982_v22  ;;  %v3996_v25 = vsel %vm399_vm4, %v3991_v24, 0 }
0x303c   :  { %10493 = vmatpush3.bf16.msra.mxu1 %v3996_v25 }
0x303d   :  { %10504 = vmatprep.subr.bf16.mxu1 %v11435_v0 }
0x3045   :  { %v11205_v26 = vpop.eup %11204 }
0x3046   :  { %v3984_v11 = vsel %vm334_vm3, %v11205_v26, 0.0 }
0x3047   :  { %3985 = vadd.xlane.f32.xlu1 %v3984_v11 }
0x3058   :  { %4090 = vrot.lane.b32.xlu1 %v12221_v20, %s11438_s11 }
0x305c   :  { %4201 = vrot.lane.b32.xlu1 %v12221_v20, %s11437_s2 }
0x3071   :  { %v3919_v12 = vpop.f32.mrb[128].mxu1 }
0x3072   :  { %v12233_v27 = vadd.f32 %v3919_v12, %v12183_v32  ;;  %v10484_v28 = vpop.f32.mrb[129].mxu1  ;;  %v4204_v32 = vpop.permute.xlu0 %4203 }
0x3073   :  { %v3922_v29 = vpop.f32.mrb[130].mxu1  ;;  %v4209_v40 = vsel %vm334_vm3, %v4204_v32, 0 }
0x3074   :  { %v10485_v30 = vpop.f32.mrb[131].mxu1 }
0x30d4   :  { %v3986_v56 = vpop.xlane.xlu1 %3985 }
0x30d5   :  { %11206 = vrcp.f32 %v3986_v56 }
0x30d8   :  { %v4091_v36 = vpop.permute.xlu1 %4090 }
0x30d9   :  { %v4096_v39 = vsel %vm334_vm3, %v4091_v36, 0 }
0x30dc   :  { %v4202_v42 = vpop.permute.xlu1 %4201 }
0x30df   :  { %v11207_v33 = vpop.eup %11206 }
0x30e0   :  { %v3988_v35 = vmul.f32 %v11207_v33, %v11205_v26 }
0x30e2   :  { %v3989_v37 = vpack.c.bf16 %v3988_v35, %v3988_v35 }
0x30e4   :  { %10495 = vmatmul.mubr.msk.bf16.vlgmr.msra.gmra.mrb[132].mxu1 %vm334_vm3, %v3989_v37 }
0x30e5   :  { %10505 = vmatpush3.bf16.xpose.msra.mxu1 %v4096_v39  ;;  %10506 = vmatprep.mubr.msk.bf16.mxu1 %vm11436_vm0, %v11435_v0 }
0x30e6   :  { %10516 = vmatprep.subr.bf16.mxu1 %v11435_v0 }
0x30ec   :  { %10507 = vmatmul.mubr.msk.bf16.vlgmr.msra.gmra.mrb[136].mxu1 %vm334_vm3, %v12221_v20 }
0x30ed   :  { %10517 = vmatpush3.bf16.xpose.msra.mxu1 %v4209_v40  ;;  %10518 = vmatprep.mubr.msk.bf16.mxu1 %vm11436_vm0, %v11435_v0 }
0x30ee   :  { %10528 = vmatprep.subr.bf16.mxu1 %v11435_v0 }
0x30f4   :  { %10519 = vmatmul.mubr.msk.bf16.vlgmr.msra.gmra.mrb[140].mxu1 %vm334_vm3, %v4202_v42 }
0x30f5   :  { %10529 = vmatpush3.bf16.msra.mxu1 %v12167_v9  ;;  %10530 = vmatprep.mubr.msk.bf16.mxu1 %vm11436_vm0, %v11435_v0 }
0x30f6   :  { %10540 = vmatprep.subr.bf16.mxu1 %v11435_v0 }
0x31b7   :  { %v4032_v51 = vpop.f32.mrb[132].mxu1 }
0x31b8   :  { %v4038_v52 = vpack.c.bf16 %v4032_v51, %v4032_v51  ;;  %v10496_v16 = vpop.f32.mrb[133].mxu1 }
0x31b9   :  { %v4035_v62 = vpop.f32.mrb[134].mxu1 }
0x31ba   :  { %v10497_v55 = vpop.f32.mrb[135].mxu1  ;;  %10501 = vmatmul.mubr.msk.bf16.vlgmr.msra.gmra.mrb[128].mxu0 %vm334_vm3, %v4038_v52 }
0x31bb   :  { %10512 = vmatprep.mubr.msk.bf16.mxu0 %vm11436_vm0, %v11435_v0 }
0x31bf   :  { %v4132_v9 = vpop.f32.mrb[136].mxu1 }
0x31c0   :  { %v4138_v54 = vmul.f32 0.35355338, %v4132_v9  ;;  %v10508_v57 = vpop.f32.mrb[137].mxu1 }
0x31c1   :  { %v4135_v58 = vpop.f32.mrb[138].mxu1 }
0x31c2   :  { %v4139_v59 = vadd.f32 %v4138_v54, %v12136_v1  ;;  %v10509_v38 = vpop.f32.mrb[139].mxu1 }
0x31c4   :  { %v4140_v41 = vsel %vm334_vm3, %v4139_v59, -inf }
0x31c5   :  { %4141 = vmax.xlane.f32.xlu0 %v4140_v41 }
0x31c7   :  { %v4245_v60 = vpop.f32.mrb[140].mxu1 }
0x31c8   :  { %v4251_v61 = vmul.f32 0.35355338, %v4245_v60  ;;  %v10520_v63 = vpop.f32.mrb[141].mxu1 }
0x31c9   :  { %v4248_v2 = vpop.f32.mrb[142].mxu1 }
0x31ca   :  { %v4252_v3 = vadd.f32 %v4251_v61, %v12136_v1  ;;  %v10521_v4 = vpop.f32.mrb[143].mxu1 }
0x31cc   :  { %v4253_v43 = vsel %vm334_vm3, %v4252_v3, -inf }
0x31cd   :  { %4254 = vmax.xlane.f32.xlu1 %v4253_v43 }
0x31de   :  { %4152 = vrot.lane.b32.xlu1 %v12221_v20, %s11440_s13 }
0x31e2   :  { %4402 = vrot.lane.b32.xlu1 %v12221_v20, %s11443_s16 }
0x31e6   :  { %4400 = vrot.lane.b32.xlu1 %v12221_v20, %s11442_s15 }
0x3252   :  { %v4142_v45 = vpop.xlane.xlu0 %4141 }
0x3253   :  { %v4143_v6 = vsub.f32 %v4139_v59, %v4142_v45 }
0x3255   :  { %v4144_v49 = vmul.f32 1.442695, %v4143_v6 }
0x3257   :  { %11208 = vpow2.f32 %v4144_v49 }
0x325a   :  { %v4255_v48 = vpop.xlane.xlu1 %4254 }
0x325b   :  { %v4256_v13 = vsub.f32 %v4252_v3, %v4255_v48 }
0x325d   :  { %v4257_v14 = vmul.f32 1.442695, %v4256_v13 }
0x325e   :  { %v4153_v46 = vpop.permute.xlu1 %4152 }
0x325f   :  { %11210 = vpow2.f32 %v4257_v14  ;;  %v4158_v15 = vsel %vm399_vm4, %v4153_v46, 0 }
0x3260   :  { %10511 = vmatpush3.bf16.msra.mxu0 %v4158_v15 }
0x3261   :  { %v11209_v47 = vpop.eup %11208  ;;  %10522 = vmatprep.subr.bf16.mxu0 %v11435_v0 }
0x3262   :  { %v4146_v17 = vsel %vm334_vm3, %v11209_v47, 0.0  ;;  %v4403_v8 = vpop.permute.xlu1 %4402 }
0x3263   :  { %4147 = vadd.xlane.f32.xlu0 %v4146_v17  ;;  %v4408_v62 = vsel %vm334_vm3, %v4403_v8, 0 }
0x3266   :  { %v4401_v9 = vpop.permute.xlu1 %4400 }
0x3269   :  { %v11211_v19 = vpop.eup %11210 }
0x326a   :  { %v4259_v21 = vsel %vm334_vm3, %v11211_v19, 0.0 }
0x326b   :  { %4260 = vadd.xlane.f32.xlu0 %v4259_v21 }
0x3281   :  { %4265 = vrot.lane.b32.xlu0 %v12221_v20, %s11441_s14 }
0x328d   :  { %v4081_v34 = vpop.f32.mrb[128].mxu0 }
0x328e   :  { %v12277_v22 = vadd.f32 %v4081_v34, %v12233_v27  ;;  %v10502_v24 = vpop.f32.mrb[129].mxu0 }
0x328f   :  { %v4084_v25 = vpop.f32.mrb[130].mxu0 }
0x3290   :  { %v10503_v26 = vpop.f32.mrb[131].mxu0 }
0x32f0   :  { %v4148_v11 = vpop.xlane.xlu0 %4147 }
0x32f1   :  { %11212 = vrcp.f32 %v4148_v11 }
0x32f8   :  { %v4261_v12 = vpop.xlane.xlu0 %4260 }
0x32f9   :  { %11214 = vrcp.f32 %v4261_v12 }
0x32fb   :  { %v11213_v28 = vpop.eup %11212 }
0x32fc   :  { %v4150_v29 = vmul.f32 %v11213_v28, %v11209_v47  ;;  %v4266_v30 = vpop.permute.xlu0 %4265 }
0x32fd   :  { %v4271_v33 = vsel %vm399_vm4, %v4266_v30, 0 }
0x32fe   :  { %v4151_v56 = vpack.c.bf16 %v4150_v29, %v4150_v29 }
0x3300   :  { %10513 = vmatmul.mubr.msk.bf16.vlgmr.msra.gmra.mrb[132].mxu0 %vm334_vm3, %v4151_v56  ;;  %v9591_v56 = vld [vmem:[#allocation7 + $0x230] ss:$0 sm:$0xff] }
0x3301   :  { %10523 = vmatpush3.bf16.msra.mxu0 %v4271_v33  ;;  %10524 = vmatprep.mubr.msk.bf16.mxu0 %vm11436_vm0, %v11435_v0 }
0x3302   :  { %10534 = vmatprep.subr.bf16.mxu0 %v11435_v0 }
0x3303   :  { %v11215_v27 = vpop.eup %11214 }
0x3304   :  { %v4263_v35 = vmul.f32 %v11215_v27, %v11211_v19  ;;  %v3290_v27 = vadd.f32 %v9591_v56, %v12132_v18 }
0x3306   :  { %v4264_v36 = vpack.c.bf16 %v4263_v35, %v4263_v35 }
0x3308   :  { %10525 = vmatmul.mubr.msk.bf16.vlgmr.msra.gmra.mrb[136].mxu0 %vm334_vm3, %v4264_v36 }
0x3309   :  { %10535 = vmatpush3.bf16.msra.mxu0 %v12163_v7  ;;  %10536 = vmatprep.mubr.msk.bf16.mxu0 %vm11436_vm0, %v11435_v0 }
0x330a   :  { %10546 = vmatprep.subr.bf16.mxu0 %v11435_v0 }
0x33d3   :  { %v4194_v37 = vpop.f32.mrb[132].mxu0 }
0x33d4   :  { %v4200_v39 = vpack.c.bf16 %v4194_v37, %v4194_v37  ;;  %v10514_v32 = vpop.f32.mrb[133].mxu0 }
0x33d5   :  { %v4197_v40 = vpop.f32.mrb[134].mxu0  ;;  %v3296_v32 = vadd.f32 %v3290_v27, %v12086_v44 }
0x33d6   :  { %v10515_v42 = vpop.f32.mrb[135].mxu0  ;;  %10537 = vmatmul.mubr.msk.bf16.vlgmr.msra.gmra.mrb[140].mxu0 %vm334_vm3, %v4200_v39  ;;  %v3293_v40 = vadd.f32 %v9591_v56, %v12134_v31 }
0x33d7   :  { %10548 = vmatprep.mubr.msk.bf16.mxu0 %vm11436_vm0, %v11435_v0 }
0x33d8   :  { %v3297_v8 = vadd.f32 %v3293_v40, %v12088_v10 }
0x33da   :  { %v3301_v18 = vsel %vm279_vm2, %v3297_v8, 0.0 }
0x33db   :  { %v4307_v51 = vpop.f32.mrb[136].mxu0 }
0x33dc   :  { %v4313_v52 = vpack.c.bf16 %v4307_v51, %v4307_v51  ;;  %v10526_v16 = vpop.f32.mrb[137].mxu0  ;;  %v3298_v51 = vsel %vm279_vm2, %v3296_v32, 0.0 }
0x33dd   :  { %v4310_v7 = vpop.f32.mrb[138].mxu0 }
0x33de   :  { %v10527_v55 = vpop.f32.mrb[139].mxu0  ;;  %10531 = vmatmul.mubr.msk.bf16.vlgmr.msra.gmra.mrb[144].mxu1 %vm334_vm3, %v4313_v52 }
0x33df   :  { %10541 = vmatpush3.bf16.xpose.msra.mxu1 %v4408_v62  ;;  %10542 = vmatprep.mubr.msk.bf16.mxu1 %vm11436_vm0, %v11435_v0 }
0x33e0   :  { %10552 = vmatprep.subr.bf16.mxu1 %v11435_v0 }
0x33e6   :  { %10543 = vmatmul.mubr.msk.bf16.vlgmr.msra.gmra.mrb[148].mxu1 %vm334_vm3, %v4401_v9 }
0x33e7   :  { %10553 = vmatpush3.bf16.msra.mxu1 %v12208_v5  ;;  %10554 = vmatprep.mubr.msk.bf16.mxu1 %vm11436_vm0, %v11435_v0 }
0x33e8   :  { %10564 = vmatprep.subr.bf16.mxu1 %v11435_v0 }
0x34a9   :  { %v4394_v54 = vpop.f32.mrb[140].mxu0 }
0x34aa   :  { %v10538_v57 = vpop.f32.mrb[141].mxu0 }
0x34ab   :  { %v4397_v58 = vpop.f32.mrb[142].mxu0 }
0x34ac   :  { %v10539_v59 = vpop.f32.mrb[143].mxu0 }
0x34b1   :  { %v4351_v38 = vpop.f32.mrb[144].mxu1 }
0x34b2   :  { %v12302_v41 = vadd.f32 %v4394_v54, %v4351_v38  ;;  %v10532_v60 = vpop.f32.mrb[145].mxu1 }
0x34b3   :  { %v4354_v61 = vpop.f32.mrb[146].mxu1 }
0x34b4   :  { %v10533_v63 = vpop.f32.mrb[147].mxu1  ;;  %v9623_v61 = vld [vmem:[#allocation7 + $0x2b0] ss:$0 sm:$0xff] }
0x34b9   :  { %v4444_v2 = vpop.f32.mrb[148].mxu1 }
0x34ba   :  { %v4450_v3 = vmul.f32 0.35355338, %v4444_v2  ;;  %v10544_v4 = vpop.f32.mrb[149].mxu1 }
0x34bb   :  { %v4447_v43 = vpop.f32.mrb[150].mxu1  ;;  %v4719_v4 = vadd.f32 %v9623_v61, %v12277_v22 }
0x34bc   :  { %v4451_v5 = vadd.f32 %v4450_v3, %v12136_v1  ;;  %v10545_v45 = vpop.f32.mrb[151].mxu1 }
0x34bd   :  { %v4721_v45 = vadd.f32 %v4719_v4, %v12095_v23 }
0x34be   :  { %v4452_v6 = vsel %vm334_vm3, %v4451_v5, -inf }
0x34bf   :  { %4453 = vmax.xlane.f32.xlu0 %v4452_v6  ;;  %v4723_v6 = vsel %vm279_vm2, %v4721_v45, 0.0 }
0x34d5   :  { %4464 = vrot.lane.b32.xlu0 %v12221_v20, %s11446_s19 }
0x34d9   :  { %4557 = vrot.lane.b32.xlu0 %v12221_v20, %s11445_s18 }
0x354c   :  { %v4454_v49 = vpop.xlane.xlu0 %4453 }
0x354d   :  { %v4455_v48 = vsub.f32 %v4451_v5, %v4454_v49 }
0x354f   :  { %v4456_v13 = vmul.f32 1.442695, %v4455_v48 }
0x3550   :  { %v4465_v14 = vpop.permute.xlu0 %4464 }
0x3551   :  { %11216 = vpow2.f32 %v4456_v13  ;;  %v4470_v46 = vsel %vm399_vm4, %v4465_v14, 0 }
0x3552   :  { %10547 = vmatpush3.bf16.msra.mxu0 %v4470_v46 }
0x3553   :  { %10558 = vmatprep.subr.bf16.mxu0 %v11435_v0 }
0x3554   :  { %v4558_v26 = vpop.permute.xlu0 %4557 }
0x355b   :  { %v11217_v15 = vpop.eup %11216 }
0x355c   :  { %v4458_v47 = vsel %vm334_vm3, %v11217_v15, 0.0 }
0x355d   :  { %4459 = vadd.xlane.f32.xlu1 %v4458_v47  ;;  %v9593_v47 = vld [vmem:[#allocation7 + $0x248] ss:$0 sm:$0xff] }
0x356e   :  { %4559 = vrot.lane.b32.xlu1 %v12221_v20, %s11444_s17 }
0x35ea   :  { %v4460_v17 = vpop.xlane.xlu1 %4459 }
0x35eb   :  { %11218 = vrcp.f32 %v4460_v17 }
0x35ee   :  { %v4560_v34 = vpop.permute.xlu1 %4559 }
0x35ef   :  { %v4565_v25 = vsel %vm334_vm3, %v4560_v34, 0  ;;  %v9594_v34 = vld [vmem:[#allocation7 + $0x250] ss:$0 sm:$0xff] }
0x35f5   :  { %v11219_v19 = vpop.eup %11218 }
0x35f6   :  { %v4462_v21 = vmul.f32 %v11219_v19, %v11217_v15 }
0x35f8   :  { %v4463_v24 = vpack.c.bf16 %v4462_v21, %v4462_v21 }
0x35fa   :  { %10549 = vmatmul.mubr.msk.bf16.vlgmr.msra.gmra.mrb[144].mxu0 %vm334_vm3, %v4463_v24 }
0x35fb   :  { %10559 = vmatpush3.bf16.xpose.msra.mxu0 %v4565_v25  ;;  %10560 = vmatprep.mubr.msk.bf16.mxu0 %vm11436_vm0, %v11435_v0 }
0x35fc   :  { %10570 = vmatprep.subr.bf16.mxu0 %v11435_v0 }
0x3602   :  { %10561 = vmatmul.mubr.msk.bf16.vlgmr.msra.gmra.mrb[148].mxu0 %vm334_vm3, %v4558_v26 }
0x3603   :  { %10571 = vmatpush3.bf16.msra.mxu0 %v12253_v50  ;;  %10572 = vmatprep.mubr.msk.bf16.mxu0 %vm11436_vm0, %v11435_v0 }
0x3604   :  { %10584 = vmatprep.subr.bf16.mxu0 %v11435_v0 }
0x36cd   :  { %v4506_v11 = vpop.f32.mrb[144].mxu0 }
0x36ce   :  { %v4512_v12 = vpack.c.bf16 %v4506_v11, %v4506_v11  ;;  %v10550_v28 = vpop.f32.mrb[145].mxu0 }
0x36cf   :  { %v4509_v29 = vpop.f32.mrb[146].mxu0 }
0x36d0   :  { %v10551_v30 = vpop.f32.mrb[147].mxu0  ;;  %10555 = vmatmul.mubr.msk.bf16.vlgmr.msra.gmra.mrb[152].mxu1 %vm334_vm3, %v4512_v12 }
0x36d1   :  { %10566 = vmatprep.mubr.msk.bf16.mxu1 %vm11436_vm0, %v11435_v0 }
0x36d5   :  { %v4601_v33 = vpop.f32.mrb[148].mxu0 }
0x36d6   :  { %v4607_v50 = vmul.f32 0.35355338, %v4601_v33  ;;  %v10562_v35 = vpop.f32.mrb[149].mxu0 }
0x36d7   :  { %v4604_v36 = vpop.f32.mrb[150].mxu0 }
0x36d8   :  { %v4608_v37 = vadd.f32 %v4607_v50, %v12136_v1  ;;  %v10563_v39 = vpop.f32.mrb[151].mxu0 }
0x36da   :  { %v4609_v42 = vsel %vm334_vm3, %v4608_v37, -inf }
0x36db   :  { %4610 = vmax.xlane.f32.xlu1 %v4609_v42 }
0x36df   :  { %3299 = vadd.xlane.f32.xlu1 %v3298_v51 }
0x36e3   :  { %3302 = vadd.xlane.f32.xlu1 %v3301_v18 }
0x3768   :  { %v4611_v52 = vpop.xlane.xlu1 %4610 }
0x3769   :  { %v4612_v16 = vsub.f32 %v4608_v37, %v4611_v52 }
0x376b   :  { %v4613_v7 = vmul.f32 1.442695, %v4612_v16 }
0x376c   :  { %v3300_v62 = vpop.xlane.xlu1 %3299 }
0x376d   :  { %11220 = vpow2.f32 %v4613_v7  ;;  %v3304_v55 = vmul.f32 0.03125, %v3300_v62 }
0x376f   :  { %v3306_v44 = vsub.f32 %v3296_v32, %v3304_v55 }
0x3770   :  { %v3303_v9 = vpop.xlane.xlu1 %3302 }
0x3771   :  { %v3305_v31 = vmul.f32 0.03125, %v3303_v9  ;;  %v3308_v54 = vmul.f32 %v3306_v44, %v3306_v44 }
0x3773   :  { %v3307_v57 = vsub.f32 %v3297_v8, %v3305_v31  ;;  %v3310_v58 = vsel %vm279_vm2, %v3308_v54, 0.0 }
0x3774   :  { %3311 = vadd.xlane.f32.xlu1 %v3310_v58 }
0x3775   :  { %v3309_v10 = vmul.f32 %v3307_v57, %v3307_v57 }
0x3777   :  { %v11221_v59 = vpop.eup %11220  ;;  %v3313_v38 = vsel %vm279_vm2, %v3309_v10, 0.0 }
0x3778   :  { %3314 = vadd.xlane.f32.xlu1 %v3313_v38  ;;  %v4615_v60 = vsel %vm334_vm3, %v11221_v59, 0.0 }
0x3779   :  { %4616 = vadd.xlane.f32.xlu0 %v4615_v60  ;;  %v4819_v60 = vld [vmem:[#allocation7 + $0x2e0] sm:$0xff] }
0x378f   :  { %4621 = vrot.lane.b32.xlu0 %v12221_v20, %s11447_s20 }
0x37a3   :  { %v4550_v63 = vpop.f32.mrb[152].mxu1 }
0x37a4   :  { %v4556_v2 = vadd.f32 %v4550_v63, %v12302_v41  ;;  %v10556_v3 = vpop.f32.mrb[153].mxu1 }
0x37a5   :  { %v4553_v43 = vpop.f32.mrb[154].mxu1  ;;  %v4822_v3 = vld [vmem:[#allocation7 + $0x2f8] sm:$0xff] }
0x37a6   :  { %v10557_v5 = vpop.f32.mrb[155].mxu1 }
0x37ae   :  { %4724 = vadd.xlane.f32.xlu0 %v4723_v6 }
0x3801   :  { %v3312_v49 = vpop.xlane.xlu1 %3311 }
0x3802   :  { %v3316_v48 = vmul.f32 0.03125, %v3312_v49 }
0x3804   :  { %v3318_v13 = vadd.f32 1e-05, %v3316_v48 }
0x3805   :  { %v3315_v14 = vpop.xlane.xlu1 %3314 }
0x3806   :  { %11222 = vrsqrt.f32 %v3318_v13  ;;  %v3317_v20 = vmul.f32 0.03125, %v3315_v14  ;;  %v4617_v46 = vpop.xlane.xlu0 %4616 }
0x3807   :  { %11224 = vrcp.f32 %v4617_v46 }
0x3808   :  { %v3319_v15 = vadd.f32 1e-05, %v3317_v20 }
0x380a   :  { %11226 = vrsqrt.f32 %v3319_v15  ;;  %v4622_v41 = vpop.permute.xlu0 %4621 }
0x380b   :  { %v4627_v22 = vsel %vm399_vm4, %v4622_v41, 0 }
0x380c   :  { %10565 = vmatpush3.bf16.msra.mxu1 %v4627_v22 }
0x380d   :  { %10576 = vmatprep.subr.bf16.mxu1 %v11435_v0 }
0x3810   :  { %v11223_v23 = vpop.eup %11222 }
0x3811   :  { %v11225_v17 = vpop.eup %11224  ;;  %v3322_v19 = vmul.f32 %v11223_v23, %v3306_v44  ;;  %v9595_v23 = vld [vmem:[#allocation7 + $0x258] ss:$0 sm:$0xff] }
0x3812   :  { %v4619_v21 = vmul.f32 %v11225_v17, %v11221_v59 }
0x3813   :  { %v3329_v24 = vmul.f32 %v9593_v47, %v3322_v19 }
0x3814   :  { %v11227_v25 = vpop.eup %11226  ;;  %v4620_v26 = vpack.c.bf16 %v4619_v21, %v4619_v21  ;;  %v9596_v21 = vld [vmem:[#allocation7 + $0x260] ss:$0 sm:$0xff] }
0x3815   :  { %v3336_v11 = vadd.f32 %v9594_v34, %v3329_v24  ;;  %v3323_v12 = vmul.f32 %v11227_v25, %v3307_v57 }
0x3816   :  { %10567 = vmatmul.mubr.msk.bf16.vlgmr.msra.gmra.mrb[156].mxu1 %vm334_vm3, %v4620_v26 }
0x3817   :  { %v3338_v28 = vsel %vm279_vm2, %v3336_v11, 0.0  ;;  %v3330_v29 = vmul.f32 %v9593_v47, %v3323_v12  ;;  %10580 = vmatprep.mubr.msk.bf16.mxu1 %vm11436_vm0, %v11435_v0  ;;  %v4764_v12 = vld [vmem:[#allocation7 + $0x2c0] sm:$0xff] }
0x3818   :  { %3339 = vadd.xlane.f32.xlu1 %v3338_v28 }
0x3819   :  { %v3337_v30 = vadd.f32 %v9594_v34, %v3330_v29  ;;  %v4765_v29 = vld [vmem:[#allocation7 + $0x2c8] sm:$0xff] }
0x381b   :  { %v3341_v56 = vsel %vm279_vm2, %v3337_v30, 0.0 }
0x381c   :  { %3342 = vadd.xlane.f32.xlu1 %v3341_v56 }
0x383b   :  { %v4725_v62 = vpop.xlane.xlu0 %4724 }
0x383c   :  { %v4729_v44 = vmul.f32 0.03125, %v4725_v62 }
0x383e   :  { %v12357_v57 = vsub.f32 %v4721_v45, %v4729_v44 }
0x3840   :  { %v4733_v38 = vmul.f32 %v12357_v57, %v12357_v57 }
0x38a5   :  { %v3340_v37 = vpop.xlane.xlu1 %3339 }
0x38a6   :  { %v3344_v39 = vmul.f32 0.03125, %v3340_v37 }
0x38a8   :  { %v3346_v18 = vsub.f32 %v3336_v11, %v3344_v39  ;;  %v4763_v11 = vld [vmem:[#allocation7 + $0x2b8] sm:$0xff] }
0x38a9   :  { %v3343_v32 = vpop.xlane.xlu1 %3342  ;;  %v4767_v28 = vpack.c.bf16 %v4764_v12, %v4763_v11 }
0x38aa   :  { %v3345_v52 = vmul.f32 0.03125, %v3343_v32  ;;  %v3348_v54 = vmul.f32 %v3346_v18, %v3346_v18 }
0x38ab   :  { %10577 = vmatpush3.bf16.msra.mxu1 %v4767_v28 }
0x38ac   :  { %v3347_v9 = vsub.f32 %v3337_v30, %v3345_v52  ;;  %v3350_v58 = vsel %vm279_vm2, %v3348_v54, 0.0  ;;  %v4766_v30 = vld [vmem:[#allocation7 + $0x2d0] sm:$0xff]  ;;  %10578 = vmatprep.subr.bf16.mxu1 %v11435_v0 }
0x38ad   :  { %v4768_v56 = vpack.c.bf16 %v4766_v30, %v4765_v29 }
0x38ae   :  { %v3349_v10 = vmul.f32 %v3347_v9, %v3347_v9 }
0x38af   :  { %10579 = vmatpush3.bf16.msra.mxu1 %v4768_v56 }
0x38b0   :  { %v3353_v59 = vsel %vm279_vm2, %v3349_v10, 0.0  ;;  %10592 = vmatprep.subr.bf16.mxu1 %v11435_v0 }
0x38e9   :  { %v4663_v33 = vpop.f32.mrb[156].mxu1 }
0x38ea   :  { %v4669_v27 = vpack.c.bf16 %v4663_v33, %v4663_v33  ;;  %v10568_v50 = vpop.f32.mrb[157].mxu1 }
0x38eb   :  { %v4666_v35 = vpop.f32.mrb[158].mxu1 }
0x38ec   :  { %v10569_v36 = vpop.f32.mrb[159].mxu1  ;;  %10573 = vmatmul.mubr.msk.bf16.vlgmr.msra.gmra.mrb[152].mxu0 %vm334_vm3, %v4669_v27 }
0x38ed   :  { %10588 = vmatprep.mubr.msk.bf16.mxu0 %vm11436_vm0, %v11435_v0 }
0x39bf   :  { %v4707_v40 = vpop.f32.mrb[152].mxu0 }
0x39c0   :  { %v4713_v42 = vadd.f32 %v4707_v40, %v4556_v2  ;;  %v10574_v8 = vpop.f32.mrb[153].mxu0  ;;  %v4821_v2 = vld [vmem:[#allocation7 + $0x2f0] sm:$0xff]  ;;  %v9624_v40 = vld [vmem:[#allocation7 + $0x3a0] ss:$0 sm:$0xff] }
0x39c1   :  { %v4710_v51 = vpop.f32.mrb[154].mxu0  ;;  %v4824_v4 = vpack.c.bf16 %v4822_v3, %v4821_v2 }
0x39c2   :  { %v4720_v16 = vadd.f32 %v9623_v61, %v4713_v42  ;;  %v10575_v7 = vpop.f32.mrb[155].mxu0  ;;  %v4820_v61 = vld [vmem:[#allocation7 + $0x2e8] sm:$0xff] }
0x39c3   :  { %v4823_v63 = vpack.c.bf16 %v4820_v61, %v4819_v60 }
0x39c4   :  { %v4722_v55 = vadd.f32 %v4720_v16, %v12097_v53  ;;  %v4735_v53 = vsel %vm279_vm2, %v4733_v38, 0.0  ;;  %v9626_v38 = vld [vmem:[#allocation7 + $0x2d8] ss:$0 sm:$0xff] }
0x39c5   :  { %10585 = vmatpush3.bf16.msra.mxu0 %v4823_v63 }
0x39c6   :  { %v4726_v31 = vsel %vm279_vm2, %v4722_v55, 0.0  ;;  %10586 = vmatprep.subr.bf16.mxu0 %v11435_v0 }
0x39c7   :  { %4727 = vadd.xlane.f32.xlu1 %v4726_v31 }
0x39c9   :  { %10587 = vmatpush3.bf16.msra.mxu0 %v4824_v4 }
0x39ca   :  { %10598 = vmatprep.subr.bf16.mxu0 %v11435_v0 }
0x39cb   :  { %3351 = vadd.xlane.f32.xlu1 %v3350_v58 }
0x39cf   :  { %3354 = vadd.xlane.f32.xlu1 %v3353_v59 }
0x39d3   :  { %4736 = vadd.xlane.f32.xlu1 %v4735_v53 }
0x3a54   :  { %v4728_v43 = vpop.xlane.xlu1 %4727 }
0x3a55   :  { %v4730_v5 = vmul.f32 0.03125, %v4728_v43 }
0x3a57   :  { %v4732_v45 = vsub.f32 %v4722_v55, %v4730_v5  ;;  %v9628_v55 = vld [vmem:[#allocation7 + $0x300] ss:$0 sm:$0xff] }
0x3a58   :  { %v3352_v6 = vpop.xlane.xlu1 %3351 }
0x3a59   :  { %v3356_v49 = vmul.f32 0.03125, %v3352_v6  ;;  %v4734_v48 = vmul.f32 %v4732_v45, %v4732_v45 }
0x3a5b   :  { %v3358_v13 = vadd.f32 1e-05, %v3356_v49  ;;  %v4738_v14 = vsel %vm279_vm2, %v4734_v48, 0.0 }
0x3a5c   :  { %4739 = vadd.xlane.f32.xlu1 %v4738_v14  ;;  %v3355_v20 = vpop.xlane.xlu1 %3354 }
0x3a5d   :  { %11228 = vrsqrt.f32 %v3358_v13  ;;  %v3357_v46 = vmul.f32 0.03125, %v3355_v20 }
0x3a5f   :  { %v3359_v15 = vadd.f32 1e-05, %v3357_v46 }
0x3a60   :  { %v4737_v33 = vpop.xlane.xlu1 %4736 }
0x3a61   :  { %11230 = vrsqrt.f32 %v3359_v15  ;;  %v4741_v27 = vmul.f32 0.03125, %v4737_v33 }
0x3a63   :  { %v4743_v50 = vadd.f32 1e-05, %v4741_v27 }
0x3a65   :  { %11232 = vrsqrt.f32 %v4743_v50 }
0x3a67   :  { %v11229_v41 = vpop.eup %11228 }
0x3a68   :  { %v3362_v22 = vmul.f32 %v11229_v41, %v3346_v18  ;;  %v9625_v18 = vld [vmem:[#allocation7 + $0x3a8] ss:$0 sm:$0xff] }
0x3a6a   :  { %v3369_v17 = vmul.f32 %v9595_v23, %v3362_v22 }
0x3a6b   :  { %v11231_v47 = vpop.eup %11230 }
0x3a6c   :  { %v3363_v19 = vmul.f32 %v11231_v47, %v3347_v9  ;;  %v3376_v24 = vadd.f32 %v9596_v21, %v3369_v17 }
0x3a6e   :  { %v3370_v34 = vmul.f32 %v9595_v23, %v3363_v19 }
0x3a6f   :  { %v11233_v39 = vpop.eup %11232 }
0x3a70   :  { %v3377_v25 = vadd.f32 %v9596_v21, %v3370_v34  ;;  %v4747_v32 = vmul.f32 %v11233_v39, %v12357_v57 }
0x3a72   :  { %v12367_v26 = vpack.c.bf16 %v3377_v25, %v3376_v24  ;;  %v4754_v8 = vmul.f32 %v9624_v40, %v4747_v32 }
0x3a74   :  { %10589 = vmatmul.mubr.msk.bf16.vlgmr.msra.gmra.mrb[156].mxu0 %vm279_vm2, %v12367_v26  ;;  %v12376_v16 = vadd.f32 %v9625_v18, %v4754_v8 }
0x3a75   :  { %10600 = vmatprep.mubr.msk.bf16.mxu0 %vm11436_vm0, %v11435_v0 }
0x3ae9   :  { %v4740_v35 = vpop.xlane.xlu1 %4739 }
0x3aea   :  { %v4742_v36 = vmul.f32 0.03125, %v4740_v35 }
0x3aec   :  { %v4744_v37 = vadd.f32 1e-05, %v4742_v36  ;;  %v4875_v36 = vld [vmem:[#allocation7 + $0x308] sm:$0xff] }
0x3aee   :  { %11234 = vrsqrt.f32 %v4744_v37  ;;  %v4876_v37 = vld [vmem:[#allocation7 + $0x310] sm:$0xff] }
0x3aef   :  { %v4879_v39 = vpack.c.bf16 %v4876_v37, %v4875_v36 }
0x3af1   :  { %v5106_v32 = vrot.slane %v4879_v39, 4 }
0x3af8   :  { %v11235_v42 = vpop.eup %11234 }
0x3af9   :  { %v4748_v51 = vmul.f32 %v11235_v42, %v4732_v45 }
0x3afb   :  { %v4755_v52 = vmul.f32 %v9624_v40, %v4748_v51  ;;  %v12427_v40 = vsel %vm399_vm4, %v5106_v32, 0 }
0x3afd   :  { %v12378_v7 = vadd.f32 %v9625_v18, %v4755_v52 }
0x3aff   :  { %v4769_v62 = vpack.c.bf16 %v12378_v7, %v12376_v16 }
0x3b01   :  { %10581 = vmatmul.mubr.msk.bf16.vlgmr.msra.gmra.mrb[160].mxu1 %vm279_vm2, %v4769_v62 }
0x3b02   :  { %10594 = vmatprep.mubr.msk.bf16.mxu1 %vm11436_vm0, %v11435_v0 }
0x3b47   :  { %v4868_v44 = vpop.f32.mrb[156].mxu0 }
0x3b48   :  { %v4869_v9 = vadd.f32 %v9628_v55, %v4868_v44  ;;  %v10590_v31 = vpop.f32.mrb[157].mxu0 }
0x3b49   :  { %v4871_v54 = vpop.f32.mrb[158].mxu0 }
0x3b4a   :  { %v12385_v57 = vpack.c.bf16 %v4869_v9, %v4869_v9  ;;  %v12387_v58 = vadd.f32 %v9628_v55, %v4871_v54  ;;  %v10591_v10 = vpop.f32.mrb[159].mxu0  ;;  %v12434_v55 = vsel %vm399_vm4, %v4879_v39, 0 }
0x3b4c   :  { %4995 = vrot.lane.b32.xlu1 %v12385_v57, %s11437_s2  ;;  %v4887_v59 = vsel %vm334_vm3, %v12385_v57, 0 }
0x3b4d   :  { %10593 = vmatpush3.bf16.xpose.msra.mxu1 %v4887_v59 }
0x3b4e   :  { %10604 = vmatprep.subr.bf16.mxu1 %v11435_v0 }
0x3bbe   :  { %v4996_v63 = vpop.permute.xlu1 %4995 }
0x3bbf   :  { %v5001_v5 = vsel %vm334_vm3, %v4996_v63, 0 }
0x3bd4   :  { %v4812_v53 = vpop.f32.mrb[160].mxu1 }
0x3bd5   :  { %v4813_v60 = vadd.f32 %v9626_v38, %v4812_v53  ;;  %v10582_v61 = vpop.f32.mrb[161].mxu1 }
0x3bd6   :  { %v4815_v2 = vpop.f32.mrb[162].mxu1 }
0x3bd7   :  { %v12394_v3 = vpack.c.bf16 %v4813_v60, %v4813_v60  ;;  %v12396_v4 = vadd.f32 %v9626_v38, %v4815_v2  ;;  %v10583_v43 = vpop.f32.mrb[163].mxu1 }
0x3bd9   :  { %4993 = vrot.lane.b32.xlu0 %v12394_v3, %s11437_s2  ;;  %10595 = vmatmul.mubr.msk.bf16.vlgmr.msra.gmra.mrb[164].mxu1 %vm334_vm3, %v12394_v3 }
0x3bda   :  { %10605 = vmatpush3.bf16.xpose.msra.mxu1 %v5001_v5  ;;  %10606 = vmatprep.mubr.msk.bf16.mxu1 %vm11436_vm0, %v11435_v0 }
0x3bdb   :  { %10616 = vmatprep.subr.bf16.mxu1 %v11435_v0 }
0x3c4b   :  { %v4994_v45 = vpop.permute.xlu0 %4993 }
0x3c4c   :  { %10607 = vmatmul.mubr.msk.bf16.vlgmr.msra.gmra.mrb[168].mxu1 %vm334_vm3, %v4994_v45 }
0x3c4d   :  { %10618 = vmatprep.mubr.msk.bf16.mxu1 %vm11436_vm0, %v11435_v0  ;;  %10617 = vmatpush3.bf16.msra.mxu1 %v12427_v40 }
0x3c4e   :  { %10628 = vmatprep.subr.bf16.mxu1 %v11435_v0 }
0x3cac   :  { %v4923_v6 = vpop.f32.mrb[164].mxu1 }
0x3cad   :  { %v4929_v49 = vmul.f32 0.35355338, %v4923_v6  ;;  %v10596_v48 = vpop.f32.mrb[165].mxu1 }
0x3cae   :  { %v4926_v13 = vpop.f32.mrb[166].mxu1 }
0x3caf   :  { %v10597_v14 = vpop.f32.mrb[167].mxu1  ;;  %v4930_v20 = vsel %vm334_vm3, %v4929_v49, -inf }
0x3cb0   :  { %4931 = vmax.xlane.f32.xlu1 %v4930_v20 }
0x3d1f   :  { %v5037_v46 = vpop.f32.mrb[168].mxu1 }
0x3d20   :  { %v5043_v15 = vmul.f32 0.35355338, %v5037_v46  ;;  %v10608_v41 = vpop.f32.mrb[169].mxu1 }
0x3d21   :  { %v5040_v22 = vpop.f32.mrb[170].mxu1 }
0x3d22   :  { %v10609_v23 = vpop.f32.mrb[171].mxu1  ;;  %v5044_v47 = vsel %vm334_vm3, %v5043_v15, -inf }
0x3d23   :  { %5045 = vmax.xlane.f32.xlu0 %v5044_v47 }
0x3d39   :  { %4943 = vrot.lane.b32.xlu0 %v12385_v57, %s11438_s11 }
0x3d3d   :  { %v4932_v17 = vpop.xlane.xlu1 %4931 }
0x3d3e   :  { %v4933_v19 = vsub.f32 %v4929_v49, %v4932_v17 }
0x3d40   :  { %v4934_v21 = vmul.f32 1.442695, %v4933_v19 }
0x3d42   :  { %11236 = vpow2.f32 %v4934_v21 }
0x3d4c   :  { %v11237_v34 = vpop.eup %11236 }
0x3d4d   :  { %v4936_v24 = vsel %vm334_vm3, %v11237_v34, 0.0 }
0x3d4e   :  { %4937 = vadd.xlane.f32.xlu1 %v4936_v24 }
0x3db0   :  { %v5046_v25 = vpop.xlane.xlu0 %5045 }
0x3db1   :  { %v5047_v11 = vsub.f32 %v5043_v15, %v5046_v25 }
0x3db3   :  { %v5048_v12 = vmul.f32 1.442695, %v5047_v11 }
0x3db4   :  { %v4944_v28 = vpop.permute.xlu0 %4943 }
0x3db5   :  { %11238 = vpow2.f32 %v5048_v12  ;;  %v4949_v29 = vsel %vm399_vm4, %v4944_v28, 0 }
0x3db6   :  { %10599 = vmatpush3.bf16.msra.mxu0 %v4949_v29 }
0x3db7   :  { %10610 = vmatprep.subr.bf16.mxu0 %v11435_v0 }
0x3dbf   :  { %v11239_v30 = vpop.eup %11238 }
0x3dc0   :  { %v5050_v56 = vsel %vm334_vm3, %v11239_v30, 0.0 }
0x3dc1   :  { %5051 = vadd.xlane.f32.xlu1 %v5050_v56 }
0x3dd2   :  { %5056 = vrot.lane.b32.xlu1 %v12385_v57, %s11439_s12 }
0x3dd6   :  { %5201 = vrot.lane.b32.xlu1 %v12385_v57, %s11442_s15 }
0x3dda   :  { %5199 = vrot.lane.b32.xlu1 %v12394_v3, %s11442_s15 }
0x3ddb   :  { %v4938_v33 = vpop.xlane.xlu1 %4937 }
0x3ddc   :  { %11240 = vrcp.f32 %v4938_v33 }
0x3de6   :  { %v11241_v27 = vpop.eup %11240 }
0x3de7   :  { %v4940_v50 = vmul.f32 %v11241_v27, %v11237_v34 }
0x3de9   :  { %v4941_v35 = vpack.c.bf16 %v4940_v50, %v4940_v50  ;;  %v4877_v50 = vld [vmem:[#allocation7 + $0x318] sm:$0xff] }
0x3deb   :  { %10601 = vmatmul.mubr.msk.bf16.vlgmr.msra.gmra.mrb[160].mxu0 %vm334_vm3, %v4941_v35  ;;  %v4878_v35 = vld [vmem:[#allocation7 + $0x320] sm:$0xff] }
0x3dec   :  { %10612 = vmatprep.mubr.msk.bf16.mxu0 %vm11436_vm0, %v11435_v0  ;;  %v4880_v36 = vpack.c.bf16 %v4878_v35, %v4877_v50 }
0x3dee   :  { %v12473_v37 = vsel %vm399_vm4, %v4880_v36, 0 }
0x3e4e   :  { %v5052_v42 = vpop.xlane.xlu1 %5051 }
0x3e4f   :  { %11242 = vrcp.f32 %v5052_v42 }
0x3e52   :  { %v5057_v8 = vpop.permute.xlu1 %5056 }
0x3e53   :  { %v5062_v51 = vsel %vm399_vm4, %v5057_v8, 0 }
0x3e54   :  { %10611 = vmatpush3.bf16.msra.mxu0 %v5062_v51 }
0x3e55   :  { %10622 = vmatprep.subr.bf16.mxu0 %v11435_v0 }
0x3e56   :  { %v5202_v59 = vpop.permute.xlu1 %5201 }
0x3e57   :  { %v5207_v63 = vsel %vm334_vm3, %v5202_v59, 0 }
0x3e59   :  { %v11243_v18 = vpop.eup %11242 }
0x3e5a   :  { %v5054_v52 = vmul.f32 %v11243_v18, %v11239_v30  ;;  %v5200_v43 = vpop.permute.xlu1 %5199 }
0x3e5c   :  { %v5055_v62 = vpack.c.bf16 %v5054_v52, %v5054_v52 }
0x3e5e   :  { %10613 = vmatmul.mubr.msk.bf16.vlgmr.msra.gmra.mrb[164].mxu0 %vm334_vm3, %v5055_v62 }
0x3e5f   :  { %10623 = vmatpush3.bf16.msra.mxu0 %v12434_v55  ;;  %10624 = vmatprep.mubr.msk.bf16.mxu0 %vm11436_vm0, %v11435_v0 }
0x3e60   :  { %10634 = vmatprep.subr.bf16.mxu0 %v11435_v0 }
0x3ebe   :  { %v4985_v44 = vpop.f32.mrb[160].mxu0 }
0x3ebf   :  { %v4991_v9 = vpack.c.bf16 %v4985_v44, %v4985_v44  ;;  %v10602_v31 = vpop.f32.mrb[161].mxu0 }
0x3ec0   :  { %v4988_v54 = vpop.f32.mrb[162].mxu0 }
0x3ec1   :  { %v10603_v10 = vpop.f32.mrb[163].mxu0  ;;  %10625 = vmatmul.mubr.msk.bf16.vlgmr.msra.gmra.mrb[168].mxu0 %vm334_vm3, %v4991_v9  ;;  %v12483_v54 = vpack.c.bf16 %v12387_v58, %v12387_v58 }
0x3ec2   :  { %10636 = vmatprep.mubr.msk.bf16.mxu0 %vm11436_vm0, %v11435_v0  ;;  %v12489_v10 = vpack.c.bf16 %v12396_v4, %v12396_v4 }
0x3f31   :  { %v5098_v38 = vpop.f32.mrb[164].mxu0 }
0x3f32   :  { %v5104_v53 = vpack.c.bf16 %v5098_v38, %v5098_v38  ;;  %v10614_v60 = vpop.f32.mrb[165].mxu0 }
0x3f33   :  { %v5101_v61 = vpop.f32.mrb[166].mxu0 }
0x3f34   :  { %v10615_v2 = vpop.f32.mrb[167].mxu0  ;;  %10619 = vmatmul.mubr.msk.bf16.vlgmr.msra.gmra.mrb[172].mxu1 %vm334_vm3, %v5104_v53 }
0x3f35   :  { %10629 = vmatpush3.bf16.xpose.msra.mxu1 %v5207_v63  ;;  %10630 = vmatprep.mubr.msk.bf16.mxu1 %vm11436_vm0, %v11435_v0 }
0x3f36   :  { %10640 = vmatprep.subr.bf16.mxu1 %v11435_v0 }
0x3f3c   :  { %10631 = vmatmul.mubr.msk.bf16.vlgmr.msra.gmra.mrb[176].mxu1 %vm334_vm3, %v5200_v43 }
0x3f3d   :  { %10642 = vmatprep.mubr.msk.bf16.mxu1 %vm11436_vm0, %v11435_v0  ;;  %10641 = vmatpush3.bf16.msra.mxu1 %v12473_v37 }
0x3f3e   :  { %10652 = vmatprep.subr.bf16.mxu1 %v11435_v0 }
0x3f94   :  { %v5193_v5 = vpop.f32.mrb[168].mxu0 }
0x3f95   :  { %v10626_v45 = vpop.f32.mrb[169].mxu0 }
0x3f96   :  { %v5196_v6 = vpop.f32.mrb[170].mxu0 }
0x3f97   :  { %v10627_v49 = vpop.f32.mrb[171].mxu0 }
0x4007   :  { %v5147_v48 = vpop.f32.mrb[172].mxu1 }
0x4008   :  { %v12452_v13 = vadd.f32 %v5193_v5, %v5147_v48  ;;  %v10620_v14 = vpop.f32.mrb[173].mxu1 }
0x4009   :  { %v5150_v20 = vpop.f32.mrb[174].mxu1 }
0x400a   :  { %v10621_v46 = vpop.f32.mrb[175].mxu1 }
0x400f   :  { %v5243_v15 = vpop.f32.mrb[176].mxu1 }
0x4010   :  { %v5249_v41 = vmul.f32 0.35355338, %v5243_v15  ;;  %v10632_v22 = vpop.f32.mrb[177].mxu1  ;;  %v5471_v15 = vrot.slane %v4880_v36, 4 }
0x4011   :  { %v5246_v23 = vpop.f32.mrb[178].mxu1 }
0x4012   :  { %v10633_v47 = vpop.f32.mrb[179].mxu1  ;;  %v5250_v17 = vsel %vm334_vm3, %v5249_v41, -inf }
0x4013   :  { %5251 = vmax.xlane.f32.xlu0 %v5250_v17 }
0x4029   :  { %5262 = vrot.lane.b32.xlu0 %v12385_v57, %s11443_s16 }
0x402d   :  { %5358 = vrot.lane.b32.xlu0 %v12394_v3, %s11445_s18 }
0x40a0   :  { %v5252_v19 = vpop.xlane.xlu0 %5251 }
0x40a1   :  { %v5253_v21 = vsub.f32 %v5249_v41, %v5252_v19  ;;  %v12519_v41 = vsel %vm399_vm4, %v5471_v15, 0 }
0x40a3   :  { %v5254_v34 = vmul.f32 1.442695, %v5253_v21 }
0x40a4   :  { %v5263_v24 = vpop.permute.xlu0 %5262 }
0x40a5   :  { %11244 = vpow2.f32 %v5254_v34  ;;  %v5268_v25 = vsel %vm399_vm4, %v5263_v24, 0 }
0x40a6   :  { %10635 = vmatpush3.bf16.msra.mxu0 %v5268_v25 }
0x40a7   :  { %10646 = vmatprep.subr.bf16.mxu0 %v11435_v0 }
0x40a8   :  { %v5359_v27 = vpop.permute.xlu0 %5358 }
0x40af   :  { %v11245_v11 = vpop.eup %11244 }
0x40b0   :  { %v5256_v12 = vsel %vm334_vm3, %v11245_v11, 0.0 }
0x40b1   :  { %5257 = vadd.xlane.f32.xlu1 %v5256_v12 }
0x40c2   :  { %5360 = vrot.lane.b32.xlu1 %v12385_v57, %s11445_s18 }
0x413e   :  { %v5258_v28 = vpop.xlane.xlu1 %5257 }
0x413f   :  { %11246 = vrcp.f32 %v5258_v28 }
0x4142   :  { %v5361_v30 = vpop.permute.xlu1 %5360 }
0x4143   :  { %v5366_v33 = vsel %vm334_vm3, %v5361_v30, 0 }
0x4149   :  { %v11247_v3 = vpop.eup %11246 }
0x414a   :  { %v5260_v29 = vmul.f32 %v11247_v3, %v11245_v11 }
0x414c   :  { %v5261_v56 = vpack.c.bf16 %v5260_v29, %v5260_v29 }
0x414e   :  { %10637 = vmatmul.mubr.msk.bf16.vlgmr.msra.gmra.mrb[172].mxu0 %vm334_vm3, %v5261_v56 }
0x414f   :  { %10647 = vmatpush3.bf16.xpose.msra.mxu0 %v5366_v33  ;;  %10648 = vmatprep.mubr.msk.bf16.mxu0 %vm11436_vm0, %v11435_v0 }
0x4150   :  { %10658 = vmatprep.subr.bf16.mxu0 %v11435_v0 }
0x4156   :  { %10649 = vmatmul.mubr.msk.bf16.vlgmr.msra.gmra.mrb[176].mxu0 %vm334_vm3, %v5359_v27 }
0x4157   :  { %10660 = vmatprep.mubr.msk.bf16.mxu0 %vm11436_vm0, %v11435_v0  ;;  %10659 = vmatpush3.bf16.msra.mxu0 %v12519_v41 }
0x4158   :  { %10670 = vmatprep.subr.bf16.mxu0 %v11435_v0 }
0x4221   :  { %v5304_v39 = vpop.f32.mrb[172].mxu0 }
0x4222   :  { %v5310_v32 = vpack.c.bf16 %v5304_v39, %v5304_v39  ;;  %v10638_v42 = vpop.f32.mrb[173].mxu0 }
0x4223   :  { %v5307_v8 = vpop.f32.mrb[174].mxu0 }
0x4224   :  { %v10639_v51 = vpop.f32.mrb[175].mxu0  ;;  %10643 = vmatmul.mubr.msk.bf16.vlgmr.msra.gmra.mrb[180].mxu1 %vm334_vm3, %v5310_v32 }
0x4225   :  { %10654 = vmatprep.mubr.msk.bf16.mxu1 %vm11436_vm0, %v11435_v0 }
0x4229   :  { %v5402_v18 = vpop.f32.mrb[176].mxu0 }
0x422a   :  { %v5408_v52 = vmul.f32 0.35355338, %v5402_v18  ;;  %v10650_v62 = vpop.f32.mrb[177].mxu0 }
0x422b   :  { %v5405_v44 = vpop.f32.mrb[178].mxu0 }
0x422c   :  { %v10651_v9 = vpop.f32.mrb[179].mxu0  ;;  %v5409_v31 = vsel %vm334_vm3, %v5408_v52, -inf }
0x422d   :  { %5410 = vmax.xlane.f32.xlu1 %v5409_v31 }
0x423e   :  { %5633 = vrot.lane.b32.xlu1 %v12483_v54, %s11437_s2 }
0x4242   :  { %5631 = vrot.lane.b32.xlu1 %v12489_v10, %s11437_s2 }
0x42ba   :  { %v5411_v59 = vpop.xlane.xlu1 %5410 }
0x42bb   :  { %v5412_v38 = vsub.f32 %v5408_v52, %v5411_v59 }
0x42bd   :  { %v5413_v53 = vmul.f32 1.442695, %v5412_v38 }
0x42bf   :  { %11248 = vpow2.f32 %v5413_v53 }
0x42c9   :  { %v11249_v60 = vpop.eup %11248 }
0x42ca   :  { %v5415_v61 = vsel %vm334_vm3, %v11249_v60, 0.0 }
0x42cb   :  { %5416 = vadd.xlane.f32.xlu0 %v5415_v61 }
0x42e1   :  { %5421 = vrot.lane.b32.xlu0 %v12385_v57, %s11444_s17  ;;  %v5525_v57 = vsel %vm334_vm3, %v12483_v54, 0 }
0x42f7   :  { %v5351_v58 = vpop.f32.mrb[180].mxu1 }
0x42f8   :  { %v12497_v63 = vadd.f32 %v5351_v58, %v12452_v13  ;;  %v10644_v4 = vpop.f32.mrb[181].mxu1  ;;  %v5634_v13 = vpop.permute.xlu1 %5633 }
0x42f9   :  { %v5354_v2 = vpop.f32.mrb[182].mxu1  ;;  %v5639_v20 = vsel %vm334_vm3, %v5634_v13, 0 }
0x42fa   :  { %v10645_v43 = vpop.f32.mrb[183].mxu1 }
0x42fc   :  { %v5632_v46 = vpop.permute.xlu1 %5631 }
0x4358   :  { %v5417_v5 = vpop.xlane.xlu0 %5416 }
0x4359   :  { %11250 = vrcp.f32 %v5417_v5 }
0x435c   :  { %v5422_v45 = vpop.permute.xlu0 %5421 }
0x435d   :  { %v5427_v6 = vsel %vm399_vm4, %v5422_v45, 0 }
0x435e   :  { %10653 = vmatpush3.bf16.msra.mxu1 %v5427_v6 }
0x435f   :  { %10664 = vmatprep.subr.bf16.mxu1 %v11435_v0 }
0x4363   :  { %v11251_v49 = vpop.eup %11250 }
0x4364   :  { %v5419_v48 = vmul.f32 %v11251_v49, %v11249_v60 }
0x4366   :  { %v5420_v14 = vpack.c.bf16 %v5419_v48, %v5419_v48 }
0x4368   :  { %10655 = vmatmul.mubr.msk.bf16.vlgmr.msra.gmra.mrb[184].mxu1 %vm334_vm3, %v5420_v14 }
0x4369   :  { %10665 = vmatpush3.bf16.xpose.msra.mxu1 %v5525_v57  ;;  %10666 = vmatprep.mubr.msk.bf16.mxu1 %vm11436_vm0, %v11435_v0 }
0x436a   :  { %10676 = vmatprep.subr.bf16.mxu1 %v11435_v0 }
0x4370   :  { %10667 = vmatmul.mubr.msk.bf16.vlgmr.msra.gmra.mrb[188].mxu1 %vm334_vm3, %v12489_v10 }
0x4371   :  { %10677 = vmatpush3.bf16.xpose.msra.mxu1 %v5639_v20  ;;  %10678 = vmatprep.mubr.msk.bf16.mxu1 %vm11436_vm0, %v11435_v0 }
0x4372   :  { %10688 = vmatprep.subr.bf16.mxu1 %v11435_v0 }
0x4378   :  { %10679 = vmatmul.mubr.msk.bf16.vlgmr.msra.gmra.mrb[192].mxu1 %vm334_vm3, %v5632_v46 }
0x4379   :  { %10689 = vmatpush3.bf16.msra.mxu1 %v12427_v40  ;;  %10690 = vmatprep.mubr.msk.bf16.mxu1 %vm11436_vm0, %v11435_v0 }
0x437a   :  { %10700 = vmatprep.subr.bf16.mxu1 %v11435_v0 }
0x443b   :  { %v5463_v22 = vpop.f32.mrb[184].mxu1 }
0x443c   :  { %v5469_v23 = vpack.c.bf16 %v5463_v22, %v5463_v22  ;;  %v10656_v47 = vpop.f32.mrb[185].mxu1 }
0x443d   :  { %v5466_v17 = vpop.f32.mrb[186].mxu1 }
0x443e   :  { %v10657_v19 = vpop.f32.mrb[187].mxu1  ;;  %10661 = vmatmul.mubr.msk.bf16.vlgmr.msra.gmra.mrb[180].mxu0 %vm334_vm3, %v5469_v23 }
0x443f   :  { %10672 = vmatprep.mubr.msk.bf16.mxu0 %vm11436_vm0, %v11435_v0 }
0x4443   :  { %v5561_v40 = vpop.f32.mrb[188].mxu1 }
0x4444   :  { %v5567_v21 = vmul.f32 0.35355338, %v5561_v40  ;;  %v10668_v34 = vpop.f32.mrb[189].mxu1 }
0x4445   :  { %v5564_v24 = vpop.f32.mrb[190].mxu1 }
0x4446   :  { %v10669_v25 = vpop.f32.mrb[191].mxu1  ;;  %v5568_v11 = vsel %vm334_vm3, %v5567_v21, -inf }
0x4447   :  { %5569 = vmax.xlane.f32.xlu0 %v5568_v11 }
0x444b   :  { %v5675_v12 = vpop.f32.mrb[192].mxu1 }
0x444c   :  { %v5681_v28 = vmul.f32 0.35355338, %v5675_v12  ;;  %v10680_v3 = vpop.f32.mrb[193].mxu1 }
0x444d   :  { %v5678_v29 = vpop.f32.mrb[194].mxu1 }
0x444e   :  { %v10681_v30 = vpop.f32.mrb[195].mxu1  ;;  %v5682_v56 = vsel %vm334_vm3, %v5681_v28, -inf }
0x444f   :  { %5683 = vmax.xlane.f32.xlu1 %v5682_v56 }
0x4460   :  { %5694 = vrot.lane.b32.xlu1 %v12483_v54, %s11439_s12 }
0x4464   :  { %5831 = vrot.lane.b32.xlu1 %v12483_v54, %s11442_s15 }
0x4468   :  { %5829 = vrot.lane.b32.xlu1 %v12489_v10, %s11442_s15 }
0x44d4   :  { %v5570_v33 = vpop.xlane.xlu0 %5569 }
0x44d5   :  { %v5571_v27 = vsub.f32 %v5567_v21, %v5570_v33 }
0x44d7   :  { %v5572_v50 = vmul.f32 1.442695, %v5571_v27 }
0x44d9   :  { %11252 = vpow2.f32 %v5572_v50 }
0x44dc   :  { %v5684_v35 = vpop.xlane.xlu1 %5683 }
0x44dd   :  { %v5685_v36 = vsub.f32 %v5681_v28, %v5684_v35 }
0x44df   :  { %v5686_v39 = vmul.f32 1.442695, %v5685_v36 }
0x44e0   :  { %v5695_v58 = vpop.permute.xlu1 %5694 }
0x44e1   :  { %11254 = vpow2.f32 %v5686_v39 }
0x44e3   :  { %v11253_v32 = vpop.eup %11252 }
0x44e4   :  { %v5574_v42 = vsel %vm334_vm3, %v11253_v32, 0.0  ;;  %v5832_v57 = vpop.permute.xlu1 %5831 }
0x44e5   :  { %5575 = vadd.xlane.f32.xlu0 %v5574_v42  ;;  %v5837_v15 = vsel %vm334_vm3, %v5832_v57, 0 }
0x44e8   :  { %v5830_v23 = vpop.permute.xlu1 %5829 }
0x44eb   :  { %v11255_v8 = vpop.eup %11254 }
0x44ec   :  { %v5688_v51 = vsel %vm334_vm3, %v11255_v8, 0.0 }
0x44ed   :  { %5689 = vadd.xlane.f32.xlu0 %v5688_v51 }
0x4503   :  { %5581 = vrot.lane.b32.xlu0 %v12483_v54, %s11438_s11 }
0x4511   :  { %v5512_v18 = vpop.f32.mrb[180].mxu0 }
0x4512   :  { %v12539_v52 = vadd.f32 %v5512_v18, %v12497_v63  ;;  %v10662_v62 = vpop.f32.mrb[181].mxu0  ;;  %v5700_v63 = vsel %vm399_vm4, %v5695_v58, 0 }
0x4513   :  { %v5515_v44 = vpop.f32.mrb[182].mxu0 }
0x4514   :  { %v10663_v9 = vpop.f32.mrb[183].mxu0 }
0x4572   :  { %v5576_v31 = vpop.xlane.xlu0 %5575 }
0x4573   :  { %11256 = vrcp.f32 %v5576_v31 }
0x457a   :  { %v5690_v59 = vpop.xlane.xlu0 %5689 }
0x457b   :  { %11258 = vrcp.f32 %v5690_v59 }
0x457d   :  { %v11257_v38 = vpop.eup %11256 }
0x457e   :  { %v5578_v53 = vmul.f32 %v11257_v38, %v11253_v32  ;;  %v5582_v60 = vpop.permute.xlu0 %5581 }
0x457f   :  { %v5587_v61 = vsel %vm399_vm4, %v5582_v60, 0 }
0x4580   :  { %10671 = vmatpush3.bf16.msra.mxu0 %v5587_v61  ;;  %v5579_v4 = vpack.c.bf16 %v5578_v53, %v5578_v53  ;;  %v9654_v53 = vld [vmem:[#allocation7 + $0x328] ss:$0 sm:$0xff] }
0x4581   :  { %10682 = vmatprep.subr.bf16.mxu0 %v11435_v0  ;;  %v6146_v60 = vadd.f32 %v9654_v53, %v12539_v52 }
0x4583   :  { %10673 = vmatmul.mubr.msk.bf16.vlgmr.msra.gmra.mrb[184].mxu0 %vm334_vm3, %v5579_v4 }
0x4584   :  { %10683 = vmatpush3.bf16.msra.mxu0 %v5700_v63  ;;  %10684 = vmatprep.mubr.msk.bf16.mxu0 %vm11436_vm0, %v11435_v0 }
0x4585   :  { %v11259_v2 = vpop.eup %11258  ;;  %10694 = vmatprep.subr.bf16.mxu0 %v11435_v0 }
0x4586   :  { %v5692_v43 = vmul.f32 %v11259_v2, %v11255_v8 }
0x4588   :  { %v5693_v5 = vpack.c.bf16 %v5692_v43, %v5692_v43  ;;  %v6148_v43 = vadd.f32 %v6146_v60, %v12376_v16 }
0x458b   :  { %10685 = vmatmul.mubr.msk.bf16.vlgmr.msra.gmra.mrb[188].mxu0 %vm334_vm3, %v5693_v5  ;;  %v6150_v5 = vsel %vm279_vm2, %v6148_v43, 0.0 }
0x458c   :  { %10695 = vmatpush3.bf16.msra.mxu0 %v12434_v55  ;;  %10696 = vmatprep.mubr.msk.bf16.mxu0 %vm11436_vm0, %v11435_v0 }
0x458d   :  { %10706 = vmatprep.subr.bf16.mxu0 %v11435_v0 }
0x4656   :  { %v5623_v45 = vpop.f32.mrb[184].mxu0 }
0x4657   :  { %v5629_v6 = vpack.c.bf16 %v5623_v45, %v5623_v45  ;;  %v10674_v49 = vpop.f32.mrb[185].mxu0 }
0x4658   :  { %v5626_v48 = vpop.f32.mrb[186].mxu0 }
0x4659   :  { %v10675_v14 = vpop.f32.mrb[187].mxu0  ;;  %10697 = vmatmul.mubr.msk.bf16.vlgmr.msra.gmra.mrb[192].mxu0 %vm334_vm3, %v5629_v6 }
0x465a   :  { %10708 = vmatprep.mubr.msk.bf16.mxu0 %vm11436_vm0, %v11435_v0 }
0x465e   :  { %v5736_v13 = vpop.f32.mrb[188].mxu0 }
0x465f   :  { %v5742_v20 = vpack.c.bf16 %v5736_v13, %v5736_v13  ;;  %v10686_v46 = vpop.f32.mrb[189].mxu0 }
0x4660   :  { %v5739_v55 = vpop.f32.mrb[190].mxu0 }
0x4661   :  { %v10687_v22 = vpop.f32.mrb[191].mxu0  ;;  %10691 = vmatmul.mubr.msk.bf16.vlgmr.msra.gmra.mrb[196].mxu1 %vm334_vm3, %v5742_v20 }
0x4662   :  { %10701 = vmatpush3.bf16.xpose.msra.mxu1 %v5837_v15  ;;  %10702 = vmatprep.mubr.msk.bf16.mxu1 %vm11436_vm0, %v11435_v0 }
0x4663   :  { %10712 = vmatprep.subr.bf16.mxu1 %v11435_v0 }
0x4669   :  { %10703 = vmatmul.mubr.msk.bf16.vlgmr.msra.gmra.mrb[200].mxu1 %vm334_vm3, %v5830_v23 }
0x466a   :  { %10713 = vmatpush3.bf16.msra.mxu1 %v12473_v37  ;;  %10714 = vmatprep.mubr.msk.bf16.mxu1 %vm11436_vm0, %v11435_v0 }
0x466b   :  { %10724 = vmatprep.subr.bf16.mxu1 %v11435_v0 }
0x472c   :  { %v5823_v47 = vpop.f32.mrb[192].mxu0 }
0x472d   :  { %v10698_v17 = vpop.f32.mrb[193].mxu0 }
0x472e   :  { %v5826_v19 = vpop.f32.mrb[194].mxu0 }
0x472f   :  { %v10699_v40 = vpop.f32.mrb[195].mxu0 }
0x4734   :  { %v5780_v21 = vpop.f32.mrb[196].mxu1 }
0x4735   :  { %v12566_v34 = vadd.f32 %v5823_v47, %v5780_v21  ;;  %v10692_v24 = vpop.f32.mrb[197].mxu1 }
0x4736   :  { %v5783_v25 = vpop.f32.mrb[198].mxu1 }
0x4737   :  { %v10693_v11 = vpop.f32.mrb[199].mxu1 }
0x473c   :  { %v5873_v12 = vpop.f32.mrb[200].mxu1 }
0x473d   :  { %v5879_v28 = vmul.f32 0.35355338, %v5873_v12  ;;  %v10704_v3 = vpop.f32.mrb[201].mxu1 }
0x473e   :  { %v5876_v29 = vpop.f32.mrb[202].mxu1 }
0x473f   :  { %v10705_v37 = vpop.f32.mrb[203].mxu1  ;;  %v5880_v30 = vsel %vm334_vm3, %v5879_v28, -inf }
0x4740   :  { %5881 = vmax.xlane.f32.xlu0 %v5880_v30 }
0x4756   :  { %5892 = vrot.lane.b32.xlu0 %v12483_v54, %s11443_s16 }
0x475a   :  { %5985 = vrot.lane.b32.xlu0 %v12489_v10, %s11445_s18 }
0x47cd   :  { %v5882_v56 = vpop.xlane.xlu0 %5881 }
0x47ce   :  { %v5883_v33 = vsub.f32 %v5879_v28, %v5882_v56 }
0x47d0   :  { %v5884_v27 = vmul.f32 1.442695, %v5883_v33 }
0x47d1   :  { %v5893_v50 = vpop.permute.xlu0 %5892 }
0x47d2   :  { %11260 = vpow2.f32 %v5884_v27  ;;  %v5898_v35 = vsel %vm399_vm4, %v5893_v50, 0 }
0x47d3   :  { %10707 = vmatpush3.bf16.msra.mxu0 %v5898_v35 }
0x47d4   :  { %10718 = vmatprep.subr.bf16.mxu0 %v11435_v0 }
0x47d5   :  { %v5986_v62 = vpop.permute.xlu0 %5985 }
0x47dc   :  { %v11261_v36 = vpop.eup %11260 }
0x47dd   :  { %v5886_v39 = vsel %vm334_vm3, %v11261_v36, 0.0 }
0x47de   :  { %5887 = vadd.xlane.f32.xlu1 %v5886_v39 }
0x47ef   :  { %5987 = vrot.lane.b32.xlu1 %v12483_v54, %s11445_s18 }
0x486b   :  { %v5888_v32 = vpop.xlane.xlu1 %5887 }
0x486c   :  { %11262 = vrcp.f32 %v5888_v32 }
0x486f   :  { %v5988_v8 = vpop.permute.xlu1 %5987 }
0x4870   :  { %v5993_v18 = vsel %vm334_vm3, %v5988_v8, 0 }
0x4876   :  { %v11263_v10 = vpop.eup %11262 }
0x4877   :  { %v5890_v42 = vmul.f32 %v11263_v10, %v11261_v36  ;;  %v6190_v10 = vld [vmem:[#allocation7 + $0x330] sm:$0xff] }
0x4879   :  { %v5891_v51 = vpack.c.bf16 %v5890_v42, %v5890_v42  ;;  %v6191_v42 = vld [vmem:[#allocation7 + $0x338] sm:$0xff] }
0x487a   :  { %v6194_v8 = vpack.c.bf16 %v6191_v42, %v6190_v10 }
0x487b   :  { %10709 = vmatmul.mubr.msk.bf16.vlgmr.msra.gmra.mrb[196].mxu0 %vm334_vm3, %v5891_v51  ;;  %v6192_v51 = vld [vmem:[#allocation7 + $0x340] sm:$0xff] }
0x487c   :  { %10719 = vmatpush3.bf16.xpose.msra.mxu0 %v5993_v18  ;;  %10720 = vmatprep.mubr.msk.bf16.mxu0 %vm11436_vm0, %v11435_v0 }
0x487d   :  { %10730 = vmatprep.subr.bf16.mxu0 %v11435_v0 }
0x4883   :  { %10721 = vmatmul.mubr.msk.bf16.vlgmr.msra.gmra.mrb[200].mxu0 %vm334_vm3, %v5986_v62  ;;  %v6248_v62 = vld [vmem:[#allocation7 + $0x358] sm:$0xff] }
0x4884   :  { %10731 = vmatpush3.bf16.msra.mxu0 %v12519_v41  ;;  %10732 = vmatprep.mubr.msk.bf16.mxu0 %vm11436_vm0, %v11435_v0 }
0x4885   :  { %10744 = vmatprep.subr.bf16.mxu0 %v11435_v0 }
0x494e   :  { %v5934_v44 = vpop.f32.mrb[196].mxu0 }
0x494f   :  { %v5940_v9 = vpack.c.bf16 %v5934_v44, %v5934_v44  ;;  %v10710_v31 = vpop.f32.mrb[197].mxu0  ;;  %v6249_v44 = vld [vmem:[#allocation7 + $0x360] sm:$0xff] }
0x4950   :  { %v5937_v59 = vpop.f32.mrb[198].mxu0  ;;  %v6256_v31 = vpack.c.bf16 %v6249_v44, %v6248_v62  ;;  %v6353_v62 = vld [vmem:[#allocation7 + $0x3d8] sm:$0xff] }
0x4951   :  { %v10711_v38 = vpop.f32.mrb[199].mxu0  ;;  %10715 = vmatmul.mubr.msk.bf16.vlgmr.msra.gmra.mrb[204].mxu1 %vm334_vm3, %v5940_v9  ;;  %v6250_v9 = vld [vmem:[#allocation7 + $0x368] sm:$0xff]  ;;  %v6251_v59 = vld [vmem:[#allocation7 + $0x370] sm:$0xff] }
0x4952   :  { %10726 = vmatprep.mubr.msk.bf16.mxu1 %vm11436_vm0, %v11435_v0  ;;  %v6257_v38 = vpack.c.bf16 %v6251_v59, %v6250_v9  ;;  %v6354_v9 = vld [vmem:[#allocation7 + $0x3e0] sm:$0xff] }
0x4956   :  { %v6029_v61 = vpop.f32.mrb[200].mxu0 }
0x4957   :  { %v6035_v41 = vmul.f32 0.35355338, %v6029_v61  ;;  %v10722_v58 = vpop.f32.mrb[201].mxu0 }
0x4958   :  { %v6032_v4 = vpop.f32.mrb[202].mxu0 }
0x4959   :  { %v10723_v63 = vpop.f32.mrb[203].mxu0  ;;  %v6036_v2 = vsel %vm334_vm3, %v6035_v41, -inf }
0x495a   :  { %6037 = vmax.xlane.f32.xlu1 %v6036_v2 }
0x495e   :  { %6151 = vadd.xlane.f32.xlu1 %v6150_v5 }
0x49e7   :  { %v6038_v45 = vpop.xlane.xlu1 %6037 }
0x49e8   :  { %v6039_v6 = vsub.f32 %v6035_v41, %v6038_v45 }
0x49ea   :  { %v6040_v49 = vmul.f32 1.442695, %v6039_v6 }
0x49ec   :  { %11264 = vpow2.f32 %v6040_v49  ;;  %v9656_v49 = vld [vmem:[#allocation7 + $0x3b8] ss:$0 sm:$0xff] }
0x49f6   :  { %v11265_v48 = vpop.eup %11264 }
0x49f7   :  { %v6042_v52 = vsel %vm334_vm3, %v11265_v48, 0.0 }
0x49f8   :  { %6043 = vadd.xlane.f32.xlu0 %v6042_v52 }
0x4a0e   :  { %6048 = vrot.lane.b32.xlu0 %v12483_v54, %s11444_s17 }
0x4a24   :  { %v5978_v14 = vpop.f32.mrb[204].mxu1 }
0x4a25   :  { %v5984_v57 = vadd.f32 %v5978_v14, %v12566_v34  ;;  %v10716_v13 = vpop.f32.mrb[205].mxu1  ;;  %v6152_v34 = vpop.xlane.xlu1 %6151 }
0x4a26   :  { %v5981_v16 = vpop.f32.mrb[206].mxu1  ;;  %v6156_v24 = vmul.f32 0.03125, %v6152_v34  ;;  %v6252_v13 = vld [vmem:[#allocation7 + $0x378] sm:$0xff] }
0x4a27   :  { %v10717_v20 = vpop.f32.mrb[207].mxu1  ;;  %v6253_v16 = vld [vmem:[#allocation7 + $0x380] sm:$0xff] }
0x4a28   :  { %v6158_v3 = vsub.f32 %v6148_v43, %v6156_v24  ;;  %v9655_v43 = vld [vmem:[#allocation7 + $0x3b0] ss:$0 sm:$0xff]  ;;  %v6258_v20 = vpack.c.bf16 %v6253_v16, %v6252_v13 }
0x4a2a   :  { %v6160_v33 = vmul.f32 %v6158_v3, %v6158_v3 }
0x4a2c   :  { %v6162_v27 = vsel %vm279_vm2, %v6160_v33, 0.0 }
0x4a85   :  { %v6044_v46 = vpop.xlane.xlu0 %6043 }
0x4a86   :  { %11266 = vrcp.f32 %v6044_v46  ;;  %v6254_v46 = vld [vmem:[#allocation7 + $0x388] sm:$0xff] }
0x4a89   :  { %v6049_v55 = vpop.permute.xlu0 %6048 }
0x4a8a   :  { %v6054_v15 = vsel %vm399_vm4, %v6049_v55, 0  ;;  %v6255_v55 = vld [vmem:[#allocation7 + $0x390] sm:$0xff] }
0x4a8b   :  { %10725 = vmatpush3.bf16.msra.mxu1 %v6054_v15  ;;  %v6259_v15 = vpack.c.bf16 %v6255_v55, %v6254_v46 }
0x4a8c   :  { %10736 = vmatprep.subr.bf16.mxu1 %v11435_v0 }
0x4a90   :  { %v11267_v22 = vpop.eup %11266 }
0x4a91   :  { %v6046_v23 = vmul.f32 %v11267_v22, %v11265_v48  ;;  %v9657_v22 = vld [vmem:[#allocation7 + $0x350] ss:$0 sm:$0xff] }
0x4a93   :  { %v6047_v47 = vpack.c.bf16 %v6046_v23, %v6046_v23 }
0x4a95   :  { %10727 = vmatmul.mubr.msk.bf16.vlgmr.msra.gmra.mrb[208].mxu1 %vm334_vm3, %v6047_v47 }
0x4a96   :  { %10740 = vmatprep.mubr.msk.bf16.mxu1 %vm11436_vm0, %v11435_v0  ;;  %10737 = vmatpush3.bf16.msra.mxu1 %v6194_v8 }
0x4a97   :  { %10738 = vmatprep.subr.bf16.mxu1 %v11435_v0 }
0x4b68   :  { %v6090_v54 = vpop.f32.mrb[208].mxu1 }
0x4b69   :  { %v6096_v17 = vpack.c.bf16 %v6090_v54, %v6090_v54  ;;  %v10728_v19 = vpop.f32.mrb[209].mxu1 }
0x4b6a   :  { %v6093_v40 = vpop.f32.mrb[210].mxu1 }
0x4b6b   :  { %v10729_v21 = vpop.f32.mrb[211].mxu1  ;;  %10733 = vmatmul.mubr.msk.bf16.vlgmr.msra.gmra.mrb[204].mxu0 %vm334_vm3, %v6096_v17 }
0x4b6c   :  { %10752 = vmatprep.mubr.msk.bf16.mxu0 %vm11436_vm0, %v11435_v0  ;;  %10745 = vmatpush3.bf16.msra.mxu0 %v6256_v31  ;;  %v6355_v31 = vld [vmem:[#allocation7 + $0x3e8] sm:$0xff] }
0x4b6d   :  { %10746 = vmatprep.subr.bf16.mxu0 %v11435_v0  ;;  %v6357_v59 = vpack.c.bf16 %v6355_v31, %v6354_v9 }
0x4b70   :  { %10747 = vmatpush3.bf16.msra.mxu0 %v6257_v38 }
0x4b71   :  { %10748 = vmatprep.subr.bf16.mxu0 %v11435_v0 }
0x4b74   :  { %10749 = vmatpush3.bf16.msra.mxu0 %v6258_v20 }
0x4b75   :  { %10750 = vmatprep.subr.bf16.mxu0 %v11435_v0 }
0x4b78   :  { %10751 = vmatpush3.bf16.msra.mxu0 %v6259_v15 }
0x4b79   :  { %10770 = vmatprep.subr.bf16.mxu0 %v11435_v0 }
0x4c3e   :  { %v6134_v25 = vpop.f32.mrb[204].mxu0 }
0x4c3f   :  { %v6140_v11 = vadd.f32 %v6134_v25, %v5984_v57  ;;  %v10734_v12 = vpop.f32.mrb[205].mxu0  ;;  %v9659_v25 = vld [vmem:[#allocation7 + $0x398] ss:$0 sm:$0xff] }
0x4c40   :  { %v6137_v28 = vpop.f32.mrb[206].mxu0 }
0x4c41   :  { %v6147_v29 = vadd.f32 %v9654_v53, %v6140_v11  ;;  %v10735_v37 = vpop.f32.mrb[207].mxu0 }
0x4c43   :  { %v6149_v30 = vadd.f32 %v6147_v29, %v12378_v7  ;;  %v6193_v7 = vld [vmem:[#allocation7 + $0x348] sm:$0xff] }
0x4c44   :  { %v6195_v18 = vpack.c.bf16 %v6193_v7, %v6192_v51 }
0x4c45   :  { %v6153_v56 = vsel %vm279_vm2, %v6149_v30, 0.0 }
0x4c46   :  { %6154 = vadd.xlane.f32.xlu1 %v6153_v56  ;;  %10739 = vmatpush3.bf16.msra.mxu1 %v6195_v18  ;;  %v6352_v18 = vld [vmem:[#allocation7 + $0x3d0] sm:$0xff] }
0x4c47   :  { %10756 = vmatprep.subr.bf16.mxu1 %v11435_v0  ;;  %v6356_v44 = vpack.c.bf16 %v6353_v62, %v6352_v18 }
0x4c4a   :  { %6163 = vadd.xlane.f32.xlu1 %v6162_v27 }
0x4cd3   :  { %v6155_v50 = vpop.xlane.xlu1 %6154 }
0x4cd4   :  { %v6157_v35 = vmul.f32 0.03125, %v6155_v50 }
0x4cd6   :  { %v6159_v36 = vsub.f32 %v6149_v30, %v6157_v35 }
0x4cd7   :  { %v6164_v53 = vpop.xlane.xlu1 %6163 }
0x4cd8   :  { %v6161_v39 = vmul.f32 %v6159_v36, %v6159_v36  ;;  %v6168_v60 = vmul.f32 0.03125, %v6164_v53 }
0x4cda   :  { %v6165_v32 = vsel %vm279_vm2, %v6161_v39, 0.0  ;;  %v6170_v61 = vadd.f32 1e-05, %v6168_v60 }
0x4cdb   :  { %6166 = vadd.xlane.f32.xlu1 %v6165_v32 }
0x4cdc   :  { %11268 = vrsqrt.f32 %v6170_v61 }
0x4ce6   :  { %v11269_v63 = vpop.eup %11268 }
0x4ce7   :  { %v6174_v2 = vmul.f32 %v11269_v63, %v6158_v3 }
0x4ce9   :  { %v6181_v45 = vmul.f32 %v9655_v43, %v6174_v2  ;;  %v9661_v2 = vld [vmem:[#allocation7 + $0x3c0] ss:$0 sm:$0xff] }
0x4ceb   :  { %v6188_v52 = vadd.f32 %v9656_v49, %v6181_v45 }
0x4d68   :  { %v6167_v41 = vpop.xlane.xlu1 %6166 }
0x4d69   :  { %v6169_v58 = vmul.f32 0.03125, %v6167_v41 }
0x4d6b   :  { %v6171_v4 = vadd.f32 1e-05, %v6169_v58 }
0x4d6d   :  { %11270 = vrsqrt.f32 %v6171_v4 }
0x4d77   :  { %v11271_v5 = vpop.eup %11270 }
0x4d78   :  { %v6175_v6 = vmul.f32 %v11271_v5, %v6159_v36 }
0x4d7a   :  { %v6182_v48 = vmul.f32 %v9655_v43, %v6175_v6  ;;  %v9662_v6 = vld [vmem:[#allocation7 + $0x3c8] ss:$0 sm:$0xff] }
0x4d7c   :  { %v6189_v14 = vadd.f32 %v9656_v49, %v6182_v48 }
0x4d7e   :  { %v6196_v57 = vpack.c.bf16 %v6189_v14, %v6188_v52 }
0x4d80   :  { %10741 = vmatmul.mubr.msk.bf16.vlgmr.msra.gmra.mrb[212].mxu1 %vm279_vm2, %v6196_v57  ;;  %v9663_v57 = vld [vmem:[#allocation7 + $0x3f0] ss:$0 sm:$0xff] }
0x4d81   :  { %10760 = vmatprep.mubr.msk.bf16.mxu1 %vm11436_vm0, %v11435_v0  ;;  %10757 = vmatpush3.bf16.msra.mxu1 %v6356_v44 }
0x4d82   :  { %10758 = vmatprep.subr.bf16.mxu1 %v11435_v0 }
0x4d85   :  { %10759 = vmatpush3.bf16.msra.mxu1 %v6357_v59 }
0x4d86   :  { %10764 = vmatprep.subr.bf16.mxu1 %v11435_v0 }
0x4e53   :  { %v6239_v23 = vpop.f32.mrb[212].mxu1 }
0x4e54   :  { %v6240_v47 = vadd.f32 %v9657_v22, %v6239_v23  ;;  %v10742_v54 = vpop.f32.mrb[213].mxu1 }
0x4e55   :  { %v6242_v17 = vpop.f32.mrb[214].mxu1 }
0x4e56   :  { %v6243_v19 = vadd.f32 %v9657_v22, %v6242_v17  ;;  %v10743_v40 = vpop.f32.mrb[215].mxu1  ;;  %v6246_v21 = vmax.f32 %v6240_v47, 0.0 }
0x4e58   :  { %v6247_v34 = vmax.f32 %v6243_v19, 0.0 }
0x4e5a   :  { %v6260_v24 = vpack.c.bf16 %v6247_v34, %v6246_v21 }
0x4e5c   :  { %10753 = vmatmul.mubr.msk.bf16.vlgmr.msra.gmra.mrb[208].mxu0 %vm1718_vm5, %v6260_v24 }
0x4e5d   :  { %10772 = vmatprep.mubr.msk.bf16.mxu0 %vm11436_vm0, %v11435_v0 }
0x4f2f   :  { %v6303_v11 = vpop.f32.mrb[208].mxu0 }
0x4f30   :  { %v6304_v12 = vadd.f32 %v9659_v25, %v6303_v11  ;;  %v10754_v28 = vpop.f32.mrb[209].mxu0 }
0x4f31   :  { %v6306_v3 = vpop.f32.mrb[210].mxu0 }
0x4f32   :  { %v6310_v29 = vadd.f32 %v6304_v12, %v6188_v52  ;;  %v6307_v37 = vadd.f32 %v9659_v25, %v6306_v3  ;;  %v10755_v30 = vpop.f32.mrb[211].mxu0 }
0x4f34   :  { %v6311_v56 = vadd.f32 %v6307_v37, %v6189_v14  ;;  %v6312_v33 = vsel %vm279_vm2, %v6310_v29, 0.0 }
0x4f35   :  { %6313 = vadd.xlane.f32.xlu1 %v6312_v33 }
0x4f36   :  { %v6315_v27 = vsel %vm279_vm2, %v6311_v56, 0.0 }
0x4f37   :  { %6316 = vadd.xlane.f32.xlu0 %v6315_v27 }
0x4fc2   :  { %v6314_v50 = vpop.xlane.xlu1 %6313 }
0x4fc3   :  { %v6318_v35 = vmul.f32 0.03125, %v6314_v50 }
0x4fc4   :  { %v6317_v36 = vpop.xlane.xlu0 %6316 }
0x4fc5   :  { %v6320_v39 = vsub.f32 %v6310_v29, %v6318_v35  ;;  %v6319_v32 = vmul.f32 0.03125, %v6317_v36 }
0x4fc7   :  { %v6321_v10 = vsub.f32 %v6311_v56, %v6319_v32  ;;  %v6322_v42 = vmul.f32 %v6320_v39, %v6320_v39 }
0x4fc9   :  { %v6324_v8 = vsel %vm279_vm2, %v6322_v42, 0.0  ;;  %v6323_v51 = vmul.f32 %v6321_v10, %v6321_v10 }
0x4fca   :  { %6325 = vadd.xlane.f32.xlu1 %v6324_v8 }
0x4fcb   :  { %v6327_v7 = vsel %vm279_vm2, %v6323_v51, 0.0 }
0x4fce   :  { %6328 = vadd.xlane.f32.xlu1 %v6327_v7 }
0x5057   :  { %v6326_v38 = vpop.xlane.xlu1 %6325 }
0x5058   :  { %v6330_v53 = vmul.f32 0.03125, %v6326_v38 }
0x505a   :  { %v6332_v60 = vadd.f32 1e-05, %v6330_v53 }
0x505b   :  { %v6329_v61 = vpop.xlane.xlu1 %6328 }
0x505c   :  { %11272 = vrsqrt.f32 %v6332_v60  ;;  %v6331_v41 = vmul.f32 0.03125, %v6329_v61 }
0x505e   :  { %v6333_v58 = vadd.f32 1e-05, %v6331_v41 }
0x5060   :  { %11274 = vrsqrt.f32 %v6333_v58  ;;  %v6408_v58 = vld [vmem:[#allocation7 + $0x3f8] sm:$0xff] }
0x5066   :  { %v11273_v4 = vpop.eup %11272 }
0x5067   :  { %v6336_v63 = vmul.f32 %v11273_v4, %v6320_v39  ;;  %v6409_v4 = vld [vmem:[#allocation7 + $0x400] sm:$0xff] }
0x5069   :  { %v6343_v5 = vmul.f32 %v9661_v2, %v6336_v63  ;;  %v6412_v63 = vpack.c.bf16 %v6409_v4, %v6408_v58 }
0x506a   :  { %v11275_v43 = vpop.eup %11274 }
0x506b   :  { %v6337_v45 = vmul.f32 %v11275_v43, %v6321_v10  ;;  %v12629_v48 = vadd.f32 %v9662_v6, %v6343_v5  ;;  %v6641_v43 = vrot.slane %v6412_v63, 4 }
0x506d   :  { %v6344_v49 = vmul.f32 %v9661_v2, %v6337_v45  ;;  %v12684_v2 = vsel %vm399_vm4, %v6412_v63, 0  ;;  %v12688_v5 = vsel %vm399_vm4, %v6641_v43, 0 }
0x506f   :  { %v12631_v52 = vadd.f32 %v9662_v6, %v6344_v49 }
0x5071   :  { %v6358_v14 = vpack.c.bf16 %v12631_v52, %v12629_v48 }
0x5073   :  { %10761 = vmatmul.mubr.msk.bf16.vlgmr.msra.gmra.mrb[216].mxu1 %vm279_vm2, %v6358_v14 }
0x5074   :  { %10766 = vmatprep.mubr.msk.bf16.mxu1 %vm11436_vm0, %v11435_v0 }
0x5146   :  { %v6401_v13 = vpop.f32.mrb[216].mxu1 }
0x5147   :  { %v6402_v16 = vadd.f32 %v9663_v57, %v6401_v13  ;;  %v10762_v20 = vpop.f32.mrb[217].mxu1 }
0x5148   :  { %v6404_v46 = vpop.f32.mrb[218].mxu1 }
0x5149   :  { %v12638_v55 = vpack.c.bf16 %v6402_v16, %v6402_v16  ;;  %v12640_v15 = vadd.f32 %v9663_v57, %v6404_v46  ;;  %v10763_v22 = vpop.f32.mrb[219].mxu1 }
0x514b   :  { %6527 = vrot.lane.b32.xlu0 %v12638_v55, %s11437_s2  ;;  %6416 = vrot.lane.b32.xlu1 %v12638_v55, %s11438_s11 }
0x514f   :  { %6529 = vrot.lane.b32.xlu1 %v12638_v55, %s11439_s12 }
0x51bd   :  { %v6417_v23 = vpop.permute.xlu1 %6416  ;;  %v6528_v19 = vpop.permute.xlu0 %6527 }
0x51be   :  { %v6422_v47 = vsel %vm334_vm3, %v6417_v23, 0 }
0x51bf   :  { %10765 = vmatpush3.bf16.xpose.msra.mxu1 %v6422_v47 }
0x51c0   :  { %10776 = vmatprep.subr.bf16.mxu1 %v11435_v0 }
0x51c1   :  { %v6530_v54 = vpop.permute.xlu1 %6529 }
0x51c2   :  { %v6535_v17 = vsel %vm334_vm3, %v6530_v54, 0 }
0x51c6   :  { %10767 = vmatmul.mubr.msk.bf16.vlgmr.msra.gmra.mrb[220].mxu1 %vm334_vm3, %v12638_v55 }
0x51c7   :  { %10777 = vmatpush3.bf16.xpose.msra.mxu1 %v6535_v17  ;;  %10778 = vmatprep.mubr.msk.bf16.mxu1 %vm11436_vm0, %v11435_v0 }
0x51c8   :  { %10788 = vmatprep.subr.bf16.mxu1 %v11435_v0 }
0x51ce   :  { %10779 = vmatmul.mubr.msk.bf16.vlgmr.msra.gmra.mrb[224].mxu1 %vm334_vm3, %v6528_v19 }
0x51cf   :  { %10790 = vmatprep.mubr.msk.bf16.mxu1 %vm11436_vm0, %v11435_v0  ;;  %10789 = vmatpush3.bf16.msra.mxu1 %v12688_v5 }
0x51d0   :  { %10800 = vmatprep.subr.bf16.mxu1 %v11435_v0 }
0x5299   :  { %v6458_v40 = vpop.f32.mrb[220].mxu1 }
0x529a   :  { %v6464_v21 = vmul.f32 0.35355338, %v6458_v40  ;;  %v10768_v34 = vpop.f32.mrb[221].mxu1 }
0x529b   :  { %v6461_v24 = vpop.f32.mrb[222].mxu1 }
0x529c   :  { %v6465_v25 = vadd.f32 %v6464_v21, %v12136_v1  ;;  %v10769_v11 = vpop.f32.mrb[223].mxu1 }
0x529e   :  { %v6466_v12 = vsel %vm334_vm3, %v6465_v25, -inf }
0x529f   :  { %6467 = vmax.xlane.f32.xlu1 %v6466_v12 }
0x52a1   :  { %v6571_v28 = vpop.f32.mrb[224].mxu1 }
0x52a2   :  { %v6577_v3 = vmul.f32 0.35355338, %v6571_v28  ;;  %v10780_v29 = vpop.f32.mrb[225].mxu1 }
0x52a3   :  { %v6574_v37 = vpop.f32.mrb[226].mxu1 }
0x52a4   :  { %v6578_v30 = vadd.f32 %v6577_v3, %v12136_v1  ;;  %v10781_v56 = vpop.f32.mrb[227].mxu1 }
0x52a6   :  { %v6579_v33 = vsel %vm334_vm3, %v6578_v30, -inf }
0x52a7   :  { %6580 = vmax.xlane.f32.xlu0 %v6579_v33 }
0x52bd   :  { %6591 = vrot.lane.b32.xlu0 %v12638_v55, %s11441_s14 }
0x532c   :  { %v6468_v27 = vpop.xlane.xlu1 %6467 }
0x532d   :  { %v6469_v50 = vsub.f32 %v6465_v25, %v6468_v27 }
0x532f   :  { %v6470_v35 = vmul.f32 1.442695, %v6469_v50 }
0x5331   :  { %11276 = vpow2.f32 %v6470_v35 }
0x5334   :  { %v6581_v36 = vpop.xlane.xlu0 %6580 }
0x5335   :  { %v6582_v39 = vsub.f32 %v6578_v30, %v6581_v36 }
0x5337   :  { %v6583_v32 = vmul.f32 1.442695, %v6582_v39 }
0x5338   :  { %v6592_v59 = vpop.permute.xlu0 %6591 }
0x5339   :  { %11278 = vpow2.f32 %v6583_v32  ;;  %v6597_v53 = vsel %vm399_vm4, %v6592_v59, 0 }
0x533b   :  { %v11277_v10 = vpop.eup %11276 }
0x533c   :  { %v6472_v42 = vsel %vm334_vm3, %v11277_v10, 0.0 }
0x533d   :  { %6473 = vadd.xlane.f32.xlu1 %v6472_v42 }
0x5343   :  { %v11279_v8 = vpop.eup %11278 }
0x5344   :  { %v6585_v51 = vsel %vm334_vm3, %v11279_v8, 0.0 }
0x5345   :  { %6586 = vadd.xlane.f32.xlu1 %v6585_v51 }
0x5356   :  { %6478 = vrot.lane.b32.xlu1 %v12638_v55, %s11440_s13 }
0x535a   :  { %6736 = vrot.lane.b32.xlu1 %v12638_v55, %s11443_s16 }
0x535e   :  { %6734 = vrot.lane.b32.xlu1 %v12638_v55, %s11442_s15 }
0x53ca   :  { %v6474_v7 = vpop.xlane.xlu1 %6473 }
0x53cb   :  { %11280 = vrcp.f32 %v6474_v7 }
0x53d2   :  { %v6587_v18 = vpop.xlane.xlu1 %6586 }
0x53d3   :  { %11282 = vrcp.f32 %v6587_v18 }
0x53d5   :  { %v11281_v62 = vpop.eup %11280 }
0x53d6   :  { %v6479_v44 = vpop.permute.xlu1 %6478  ;;  %v6476_v9 = vmul.f32 %v11281_v62, %v11277_v10 }
0x53d7   :  { %v6484_v31 = vsel %vm399_vm4, %v6479_v44, 0 }
0x53d8   :  { %10771 = vmatpush3.bf16.msra.mxu0 %v6484_v31  ;;  %v6477_v38 = vpack.c.bf16 %v6476_v9, %v6476_v9  ;;  %v6410_v9 = vld [vmem:[#allocation7 + $0x408] sm:$0xff]  ;;  %v6411_v31 = vld [vmem:[#allocation7 + $0x410] sm:$0xff] }
0x53d9   :  { %10782 = vmatprep.subr.bf16.mxu0 %v11435_v0  ;;  %v12725_v59 = vpack.c.bf16 %v6411_v31, %v6410_v9 }
0x53da   :  { %v6737_v13 = vpop.permute.xlu1 %6736 }
0x53db   :  { %10773 = vmatmul.mubr.msk.bf16.vlgmr.msra.gmra.mrb[212].mxu0 %vm334_vm3, %v6477_v38  ;;  %v6742_v23 = vsel %vm334_vm3, %v6737_v13, 0  ;;  %v12729_v38 = vsel %vm399_vm4, %v12725_v59, 0 }
0x53dc   :  { %10783 = vmatpush3.bf16.msra.mxu0 %v6597_v53  ;;  %10784 = vmatprep.mubr.msk.bf16.mxu0 %vm11436_vm0, %v11435_v0 }
0x53dd   :  { %v11283_v60 = vpop.eup %11282  ;;  %10794 = vmatprep.subr.bf16.mxu0 %v11435_v0 }
0x53de   :  { %v6589_v61 = vmul.f32 %v11283_v60, %v11279_v8  ;;  %v6735_v54 = vpop.permute.xlu1 %6734 }
0x53e0   :  { %v6590_v41 = vpack.c.bf16 %v6589_v61, %v6589_v61 }
0x53e3   :  { %10785 = vmatmul.mubr.msk.bf16.vlgmr.msra.gmra.mrb[216].mxu0 %vm334_vm3, %v6590_v41 }
0x53e4   :  { %10796 = vmatprep.mubr.msk.bf16.mxu0 %vm11436_vm0, %v11435_v0  ;;  %10795 = vmatpush3.bf16.msra.mxu0 %v12684_v2 }
0x53e5   :  { %10806 = vmatprep.subr.bf16.mxu0 %v11435_v0 }
0x54ae   :  { %v6520_v45 = vpop.f32.mrb[212].mxu0 }
0x54af   :  { %v6526_v6 = vpack.c.bf16 %v6520_v45, %v6520_v45  ;;  %v10774_v49 = vpop.f32.mrb[213].mxu0 }
0x54b0   :  { %v6523_v14 = vpop.f32.mrb[214].mxu0 }
0x54b1   :  { %v10775_v57 = vpop.f32.mrb[215].mxu0  ;;  %10797 = vmatmul.mubr.msk.bf16.vlgmr.msra.gmra.mrb[220].mxu0 %vm334_vm3, %v6526_v6 }
0x54b2   :  { %10808 = vmatprep.mubr.msk.bf16.mxu0 %vm11436_vm0, %v11435_v0  ;;  %v12740_v57 = vpack.c.bf16 %v12640_v15, %v12640_v15 }
0x54b6   :  { %v6633_v16 = vpop.f32.mrb[216].mxu0 }
0x54b7   :  { %v6639_v20 = vpack.c.bf16 %v6633_v16, %v6633_v16  ;;  %v10786_v46 = vpop.f32.mrb[217].mxu0 }
0x54b8   :  { %v6636_v22 = vpop.f32.mrb[218].mxu0 }
0x54b9   :  { %v10787_v47 = vpop.f32.mrb[219].mxu0  ;;  %10791 = vmatmul.mubr.msk.bf16.vlgmr.msra.gmra.mrb[228].mxu1 %vm334_vm3, %v6639_v20 }
0x54ba   :  { %10801 = vmatpush3.bf16.xpose.msra.mxu1 %v6742_v23  ;;  %10802 = vmatprep.mubr.msk.bf16.mxu1 %vm11436_vm0, %v11435_v0 }
0x54bb   :  { %10812 = vmatprep.subr.bf16.mxu1 %v11435_v0 }
0x54c1   :  { %10803 = vmatmul.mubr.msk.bf16.vlgmr.msra.gmra.mrb[232].mxu1 %vm334_vm3, %v6735_v54 }
0x54c2   :  { %10814 = vmatprep.mubr.msk.bf16.mxu1 %vm11436_vm0, %v11435_v0  ;;  %10813 = vmatpush3.bf16.msra.mxu1 %v12729_v38 }
0x54c3   :  { %10824 = vmatprep.subr.bf16.mxu1 %v11435_v0 }
0x5584   :  { %v6728_v17 = vpop.f32.mrb[220].mxu0 }
0x5585   :  { %v10798_v19 = vpop.f32.mrb[221].mxu0 }
0x5586   :  { %v6731_v40 = vpop.f32.mrb[222].mxu0 }
0x5587   :  { %v10799_v21 = vpop.f32.mrb[223].mxu0 }
0x558c   :  { %v6682_v34 = vpop.f32.mrb[228].mxu1 }
0x558d   :  { %v12704_v24 = vadd.f32 %v6728_v17, %v6682_v34  ;;  %v10792_v25 = vpop.f32.mrb[229].mxu1 }
0x558e   :  { %v6685_v11 = vpop.f32.mrb[230].mxu1 }
0x558f   :  { %v10793_v12 = vpop.f32.mrb[231].mxu1 }
0x5594   :  { %v6778_v28 = vpop.f32.mrb[232].mxu1 }
0x5595   :  { %v6784_v3 = vmul.f32 0.35355338, %v6778_v28  ;;  %v10804_v29 = vpop.f32.mrb[233].mxu1 }
0x5596   :  { %v6781_v37 = vpop.f32.mrb[234].mxu1  ;;  %v7008_v29 = vrot.slane %v12725_v59, 4 }
0x5597   :  { %v6785_v30 = vadd.f32 %v6784_v3, %v12136_v1  ;;  %v10805_v56 = vpop.f32.mrb[235].mxu1 }
0x5598   :  { %v12774_v37 = vsel %vm399_vm4, %v7008_v29, 0 }
0x5599   :  { %v6786_v33 = vsel %vm334_vm3, %v6785_v30, -inf }
0x559a   :  { %6787 = vmax.xlane.f32.xlu1 %v6786_v33 }
0x55ab   :  { %6798 = vrot.lane.b32.xlu1 %v12638_v55, %s11446_s19 }
0x55af   :  { %6894 = vrot.lane.b32.xlu1 %v12638_v55, %s11445_s18 }
0x5627   :  { %v6788_v27 = vpop.xlane.xlu1 %6787 }
0x5628   :  { %v6789_v50 = vsub.f32 %v6785_v30, %v6788_v27 }
0x562a   :  { %v6790_v35 = vmul.f32 1.442695, %v6789_v50 }
0x562b   :  { %v6799_v36 = vpop.permute.xlu1 %6798 }
0x562c   :  { %11284 = vpow2.f32 %v6790_v35  ;;  %v6804_v39 = vsel %vm399_vm4, %v6799_v36, 0 }
0x562d   :  { %10807 = vmatpush3.bf16.msra.mxu0 %v6804_v39 }
0x562e   :  { %10818 = vmatprep.subr.bf16.mxu0 %v11435_v0 }
0x562f   :  { %v6895_v44 = vpop.permute.xlu1 %6894 }
0x5636   :  { %v11285_v32 = vpop.eup %11284 }
0x5637   :  { %v6792_v10 = vsel %vm334_vm3, %v11285_v32, 0.0 }
0x5638   :  { %6793 = vadd.xlane.f32.xlu0 %v6792_v10 }
0x564e   :  { %6896 = vrot.lane.b32.xlu0 %v12638_v55, %s11444_s17 }
0x56c5   :  { %v6794_v42 = vpop.xlane.xlu0 %6793 }
0x56c6   :  { %11286 = vrcp.f32 %v6794_v42 }
0x56c9   :  { %v6897_v7 = vpop.permute.xlu0 %6896 }
0x56ca   :  { %v6902_v62 = vsel %vm334_vm3, %v6897_v7, 0 }
0x56d0   :  { %v11287_v8 = vpop.eup %11286 }
0x56d1   :  { %v6796_v51 = vmul.f32 %v11287_v8, %v11285_v32 }
0x56d3   :  { %v6797_v18 = vpack.c.bf16 %v6796_v51, %v6796_v51 }
0x56d5   :  { %10809 = vmatmul.mubr.msk.bf16.vlgmr.msra.gmra.mrb[224].mxu0 %vm334_vm3, %v6797_v18 }
0x56d6   :  { %10819 = vmatpush3.bf16.xpose.msra.mxu0 %v6902_v62  ;;  %10820 = vmatprep.mubr.msk.bf16.mxu0 %vm11436_vm0, %v11435_v0 }
0x56d7   :  { %10830 = vmatprep.subr.bf16.mxu0 %v11435_v0 }
0x56dd   :  { %10821 = vmatmul.mubr.msk.bf16.vlgmr.msra.gmra.mrb[228].mxu0 %vm334_vm3, %v6895_v44 }
0x56de   :  { %10832 = vmatprep.mubr.msk.bf16.mxu0 %vm11436_vm0, %v11435_v0  ;;  %10831 = vmatpush3.bf16.msra.mxu0 %v12774_v37 }
0x56df   :  { %10842 = vmatprep.subr.bf16.mxu0 %v11435_v0 }
0x57a8   :  { %v6840_v53 = vpop.f32.mrb[224].mxu0 }
0x57a9   :  { %v6846_v60 = vpack.c.bf16 %v6840_v53, %v6840_v53  ;;  %v10810_v61 = vpop.f32.mrb[225].mxu0 }
0x57aa   :  { %v6843_v41 = vpop.f32.mrb[226].mxu0 }
0x57ab   :  { %v10811_v58 = vpop.f32.mrb[227].mxu0  ;;  %10815 = vmatmul.mubr.msk.bf16.vlgmr.msra.gmra.mrb[236].mxu1 %vm334_vm3, %v6846_v60 }
0x57ac   :  { %10826 = vmatprep.mubr.msk.bf16.mxu1 %vm11436_vm0, %v11435_v0 }
0x57b0   :  { %v6938_v4 = vpop.f32.mrb[228].mxu0 }
0x57b1   :  { %v6944_v63 = vmul.f32 0.35355338, %v6938_v4  ;;  %v10822_v43 = vpop.f32.mrb[229].mxu0 }
0x57b2   :  { %v6941_v45 = vpop.f32.mrb[230].mxu0 }
0x57b3   :  { %v6945_v6 = vadd.f32 %v6944_v63, %v12136_v1  ;;  %v10823_v49 = vpop.f32.mrb[231].mxu0 }
0x57b5   :  { %v6946_v14 = vsel %vm334_vm3, %v6945_v6, -inf }
0x57b6   :  { %6947 = vmax.xlane.f32.xlu1 %v6946_v14 }
0x57c7   :  { %7058 = vrot.lane.b32.xlu1 %v12740_v57, %s11438_s11 }
0x57cb   :  { %7171 = vrot.lane.b32.xlu1 %v12740_v57, %s11439_s12 }
0x5843   :  { %v6948_v13 = vpop.xlane.xlu1 %6947 }
0x5844   :  { %v6949_v16 = vsub.f32 %v6945_v6, %v6948_v13 }
0x5846   :  { %v6950_v20 = vmul.f32 1.442695, %v6949_v16 }
0x5847   :  { %v7059_v25 = vpop.permute.xlu1 %7058 }
0x5848   :  { %11288 = vpow2.f32 %v6950_v20  ;;  %v7064_v12 = vsel %vm334_vm3, %v7059_v25, 0 }
0x5852   :  { %v11289_v46 = vpop.eup %11288 }
0x5853   :  { %v6952_v22 = vsel %vm334_vm3, %v11289_v46, 0.0 }
0x5854   :  { %6953 = vadd.xlane.f32.xlu0 %v6952_v22 }
0x586a   :  { %6958 = vrot.lane.b32.xlu0 %v12638_v55, %s11447_s20 }
0x586e   :  { %7169 = vrot.lane.b32.xlu0 %v12740_v57, %s11437_s2 }
0x587e   :  { %v6887_v15 = vpop.f32.mrb[236].mxu1 }
0x587f   :  { %v12752_v23 = vadd.f32 %v6887_v15, %v12704_v24  ;;  %v10816_v47 = vpop.f32.mrb[237].mxu1  ;;  %v7172_v24 = vpop.permute.xlu1 %7171 }
0x5880   :  { %v6890_v54 = vpop.f32.mrb[238].mxu1  ;;  %v7177_v28 = vsel %vm334_vm3, %v7172_v24, 0 }
0x5881   :  { %v10817_v17 = vpop.f32.mrb[239].mxu1 }
0x58e1   :  { %v6954_v19 = vpop.xlane.xlu0 %6953 }
0x58e2   :  { %11290 = vrcp.f32 %v6954_v19 }
0x58e5   :  { %v6959_v40 = vpop.permute.xlu0 %6958 }
0x58e6   :  { %v6964_v21 = vsel %vm399_vm4, %v6959_v40, 0 }
0x58e7   :  { %10825 = vmatpush3.bf16.msra.mxu1 %v6964_v21 }
0x58e8   :  { %10836 = vmatprep.subr.bf16.mxu1 %v11435_v0 }
0x58e9   :  { %v7170_v3 = vpop.permute.xlu0 %7169 }
0x58ec   :  { %v11291_v34 = vpop.eup %11290 }
0x58ed   :  { %v6956_v55 = vmul.f32 %v11291_v34, %v11289_v46 }
0x58ef   :  { %v6957_v11 = vpack.c.bf16 %v6956_v55, %v6956_v55 }
0x58f1   :  { %10827 = vmatmul.mubr.msk.bf16.vlgmr.msra.gmra.mrb[240].mxu1 %vm334_vm3, %v6957_v11 }
0x58f2   :  { %10837 = vmatpush3.bf16.xpose.msra.mxu1 %v7064_v12  ;;  %10838 = vmatprep.mubr.msk.bf16.mxu1 %vm11436_vm0, %v11435_v0 }
0x58f3   :  { %10848 = vmatprep.subr.bf16.mxu1 %v11435_v0 }
0x58f9   :  { %10839 = vmatmul.mubr.msk.bf16.vlgmr.msra.gmra.mrb[244].mxu1 %vm334_vm3, %v12740_v57 }
0x58fa   :  { %10849 = vmatpush3.bf16.xpose.msra.mxu1 %v7177_v28  ;;  %10850 = vmatprep.mubr.msk.bf16.mxu1 %vm11436_vm0, %v11435_v0 }
0x58fb   :  { %10860 = vmatprep.subr.bf16.mxu1 %v11435_v0 }
0x5901   :  { %10851 = vmatmul.mubr.msk.bf16.vlgmr.msra.gmra.mrb[248].mxu1 %vm334_vm3, %v7170_v3 }
0x5902   :  { %10861 = vmatpush3.bf16.msra.mxu1 %v12688_v5  ;;  %10862 = vmatprep.mubr.msk.bf16.mxu1 %vm11436_vm0, %v11435_v0 }
0x5903   :  { %10872 = vmatprep.subr.bf16.mxu1 %v11435_v0 }
0x59c4   :  { %v7000_v30 = vpop.f32.mrb[240].mxu1 }
0x59c5   :  { %v7006_v56 = vpack.c.bf16 %v7000_v30, %v7000_v30  ;;  %v10828_v33 = vpop.f32.mrb[241].mxu1 }
0x59c6   :  { %v7003_v27 = vpop.f32.mrb[242].mxu1 }
0x59c7   :  { %v10829_v50 = vpop.f32.mrb[243].mxu1  ;;  %10833 = vmatmul.mubr.msk.bf16.vlgmr.msra.gmra.mrb[232].mxu0 %vm334_vm3, %v7006_v56 }
0x59c8   :  { %10844 = vmatprep.mubr.msk.bf16.mxu0 %vm11436_vm0, %v11435_v0 }
0x59cc   :  { %v7100_v5 = vpop.f32.mrb[244].mxu1 }
0x59cd   :  { %v7106_v35 = vmul.f32 0.35355338, %v7100_v5  ;;  %v10840_v36 = vpop.f32.mrb[245].mxu1 }
0x59ce   :  { %v7103_v39 = vpop.f32.mrb[246].mxu1 }
0x59cf   :  { %v7107_v32 = vadd.f32 %v7106_v35, %v12136_v1  ;;  %v10841_v10 = vpop.f32.mrb[247].mxu1 }
0x59d1   :  { %v7108_v42 = vsel %vm334_vm3, %v7107_v32, -inf }
0x59d2   :  { %7109 = vmax.xlane.f32.xlu1 %v7108_v42 }
0x59d4   :  { %v7213_v8 = vpop.f32.mrb[248].mxu1 }
0x59d5   :  { %v7219_v51 = vmul.f32 0.35355338, %v7213_v8  ;;  %v10852_v7 = vpop.f32.mrb[249].mxu1 }
0x59d6   :  { %v7216_v18 = vpop.f32.mrb[250].mxu1 }
0x59d7   :  { %v7220_v62 = vadd.f32 %v7219_v51, %v12136_v1  ;;  %v10853_v44 = vpop.f32.mrb[251].mxu1 }
0x59d9   :  { %v7221_v9 = vsel %vm334_vm3, %v7220_v62, -inf }
0x59da   :  { %7222 = vmax.xlane.f32.xlu0 %v7221_v9 }
0x5a5f   :  { %v7110_v31 = vpop.xlane.xlu1 %7109 }
0x5a60   :  { %v7111_v59 = vsub.f32 %v7107_v32, %v7110_v31 }
0x5a62   :  { %v7112_v53 = vmul.f32 1.442695, %v7111_v59 }
0x5a64   :  { %11292 = vpow2.f32 %v7112_v53 }
0x5a67   :  { %v7223_v60 = vpop.xlane.xlu0 %7222 }
0x5a68   :  { %v7224_v61 = vsub.f32 %v7220_v62, %v7223_v60 }
0x5a6a   :  { %v7225_v41 = vmul.f32 1.442695, %v7224_v61 }
0x5a6c   :  { %11294 = vpow2.f32 %v7225_v41 }
0x5a6e   :  { %v11293_v58 = vpop.eup %11292 }
0x5a6f   :  { %v7114_v4 = vsel %vm334_vm3, %v11293_v58, 0.0 }
0x5a70   :  { %7115 = vadd.xlane.f32.xlu0 %v7114_v4 }
0x5a76   :  { %v11295_v63 = vpop.eup %11294 }
0x5a77   :  { %v7227_v43 = vsel %vm334_vm3, %v11295_v63, 0.0 }
0x5a78   :  { %7228 = vadd.xlane.f32.xlu1 %v7227_v43 }
0x5a86   :  { %7120 = vrot.lane.b32.xlu0 %v12740_v57, %s11440_s13 }
0x5a89   :  { %7233 = vrot.lane.b32.xlu1 %v12740_v57, %s11441_s14 }
0x5a8a   :  { %7368 = vrot.lane.b32.xlu0 %v12740_v57, %s11442_s15 }
0x5a8d   :  { %7370 = vrot.lane.b32.xlu1 %v12740_v57, %s11443_s16 }
0x5a9a   :  { %v7049_v45 = vpop.f32.mrb[232].mxu0 }
0x5a9b   :  { %v12796_v6 = vadd.f32 %v7049_v45, %v12752_v23  ;;  %v10834_v49 = vpop.f32.mrb[233].mxu0 }
0x5a9c   :  { %v7052_v14 = vpop.f32.mrb[234].mxu0 }
0x5a9d   :  { %v10835_v13 = vpop.f32.mrb[235].mxu0 }
0x5afd   :  { %v7116_v16 = vpop.xlane.xlu0 %7115 }
0x5afe   :  { %11296 = vrcp.f32 %v7116_v16 }
0x5b01   :  { %v7121_v20 = vpop.permute.xlu0 %7120 }
0x5b02   :  { %v7126_v46 = vsel %vm399_vm4, %v7121_v20, 0 }
0x5b03   :  { %10843 = vmatpush3.bf16.msra.mxu0 %v7126_v46 }
0x5b04   :  { %10854 = vmatprep.subr.bf16.mxu0 %v11435_v0 }
0x5b05   :  { %v7229_v22 = vpop.xlane.xlu1 %7228  ;;  %v7369_v33 = vpop.permute.xlu0 %7368 }
0x5b06   :  { %11298 = vrcp.f32 %v7229_v22 }
0x5b08   :  { %v11297_v15 = vpop.eup %11296 }
0x5b09   :  { %v7118_v47 = vmul.f32 %v11297_v15, %v11293_v58  ;;  %v7234_v54 = vpop.permute.xlu1 %7233 }
0x5b0a   :  { %v7239_v23 = vsel %vm399_vm4, %v7234_v54, 0 }
0x5b0b   :  { %v7119_v17 = vpack.c.bf16 %v7118_v47, %v7118_v47 }
0x5b0d   :  { %10845 = vmatmul.mubr.msk.bf16.vlgmr.msra.gmra.mrb[236].mxu0 %vm334_vm3, %v7119_v17  ;;  %v7371_v24 = vpop.permute.xlu1 %7370 }
0x5b0e   :  { %10855 = vmatpush3.bf16.msra.mxu0 %v7239_v23  ;;  %10856 = vmatprep.mubr.msk.bf16.mxu0 %vm11436_vm0, %v11435_v0  ;;  %v7376_v30 = vsel %vm334_vm3, %v7371_v24, 0 }
0x5b0f   :  { %10866 = vmatprep.subr.bf16.mxu0 %v11435_v0 }
0x5b10   :  { %v11299_v19 = vpop.eup %11298 }
0x5b11   :  { %v7231_v40 = vmul.f32 %v11299_v19, %v11295_v63 }
0x5b13   :  { %v7232_v21 = vpack.c.bf16 %v7231_v40, %v7231_v40 }
0x5b15   :  { %10857 = vmatmul.mubr.msk.bf16.vlgmr.msra.gmra.mrb[240].mxu0 %vm334_vm3, %v7232_v21 }
0x5b16   :  { %10867 = vmatpush3.bf16.msra.mxu0 %v12684_v2  ;;  %10868 = vmatprep.mubr.msk.bf16.mxu0 %vm11436_vm0, %v11435_v0 }
0x5b17   :  { %10878 = vmatprep.subr.bf16.mxu0 %v11435_v0 }
0x5be0   :  { %v7162_v34 = vpop.f32.mrb[236].mxu0 }
0x5be1   :  { %v7168_v55 = vpack.c.bf16 %v7162_v34, %v7162_v34  ;;  %v10846_v25 = vpop.f32.mrb[237].mxu0 }
0x5be2   :  { %v7165_v11 = vpop.f32.mrb[238].mxu0 }
0x5be3   :  { %v10847_v12 = vpop.f32.mrb[239].mxu0  ;;  %10869 = vmatmul.mubr.msk.bf16.vlgmr.msra.gmra.mrb[244].mxu0 %vm334_vm3, %v7168_v55  ;;  %v9689_v11 = vld [vmem:[#allocation7 + $0x418] ss:$0 sm:$0xff] }
0x5be4   :  { %10880 = vmatprep.mubr.msk.bf16.mxu0 %vm11436_vm0, %v11435_v0 }
0x5be8   :  { %v7275_v28 = vpop.f32.mrb[240].mxu0 }
0x5be9   :  { %v7281_v3 = vpack.c.bf16 %v7275_v28, %v7275_v28  ;;  %v10858_v29 = vpop.f32.mrb[241].mxu0 }
0x5bea   :  { %v7278_v2 = vpop.f32.mrb[242].mxu0 }
0x5beb   :  { %v10859_v56 = vpop.f32.mrb[243].mxu0  ;;  %10863 = vmatmul.mubr.msk.bf16.vlgmr.msra.gmra.mrb[252].mxu1 %vm334_vm3, %v7281_v3 }
0x5bec   :  { %10873 = vmatpush3.bf16.xpose.msra.mxu1 %v7376_v30  ;;  %10874 = vmatprep.mubr.msk.bf16.mxu1 %vm11436_vm0, %v11435_v0 }
0x5bed   :  { %10884 = vmatprep.subr.bf16.mxu1 %v11435_v0 }
0x5bf3   :  { %10875 = vmatmul.mubr.msk.bf16.vlgmr.msra.gmra.mrb[0].mxu1 %vm334_vm3, %v7369_v33 }
0x5bf4   :  { %10885 = vmatpush3.bf16.msra.mxu1 %v12729_v38  ;;  %10886 = vmatprep.mubr.msk.bf16.mxu1 %vm11436_vm0, %v11435_v0 }
0x5bf5   :  { %10896 = vmatprep.subr.bf16.mxu1 %v11435_v0 }
0x5cb6   :  { %v7362_v27 = vpop.f32.mrb[244].mxu0 }
0x5cb7   :  { %v10870_v50 = vpop.f32.mrb[245].mxu0 }
0x5cb8   :  { %v7365_v5 = vpop.f32.mrb[246].mxu0 }
0x5cb9   :  { %v10871_v35 = vpop.f32.mrb[247].mxu0  ;;  %v7788_v5 = vld [vmem:[#allocation7 + $0x450] sm:$0xff] }
0x5cbe   :  { %v7319_v36 = vpop.f32.mrb[252].mxu1 }
0x5cbf   :  { %v12823_v39 = vadd.f32 %v7362_v27, %v7319_v36  ;;  %v10864_v32 = vpop.f32.mrb[253].mxu1 }
0x5cc0   :  { %v7322_v10 = vpop.f32.mrb[254].mxu1 }
0x5cc1   :  { %v10865_v42 = vpop.f32.mrb[255].mxu1 }
0x5cc2   :  { %v7790_v42 = vld [vmem:[#allocation7 + $0x460] sm:$0xff] }
0x5cc6   :  { %v7412_v8 = vpop.f32.mrb[0].mxu1 }
0x5cc7   :  { %v7418_v51 = vmul.f32 0.35355338, %v7412_v8  ;;  %v10876_v7 = vpop.f32.mrb[1].mxu1 }
0x5cc8   :  { %v7415_v18 = vpop.f32.mrb[2].mxu1 }
0x5cc9   :  { %v7419_v38 = vadd.f32 %v7418_v51, %v12136_v1  ;;  %v10877_v62 = vpop.f32.mrb[3].mxu1 }
0x5ccb   :  { %v7420_v44 = vsel %vm334_vm3, %v7419_v38, -inf }
0x5ccc   :  { %7421 = vmax.xlane.f32.xlu1 %v7420_v44 }
0x5cdd   :  { %7527 = vrot.lane.b32.xlu1 %v12740_v57, %s11444_s17 }
0x5ce1   :  { %7525 = vrot.lane.b32.xlu1 %v12740_v57, %s11445_s18 }
0x5d59   :  { %v7422_v9 = vpop.xlane.xlu1 %7421 }
0x5d5a   :  { %v7423_v31 = vsub.f32 %v7419_v38, %v7422_v9 }
0x5d5c   :  { %v7424_v59 = vmul.f32 1.442695, %v7423_v31 }
0x5d5d   :  { %v7528_v43 = vpop.permute.xlu1 %7527 }
0x5d5e   :  { %11300 = vpow2.f32 %v7424_v59  ;;  %v7533_v49 = vsel %vm334_vm3, %v7528_v43, 0 }
0x5d61   :  { %v7526_v14 = vpop.permute.xlu1 %7525 }
0x5d68   :  { %v11301_v53 = vpop.eup %11300 }
0x5d69   :  { %v7426_v60 = vsel %vm334_vm3, %v11301_v53, 0.0 }
0x5d6a   :  { %7427 = vadd.xlane.f32.xlu0 %v7426_v60 }
0x5d80   :  { %7432 = vrot.lane.b32.xlu0 %v12740_v57, %s11446_s19 }
0x5df7   :  { %v7428_v61 = vpop.xlane.xlu0 %7427 }
0x5df8   :  { %11302 = vrcp.f32 %v7428_v61 }
0x5dfb   :  { %v7433_v41 = vpop.permute.xlu0 %7432 }
0x5dfc   :  { %v7438_v58 = vsel %vm399_vm4, %v7433_v41, 0  ;;  %v9694_v41 = vld [vmem:[#allocation7 + $0x468] ss:$0 sm:$0xff] }
0x5dfd   :  { %10879 = vmatpush3.bf16.msra.mxu0 %v7438_v58 }
0x5dfe   :  { %10890 = vmatprep.subr.bf16.mxu0 %v11435_v0 }
0x5e02   :  { %v11303_v4 = vpop.eup %11302 }
0x5e03   :  { %v7430_v63 = vmul.f32 %v11303_v4, %v11301_v53 }
0x5e05   :  { %v7431_v45 = vpack.c.bf16 %v7430_v63, %v7430_v63 }
0x5e07   :  { %10881 = vmatmul.mubr.msk.bf16.vlgmr.msra.gmra.mrb[248].mxu0 %vm334_vm3, %v7431_v45 }
0x5e08   :  { %10891 = vmatpush3.bf16.xpose.msra.mxu0 %v7533_v49  ;;  %10892 = vmatprep.mubr.msk.bf16.mxu0 %vm11436_vm0, %v11435_v0 }
0x5e09   :  { %10902 = vmatprep.subr.bf16.mxu0 %v11435_v0 }
0x5e0f   :  { %10893 = vmatmul.mubr.msk.bf16.vlgmr.msra.gmra.mrb[252].mxu0 %vm334_vm3, %v7526_v14 }
0x5e10   :  { %10903 = vmatpush3.bf16.msra.mxu0 %v12774_v37  ;;  %10904 = vmatprep.mubr.msk.bf16.mxu0 %vm11436_vm0, %v11435_v0 }
0x5e11   :  { %10916 = vmatprep.subr.bf16.mxu0 %v11435_v0 }
0x5eda   :  { %v7474_v13 = vpop.f32.mrb[248].mxu0 }
0x5edb   :  { %v7480_v16 = vpack.c.bf16 %v7474_v13, %v7474_v13  ;;  %v10882_v20 = vpop.f32.mrb[249].mxu0 }
0x5edc   :  { %v7477_v46 = vpop.f32.mrb[250].mxu0 }
0x5edd   :  { %v10883_v22 = vpop.f32.mrb[251].mxu0  ;;  %10887 = vmatmul.mubr.msk.bf16.vlgmr.msra.gmra.mrb[4].mxu1 %vm334_vm3, %v7480_v16 }
0x5ede   :  { %10898 = vmatprep.mubr.msk.bf16.mxu1 %vm11436_vm0, %v11435_v0 }
0x5ee2   :  { %v7569_v15 = vpop.f32.mrb[252].mxu0 }
0x5ee3   :  { %v7575_v47 = vmul.f32 0.35355338, %v7569_v15  ;;  %v10894_v54 = vpop.f32.mrb[253].mxu0 }
0x5ee4   :  { %v7572_v17 = vpop.f32.mrb[254].mxu0  ;;  %v7732_v54 = vld [vmem:[#allocation7 + $0x428] sm:$0xff] }
0x5ee5   :  { %v7576_v37 = vadd.f32 %v7575_v47, %v12136_v1  ;;  %v10895_v23 = vpop.f32.mrb[255].mxu0  ;;  %v7687_v1 = vadd.f32 %v9689_v11, %v12796_v6  ;;  %v7731_v47 = vld [vmem:[#allocation7 + $0x420] sm:$0xff] }
0x5ee6   :  { %v7735_v17 = vpack.c.bf16 %v7732_v54, %v7731_v47  ;;  %v7734_v23 = vld [vmem:[#allocation7 + $0x438] sm:$0xff] }
0x5ee7   :  { %v7577_v19 = vsel %vm334_vm3, %v7576_v37, -inf  ;;  %v7689_v28 = vadd.f32 %v7687_v1, %v12629_v48  ;;  %v7787_v48 = vld [vmem:[#allocation7 + $0x448] sm:$0xff] }
0x5ee8   :  { %7578 = vmax.xlane.f32.xlu0 %v7577_v19  ;;  %v7791_v36 = vpack.c.bf16 %v7788_v5, %v7787_v48 }
0x5efe   :  { %7589 = vrot.lane.b32.xlu0 %v12740_v57, %s11447_s20  ;;  %v7691_v57 = vsel %vm279_vm2, %v7689_v28, 0.0 }
0x5f75   :  { %v7579_v40 = vpop.xlane.xlu0 %7578 }
0x5f76   :  { %v7580_v21 = vsub.f32 %v7576_v37, %v7579_v40  ;;  %v7733_v37 = vld [vmem:[#allocation7 + $0x430] sm:$0xff] }
0x5f77   :  { %v7736_v19 = vpack.c.bf16 %v7734_v23, %v7733_v37 }
0x5f78   :  { %v7581_v34 = vmul.f32 1.442695, %v7580_v21 }
0x5f79   :  { %v7590_v55 = vpop.permute.xlu0 %7589 }
0x5f7a   :  { %11304 = vpow2.f32 %v7581_v34  ;;  %v7595_v25 = vsel %vm399_vm4, %v7590_v55, 0 }
0x5f7b   :  { %10897 = vmatpush3.bf16.msra.mxu1 %v7595_v25 }
0x5f7c   :  { %10908 = vmatprep.subr.bf16.mxu1 %v11435_v0 }
0x5f84   :  { %v11305_v12 = vpop.eup %11304 }
0x5f85   :  { %v7583_v24 = vsel %vm334_vm3, %v11305_v12, 0.0 }
0x5f86   :  { %7584 = vadd.xlane.f32.xlu1 %v7583_v24  ;;  %v9690_v24 = vld [vmem:[#allocation7 + $0x508] ss:$0 sm:$0xff] }
0x5f8a   :  { %7692 = vadd.xlane.f32.xlu1 %v7691_v57 }
0x5fb0   :  { %v7518_v3 = vpop.f32.mrb[4].mxu1 }
0x5fb1   :  { %v7524_v29 = vadd.f32 %v7518_v3, %v12823_v39  ;;  %v10888_v2 = vpop.f32.mrb[5].mxu1  ;;  %v7789_v39 = vld [vmem:[#allocation7 + $0x458] sm:$0xff] }
0x5fb2   :  { %v7521_v30 = vpop.f32.mrb[6].mxu1  ;;  %v7792_v7 = vpack.c.bf16 %v7790_v42, %v7789_v39 }
0x5fb3   :  { %v10889_v56 = vpop.f32.mrb[7].mxu1 }
0x6013   :  { %v7585_v33 = vpop.xlane.xlu1 %7584 }
0x6014   :  { %11306 = vrcp.f32 %v7585_v33 }
0x6017   :  { %v7693_v18 = vpop.xlane.xlu1 %7692 }
0x6018   :  { %v7697_v38 = vmul.f32 0.03125, %v7693_v18 }
0x601a   :  { %v7699_v59 = vsub.f32 %v7689_v28, %v7697_v38 }
0x601c   :  { %v7701_v4 = vmul.f32 %v7699_v59, %v7699_v59 }
0x601e   :  { %v11307_v27 = vpop.eup %11306  ;;  %v7703_v16 = vsel %vm279_vm2, %v7701_v4, 0.0 }
0x601f   :  { %v7587_v50 = vmul.f32 %v11307_v27, %v11305_v12 }
0x6021   :  { %v7588_v6 = vpack.c.bf16 %v7587_v50, %v7587_v50  ;;  %v9692_v50 = vld [vmem:[#allocation7 + $0x440] ss:$0 sm:$0xff] }
0x6023   :  { %10899 = vmatmul.mubr.msk.bf16.vlgmr.msra.gmra.mrb[8].mxu1 %vm334_vm3, %v7588_v6 }
0x6024   :  { %10912 = vmatprep.mubr.msk.bf16.mxu1 %vm11436_vm0, %v11435_v0  ;;  %10909 = vmatpush3.bf16.msra.mxu1 %v7735_v17 }
0x6025   :  { %10910 = vmatprep.subr.bf16.mxu1 %v11435_v0 }
0x6028   :  { %10911 = vmatpush3.bf16.msra.mxu1 %v7736_v19 }
0x6029   :  { %10924 = vmatprep.subr.bf16.mxu1 %v11435_v0 }
0x60f6   :  { %v7631_v35 = vpop.f32.mrb[8].mxu1 }
0x60f7   :  { %v7637_v32 = vpack.c.bf16 %v7631_v35, %v7631_v35  ;;  %v10900_v10 = vpop.f32.mrb[9].mxu1 }
0x60f8   :  { %v7634_v8 = vpop.f32.mrb[10].mxu1 }
0x60f9   :  { %v10901_v51 = vpop.f32.mrb[11].mxu1  ;;  %10905 = vmatmul.mubr.msk.bf16.vlgmr.msra.gmra.mrb[0].mxu0 %vm334_vm3, %v7637_v32 }
0x60fa   :  { %10917 = vmatpush3.bf16.msra.mxu0 %v7791_v36  ;;  %10920 = vmatprep.mubr.msk.bf16.mxu0 %vm11436_vm0, %v11435_v0 }
0x60fb   :  { %10918 = vmatprep.subr.bf16.mxu0 %v11435_v0 }
0x60fe   :  { %10919 = vmatpush3.bf16.msra.mxu0 %v7792_v7 }
0x60ff   :  { %10930 = vmatprep.subr.bf16.mxu0 %v11435_v0 }
0x6101   :  { %10921 = vmatmul.mubr.msk.bf16.vlgmr.msra.gmra.mrb[4].mxu0 %vm279_vm2, %v12367_v26 }
0x6102   :  { %10932 = vmatprep.mubr.msk.bf16.mxu0 %vm11436_vm0, %v11435_v0 }
0x61cc   :  { %v7675_v62 = vpop.f32.mrb[0].mxu0 }
0x61cd   :  { %v7681_v44 = vadd.f32 %v7675_v62, %v7524_v29  ;;  %v10906_v9 = vpop.f32.mrb[1].mxu0  ;;  %v9691_v29 = vld [vmem:[#allocation7 + $0x510] ss:$0 sm:$0xff] }
0x61ce   :  { %v7678_v31 = vpop.f32.mrb[2].mxu0 }
0x61cf   :  { %v7688_v53 = vadd.f32 %v9689_v11, %v7681_v44  ;;  %v10907_v60 = vpop.f32.mrb[3].mxu0 }
0x61d1   :  { %v7690_v61 = vadd.f32 %v7688_v53, %v12631_v52 }
0x61d3   :  { %v7694_v58 = vsel %vm279_vm2, %v7690_v61, 0.0 }
0x61d4   :  { %7695 = vadd.xlane.f32.xlu1 %v7694_v58  ;;  %v7832_v26 = vpop.f32.mrb[4].mxu0 }
0x61d5   :  { %v7833_v63 = vadd.f32 %v9694_v41, %v7832_v26  ;;  %v10922_v43 = vpop.f32.mrb[5].mxu0 }
0x61d6   :  { %v7835_v45 = vpop.f32.mrb[6].mxu0 }
0x61d7   :  { %v12874_v49 = vpack.c.bf16 %v7833_v63, %v7833_v63  ;;  %v12876_v14 = vadd.f32 %v9694_v41, %v7835_v45  ;;  %v10923_v13 = vpop.f32.mrb[7].mxu0 }
0x61d8   :  { %7704 = vadd.xlane.f32.xlu1 %v7703_v16 }
0x61d9   :  { %7959 = vrot.lane.b32.xlu0 %v12874_v49, %s11437_s2  ;;  %v7851_v27 = vsel %vm334_vm3, %v12874_v49, 0 }
0x624b   :  { %v7960_v35 = vpop.permute.xlu0 %7959 }
0x624c   :  { %v7965_v42 = vsel %vm334_vm3, %v7960_v35, 0 }
0x6261   :  { %v7696_v52 = vpop.xlane.xlu1 %7695 }
0x6262   :  { %v7698_v20 = vmul.f32 0.03125, %v7696_v52 }
0x6264   :  { %v7700_v46 = vsub.f32 %v7690_v61, %v7698_v20 }
0x6265   :  { %v7705_v40 = vpop.xlane.xlu1 %7704 }
0x6266   :  { %v7702_v22 = vmul.f32 %v7700_v46, %v7700_v46  ;;  %v7709_v21 = vmul.f32 0.03125, %v7705_v40 }
0x6268   :  { %v7706_v15 = vsel %vm279_vm2, %v7702_v22, 0.0  ;;  %v7711_v34 = vadd.f32 1e-05, %v7709_v21 }
0x6269   :  { %7707 = vadd.xlane.f32.xlu1 %v7706_v15 }
0x626a   :  { %11308 = vrsqrt.f32 %v7711_v34  ;;  %v7839_v34 = vld [vmem:[#allocation7 + $0x470] sm:$0xff] }
0x6274   :  { %v11309_v1 = vpop.eup %11308 }
0x6275   :  { %v7715_v12 = vmul.f32 %v11309_v1, %v7699_v59 }
0x6277   :  { %v7722_v57 = vmul.f32 %v9690_v24, %v7715_v12 }
0x6279   :  { %v12884_v30 = vadd.f32 %v9691_v29, %v7722_v57 }
0x62f6   :  { %v7708_v55 = vpop.xlane.xlu1 %7707 }
0x62f7   :  { %v7710_v25 = vmul.f32 0.03125, %v7708_v55  ;;  %v7840_v55 = vld [vmem:[#allocation7 + $0x478] sm:$0xff] }
0x62f9   :  { %v7712_v11 = vadd.f32 1e-05, %v7710_v25  ;;  %v7843_v25 = vpack.c.bf16 %v7840_v55, %v7839_v34 }
0x62fb   :  { %11310 = vrsqrt.f32 %v7712_v11  ;;  %v12934_v11 = vsel %vm399_vm4, %v7843_v25, 0  ;;  %v8070_v1 = vrot.slane %v7843_v25, 4 }
0x62fd   :  { %v12938_v12 = vsel %vm399_vm4, %v8070_v1, 0 }
0x6305   :  { %v11311_v28 = vpop.eup %11310 }
0x6306   :  { %v7716_v3 = vmul.f32 %v11311_v28, %v7700_v46 }
0x6308   :  { %v7723_v2 = vmul.f32 %v9690_v24, %v7716_v3 }
0x630a   :  { %v12886_v56 = vadd.f32 %v9691_v29, %v7723_v2 }
0x630c   :  { %v7737_v33 = vpack.c.bf16 %v12886_v56, %v12884_v30 }
0x630e   :  { %10913 = vmatmul.mubr.msk.bf16.vlgmr.msra.gmra.mrb[12].mxu1 %vm279_vm2, %v7737_v33 }
0x630f   :  { %10925 = vmatpush3.bf16.xpose.msra.mxu1 %v7851_v27  ;;  %10926 = vmatprep.mubr.msk.bf16.mxu1 %vm11436_vm0, %v11435_v0 }
0x6310   :  { %10936 = vmatprep.subr.bf16.mxu1 %v11435_v0 }
0x63e1   :  { %v7780_v6 = vpop.f32.mrb[12].mxu1 }
0x63e2   :  { %v7781_v48 = vadd.f32 %v9692_v50, %v7780_v6  ;;  %v10914_v5 = vpop.f32.mrb[13].mxu1 }
0x63e3   :  { %v7783_v36 = vpop.f32.mrb[14].mxu1 }
0x63e4   :  { %v12896_v32 = vpack.c.bf16 %v7781_v48, %v7781_v48  ;;  %v12898_v10 = vadd.f32 %v9692_v50, %v7783_v36  ;;  %v10915_v39 = vpop.f32.mrb[15].mxu1 }
0x63e6   :  { %7957 = vrot.lane.b32.xlu1 %v12896_v32, %s11437_s2  ;;  %10927 = vmatmul.mubr.msk.bf16.vlgmr.msra.gmra.mrb[16].mxu1 %vm334_vm3, %v12896_v32 }
0x63e7   :  { %10937 = vmatpush3.bf16.xpose.msra.mxu1 %v7965_v42  ;;  %10938 = vmatprep.mubr.msk.bf16.mxu1 %vm11436_vm0, %v11435_v0 }
0x63e8   :  { %10948 = vmatprep.subr.bf16.mxu1 %v11435_v0 }
0x6458   :  { %v7958_v8 = vpop.permute.xlu1 %7957 }
0x6459   :  { %10939 = vmatmul.mubr.msk.bf16.vlgmr.msra.gmra.mrb[20].mxu1 %vm334_vm3, %v7958_v8 }
0x645a   :  { %10950 = vmatprep.mubr.msk.bf16.mxu1 %vm11436_vm0, %v11435_v0  ;;  %10949 = vmatpush3.bf16.msra.mxu1 %v12938_v12 }
0x645b   :  { %10960 = vmatprep.subr.bf16.mxu1 %v11435_v0 }
0x64b9   :  { %v7887_v51 = vpop.f32.mrb[16].mxu1 }
0x64ba   :  { %v7893_v7 = vmul.f32 0.35355338, %v7887_v51  ;;  %v10928_v18 = vpop.f32.mrb[17].mxu1 }
0x64bb   :  { %v7890_v38 = vpop.f32.mrb[18].mxu1 }
0x64bc   :  { %v10929_v62 = vpop.f32.mrb[19].mxu1  ;;  %v7894_v44 = vsel %vm334_vm3, %v7893_v7, -inf }
0x64bd   :  { %7895 = vmax.xlane.f32.xlu0 %v7894_v44 }
0x652c   :  { %v8001_v9 = vpop.f32.mrb[20].mxu1 }
0x652d   :  { %v8007_v31 = vmul.f32 0.35355338, %v8001_v9  ;;  %v10940_v59 = vpop.f32.mrb[21].mxu1 }
0x652e   :  { %v8004_v53 = vpop.f32.mrb[22].mxu1 }
0x652f   :  { %v10941_v60 = vpop.f32.mrb[23].mxu1  ;;  %v8008_v61 = vsel %vm334_vm3, %v8007_v31, -inf }
0x6530   :  { %8009 = vmax.xlane.f32.xlu1 %v8008_v61 }
0x6541   :  { %8020 = vrot.lane.b32.xlu1 %v12874_v49, %s11439_s12 }
0x654a   :  { %v7896_v41 = vpop.xlane.xlu0 %7895 }
0x654b   :  { %v7897_v58 = vsub.f32 %v7893_v7, %v7896_v41 }
0x654d   :  { %v7898_v4 = vmul.f32 1.442695, %v7897_v58 }
0x654f   :  { %11312 = vpow2.f32 %v7898_v4 }
0x6559   :  { %v11313_v26 = vpop.eup %11312 }
0x655a   :  { %v7900_v63 = vsel %vm334_vm3, %v11313_v26, 0.0 }
0x655b   :  { %7901 = vadd.xlane.f32.xlu0 %v7900_v63 }
0x65bd   :  { %v8010_v43 = vpop.xlane.xlu1 %8009 }
0x65be   :  { %v8011_v45 = vsub.f32 %v8007_v31, %v8010_v43 }
0x65c0   :  { %v8012_v13 = vmul.f32 1.442695, %v8011_v45 }
0x65c1   :  { %v8021_v17 = vpop.permute.xlu1 %8020 }
0x65c2   :  { %11314 = vpow2.f32 %v8012_v13  ;;  %v8026_v23 = vsel %vm399_vm4, %v8021_v17, 0 }
0x65cc   :  { %v11315_v16 = vpop.eup %11314 }
0x65cd   :  { %v8014_v52 = vsel %vm334_vm3, %v11315_v16, 0.0 }
0x65ce   :  { %8015 = vadd.xlane.f32.xlu0 %v8014_v52 }
0x65e4   :  { %7907 = vrot.lane.b32.xlu0 %v12874_v49, %s11438_s11 }
0x65e8   :  { %8165 = vrot.lane.b32.xlu0 %v12874_v49, %s11442_s15  ;;  %v7902_v20 = vpop.xlane.xlu0 %7901 }
0x65e9   :  { %11316 = vrcp.f32 %v7902_v20 }
0x65ec   :  { %8163 = vrot.lane.b32.xlu0 %v12896_v32, %s11442_s15 }
0x65f3   :  { %v11317_v46 = vpop.eup %11316 }
0x65f4   :  { %v7904_v15 = vmul.f32 %v11317_v46, %v11313_v26 }
0x65f6   :  { %v7905_v37 = vpack.c.bf16 %v7904_v15, %v7904_v15  ;;  %v7842_v15 = vld [vmem:[#allocation7 + $0x488] sm:$0xff] }
0x665b   :  { %v8016_v22 = vpop.xlane.xlu0 %8015 }
0x665c   :  { %11318 = vrcp.f32 %v8016_v22  ;;  %v7841_v22 = vld [vmem:[#allocation7 + $0x480] sm:$0xff] }
0x665f   :  { %v7908_v47 = vpop.permute.xlu0 %7907 }
0x6660   :  { %v7913_v54 = vsel %vm399_vm4, %v7908_v47, 0  ;;  %v7844_v47 = vpack.c.bf16 %v7842_v15, %v7841_v22 }
0x6661   :  { %10931 = vmatpush3.bf16.msra.mxu0 %v7913_v54 }
0x6662   :  { %10942 = vmatprep.subr.bf16.mxu0 %v11435_v0  ;;  %v12975_v54 = vsel %vm399_vm4, %v7844_v47, 0 }
0x6663   :  { %v8166_v2 = vpop.permute.xlu0 %8165 }
0x6664   :  { %10933 = vmatmul.mubr.msk.bf16.vlgmr.msra.gmra.mrb[8].mxu0 %vm334_vm3, %v7905_v37  ;;  %v8171_v48 = vsel %vm334_vm3, %v8166_v2, 0 }
0x6665   :  { %10943 = vmatpush3.bf16.msra.mxu0 %v8026_v23  ;;  %10944 = vmatprep.mubr.msk.bf16.mxu0 %vm11436_vm0, %v11435_v0 }
0x6666   :  { %v11319_v19 = vpop.eup %11318  ;;  %10954 = vmatprep.subr.bf16.mxu0 %v11435_v0 }
0x6667   :  { %v8018_v40 = vmul.f32 %v11319_v19, %v11315_v16  ;;  %v8164_v35 = vpop.permute.xlu0 %8163 }
0x6669   :  { %v8019_v21 = vpack.c.bf16 %v8018_v40, %v8018_v40 }
0x666c   :  { %10945 = vmatmul.mubr.msk.bf16.vlgmr.msra.gmra.mrb[12].mxu0 %vm334_vm3, %v8019_v21 }
0x666d   :  { %10956 = vmatprep.mubr.msk.bf16.mxu0 %vm11436_vm0, %v11435_v0  ;;  %10955 = vmatpush3.bf16.msra.mxu0 %v12934_v11 }
0x666e   :  { %10966 = vmatprep.subr.bf16.mxu0 %v11435_v0 }
0x6737   :  { %v7949_v24 = vpop.f32.mrb[8].mxu0 }
0x6738   :  { %v7955_v28 = vpack.c.bf16 %v7949_v24, %v7949_v24  ;;  %v10934_v57 = vpop.f32.mrb[9].mxu0 }
0x6739   :  { %v7952_v3 = vpop.f32.mrb[10].mxu0 }
0x673a   :  { %v10935_v29 = vpop.f32.mrb[11].mxu0  ;;  %10957 = vmatmul.mubr.msk.bf16.vlgmr.msra.gmra.mrb[16].mxu0 %vm334_vm3, %v7955_v28  ;;  %v12987_v28 = vpack.c.bf16 %v12898_v10, %v12898_v10  ;;  %v12996_v10 = vpack.c.bf16 %v12876_v14, %v12876_v14 }
0x673b   :  { %10968 = vmatprep.mubr.msk.bf16.mxu0 %vm11436_vm0, %v11435_v0 }
0x673c   :  { %v8489_v14 = vsel %vm334_vm3, %v12996_v10, 0 }
0x673f   :  { %v8062_v33 = vpop.f32.mrb[12].mxu0 }
0x6740   :  { %v8068_v27 = vpack.c.bf16 %v8062_v33, %v8062_v33  ;;  %v10946_v50 = vpop.f32.mrb[13].mxu0 }
0x6741   :  { %v8065_v6 = vpop.f32.mrb[14].mxu0 }
0x6742   :  { %v10947_v5 = vpop.f32.mrb[15].mxu0  ;;  %10951 = vmatmul.mubr.msk.bf16.vlgmr.msra.gmra.mrb[24].mxu1 %vm334_vm3, %v8068_v27 }
0x6743   :  { %10961 = vmatpush3.bf16.xpose.msra.mxu1 %v8171_v48  ;;  %10962 = vmatprep.mubr.msk.bf16.mxu1 %vm11436_vm0, %v11435_v0 }
0x6744   :  { %10972 = vmatprep.subr.bf16.mxu1 %v11435_v0 }
0x674a   :  { %10963 = vmatmul.mubr.msk.bf16.vlgmr.msra.gmra.mrb[28].mxu1 %vm334_vm3, %v8164_v35 }
0x674b   :  { %10974 = vmatprep.mubr.msk.bf16.mxu1 %vm11436_vm0, %v11435_v0  ;;  %10973 = vmatpush3.bf16.msra.mxu1 %v12975_v54 }
0x674c   :  { %10984 = vmatprep.subr.bf16.mxu1 %v11435_v0 }
0x680d   :  { %v8157_v36 = vpop.f32.mrb[16].mxu0 }
0x680e   :  { %v10958_v39 = vpop.f32.mrb[17].mxu0 }
0x680f   :  { %v8160_v42 = vpop.f32.mrb[18].mxu0 }
0x6810   :  { %v10959_v8 = vpop.f32.mrb[19].mxu0 }
0x6815   :  { %v8111_v51 = vpop.f32.mrb[24].mxu1 }
0x6816   :  { %v12954_v7 = vadd.f32 %v8157_v36, %v8111_v51  ;;  %v10952_v18 = vpop.f32.mrb[25].mxu1 }
0x6817   :  { %v8114_v38 = vpop.f32.mrb[26].mxu1 }
0x6818   :  { %v10953_v62 = vpop.f32.mrb[27].mxu1  ;;  %v8435_v38 = vrot.slane %v7844_v47, 4 }
0x681a   :  { %v13021_v62 = vsel %vm399_vm4, %v8435_v38, 0 }
0x681d   :  { %v8207_v44 = vpop.f32.mrb[28].mxu1 }
0x681e   :  { %v8213_v9 = vmul.f32 0.35355338, %v8207_v44  ;;  %v10964_v31 = vpop.f32.mrb[29].mxu1 }
0x681f   :  { %v8210_v59 = vpop.f32.mrb[30].mxu1 }
0x6820   :  { %v10965_v53 = vpop.f32.mrb[31].mxu1  ;;  %v8214_v60 = vsel %vm334_vm3, %v8213_v9, -inf }
0x6821   :  { %8215 = vmax.xlane.f32.xlu1 %v8214_v60 }
0x6832   :  { %8324 = vrot.lane.b32.xlu1 %v12874_v49, %s11445_s18 }
0x6836   :  { %8322 = vrot.lane.b32.xlu1 %v12896_v32, %s11445_s18 }
0x68ae   :  { %v8216_v61 = vpop.xlane.xlu1 %8215 }
0x68af   :  { %v8217_v41 = vsub.f32 %v8213_v9, %v8216_v61 }
0x68b1   :  { %v8218_v58 = vmul.f32 1.442695, %v8217_v41 }
0x68b2   :  { %v8325_v16 = vpop.permute.xlu1 %8324 }
0x68b3   :  { %11320 = vpow2.f32 %v8218_v58  ;;  %v8330_v20 = vsel %vm334_vm3, %v8325_v16, 0 }
0x68b6   :  { %v8323_v46 = vpop.permute.xlu1 %8322 }
0x68bd   :  { %v11321_v4 = vpop.eup %11320 }
0x68be   :  { %v8220_v26 = vsel %vm334_vm3, %v11321_v4, 0.0 }
0x68bf   :  { %8221 = vadd.xlane.f32.xlu0 %v8220_v26 }
0x68d5   :  { %8226 = vrot.lane.b32.xlu0 %v12874_v49, %s11443_s16 }
0x694c   :  { %v8222_v63 = vpop.xlane.xlu0 %8221 }
0x694d   :  { %11322 = vrcp.f32 %v8222_v63 }
0x6950   :  { %v8227_v43 = vpop.permute.xlu0 %8226 }
0x6951   :  { %v8232_v45 = vsel %vm399_vm4, %v8227_v43, 0 }
0x6952   :  { %10967 = vmatpush3.bf16.msra.mxu0 %v8232_v45 }
0x6953   :  { %10978 = vmatprep.subr.bf16.mxu0 %v11435_v0 }
0x6957   :  { %v11323_v32 = vpop.eup %11322 }
0x6958   :  { %v8224_v13 = vmul.f32 %v11323_v32, %v11321_v4 }
0x695a   :  { %v8225_v52 = vpack.c.bf16 %v8224_v13, %v8224_v13 }
0x695c   :  { %10969 = vmatmul.mubr.msk.bf16.vlgmr.msra.gmra.mrb[20].mxu0 %vm334_vm3, %v8225_v52 }
0x695d   :  { %10979 = vmatpush3.bf16.xpose.msra.mxu0 %v8330_v20  ;;  %10980 = vmatprep.mubr.msk.bf16.mxu0 %vm11436_vm0, %v11435_v0 }
0x695e   :  { %10990 = vmatprep.subr.bf16.mxu0 %v11435_v0 }
0x6964   :  { %10981 = vmatmul.mubr.msk.bf16.vlgmr.msra.gmra.mrb[24].mxu0 %vm334_vm3, %v8323_v46 }
0x6965   :  { %10992 = vmatprep.mubr.msk.bf16.mxu0 %vm11436_vm0, %v11435_v0  ;;  %10991 = vmatpush3.bf16.msra.mxu0 %v13021_v62 }
0x6966   :  { %11002 = vmatprep.subr.bf16.mxu0 %v11435_v0 }
0x6a2f   :  { %v8268_v17 = vpop.f32.mrb[20].mxu0 }
0x6a30   :  { %v8274_v37 = vpack.c.bf16 %v8268_v17, %v8268_v17  ;;  %v10970_v23 = vpop.f32.mrb[21].mxu0 }
0x6a31   :  { %v8271_v19 = vpop.f32.mrb[22].mxu0 }
0x6a32   :  { %v10971_v40 = vpop.f32.mrb[23].mxu0  ;;  %10975 = vmatmul.mubr.msk.bf16.vlgmr.msra.gmra.mrb[32].mxu1 %vm334_vm3, %v8274_v37 }
0x6a33   :  { %10986 = vmatprep.mubr.msk.bf16.mxu1 %vm11436_vm0, %v11435_v0 }
0x6a37   :  { %v8366_v21 = vpop.f32.mrb[24].mxu0 }
0x6a38   :  { %v8372_v34 = vmul.f32 0.35355338, %v8366_v21  ;;  %v10982_v55 = vpop.f32.mrb[25].mxu0 }
0x6a39   :  { %v8369_v25 = vpop.f32.mrb[26].mxu0 }
0x6a3a   :  { %v10983_v1 = vpop.f32.mrb[27].mxu0  ;;  %v8373_v24 = vsel %vm334_vm3, %v8372_v34, -inf }
0x6a3b   :  { %8374 = vmax.xlane.f32.xlu0 %v8373_v24 }
0x6a51   :  { %8385 = vrot.lane.b32.xlu0 %v12874_v49, %s11444_s17 }
0x6a55   :  { %8595 = vrot.lane.b32.xlu0 %v12987_v28, %s11437_s2 }
0x6ac8   :  { %v8375_v57 = vpop.xlane.xlu0 %8374 }
0x6ac9   :  { %v8376_v3 = vsub.f32 %v8372_v34, %v8375_v57 }
0x6acb   :  { %v8377_v29 = vmul.f32 1.442695, %v8376_v3 }
0x6acc   :  { %v8386_v2 = vpop.permute.xlu0 %8385 }
0x6acd   :  { %11324 = vpow2.f32 %v8377_v29  ;;  %v8391_v33 = vsel %vm399_vm4, %v8386_v2, 0 }
0x6ace   :  { %10985 = vmatpush3.bf16.msra.mxu1 %v8391_v33 }
0x6acf   :  { %10996 = vmatprep.subr.bf16.mxu1 %v11435_v0 }
0x6ad0   :  { %v8596_v18 = vpop.permute.xlu0 %8595 }
0x6ad7   :  { %v11325_v27 = vpop.eup %11324 }
0x6ad8   :  { %v8379_v49 = vsel %vm334_vm3, %v11325_v27, 0.0 }
0x6ad9   :  { %8380 = vadd.xlane.f32.xlu1 %v8379_v49 }
0x6aea   :  { %8597 = vrot.lane.b32.xlu1 %v12996_v10, %s11437_s2  ;;  %s11449_s2 = smov [#allocation10]  }
0x6b05   :  { %v8315_v50 = vpop.f32.mrb[32].mxu1 }
0x6b06   :  { %v13001_v6 = vadd.f32 %v8315_v50, %v12954_v7  ;;  %v10976_v48 = vpop.f32.mrb[33].mxu1 }
0x6b07   :  { %v8318_v5 = vpop.f32.mrb[34].mxu1 }
0x6b08   :  { %v10977_v35 = vpop.f32.mrb[35].mxu1 }
0x6b66   :  { %v8381_v36 = vpop.xlane.xlu1 %8380 }
0x6b67   :  { %11326 = vrcp.f32 %v8381_v36 }
0x6b6a   :  { %v8598_v51 = vpop.permute.xlu1 %8597 }
0x6b6b   :  { %v8603_v7 = vsel %vm334_vm3, %v8598_v51, 0 }
0x6b71   :  { %v11327_v39 = vpop.eup %11326 }
0x6b72   :  { %v8383_v42 = vmul.f32 %v11327_v39, %v11325_v27 }
0x6b74   :  { %v8384_v8 = vpack.c.bf16 %v8383_v42, %v8383_v42 }
0x6b76   :  { %10987 = vmatmul.mubr.msk.bf16.vlgmr.msra.gmra.mrb[36].mxu1 %vm334_vm3, %v8384_v8 }
0x6b77   :  { %10997 = vmatpush3.bf16.xpose.msra.mxu1 %v8489_v14  ;;  %10998 = vmatprep.mubr.msk.bf16.mxu1 %vm11436_vm0, %v11435_v0 }
0x6b78   :  { %11008 = vmatprep.subr.bf16.mxu1 %v11435_v0 }
0x6b7e   :  { %10999 = vmatmul.mubr.msk.bf16.vlgmr.msra.gmra.mrb[40].mxu1 %vm334_vm3, %v12987_v28 }
0x6b7f   :  { %11009 = vmatpush3.bf16.xpose.msra.mxu1 %v8603_v7  ;;  %11010 = vmatprep.mubr.msk.bf16.mxu1 %vm11436_vm0, %v11435_v0 }
0x6b80   :  { %11020 = vmatprep.subr.bf16.mxu1 %v11435_v0 }
0x6b86   :  { %11011 = vmatmul.mubr.msk.bf16.vlgmr.msra.gmra.mrb[44].mxu1 %vm334_vm3, %v8596_v18 }
0x6b87   :  { %11021 = vmatpush3.bf16.msra.mxu1 %v12938_v12  ;;  %11022 = vmatprep.mubr.msk.bf16.mxu1 %vm11436_vm0, %v11435_v0 }
0x6b88   :  { %11032 = vmatprep.subr.bf16.mxu1 %v11435_v0 }
0x6c49   :  { %v8427_v44 = vpop.f32.mrb[36].mxu1 }
0x6c4a   :  { %v8433_v9 = vpack.c.bf16 %v8427_v44, %v8427_v44  ;;  %v10988_v31 = vpop.f32.mrb[37].mxu1 }
0x6c4b   :  { %v8430_v59 = vpop.f32.mrb[38].mxu1 }
0x6c4c   :  { %v10989_v53 = vpop.f32.mrb[39].mxu1  ;;  %10993 = vmatmul.mubr.msk.bf16.vlgmr.msra.gmra.mrb[28].mxu0 %vm334_vm3, %v8433_v9 }
0x6c4d   :  { %11004 = vmatprep.mubr.msk.bf16.mxu0 %vm11436_vm0, %v11435_v0 }
0x6c51   :  { %v8525_v12 = vpop.f32.mrb[40].mxu1 }
0x6c52   :  { %v8531_v60 = vmul.f32 0.35355338, %v8525_v12  ;;  %v11000_v61 = vpop.f32.mrb[41].mxu1 }
0x6c53   :  { %v8528_v41 = vpop.f32.mrb[42].mxu1 }
0x6c54   :  { %v11001_v58 = vpop.f32.mrb[43].mxu1  ;;  %v8532_v4 = vsel %vm334_vm3, %v8531_v60, -inf }
0x6c55   :  { %8533 = vmax.xlane.f32.xlu1 %v8532_v4 }
0x6c59   :  { %v8639_v26 = vpop.f32.mrb[44].mxu1 }
0x6c5a   :  { %v8645_v63 = vmul.f32 0.35355338, %v8639_v26  ;;  %v11012_v43 = vpop.f32.mrb[45].mxu1 }
0x6c5b   :  { %v8642_v45 = vpop.f32.mrb[46].mxu1 }
0x6c5c   :  { %v11013_v32 = vpop.f32.mrb[47].mxu1  ;;  %v8646_v13 = vsel %vm334_vm3, %v8645_v63, -inf }
0x6c5d   :  { %8647 = vmax.xlane.f32.xlu0 %v8646_v13 }
0x6ce2   :  { %v8534_v16 = vpop.xlane.xlu1 %8533 }
0x6ce3   :  { %v8535_v52 = vsub.f32 %v8531_v60, %v8534_v16 }
0x6ce5   :  { %v8536_v20 = vmul.f32 1.442695, %v8535_v52 }
0x6ce7   :  { %11328 = vpow2.f32 %v8536_v20 }
0x6cea   :  { %v8648_v46 = vpop.xlane.xlu0 %8647 }
0x6ceb   :  { %v8649_v22 = vsub.f32 %v8645_v63, %v8648_v46 }
0x6ced   :  { %v8650_v15 = vmul.f32 1.442695, %v8649_v22 }
0x6cef   :  { %11330 = vpow2.f32 %v8650_v15 }
0x6cf1   :  { %v11329_v47 = vpop.eup %11328 }
0x6cf2   :  { %v8538_v17 = vsel %vm334_vm3, %v11329_v47, 0.0 }
0x6cf3   :  { %8539 = vadd.xlane.f32.xlu0 %v8538_v17 }
0x6cf9   :  { %v11331_v37 = vpop.eup %11330 }
0x6cfa   :  { %v8652_v23 = vsel %vm334_vm3, %v11331_v37, 0.0 }
0x6cfb   :  { %8653 = vadd.xlane.f32.xlu1 %v8652_v23 }
0x6d09   :  { %8545 = vrot.lane.b32.xlu0 %v12996_v10, %s11438_s11  ;;  %s9419_s11 = sshll.u32 %s11449_s2, 4  ;;  %s9420_s11 = int_to_ptr.vmem [resolvable:$true] %s9419_s11 }
0x6d0a   :  { %p11407_p5 = scmp.lt.s32.totalorder %s9420_s11, %s9420_s11 }
0x6d0c   :  { %8658 = vrot.lane.b32.xlu1 %v12996_v10, %s11439_s12  ;;  %s11402_s12 = scalar_lea.vmem %s9420_s11, 256 }
0x6d0d   :  { %8793 = vrot.lane.b32.xlu0 %v12987_v28, %s11442_s15  ;;  %p11403_p4 = scmp.ne.s32.totalorder %s9420_s11, %s11402_s12  ;;  %p11408_p6 = scmp.lt.s32.totalorder %s11402_s12, %s11402_s12 }
0x6d0f   :  { %p11409_p7 = por %p11408_p6, %p11407_p5 }
0x6d10   :  { %8795 = vrot.lane.b32.xlu1 %v12996_v10, %s11442_s15 }
0x6d11   :  { %p11410_p8 = pnand %p11409_p7, %p11403_p4 }
0x6d1f   :  { %v8476_v19 = vpop.f32.mrb[28].mxu0 }
0x6d20   :  { %v13041_v40 = vadd.f32 %v8476_v19, %v13001_v6  ;;  %v10994_v21 = vpop.f32.mrb[29].mxu0 }
0x6d21   :  { %v8479_v34 = vpop.f32.mrb[30].mxu0 }
0x6d22   :  { %v10995_v55 = vpop.f32.mrb[31].mxu0 }
0x6d80   :  { %v8540_v25 = vpop.xlane.xlu0 %8539 }
0x6d81   :  { %11332 = vrcp.f32 %v8540_v25 }
0x6d84   :  { %v8546_v1 = vpop.permute.xlu0 %8545 }
0x6d85   :  { %v8551_v24 = vsel %vm399_vm4, %v8546_v1, 0 }
0x6d86   :  { %11003 = vmatpush3.bf16.msra.mxu0 %v8551_v24 }
0x6d87   :  { %11014 = vmatprep.subr.bf16.mxu0 %v11435_v0 }
0x6d88   :  { %v8654_v57 = vpop.xlane.xlu1 %8653  ;;  %v8794_v38 = vpop.permute.xlu0 %8793 }
0x6d89   :  { %11334 = vrcp.f32 %v8654_v57 }
0x6d8b   :  { %v11333_v3 = vpop.eup %11332 }
0x6d8c   :  { %v8542_v29 = vmul.f32 %v11333_v3, %v11329_v47  ;;  %v8659_v2 = vpop.permute.xlu1 %8658 }
0x6d8d   :  { %v8664_v27 = vsel %vm399_vm4, %v8659_v2, 0 }
0x6d8e   :  { %v8543_v33 = vpack.c.bf16 %v8542_v29, %v8542_v29 }
0x6d90   :  { %11005 = vmatmul.mubr.msk.bf16.vlgmr.msra.gmra.mrb[32].mxu0 %vm334_vm3, %v8543_v33  ;;  %v8796_v42 = vpop.permute.xlu1 %8795 }
0x6d91   :  { %11015 = vmatpush3.bf16.msra.mxu0 %v8664_v27  ;;  %11016 = vmatprep.mubr.msk.bf16.mxu0 %vm11436_vm0, %v11435_v0  ;;  %v8801_v7 = vsel %vm334_vm3, %v8796_v42, 0 }
0x6d92   :  { %11026 = vmatprep.subr.bf16.mxu0 %v11435_v0 }
0x6d93   :  { %v11335_v49 = vpop.eup %11334 }
0x6d94   :  { %v8656_v50 = vmul.f32 %v11335_v49, %v11331_v37 }
0x6d96   :  { %v8657_v6 = vpack.c.bf16 %v8656_v50, %v8656_v50 }
0x6d98   :  { %11017 = vmatmul.mubr.msk.bf16.vlgmr.msra.gmra.mrb[36].mxu0 %vm334_vm3, %v8657_v6  ;;  %v9720_v6 = vld [vmem:[#allocation7 + $0x490] ss:$0 sm:$0xff] }
0x6d99   :  { %11027 = vmatpush3.bf16.msra.mxu0 %v12934_v11  ;;  %11028 = vmatprep.mubr.msk.bf16.mxu0 %vm11436_vm0, %v11435_v0 }
0x6d9a   :  { %11038 = vmatprep.subr.bf16.mxu0 %v11435_v0 }
0x6e63   :  { %v8587_v48 = vpop.f32.mrb[32].mxu0 }
0x6e64   :  { %v8593_v5 = vpack.c.bf16 %v8587_v48, %v8587_v48  ;;  %v11006_v35 = vpop.f32.mrb[33].mxu0  ;;  %v9110_v48 = vadd.f32 %v9720_v6, %v13041_v40 }
0x6e65   :  { %v8590_v36 = vpop.f32.mrb[34].mxu0 }
0x6e66   :  { %v11007_v39 = vpop.f32.mrb[35].mxu0  ;;  %11029 = vmatmul.mubr.msk.bf16.vlgmr.msra.gmra.mrb[40].mxu0 %vm334_vm3, %v8593_v5  ;;  %v9112_v36 = vadd.f32 %v9110_v48, %v12884_v30 }
0x6e67   :  { %11040 = vmatprep.mubr.msk.bf16.mxu0 %vm11436_vm0, %v11435_v0 }
0x6e6b   :  { %v8700_v8 = vpop.f32.mrb[36].mxu0 }
0x6e6c   :  { %v8706_v14 = vpack.c.bf16 %v8700_v8, %v8700_v8  ;;  %v11018_v51 = vpop.f32.mrb[37].mxu0 }
0x6e6d   :  { %v8703_v11 = vpop.f32.mrb[38].mxu0 }
0x6e6e   :  { %v11019_v18 = vpop.f32.mrb[39].mxu0  ;;  %11023 = vmatmul.mubr.msk.bf16.vlgmr.msra.gmra.mrb[48].mxu1 %vm334_vm3, %v8706_v14 }
0x6e6f   :  { %11033 = vmatpush3.bf16.xpose.msra.mxu1 %v8801_v7  ;;  %11034 = vmatprep.mubr.msk.bf16.mxu1 %vm11436_vm0, %v11435_v0 }
0x6e70   :  { %11044 = vmatprep.subr.bf16.mxu1 %v11435_v0 }
0x6e76   :  { %11035 = vmatmul.mubr.msk.bf16.vlgmr.msra.gmra.mrb[52].mxu1 %vm334_vm3, %v8794_v38 }
0x6e77   :  { %11045 = vmatpush3.bf16.msra.mxu1 %v12975_v54  ;;  %11046 = vmatprep.mubr.msk.bf16.mxu1 %vm11436_vm0, %v11435_v0 }
0x6e78   :  { %11056 = vmatprep.subr.bf16.mxu1 %v11435_v0 }
0x6f39   :  { %v8787_v44 = vpop.f32.mrb[40].mxu0 }
0x6f3a   :  { %v11030_v9 = vpop.f32.mrb[41].mxu0 }
0x6f3b   :  { %v8790_v31 = vpop.f32.mrb[42].mxu0 }
0x6f3c   :  { %v11031_v59 = vpop.f32.mrb[43].mxu0 }
0x6f41   :  { %v8744_v53 = vpop.f32.mrb[48].mxu1 }
0x6f42   :  { %v13068_v12 = vadd.f32 %v8787_v44, %v8744_v53  ;;  %v11024_v60 = vpop.f32.mrb[49].mxu1 }
0x6f43   :  { %v8747_v61 = vpop.f32.mrb[50].mxu1 }
0x6f44   :  { %v11025_v41 = vpop.f32.mrb[51].mxu1 }
0x6f49   :  { %v8837_v58 = vpop.f32.mrb[52].mxu1 }
0x6f4a   :  { %v8843_v4 = vmul.f32 0.35355338, %v8837_v58  ;;  %v11036_v26 = vpop.f32.mrb[53].mxu1 }
0x6f4b   :  { %v8840_v63 = vpop.f32.mrb[54].mxu1 }
0x6f4c   :  { %v11037_v54 = vpop.f32.mrb[55].mxu1  ;;  %v8844_v43 = vsel %vm334_vm3, %v8843_v4, -inf }
0x6f4d   :  { %8845 = vmax.xlane.f32.xlu1 %v8844_v43 }
0x6f5e   :  { %8951 = vrot.lane.b32.xlu1 %v12996_v10, %s11445_s18 }
0x6f62   :  { %8949 = vrot.lane.b32.xlu1 %v12987_v28, %s11445_s18 }
0x6fda   :  { %v8846_v45 = vpop.xlane.xlu1 %8845 }
0x6fdb   :  { %v8847_v32 = vsub.f32 %v8843_v4, %v8846_v45 }
0x6fdd   :  { %v8848_v13 = vmul.f32 1.442695, %v8847_v32 }
0x6fde   :  { %v8952_v47 = vpop.permute.xlu1 %8951 }
0x6fdf   :  { %11336 = vpow2.f32 %v8848_v13  ;;  %v8957_v37 = vsel %vm334_vm3, %v8952_v47, 0 }
0x6fe2   :  { %v8950_v23 = vpop.permute.xlu1 %8949 }
0x6fe9   :  { %v11337_v16 = vpop.eup %11336 }
0x6fea   :  { %v8850_v52 = vsel %vm334_vm3, %v11337_v16, 0.0 }
0x6feb   :  { %8851 = vadd.xlane.f32.xlu0 %v8850_v52 }
0x7001   :  { %8856 = vrot.lane.b32.xlu0 %v12996_v10, %s11443_s16 }
0x7078   :  { %v8852_v20 = vpop.xlane.xlu0 %8851 }
0x7079   :  { %11338 = vrcp.f32 %v8852_v20 }
0x707c   :  { %v8857_v46 = vpop.permute.xlu0 %8856 }
0x707d   :  { %v8862_v22 = vsel %vm399_vm4, %v8857_v46, 0  ;;  %v9154_v46 = vld [vmem:[#allocation7 + $0x498] sm:$0xff] }
0x707e   :  { %11039 = vmatpush3.bf16.msra.mxu0 %v8862_v22  ;;  %v9155_v22 = vld [vmem:[#allocation7 + $0x4a0] sm:$0xff] }
0x707f   :  { %11050 = vmatprep.subr.bf16.mxu0 %v11435_v0 }
0x7083   :  { %v11339_v28 = vpop.eup %11338 }
0x7084   :  { %v8854_v15 = vmul.f32 %v11339_v28, %v11337_v16  ;;  %v9158_v28 = vpack.c.bf16 %v9155_v22, %v9154_v46 }
0x7086   :  { %v8855_v17 = vpack.c.bf16 %v8854_v15, %v8854_v15  ;;  %v9157_v15 = vld [vmem:[#allocation7 + $0x4b0] sm:$0xff] }
0x7088   :  { %11041 = vmatmul.mubr.msk.bf16.vlgmr.msra.gmra.mrb[44].mxu0 %vm334_vm3, %v8855_v17  ;;  %v9212_v17 = vld [vmem:[#allocation7 + $0x4c0] sm:$0xff] }
0x7089   :  { %11051 = vmatpush3.bf16.xpose.msra.mxu0 %v8957_v37  ;;  %11052 = vmatprep.mubr.msk.bf16.mxu0 %vm11436_vm0, %v11435_v0  ;;  %v9213_v37 = vld [vmem:[#allocation7 + $0x4c8] sm:$0xff] }
0x708a   :  { %11062 = vmatprep.subr.bf16.mxu0 %v11435_v0 }
0x7090   :  { %11053 = vmatmul.mubr.msk.bf16.vlgmr.msra.gmra.mrb[48].mxu0 %vm334_vm3, %v8950_v23  ;;  %v9214_v23 = vld [vmem:[#allocation7 + $0x4d0] sm:$0xff] }
0x7091   :  { %11063 = vmatpush3.bf16.msra.mxu0 %v13021_v62  ;;  %11064 = vmatprep.mubr.msk.bf16.mxu0 %vm11436_vm0, %v11435_v0 }
0x7092   :  { %11076 = vmatprep.subr.bf16.mxu0 %v11435_v0 }
0x715b   :  { %v8898_v19 = vpop.f32.mrb[44].mxu0 }
0x715c   :  { %v8904_v21 = vpack.c.bf16 %v8898_v19, %v8898_v19  ;;  %v11042_v34 = vpop.f32.mrb[45].mxu0  ;;  %v9220_v19 = vpack.c.bf16 %v9213_v37, %v9212_v17 }
0x715d   :  { %v8901_v55 = vpop.f32.mrb[46].mxu0 }
0x715e   :  { %v11043_v25 = vpop.f32.mrb[47].mxu0  ;;  %11047 = vmatmul.mubr.msk.bf16.vlgmr.msra.gmra.mrb[56].mxu1 %vm334_vm3, %v8904_v21  ;;  %v9215_v21 = vld [vmem:[#allocation7 + $0x4d8] sm:$0xff] }
0x715f   :  { %11058 = vmatprep.mubr.msk.bf16.mxu1 %vm11436_vm0, %v11435_v0  ;;  %v9221_v34 = vpack.c.bf16 %v9215_v21, %v9214_v23  ;;  %v9727_v21 = vld [vmem:[#allocation7 + $0x528] ss:$0 sm:$0xff] }
0x7163   :  { %v8993_v1 = vpop.f32.mrb[48].mxu0 }
0x7164   :  { %v8999_v24 = vmul.f32 0.35355338, %v8993_v1  ;;  %v11054_v57 = vpop.f32.mrb[49].mxu0 }
0x7165   :  { %v8996_v3 = vpop.f32.mrb[50].mxu0 }
0x7166   :  { %v11055_v62 = vpop.f32.mrb[51].mxu0  ;;  %v9000_v29 = vsel %vm334_vm3, %v8999_v24, -inf }
0x7167   :  { %9001 = vmax.xlane.f32.xlu0 %v9000_v29 }
0x717d   :  { %9012 = vrot.lane.b32.xlu0 %v12996_v10, %s11444_s17  ;;  %v9114_v10 = vsel %vm279_vm2, %v9112_v36, 0.0 }
0x71f4   :  { %v9002_v2 = vpop.xlane.xlu0 %9001 }
0x71f5   :  { %v9003_v33 = vsub.f32 %v8999_v24, %v9002_v2  ;;  %v9721_v2 = vld [vmem:[#allocation7 + $0x518] ss:$0 sm:$0xff] }
0x71f7   :  { %v9004_v27 = vmul.f32 1.442695, %v9003_v33 }
0x71f8   :  { %v9013_v49 = vpop.permute.xlu0 %9012 }
0x71f9   :  { %11340 = vpow2.f32 %v9004_v27  ;;  %v9018_v50 = vsel %vm399_vm4, %v9013_v49, 0 }
0x71fa   :  { %11057 = vmatpush3.bf16.msra.mxu1 %v9018_v50  ;;  %v9722_v50 = vld [vmem:[#allocation7 + $0x520] ss:$0 sm:$0xff] }
0x71fb   :  { %11068 = vmatprep.subr.bf16.mxu1 %v11435_v0 }
0x7203   :  { %v11341_v5 = vpop.eup %11340 }
0x7204   :  { %v9006_v35 = vsel %vm334_vm3, %v11341_v5, 0.0 }
0x7205   :  { %9007 = vadd.xlane.f32.xlu1 %v9006_v35 }
0x7209   :  { %9115 = vadd.xlane.f32.xlu1 %v9114_v10  ;;  %v9217_v10 = vld [vmem:[#allocation7 + $0x4e8] sm:$0xff] }
0x7231   :  { %v8942_v39 = vpop.f32.mrb[56].mxu1 }
0x7232   :  { %v8948_v42 = vadd.f32 %v8942_v39, %v13068_v12  ;;  %v11048_v8 = vpop.f32.mrb[57].mxu1 }
0x7233   :  { %v8945_v14 = vpop.f32.mrb[58].mxu1  ;;  %v9219_v8 = vld [vmem:[#allocation7 + $0x4f8] sm:$0xff] }
0x7234   :  { %v11049_v51 = vpop.f32.mrb[59].mxu1 }
0x7235   :  { %v9723_v51 = vld [vmem:[#allocation7 + $0x4b8] ss:$0 sm:$0xff] }
0x7292   :  { %v9008_v11 = vpop.xlane.xlu1 %9007 }
0x7293   :  { %11342 = vrcp.f32 %v9008_v11 }
0x7296   :  { %v9116_v59 = vpop.xlane.xlu1 %9115 }
0x7297   :  { %v9120_v53 = vmul.f32 0.03125, %v9116_v59  ;;  %v9725_v59 = vld [vmem:[#allocation7 + $0x500] ss:$0 sm:$0xff] }
0x7299   :  { %v9122_v58 = vsub.f32 %v9112_v36, %v9120_v53  ;;  %v9216_v36 = vld [vmem:[#allocation7 + $0x4e0] sm:$0xff] }
0x729a   :  { %v9222_v39 = vpack.c.bf16 %v9217_v10, %v9216_v36 }
0x729b   :  { %v9124_v43 = vmul.f32 %v9122_v58, %v9122_v58 }
0x729d   :  { %v11343_v7 = vpop.eup %11342  ;;  %v9126_v45 = vsel %vm279_vm2, %v9124_v43, 0.0 }
0x729e   :  { %v9010_v18 = vmul.f32 %v11343_v7, %v11341_v5 }
0x72a0   :  { %v9011_v40 = vpack.c.bf16 %v9010_v18, %v9010_v18 }
0x72a2   :  { %11059 = vmatmul.mubr.msk.bf16.vlgmr.msra.gmra.mrb[60].mxu1 %vm334_vm3, %v9011_v40 }
0x72a3   :  { %11072 = vmatprep.mubr.msk.bf16.mxu1 %vm11436_vm0, %v11435_v0  ;;  %11069 = vmatpush3.bf16.msra.mxu1 %v9158_v28 }
0x72a4   :  { %11070 = vmatprep.subr.bf16.mxu1 %v11435_v0 }
0x7375   :  { %v9054_v30 = vpop.f32.mrb[60].mxu1 }
0x7376   :  { %v9060_v38 = vpack.c.bf16 %v9054_v30, %v9054_v30  ;;  %v11060_v44 = vpop.f32.mrb[61].mxu1 }
0x7377   :  { %v9057_v9 = vpop.f32.mrb[62].mxu1 }
0x7378   :  { %v11061_v31 = vpop.f32.mrb[63].mxu1  ;;  %11065 = vmatmul.mubr.msk.bf16.vlgmr.msra.gmra.mrb[52].mxu0 %vm334_vm3, %v9060_v38 }
0x7379   :  { %11084 = vmatprep.mubr.msk.bf16.mxu0 %vm11436_vm0, %v11435_v0  ;;  %11077 = vmatpush3.bf16.msra.mxu0 %v9220_v19 }
0x737a   :  { %11078 = vmatprep.subr.bf16.mxu0 %v11435_v0 }
0x737d   :  { %11079 = vmatpush3.bf16.msra.mxu0 %v9221_v34 }
0x737e   :  { %11080 = vmatprep.subr.bf16.mxu0 %v11435_v0 }
0x7381   :  { %11081 = vmatpush3.bf16.msra.mxu0 %v9222_v39  ;;  %v9356_v39 = vld [vmem:[#allocation7 + $0x548] sm:$0xff] }
0x7382   :  { %11082 = vmatprep.subr.bf16.mxu0 %v11435_v0 }
0x744b   :  { %v9098_v12 = vpop.f32.mrb[52].mxu0 }
0x744c   :  { %v9104_v60 = vadd.f32 %v9098_v12, %v8948_v42  ;;  %v11066_v61 = vpop.f32.mrb[53].mxu0  ;;  %v9218_v42 = vld [vmem:[#allocation7 + $0x4f0] sm:$0xff] }
0x744d   :  { %v9101_v41 = vpop.f32.mrb[54].mxu0  ;;  %v9223_v14 = vpack.c.bf16 %v9219_v8, %v9218_v42  ;;  %v9357_v42 = vld [vmem:[#allocation7 + $0x550] sm:$0xff] }
0x744e   :  { %v9111_v4 = vadd.f32 %v9720_v6, %v9104_v60  ;;  %v11067_v26 = vpop.f32.mrb[55].mxu0  ;;  %v9360_v8 = vpack.c.bf16 %v9357_v42, %v9356_v39 }
0x744f   :  { %11083 = vmatpush3.bf16.msra.mxu0 %v9223_v14  ;;  %v9358_v14 = vld [vmem:[#allocation7 + $0x558] sm:$0xff] }
0x7450   :  { %v9113_v63 = vadd.f32 %v9111_v4, %v12886_v56  ;;  %v9156_v56 = vld [vmem:[#allocation7 + $0x4a8] sm:$0xff] }
0x7451   :  { %v9159_v47 = vpack.c.bf16 %v9157_v15, %v9156_v56 }
0x7452   :  { %v9117_v54 = vsel %vm279_vm2, %v9113_v63, 0.0 }
0x7453   :  { %9118 = vadd.xlane.f32.xlu1 %v9117_v54  ;;  %11071 = vmatpush3.bf16.msra.mxu1 %v9159_v47 }
0x7454   :  { %11088 = vmatprep.subr.bf16.mxu1 %v11435_v0 }
0x7457   :  { %9127 = vadd.xlane.f32.xlu1 %v9126_v45 }
0x74e0   :  { %v9119_v32 = vpop.xlane.xlu1 %9118 }
0x74e1   :  { %v9121_v13 = vmul.f32 0.03125, %v9119_v32 }
0x74e3   :  { %v9123_v16 = vsub.f32 %v9113_v63, %v9121_v13 }
0x74e4   :  { %v9128_v55 = vpop.xlane.xlu1 %9127 }
0x74e5   :  { %v9125_v52 = vmul.f32 %v9123_v16, %v9123_v16  ;;  %v9132_v25 = vmul.f32 0.03125, %v9128_v55  ;;  %v9728_v55 = vld [vmem:[#allocation7 + $0x530] ss:$0 sm:$0xff] }
0x74e7   :  { %v9129_v20 = vsel %vm279_vm2, %v9125_v52, 0.0  ;;  %v9134_v1 = vadd.f32 1e-05, %v9132_v25 }
0x74e8   :  { %9130 = vadd.xlane.f32.xlu1 %v9129_v20 }
0x74e9   :  { %11344 = vrsqrt.f32 %v9134_v1 }
0x74f3   :  { %v11345_v62 = vpop.eup %11344 }
0x74f4   :  { %v9138_v29 = vmul.f32 %v11345_v62, %v9122_v58 }
0x74f6   :  { %v9145_v27 = vmul.f32 %v9721_v2, %v9138_v29 }
0x74f8   :  { %v9152_v48 = vadd.f32 %v9722_v50, %v9145_v27 }
0x7575   :  { %v9131_v24 = vpop.xlane.xlu1 %9130 }
0x7576   :  { %v9133_v57 = vmul.f32 0.03125, %v9131_v24 }
0x7578   :  { %v9135_v3 = vadd.f32 1e-05, %v9133_v57 }
0x757a   :  { %11346 = vrsqrt.f32 %v9135_v3 }
0x7584   :  { %v11347_v33 = vpop.eup %11346 }
0x7585   :  { %v9139_v49 = vmul.f32 %v11347_v33, %v9123_v16 }
0x7587   :  { %v9146_v6 = vmul.f32 %v9721_v2, %v9139_v49 }
0x7589   :  { %v9153_v5 = vadd.f32 %v9722_v50, %v9146_v6 }
0x758b   :  { %v9160_v35 = vpack.c.bf16 %v9153_v5, %v9152_v48 }
0x758d   :  { %11073 = vmatmul.mubr.msk.bf16.vlgmr.msra.gmra.mrb[64].mxu1 %vm279_vm2, %v9160_v35 }
0x758e   :  { %11092 = vmatprep.mubr.msk.bf16.mxu1 %vm11436_vm0, %v11435_v0  ;;  %11089 = vmatpush3.bf16.msra.mxu1 %v9360_v8 }
0x758f   :  { %11090 = vmatprep.subr.bf16.mxu1 %v11435_v0 }
0x7660   :  { %v9203_v11 = vpop.f32.mrb[64].mxu1 }
0x7661   :  { %v9204_v7 = vadd.f32 %v9723_v51, %v9203_v11  ;;  %v11074_v18 = vpop.f32.mrb[65].mxu1 }
0x7662   :  { %v9206_v40 = vpop.f32.mrb[66].mxu1 }
0x7663   :  { %v9207_v30 = vadd.f32 %v9723_v51, %v9206_v40  ;;  %v11075_v38 = vpop.f32.mrb[67].mxu1  ;;  %v9210_v44 = vmax.f32 %v9204_v7, 0.0  ;;  %v9359_v51 = vld [vmem:[#allocation7 + $0x560] sm:$0xff] }
0x7664   :  { %v9361_v11 = vpack.c.bf16 %v9359_v51, %v9358_v14 }
0x7665   :  { %v9211_v9 = vmax.f32 %v9207_v30, 0.0 }
0x7666   :  { %11091 = vmatpush3.bf16.msra.mxu1 %v9361_v11 }
0x7667   :  { %v9224_v31 = vpack.c.bf16 %v9211_v9, %v9210_v44 }
0x7669   :  { %11085 = vmatmul.mubr.msk.bf16.vlgmr.msra.gmra.mrb[56].mxu0 %vm1718_vm5, %v9224_v31 }
0x773c   :  { %v9267_v53 = vpop.f32.mrb[56].mxu0 }
0x773d   :  { %v9268_v12 = vadd.f32 %v9725_v59, %v9267_v53  ;;  %v11086_v60 = vpop.f32.mrb[57].mxu0 }
0x773e   :  { %v9270_v61 = vpop.f32.mrb[58].mxu0 }
0x773f   :  { %v9274_v41 = vadd.f32 %v9268_v12, %v9152_v48  ;;  %v9271_v58 = vadd.f32 %v9725_v59, %v9270_v61  ;;  %v11087_v4 = vpop.f32.mrb[59].mxu0  ;;  %v9729_v59 = vld [vmem:[#allocation7 + $0x538] ss:$0 sm:$0xff]  ;;  %v9730_v61 = vld [vmem:[#allocation7 + $0x540] ss:$0 sm:$0xff] }
0x7741   :  { %v9275_v26 = vadd.f32 %v9271_v58, %v9153_v5  ;;  %v9276_v63 = vsel %vm279_vm2, %v9274_v41, 0.0 }
0x7742   :  { %9277 = vadd.xlane.f32.xlu0 %v9276_v63 }
0x7743   :  { %v9279_v54 = vsel %vm279_vm2, %v9275_v26, 0.0 }
0x7744   :  { %9280 = vadd.xlane.f32.xlu1 %v9279_v54 }
0x77cf   :  { %v9278_v43 = vpop.xlane.xlu0 %9277 }
0x77d0   :  { %v9282_v45 = vmul.f32 0.03125, %v9278_v43 }
0x77d1   :  { %v9281_v32 = vpop.xlane.xlu1 %9280 }
0x77d2   :  { %v9284_v13 = vsub.f32 %v9274_v41, %v9282_v45  ;;  %v9283_v16 = vmul.f32 0.03125, %v9281_v32 }
0x77d4   :  { %v9285_v52 = vsub.f32 %v9275_v26, %v9283_v16  ;;  %v9286_v20 = vmul.f32 %v9284_v13, %v9284_v13  ;;  %v9731_v26 = vld [vmem:[#allocation7 + $0x568] ss:$0 sm:$0xff] }
0x77d6   :  { %v9288_v46 = vsel %vm279_vm2, %v9286_v20, 0.0  ;;  %v9287_v22 = vmul.f32 %v9285_v52, %v9285_v52 }
0x77d7   :  { %9289 = vadd.xlane.f32.xlu1 %v9288_v46 }
0x77d8   :  { %v9291_v28 = vsel %vm279_vm2, %v9287_v22, 0.0 }
0x77db   :  { %9292 = vadd.xlane.f32.xlu1 %v9291_v28 }
0x7864   :  { %v9290_v56 = vpop.xlane.xlu1 %9289 }
0x7865   :  { %v9294_v15 = vmul.f32 0.03125, %v9290_v56 }
0x7867   :  { %v9296_v47 = vadd.f32 1e-05, %v9294_v15 }
0x7868   :  { %v9293_v17 = vpop.xlane.xlu1 %9292 }
0x7869   :  { %11348 = vrsqrt.f32 %v9296_v47  ;;  %v9295_v37 = vmul.f32 0.03125, %v9293_v17 }
0x786b   :  { %v9297_v23 = vadd.f32 1e-05, %v9295_v37 }
0x786d   :  { %11350 = vrsqrt.f32 %v9297_v23 }
0x7873   :  { %v11349_v19 = vpop.eup %11348 }
0x7874   :  { %v9300_v34 = vmul.f32 %v11349_v19, %v9284_v13 }
0x7876   :  { %v9307_v25 = vmul.f32 %v9727_v21, %v9300_v34 }
0x7877   :  { %v11351_v1 = vpop.eup %11350 }
0x7878   :  { %v9314_v24 = vadd.f32 %v9728_v55, %v9307_v25  ;;  %v9301_v57 = vmul.f32 %v11351_v1, %v9285_v52 }
0x787a   :  { %v9316_v3 = vsel %vm279_vm2, %v9314_v24, 0.0  ;;  %v9308_v62 = vmul.f32 %v9727_v21, %v9301_v57 }
0x787b   :  { %9317 = vadd.xlane.f32.xlu1 %v9316_v3 }
0x787c   :  { %v9315_v29 = vadd.f32 %v9728_v55, %v9308_v62 }
0x787e   :  { %v9319_v2 = vsel %vm279_vm2, %v9315_v29, 0.0 }
0x787f   :  { %9320 = vadd.xlane.f32.xlu1 %v9319_v2 }
0x7908   :  { %v9318_v33 = vpop.xlane.xlu1 %9317 }
0x7909   :  { %v9322_v27 = vmul.f32 0.03125, %v9318_v33 }
0x790b   :  { %v9324_v49 = vsub.f32 %v9314_v24, %v9322_v27 }
0x790c   :  { %v9321_v50 = vpop.xlane.xlu1 %9320 }
0x790d   :  { %v9323_v6 = vmul.f32 0.03125, %v9321_v50  ;;  %v9326_v48 = vmul.f32 %v9324_v49, %v9324_v49 }
0x790f   :  { %v9325_v5 = vsub.f32 %v9315_v29, %v9323_v6  ;;  %v9328_v35 = vsel %vm279_vm2, %v9326_v48, 0.0 }
0x7910   :  { %9329 = vadd.xlane.f32.xlu1 %v9328_v35 }
0x7911   :  { %v9327_v36 = vmul.f32 %v9325_v5, %v9325_v5 }
0x7913   :  { %v9331_v10 = vsel %vm279_vm2, %v9327_v36, 0.0 }
0x7914   :  { %9332 = vadd.xlane.f32.xlu1 %v9331_v10 }
0x799d   :  { %v9330_v7 = vpop.xlane.xlu1 %9329 }
0x799e   :  { %v9334_v18 = vmul.f32 0.03125, %v9330_v7 }
0x79a0   :  { %v9336_v40 = vadd.f32 1e-05, %v9334_v18 }
0x79a1   :  { %v9333_v30 = vpop.xlane.xlu1 %9332 }
0x79a2   :  { %11352 = vrsqrt.f32 %v9336_v40  ;;  %v9335_v38 = vmul.f32 0.03125, %v9333_v30 }
0x79a4   :  { %v9337_v44 = vadd.f32 1e-05, %v9335_v38 }
0x79a6   :  { %11354 = vrsqrt.f32 %v9337_v44 }
0x79ac   :  { %v11353_v9 = vpop.eup %11352 }
0x79ad   :  { %v9340_v31 = vmul.f32 %v11353_v9, %v9324_v49 }
0x79af   :  { %v9347_v12 = vmul.f32 %v9729_v59, %v9340_v31 }
0x79b0   :  { %v11355_v53 = vpop.eup %11354 }
0x79b1   :  { %v9341_v60 = vmul.f32 %v11355_v53, %v9325_v5  ;;  %v9354_v41 = vadd.f32 %v9730_v61, %v9347_v12 }
0x79b3   :  { %v9348_v0 = vmul.f32 %v9729_v59, %v9341_v60 }
0x79b5   :  { %v9355_v58 = vadd.f32 %v9730_v61, %v9348_v0 }
0x79b7   :  { %v9362_v4 = vpack.c.bf16 %v9355_v58, %v9354_v41 }
0x79b9   :  { %11093 = vmatmul.mubr.msk.bf16.vlgmr.msra.gmra.mrb[68].mxu1 %vm279_vm2, %v9362_v4 }
0x7a8c   :  { %v9405_v63 = vpop.f32.mrb[68].mxu1 }
0x7a8d   :  { %v9406_v54 = vadd.f32 %v9731_v26, %v9405_v63  ;;  %v11094_v43 = vpop.f32.mrb[69].mxu1 }
0x7a8e   :  { %v9408_v45 = vpop.f32.mrb[70].mxu1 }
0x7a8f   :  { %9412 = vst [vmem:[#allocation10] sm:$0xff] %v9406_v54  ;;  %v9409_v32 = vadd.f32 %v9731_v26, %v9408_v45  ;;  %v11095_v13 = vpop.f32.mrb[71].mxu1 }
0x7a91   :  { %9413 = vst [vmem:[#allocation10 + $0x8] sm:$0xff] %v9409_v32 }
0x7a92   :  { %11413 = shalt.err (!%p11410_p8)
}
0x7a93   :  { %s11414_s15 = scalar_lea.hbm %s13149_s3, 256 }
0x7a94   :  { %p11415_p9 = scmp.ne.s32.totalorder %s13149_s3, %s11414_s15  ;;  %p11418_p10 = scmp.lt.u32.totalorder %s11414_s15, %s13149_s3 }
0x7a96   :  { %p11420_p11 = pnand %p11418_p10, %p11415_p9 }
0x7a98   :  { %11423 = shalt.err (!%p11420_p11)
}
0x7a99   :  { %9425 = dma.vmem_to_hbm [thread:$0]  %s9420_s11, 256, %s13149_s3, [#allocation9], %s11433_s30, %s11433_s30, %s11434_s4  }
0x7a9a   :  { %11428 = dma.done.wait [#allocation9], 256  }
0x7a9b   :  { %11429 = vsyncadd [#allocation9], 4294967040 }
0x7a9c   :  { %9429 = vsyncpa [#allocation8], 1 }
0x7a9d   :  { %9430 = vsyncpa [#allocation9], 1 }

</bundles_post_ra>
